<compile_context>
chip_gen: v7x
topology: tpu7x:2x2x1
jax: 0.10.0
libtpu: 0.0.40
codegen_flags: <defaults>
</compile_context>

<pallas_src>
import functools

import jax
import jax.numpy as jnp
from jax.experimental import pallas as pl
from jax.experimental.pallas import tpu as pltpu

LN_EPS = 1e-5        # torch.nn.LayerNorm default
SOFTMAX_EPS = 1e-12  # zero in-degree guard (scatter-sum over an empty segment -> 0)
LANES = 128


def _round_up(n, m):
    return ((n + m - 1) // m) * m


def _ln_pad(x, g, b, c_real):
    # LayerNorm over the first c_real channels of a lane-padded [*, Cp] tile.
    # Padding lanes of x are exactly zero, so full-lane sums equal real-channel
    # sums; gamma/beta padding lanes are zero, so output padding lanes stay zero.
    s = jnp.sum(x, axis=-1, keepdims=True)
    mu = s / c_real
    ss = jnp.sum(x * x, axis=-1, keepdims=True)
    var = jnp.maximum(ss / c_real - mu * mu, 0.0)
    return (x - mu) * jax.lax.rsqrt(var + LN_EPS) * g + b


# ------------------------------ Pallas kernels ------------------------------

def linear_ln_kernel(x_ref, w_ref, b_ref, g_ref, beta_ref, o_ref, *, c_real):
    # y = LayerNorm(x @ W + b)   (node / edge encoder), bf16 matmul / f32 accumulate
    y = jnp.dot(x_ref[...].astype(jnp.bfloat16), w_ref[...],
                preferred_element_type=jnp.float32) + b_ref[...]
    o_ref[...] = _ln_pad(y, g_ref[...], beta_ref[...], c_real)


def ln_relu_kernel(x_ref, g_ref, b_ref, o_ref, *, c_real):
    # block-final act(norm(x))
    o_ref[...] = jnp.maximum(_ln_pad(x_ref[...], g_ref[...], b_ref[...], c_real), 0.0)


def sage_layer_kernel(dst_ref, t_ref, xn_ref, xi_ref, xj_ref, ea_ref,
                      w1a_ref, w1b_ref, w1c_ref, b1_ref, w2_ref, b2_ref, wr_ref,
                      gn_ref, bn_ref, ge_ref, be_ref,
                      xout_ref, eout_ref,
                      m_ref, d_ref, s_ref,
                      *, res_plus, c_real):
    k = pl.program_id(0)
    nk = pl.num_programs(0)
    n_pad = d_ref.shape[0]
    te = xi_ref.shape[0]

    @pl.when(k == 0)
    def _init():
        m_ref[...] = jnp.full_like(m_ref, -1e30)
        d_ref[...] = jnp.zeros_like(d_ref)
        s_ref[...] = jnp.zeros_like(s_ref)

    xi = xi_ref[...]
    xj = xj_ref[...]
    ea_raw = ea_ref[...]

    if res_plus:
        # DeepGCNLayerV2 'res+' prologue fused in: h = relu(LN(x)), edge LN.
        # LayerNorm is row-wise, so LN(gather(x)) == gather(LN(x)).
        gn = gn_ref[...]
        bn = bn_ref[...]
        hi = jnp.maximum(_ln_pad(xi, gn, bn, c_real), 0.0)
        hj = jnp.maximum(_ln_pad(xj, gn, bn, c_real), 0.0)
        ean = _ln_pad(ea_raw, ge_ref[...], be_ref[...], c_real)
    else:
        hi, hj, ean = xi, xj, ea_raw

    # per-edge message MLP: msg = relu([x_i | x_j | e] @ W1 + b1) @ W2 + b2
    # (W1 pre-split into three row chunks -> no in-kernel concat)
    h = (jnp.dot(hi.astype(jnp.bfloat16), w1a_ref[...], preferred_element_type=jnp.float32)
         + jnp.dot(hj.astype(jnp.bfloat16), w1b_ref[...], preferred_element_type=jnp.float32)
         + jnp.dot(ean.astype(jnp.bfloat16), w1c_ref[...], preferred_element_type=jnp.float32)
         + b1_ref[...])
    h = jnp.maximum(h, 0.0)
    msg = jnp.dot(h.astype(jnp.bfloat16), w2_ref[...],
                  preferred_element_type=jnp.float32) + b2_ref[...]

    # edge-feature output (residual add fused for 'res+', raw message for the bare conv)
    if res_plus:
        eout_ref[...] = ea_raw + msg
    else:
        eout_ref[...] = msg

    # scatter_softmax + scatter_sum over edges sharing a target node, accumulated
    # online over edge tiles.  One-hot built on the fly; padded edges carry a
    # sentinel dst >= n_pad so their one-hot column is all zeros.
    logits = msg * t_ref[0]
    onehot = (jax.lax.broadcasted_iota(jnp.int32, (n_pad, te), 0)
              == dst_ref[...]).astype(jnp.bfloat16)               # [N_pad, TE]
    m_old = m_ref[...]
    m_new = jnp.maximum(m_old, jnp.max(logits, axis=0, keepdims=True))
    rescale = jnp.exp(m_old - m_new)
    w = jnp.exp(logits - m_new)
    d_ref[...] = d_ref[...] * rescale + jnp.dot(
        onehot, w.astype(jnp.bfloat16), preferred_element_type=jnp.float32)
    s_ref[...] = s_ref[...] * rescale + jnp.dot(
        onehot, (msg * w).astype(jnp.bfloat16), preferred_element_type=jnp.float32)
    m_ref[...] = m_new

    @pl.when(k == nk - 1)
    def _finalize():
        xn = xn_ref[...]
        # zero in-degree nodes: denom == 0 -> agg == 0 (matches scatter-sum semantics)
        agg = s_ref[...] / jnp.maximum(d_ref[...], SOFTMAX_EPS)
        if res_plus:
            root = jnp.maximum(_ln_pad(xn, gn_ref[...], bn_ref[...], c_real), 0.0)
            base = xn
        else:
            root = xn
            base = 0.0
        xout_ref[...] = base + agg + jnp.dot(
            root.astype(jnp.bfloat16), wr_ref[...], preferred_element_type=jnp.float32)


# ----------------------------- kernel wrappers ------------------------------

def linear_layernorm(x, p, c_real):
    rows, din_p = x.shape
    cp = p['w'].shape[1]
    tr = LANES if rows % LANES == 0 else rows
    return pl.pallas_call(
        functools.partial(linear_ln_kernel, c_real=c_real),
        out_shape=jax.ShapeDtypeStruct((rows, cp), jnp.float32),
        grid=(rows // tr,),
        in_specs=[pl.BlockSpec((tr, din_p), lambda i: (i, 0)),
                  pl.BlockSpec((din_p, cp), lambda i: (0, 0)),
                  pl.BlockSpec((1, cp), lambda i: (0, 0)),
                  pl.BlockSpec((1, cp), lambda i: (0, 0)),
                  pl.BlockSpec((1, cp), lambda i: (0, 0))],
        out_specs=pl.BlockSpec((tr, cp), lambda i: (i, 0)),
        compiler_params=pltpu.CompilerParams(dimension_semantics=("parallel",)),
    )(x, p['w'], p['b'], p['gamma'], p['beta'])


def layernorm_relu(x, p, c_real):
    rows, cp = x.shape
    tr = LANES if rows % LANES == 0 else rows
    return pl.pallas_call(
        functools.partial(ln_relu_kernel, c_real=c_real),
        out_shape=jax.ShapeDtypeStruct((rows, cp), jnp.float32),
        grid=(rows // tr,),
        in_specs=[pl.BlockSpec((tr, cp), lambda i: (i, 0)),
                  pl.BlockSpec((1, cp), lambda i: (0, 0)),
                  pl.BlockSpec((1, cp), lambda i: (0, 0))],
        out_specs=pl.BlockSpec((tr, cp), lambda i: (i, 0)),
        compiler_params=pltpu.CompilerParams(dimension_semantics=("parallel",)),
    )(x, p['gamma'], p['beta'])


def sage_layer(oh_dst, x_nodes, xi, xj, ea, conv, norm, edge_norm,
               *, res_plus, c_real, edge_tile=128):
    n_pad, cp = x_nodes.shape
    e_pad = xi.shape[0]
    hp = conv['w1a'].shape[1]
    te = edge_tile if e_pad % edge_tile == 0 else e_pad
    grid = (e_pad // te,)

    def resident(shape):
        return pl.BlockSpec(shape, lambda k: (0, 0))

    edge_blk = pl.BlockSpec((te, cp), lambda k: (k, 0))

    return pl.pallas_call(
        functools.partial(sage_layer_kernel, res_plus=res_plus, c_real=c_real),
        out_shape=(jax.ShapeDtypeStruct((n_pad, cp), jnp.float32),
                   jax.ShapeDtypeStruct((e_pad, cp), jnp.float32)),
        grid=grid,
        in_specs=[pl.BlockSpec((1, te), lambda k: (0, k)),              # dst ids (one-hot)
                  pl.BlockSpec(memory_space=pltpu.MemorySpace.SMEM),    # temperature t
                  resident((n_pad, cp)),                                # node features
                  edge_blk, edge_blk, edge_blk,                         # x_i, x_j, edge_attr
                  resident((cp, hp)), resident((cp, hp)), resident((cp, hp)),
                  resident((1, hp)),
                  resident((hp, cp)), resident((1, cp)),
                  resident((cp, cp)),
                  resident((1, cp)), resident((1, cp)),
                  resident((1, cp)), resident((1, cp))],
        out_specs=(resident((n_pad, cp)), edge_blk),
        scratch_shapes=[pltpu.VMEM((1, cp), jnp.float32),      # running max
                        pltpu.VMEM((n_pad, cp), jnp.float32),  # softmax denom
                        pltpu.VMEM((n_pad, cp), jnp.float32)], # weighted sum
        compiler_params=pltpu.CompilerParams(dimension_semantics=("arbitrary",)),
    )(oh_dst, conv['t'], x_nodes, xi, xj, ea,
      conv['w1a'], conv['w1b'], conv['w1c'], conv['b1'],
      conv['w2'], conv['b2'], conv['wr'],
      norm['gamma'], norm['beta'], edge_norm['gamma'], edge_norm['beta'])


# ------------------------------- parameters --------------------------------

def _xavier(key, fan_in, fan_out):
    std = (2.0 / (fan_in + fan_out)) ** 0.5
    return std * jax.random.normal(key, (fan_in, fan_out), jnp.float32)


def _pad2(a, rows, cols):
    return jnp.zeros((rows, cols), jnp.float32).at[:a.shape[0], :a.shape[1]].set(a)


def _pad_gamma(c_real, cols):
    return jnp.zeros((1, cols), jnp.float32).at[0, :c_real].set(1.0)


def init_params(key, in_channel, mid_channel, in_edge_channel, num_layers, num_blocks):
    C = mid_channel
    Cp = _round_up(C, LANES)
    Hp = _round_up(2 * C, LANES)
    din_p = _round_up(in_channel, LANES)
    dine_p = _round_up(in_edge_channel, LANES)

    n_keys = 2 + num_blocks * num_layers * 3
    keys = iter(jax.random.split(key, n_keys))

    def enc(k, din, din_pad):
        return {'w': _pad2(_xavier(k, din, C), din_pad, Cp).astype(jnp.bfloat16),
                'b': jnp.zeros((1, Cp), jnp.float32),
                'gamma': _pad_gamma(C, Cp),
                'beta': jnp.zeros((1, Cp), jnp.float32)}

    params = {'node_enc': enc(next(keys), in_channel, din_p),
              'edge_enc': enc(next(keys), in_edge_channel, dine_p),
              'blocks': []}

    for _ in range(num_blocks):
        layers = []
        for _ in range(num_layers):
            w1 = _xavier(next(keys), 3 * C, 2 * C)       # lin_l[0]: Linear(2C + C, 2C)
            conv = {
                'w1a': _pad2(w1[:C], Cp, Hp).astype(jnp.bfloat16),
                'w1b': _pad2(w1[C:2 * C], Cp, Hp).astype(jnp.bfloat16),
                'w1c': _pad2(w1[2 * C:], Cp, Hp).astype(jnp.bfloat16),
                'b1': jnp.zeros((1, Hp), jnp.float32),
                'w2': _pad2(_xavier(next(keys), 2 * C, C), Hp, Cp).astype(jnp.bfloat16),
                'b2': jnp.zeros((1, Cp), jnp.float32),
                'wr': _pad2(_xavier(next(keys), C, C), Cp, Cp).astype(jnp.bfloat16),
                't': jnp.ones((1,), jnp.float32),        # learnable temperature, init 1.0
            }
            layers.append({'conv': conv,
                           'norm': {'gamma': _pad_gamma(C, Cp),
                                    'beta': jnp.zeros((1, Cp), jnp.float32)},
                           'edge_norm': {'gamma': _pad_gamma(C, Cp),
                                         'beta': jnp.zeros((1, Cp), jnp.float32)}})
        params['blocks'].append(layers)
    return params


# --------------------------------- forward ---------------------------------

def deeper_gcn_forward(params, x, edge_index, edge_attr, *, mid_channel, edge_tile=128):
    N, din = x.shape
    E = edge_index.shape[1]
    dine = edge_attr.shape[1]
    C = mid_channel
    Cp = _round_up(C, LANES)
    n_pad = _round_up(N, 8)
    e_pad = _round_up(E, edge_tile)
    din_p = _round_up(din, LANES)
    dine_p = _round_up(dine, LANES)

    # lane / row zero-padding: padded channel lanes stay exactly zero end-to-end
    x_p = jnp.zeros((n_pad, din_p), jnp.float32).at[:N, :din].set(x)
    ea_p = jnp.zeros((e_pad, dine_p), jnp.float32).at[:E, :dine].set(edge_attr)

    src = edge_index[0].astype(jnp.int32)   # x_j (source)
    dst = edge_index[1].astype(jnp.int32)   # x_i (aggregation target)
    pad_e = e_pad - E
    zeros_pad = jnp.zeros((pad_e,), jnp.int32)
    g_src = jnp.concatenate([src, zeros_pad])
    g_dst = jnp.concatenate([dst, zeros_pad])
    # padded edges point at a non-existent node -> zero one-hot column -> no contribution
    oh_dst = jnp.concatenate([dst, jnp.full((pad_e,), n_pad, jnp.int32)]).reshape(1, e_pad)

    x_p = linear_layernorm(x_p, params['node_enc'], C)    # node_encoder
    ea_p = linear_layernorm(ea_p, params['edge_enc'], C)  # edge_encoder

    outs = []
    for layers in params['blocks']:
        for li, lp in enumerate(layers):
            xi = jnp.take(x_p, g_dst, axis=0)             # target-node features per edge
            xj = jnp.take(x_p, g_src, axis=0)             # source-node features per edge
            x_p, ea_p = sage_layer(oh_dst, x_p, xi, xj, ea_p,
                                   lp['conv'], lp['norm'], lp['edge_norm'],
                                   res_plus=(li > 0), c_real=C, edge_tile=edge_tile)
        # gcn_block[0].act(gcn_block[0].norm(x))
        x_p = layernorm_relu(x_p, layers[0]['norm'], C)
        outs.append(x_p[:N, :C])

    return jnp.concatenate(outs, axis=1)


# ----------------------------------- main -----------------------------------

if __name__ == "__main__":
    key = jax.random.PRNGKey(0)
    N, E = 16, 32
    in_channel, mid_channel, in_edge_channel = 8, 32, 6
    num_layers, num_blocks = 3, 2

    k_x, k_e, k_a, k_p = jax.random.split(key, 4)
    x = jax.random.normal(k_x, (N, in_channel), jnp.float32)
    edge_index = jax.random.randint(k_e, (2, E), 0, N, dtype=jnp.int32)
    edge_attr = jax.random.normal(k_a, (E, in_edge_channel), jnp.float32)

    params = init_params(k_p, in_channel, mid_channel, in_edge_channel,
                         num_layers, num_blocks)

    fwd = jax.jit(functools.partial(deeper_gcn_forward, mid_channel=mid_channel))
    out = jax.block_until_ready(fwd(params, x, edge_index, edge_attr))

    assert out.shape == (N, mid_channel * num_blocks), out.shape
    assert bool(jnp.all(jnp.isfinite(out)))
    print("KERNEL_OK")
</pallas_src>

<mosaic_0001>
module attributes {stable_mosaic.version = 11 : i64} {
  func.func @linear_ln_kernel(%arg0: i32, %arg1: memref<16x128xf32, #tpu.memory_space<vmem>>, %arg2: memref<128x128xbf16, #tpu.memory_space<vmem>>, %arg3: memref<1x128xf32, #tpu.memory_space<vmem>>, %arg4: memref<1x128xf32, #tpu.memory_space<vmem>>, %arg5: memref<1x128xf32, #tpu.memory_space<vmem>>, %arg6: memref<16x128xf32, #tpu.memory_space<vmem>>) attributes {dimension_semantics = [#tpu.dimension_semantics<parallel>], iteration_bounds = array<i64: 1>, scalar_prefetch = 0 : i64, scratch_operands = 0 : i64, tpu.core_type = #tpu.core_type<tc>, window_params = [{transform_indices = @transform_0, window_bounds = array<i64: 16, 128>}, {pipeline_mode = #tpu.pipeline_mode<synchronous>, transform_indices = @transform_1, window_bounds = array<i64: 128, 128>}, {pipeline_mode = #tpu.pipeline_mode<synchronous>, transform_indices = @transform_2, window_bounds = array<i64: 1, 128>}, {pipeline_mode = #tpu.pipeline_mode<synchronous>, transform_indices = @transform_3, window_bounds = array<i64: 1, 128>}, {pipeline_mode = #tpu.pipeline_mode<synchronous>, transform_indices = @transform_4, window_bounds = array<i64: 1, 128>}, {transform_indices = @transform_5, window_bounds = array<i64: 16, 128>}]} {
    %c0 = arith.constant 0 : index
    %c0_0 = arith.constant 0 : index
    %0 = vector.load %arg1[%c0, %c0_0] : memref<16x128xf32, #tpu.memory_space<vmem>>, vector<16x128xf32>
    %1 = arith.truncf %0 : vector<16x128xf32> to vector<16x128xbf16>
    %c0_1 = arith.constant 0 : index
    %c0_2 = arith.constant 0 : index
    %2 = vector.load %arg2[%c0_1, %c0_2] : memref<128x128xbf16, #tpu.memory_space<vmem>>, vector<128x128xbf16>
    %cst = arith.constant dense<0.000000e+00> : vector<16x128xf32>
    %3 = tpu.matmul %1, %2, %cst {dimension_numbers = #tpu.dot_dimension_numbers<[1], [0], [0], [1], [0, 0, 1, 1], [], []>} : vector<16x128xbf16>, vector<128x128xbf16>, vector<16x128xf32> -> vector<16x128xf32>
    %c0_3 = arith.constant 0 : index
    %c0_4 = arith.constant 0 : index
    %4 = vector.load %arg3[%c0_3, %c0_4] : memref<1x128xf32, #tpu.memory_space<vmem>>, vector<1x128xf32>
    %5 = vector.broadcast %4 : vector<1x128xf32> to vector<16x128xf32>
    %6 = arith.addf %3, %5 : vector<16x128xf32>
    %c0_5 = arith.constant 0 : index
    %c0_6 = arith.constant 0 : index
    %7 = vector.load %arg4[%c0_5, %c0_6] : memref<1x128xf32, #tpu.memory_space<vmem>>, vector<1x128xf32>
    %c0_7 = arith.constant 0 : index
    %c0_8 = arith.constant 0 : index
    %8 = vector.load %arg5[%c0_7, %c0_8] : memref<1x128xf32, #tpu.memory_space<vmem>>, vector<1x128xf32>
    %cst_9 = arith.constant dense<0.000000e+00> : vector<16xf32>
    %9 = vector.multi_reduction <add>, %6, %cst_9 [1] : vector<16x128xf32> to vector<16xf32>
    %10 = vector.shape_cast %9 : vector<16xf32> to vector<16x1xf32>
    %cst_10 = arith.constant 3.200000e+01 : f32
    %11 = vector.broadcast %cst_10 : f32 to vector<16x1xf32>
    %12 = arith.divf %10, %11 : vector<16x1xf32>
    %13 = arith.mulf %6, %6 : vector<16x128xf32>
    %cst_11 = arith.constant dense<0.000000e+00> : vector<16xf32>
    %14 = vector.multi_reduction <add>, %13, %cst_11 [1] : vector<16x128xf32> to vector<16xf32>
    %15 = vector.shape_cast %14 : vector<16xf32> to vector<16x1xf32>
    %cst_12 = arith.constant 3.200000e+01 : f32
    %16 = vector.broadcast %cst_12 : f32 to vector<16x1xf32>
    %17 = arith.divf %15, %16 : vector<16x1xf32>
    %18 = arith.mulf %12, %12 : vector<16x1xf32>
    %19 = arith.subf %17, %18 : vector<16x1xf32>
    %cst_13 = arith.constant 0.000000e+00 : f32
    %20 = vector.broadcast %cst_13 : f32 to vector<16x1xf32>
    %21 = arith.maximumf %19, %20 : vector<16x1xf32>
    %22 = vector.broadcast %12 : vector<16x1xf32> to vector<16x128xf32>
    %23 = arith.subf %6, %22 : vector<16x128xf32>
    %cst_14 = arith.constant 9.99999974E-6 : f32
    %24 = vector.broadcast %cst_14 : f32 to vector<16x1xf32>
    %25 = arith.addf %21, %24 : vector<16x1xf32>
    %26 = math.rsqrt %25 : vector<16x1xf32>
    %27 = vector.broadcast %26 : vector<16x1xf32> to vector<16x128xf32>
    %28 = arith.mulf %23, %27 : vector<16x128xf32>
    %29 = vector.broadcast %7 : vector<1x128xf32> to vector<16x128xf32>
    %30 = arith.mulf %28, %29 : vector<16x128xf32>
    %31 = vector.broadcast %8 : vector<1x128xf32> to vector<16x128xf32>
    %32 = arith.addf %30, %31 : vector<16x128xf32>
    %c0_15 = arith.constant 0 : index
    %c0_16 = arith.constant 0 : index
    %33 = vector.load %arg6[%c0_15, %c0_16] : memref<16x128xf32, #tpu.memory_space<vmem>>, vector<16x128xf32>
    tpu.vector_store %arg6[%c0_15, %c0_16], %32 {strides = array<i32>} : memref<16x128xf32, #tpu.memory_space<vmem>>, vector<16x128xf32>,
    return
  }
  func.func @transform_0(%arg0: i32) -> (i32, i32) {
    %c0_i32 = arith.constant 0 : i32
    %c0_i32_0 = arith.constant 0 : i32
    return %arg0, %c0_i32 : i32, i32
  }
  func.func @transform_1(%arg0: i32) -> (i32, i32) {
    %c0_i32 = arith.constant 0 : i32
    %c0_i32_0 = arith.constant 0 : i32
    %c0_i32_1 = arith.constant 0 : i32
    return %c0_i32, %c0_i32_0 : i32, i32
  }
  func.func @transform_2(%arg0: i32) -> (i32, i32) {
    %c0_i32 = arith.constant 0 : i32
    %c0_i32_0 = arith.constant 0 : i32
    %c0_i32_1 = arith.constant 0 : i32
    return %c0_i32, %c0_i32_0 : i32, i32
  }
  func.func @transform_3(%arg0: i32) -> (i32, i32) {
    %c0_i32 = arith.constant 0 : i32
    %c0_i32_0 = arith.constant 0 : i32
    %c0_i32_1 = arith.constant 0 : i32
    return %c0_i32, %c0_i32_0 : i32, i32
  }
  func.func @transform_4(%arg0: i32) -> (i32, i32) {
    %c0_i32 = arith.constant 0 : i32
    %c0_i32_0 = arith.constant 0 : i32
    %c0_i32_1 = arith.constant 0 : i32
    return %c0_i32, %c0_i32_0 : i32, i32
  }
  func.func @transform_5(%arg0: i32) -> (i32, i32) {
    %c0_i32 = arith.constant 0 : i32
    %c0_i32_0 = arith.constant 0 : i32
    return %arg0, %c0_i32 : i32, i32
  }
}

module attributes {stable_mosaic.version = 11 : i64} {
  func.func @sage_layer_kernel(%arg0: i32, %arg1: memref<1x128xi32, #tpu.memory_space<vmem>>, %arg2: memref<1xf32, #tpu.memory_space<smem>>, %arg3: memref<16x128xf32, #tpu.memory_space<vmem>>, %arg4: memref<128x128xf32, #tpu.memory_space<vmem>>, %arg5: memref<128x128xf32, #tpu.memory_space<vmem>>, %arg6: memref<128x128xf32, #tpu.memory_space<vmem>>, %arg7: memref<128x128xbf16, #tpu.memory_space<vmem>>, %arg8: memref<128x128xbf16, #tpu.memory_space<vmem>>, %arg9: memref<128x128xbf16, #tpu.memory_space<vmem>>, %arg10: memref<1x128xf32, #tpu.memory_space<vmem>>, %arg11: memref<128x128xbf16, #tpu.memory_space<vmem>>, %arg12: memref<1x128xf32, #tpu.memory_space<vmem>>, %arg13: memref<128x128xbf16, #tpu.memory_space<vmem>>, %arg14: memref<1x128xf32, #tpu.memory_space<vmem>>, %arg15: memref<1x128xf32, #tpu.memory_space<vmem>>, %arg16: memref<1x128xf32, #tpu.memory_space<vmem>>, %arg17: memref<1x128xf32, #tpu.memory_space<vmem>>, %arg18: memref<16x128xf32, #tpu.memory_space<vmem>>, %arg19: memref<128x128xf32, #tpu.memory_space<vmem>>, %arg20: memref<1x128xf32, #tpu.memory_space<vmem>>, %arg21: memref<16x128xf32, #tpu.memory_space<vmem>>, %arg22: memref<16x128xf32, #tpu.memory_space<vmem>>) attributes {dimension_semantics = [#tpu.dimension_semantics<arbitrary>], iteration_bounds = array<i64: 1>, scalar_prefetch = 0 : i64, scratch_operands = 3 : i64, tpu.core_type = #tpu.core_type<tc>, window_params = [{transform_indices = @transform_0, window_bounds = array<i64: 1, 128>}, {transform_indices = @transform_1, window_bounds = array<i64: 1>}, {pipeline_mode = #tpu.pipeline_mode<synchronous>, transform_indices = @transform_2, window_bounds = array<i64: 16, 128>}, {transform_indices = @transform_3, window_bounds = array<i64: 128, 128>}, {transform_indices = @transform_4, window_bounds = array<i64: 128, 128>}, {transform_indices = @transform_5, window_bounds = array<i64: 128, 128>}, {pipeline_mode = #tpu.pipeline_mode<synchronous>, transform_indices = @transform_6, window_bounds = array<i64: 128, 128>}, {pipeline_mode = #tpu.pipeline_mode<synchronous>, transform_indices = @transform_7, window_bounds = array<i64: 128, 128>}, {pipeline_mode = #tpu.pipeline_mode<synchronous>, transform_indices = @transform_8, window_bounds = array<i64: 128, 128>}, {pipeline_mode = #tpu.pipeline_mode<synchronous>, transform_indices = @transform_9, window_bounds = array<i64: 1, 128>}, {pipeline_mode = #tpu.pipeline_mode<synchronous>, transform_indices = @transform_10, window_bounds = array<i64: 128, 128>}, {pipeline_mode = #tpu.pipeline_mode<synchronous>, transform_indices = @transform_11, window_bounds = array<i64: 1, 128>}, {pipeline_mode = #tpu.pipeline_mode<synchronous>, transform_indices = @transform_12, window_bounds = array<i64: 128, 128>}, {pipeline_mode = #tpu.pipeline_mode<synchronous>, transform_indices = @transform_13, window_bounds = array<i64: 1, 128>}, {pipeline_mode = #tpu.pipeline_mode<synchronous>, transform_indices = @transform_14, window_bounds = array<i64: 1, 128>}, {pipeline_mode = #tpu.pipeline_mode<synchronous>, transform_indices = @transform_15, window_bounds = array<i64: 1, 128>}, {pipeline_mode = #tpu.pipeline_mode<synchronous>, transform_indices = @transform_16, window_bounds = array<i64: 1, 128>}, {pipeline_mode = #tpu.pipeline_mode<synchronous>, transform_indices = @transform_17, window_bounds = array<i64: 16, 128>}, {transform_indices = @transform_18, window_bounds = array<i64: 128, 128>}]} {
    %c0_i32 = arith.constant 0 : i32
    %0 = arith.cmpi eq, %arg0, %c0_i32 : i32
    %1 = arith.extui %0 : i1 to i32
    %c0_i32_0 = arith.constant 0 : i32
    %2 = arith.cmpi ne, %1, %c0_i32_0 : i32
    scf.if %2 {
      %cst_72 = arith.constant -1.000000e+30 : f32
      %148 = vector.broadcast %cst_72 : f32 to vector<1x128xf32>
      %c0_73 = arith.constant 0 : index
      %c0_74 = arith.constant 0 : index
      %149 = vector.load %arg20[%c0_73, %c0_74] : memref<1x128xf32, #tpu.memory_space<vmem>>, vector<1x128xf32>
      tpu.vector_store %arg20[%c0_73, %c0_74], %148 {strides = array<i32>} : memref<1x128xf32, #tpu.memory_space<vmem>>, vector<1x128xf32>,
      %cst_75 = arith.constant 0.000000e+00 : f32
      %150 = vector.broadcast %cst_75 : f32 to vector<16x128xf32>
      %c0_76 = arith.constant 0 : index
      %c0_77 = arith.constant 0 : index
      %151 = vector.load %arg21[%c0_76, %c0_77] : memref<16x128xf32, #tpu.memory_space<vmem>>, vector<16x128xf32>
      tpu.vector_store %arg21[%c0_76, %c0_77], %150 {strides = array<i32>} : memref<16x128xf32, #tpu.memory_space<vmem>>, vector<16x128xf32>,
      %cst_78 = arith.constant 0.000000e+00 : f32
      %152 = vector.broadcast %cst_78 : f32 to vector<16x128xf32>
      %c0_79 = arith.constant 0 : index
      %c0_80 = arith.constant 0 : index
      %153 = vector.load %arg22[%c0_79, %c0_80] : memref<16x128xf32, #tpu.memory_space<vmem>>, vector<16x128xf32>
      tpu.vector_store %arg22[%c0_79, %c0_80], %152 {strides = array<i32>} : memref<16x128xf32, #tpu.memory_space<vmem>>, vector<16x128xf32>,
    } else {
    }
    %c0 = arith.constant 0 : index
    %c0_1 = arith.constant 0 : index
    %3 = vector.load %arg4[%c0, %c0_1] : memref<128x128xf32, #tpu.memory_space<vmem>>, vector<128x128xf32>
    %c0_2 = arith.constant 0 : index
    %c0_3 = arith.constant 0 : index
    %4 = vector.load %arg5[%c0_2, %c0_3] : memref<128x128xf32, #tpu.memory_space<vmem>>, vector<128x128xf32>
    %c0_4 = arith.constant 0 : index
    %c0_5 = arith.constant 0 : index
    %5 = vector.load %arg6[%c0_4, %c0_5] : memref<128x128xf32, #tpu.memory_space<vmem>>, vector<128x128xf32>
    %c0_6 = arith.constant 0 : index
    %c0_7 = arith.constant 0 : index
    %6 = vector.load %arg14[%c0_6, %c0_7] : memref<1x128xf32, #tpu.memory_space<vmem>>, vector<1x128xf32>
    %c0_8 = arith.constant 0 : index
    %c0_9 = arith.constant 0 : index
    %7 = vector.load %arg15[%c0_8, %c0_9] : memref<1x128xf32, #tpu.memory_space<vmem>>, vector<1x128xf32>
    %cst = arith.constant dense<0.000000e+00> : vector<128xf32>
    %8 = vector.multi_reduction <add>, %3, %cst [1] : vector<128x128xf32> to vector<128xf32>
    %9 = vector.shape_cast %8 : vector<128xf32> to vector<128x1xf32>
    %cst_10 = arith.constant 3.200000e+01 : f32
    %10 = vector.broadcast %cst_10 : f32 to vector<128x1xf32>
    %11 = arith.divf %9, %10 : vector<128x1xf32>
    %12 = arith.mulf %3, %3 : vector<128x128xf32>
    %cst_11 = arith.constant dense<0.000000e+00> : vector<128xf32>
    %13 = vector.multi_reduction <add>, %12, %cst_11 [1] : vector<128x128xf32> to vector<128xf32>
    %14 = vector.shape_cast %13 : vector<128xf32> to vector<128x1xf32>
    %cst_12 = arith.constant 3.200000e+01 : f32
    %15 = vector.broadcast %cst_12 : f32 to vector<128x1xf32>
    %16 = arith.divf %14, %15 : vector<128x1xf32>
    %17 = arith.mulf %11, %11 : vector<128x1xf32>
    %18 = arith.subf %16, %17 : vector<128x1xf32>
    %cst_13 = arith.constant 0.000000e+00 : f32
    %19 = vector.broadcast %cst_13 : f32 to vector<128x1xf32>
    %20 = arith.maximumf %18, %19 : vector<128x1xf32>
    %21 = vector.broadcast %11 : vector<128x1xf32> to vector<128x128xf32>
    %22 = arith.subf %3, %21 : vector<128x128xf32>
    %cst_14 = arith.constant 9.99999974E-6 : f32
    %23 = vector.broadcast %cst_14 : f32 to vector<128x1xf32>
    %24 = arith.addf %20, %23 : vector<128x1xf32>
    %25 = math.rsqrt %24 : vector<128x1xf32>
    %26 = vector.broadcast %25 : vector<128x1xf32> to vector<128x128xf32>
    %27 = arith.mulf %22, %26 : vector<128x128xf32>
    %28 = vector.broadcast %6 : vector<1x128xf32> to vector<128x128xf32>
    %29 = arith.mulf %27, %28 : vector<128x128xf32>
    %30 = vector.broadcast %7 : vector<1x128xf32> to vector<128x128xf32>
    %31 = arith.addf %29, %30 : vector<128x128xf32>
    %cst_15 = arith.constant 0.000000e+00 : f32
    %32 = vector.broadcast %cst_15 : f32 to vector<128x128xf32>
    %33 = arith.maximumf %31, %32 : vector<128x128xf32>
    %cst_16 = arith.constant dense<0.000000e+00> : vector<128xf32>
    %34 = vector.multi_reduction <add>, %4, %cst_16 [1] : vector<128x128xf32> to vector<128xf32>
    %35 = vector.shape_cast %34 : vector<128xf32> to vector<128x1xf32>
    %cst_17 = arith.constant 3.200000e+01 : f32
    %36 = vector.broadcast %cst_17 : f32 to vector<128x1xf32>
    %37 = arith.divf %35, %36 : vector<128x1xf32>
    %38 = arith.mulf %4, %4 : vector<128x128xf32>
    %cst_18 = arith.constant dense<0.000000e+00> : vector<128xf32>
    %39 = vector.multi_reduction <add>, %38, %cst_18 [1] : vector<128x128xf32> to vector<128xf32>
    %40 = vector.shape_cast %39 : vector<128xf32> to vector<128x1xf32>
    %cst_19 = arith.constant 3.200000e+01 : f32
    %41 = vector.broadcast %cst_19 : f32 to vector<128x1xf32>
    %42 = arith.divf %40, %41 : vector<128x1xf32>
    %43 = arith.mulf %37, %37 : vector<128x1xf32>
    %44 = arith.subf %42, %43 : vector<128x1xf32>
    %cst_20 = arith.constant 0.000000e+00 : f32
    %45 = vector.broadcast %cst_20 : f32 to vector<128x1xf32>
    %46 = arith.maximumf %44, %45 : vector<128x1xf32>
    %47 = vector.broadcast %37 : vector<128x1xf32> to vector<128x128xf32>
    %48 = arith.subf %4, %47 : vector<128x128xf32>
    %cst_21 = arith.constant 9.99999974E-6 : f32
    %49 = vector.broadcast %cst_21 : f32 to vector<128x1xf32>
    %50 = arith.addf %46, %49 : vector<128x1xf32>
    %51 = math.rsqrt %50 : vector<128x1xf32>
    %52 = vector.broadcast %51 : vector<128x1xf32> to vector<128x128xf32>
    %53 = arith.mulf %48, %52 : vector<128x128xf32>
    %54 = vector.broadcast %6 : vector<1x128xf32> to vector<128x128xf32>
    %55 = arith.mulf %53, %54 : vector<128x128xf32>
    %56 = vector.broadcast %7 : vector<1x128xf32> to vector<128x128xf32>
    %57 = arith.addf %55, %56 : vector<128x128xf32>
    %cst_22 = arith.constant 0.000000e+00 : f32
    %58 = vector.broadcast %cst_22 : f32 to vector<128x128xf32>
    %59 = arith.maximumf %57, %58 : vector<128x128xf32>
    %c0_23 = arith.constant 0 : index
    %c0_24 = arith.constant 0 : index
    %60 = vector.load %arg16[%c0_23, %c0_24] : memref<1x128xf32, #tpu.memory_space<vmem>>, vector<1x128xf32>
    %c0_25 = arith.constant 0 : index
    %c0_26 = arith.constant 0 : index
    %61 = vector.load %arg17[%c0_25, %c0_26] : memref<1x128xf32, #tpu.memory_space<vmem>>, vector<1x128xf32>
    %cst_27 = arith.constant dense<0.000000e+00> : vector<128xf32>
    %62 = vector.multi_reduction <add>, %5, %cst_27 [1] : vector<128x128xf32> to vector<128xf32>
    %63 = vector.shape_cast %62 : vector<128xf32> to vector<128x1xf32>
    %cst_28 = arith.constant 3.200000e+01 : f32
    %64 = vector.broadcast %cst_28 : f32 to vector<128x1xf32>
    %65 = arith.divf %63, %64 : vector<128x1xf32>
    %66 = arith.mulf %5, %5 : vector<128x128xf32>
    %cst_29 = arith.constant dense<0.000000e+00> : vector<128xf32>
    %67 = vector.multi_reduction <add>, %66, %cst_29 [1] : vector<128x128xf32> to vector<128xf32>
    %68 = vector.shape_cast %67 : vector<128xf32> to vector<128x1xf32>
    %cst_30 = arith.constant 3.200000e+01 : f32
    %69 = vector.broadcast %cst_30 : f32 to vector<128x1xf32>
    %70 = arith.divf %68, %69 : vector<128x1xf32>
    %71 = arith.mulf %65, %65 : vector<128x1xf32>
    %72 = arith.subf %70, %71 : vector<128x1xf32>
    %cst_31 = arith.constant 0.000000e+00 : f32
    %73 = vector.broadcast %cst_31 : f32 to vector<128x1xf32>
    %74 = arith.maximumf %72, %73 : vector<128x1xf32>
    %75 = vector.broadcast %65 : vector<128x1xf32> to vector<128x128xf32>
    %76 = arith.subf %5, %75 : vector<128x128xf32>
    %cst_32 = arith.constant 9.99999974E-6 : f32
    %77 = vector.broadcast %cst_32 : f32 to vector<128x1xf32>
    %78 = arith.addf %74, %77 : vector<128x1xf32>
    %79 = math.rsqrt %78 : vector<128x1xf32>
    %80 = vector.broadcast %79 : vector<128x1xf32> to vector<128x128xf32>
    %81 = arith.mulf %76, %80 : vector<128x128xf32>
    %82 = vector.broadcast %60 : vector<1x128xf32> to vector<128x128xf32>
    %83 = arith.mulf %81, %82 : vector<128x128xf32>
    %84 = vector.broadcast %61 : vector<1x128xf32> to vector<128x128xf32>
    %85 = arith.addf %83, %84 : vector<128x128xf32>
    %86 = arith.truncf %33 : vector<128x128xf32> to vector<128x128xbf16>
    %c0_33 = arith.constant 0 : index
    %c0_34 = arith.constant 0 : index
    %87 = vector.load %arg7[%c0_33, %c0_34] : memref<128x128xbf16, #tpu.memory_space<vmem>>, vector<128x128xbf16>
    %cst_35 = arith.constant dense<0.000000e+00> : vector<128x128xf32>
    %88 = tpu.matmul %86, %87, %cst_35 {dimension_numbers = #tpu.dot_dimension_numbers<[1], [0], [0], [1], [0, 0, 1, 1], [], []>} : vector<128x128xbf16>, vector<128x128xbf16>, vector<128x128xf32> -> vector<128x128xf32>
    %89 = arith.truncf %59 : vector<128x128xf32> to vector<128x128xbf16>
    %c0_36 = arith.constant 0 : index
    %c0_37 = arith.constant 0 : index
    %90 = vector.load %arg8[%c0_36, %c0_37] : memref<128x128xbf16, #tpu.memory_space<vmem>>, vector<128x128xbf16>
    %cst_38 = arith.constant dense<0.000000e+00> : vector<128x128xf32>
    %91 = tpu.matmul %89, %90, %cst_38 {dimension_numbers = #tpu.dot_dimension_numbers<[1], [0], [0], [1], [0, 0, 1, 1], [], []>} : vector<128x128xbf16>, vector<128x128xbf16>, vector<128x128xf32> -> vector<128x128xf32>
    %92 = arith.addf %88, %91 : vector<128x128xf32>
    %93 = arith.truncf %85 : vector<128x128xf32> to vector<128x128xbf16>
    %c0_39 = arith.constant 0 : index
    %c0_40 = arith.constant 0 : index
    %94 = vector.load %arg9[%c0_39, %c0_40] : memref<128x128xbf16, #tpu.memory_space<vmem>>, vector<128x128xbf16>
    %cst_41 = arith.constant dense<0.000000e+00> : vector<128x128xf32>
    %95 = tpu.matmul %93, %94, %cst_41 {dimension_numbers = #tpu.dot_dimension_numbers<[1], [0], [0], [1], [0, 0, 1, 1], [], []>} : vector<128x128xbf16>, vector<128x128xbf16>, vector<128x128xf32> -> vector<128x128xf32>
    %96 = arith.addf %92, %95 : vector<128x128xf32>
    %c0_42 = arith.constant 0 : index
    %c0_43 = arith.constant 0 : index
    %97 = vector.load %arg10[%c0_42, %c0_43] : memref<1x128xf32, #tpu.memory_space<vmem>>, vector<1x128xf32>
    %98 = vector.broadcast %97 : vector<1x128xf32> to vector<128x128xf32>
    %99 = arith.addf %96, %98 : vector<128x128xf32>
    %cst_44 = arith.constant 0.000000e+00 : f32
    %100 = vector.broadcast %cst_44 : f32 to vector<128x128xf32>
    %101 = arith.maximumf %99, %100 : vector<128x128xf32>
    %102 = arith.truncf %101 : vector<128x128xf32> to vector<128x128xbf16>
    %c0_45 = arith.constant 0 : index
    %c0_46 = arith.constant 0 : index
    %103 = vector.load %arg11[%c0_45, %c0_46] : memref<128x128xbf16, #tpu.memory_space<vmem>>, vector<128x128xbf16>
    %cst_47 = arith.constant dense<0.000000e+00> : vector<128x128xf32>
    %104 = tpu.matmul %102, %103, %cst_47 {dimension_numbers = #tpu.dot_dimension_numbers<[1], [0], [0], [1], [0, 0, 1, 1], [], []>} : vector<128x128xbf16>, vector<128x128xbf16>, vector<128x128xf32> -> vector<128x128xf32>
    %c0_48 = arith.constant 0 : index
    %c0_49 = arith.constant 0 : index
    %105 = vector.load %arg12[%c0_48, %c0_49] : memref<1x128xf32, #tpu.memory_space<vmem>>, vector<1x128xf32>
    %106 = vector.broadcast %105 : vector<1x128xf32> to vector<128x128xf32>
    %107 = arith.addf %104, %106 : vector<128x128xf32>
    %108 = arith.addf %5, %107 : vector<128x128xf32>
    %c0_50 = arith.constant 0 : index
    %c0_51 = arith.constant 0 : index
    %109 = vector.load %arg19[%c0_50, %c0_51] : memref<128x128xf32, #tpu.memory_space<vmem>>, vector<128x128xf32>
    tpu.vector_store %arg19[%c0_50, %c0_51], %108 {strides = array<i32>} : memref<128x128xf32, #tpu.memory_space<vmem>>, vector<128x128xf32>,
    %c0_52 = arith.constant 0 : index
    %110 = memref.load %arg2[%c0_52] : memref<1xf32, #tpu.memory_space<smem>>
    %111 = vector.broadcast %110 : f32 to vector<128x128xf32>
    %112 = arith.mulf %107, %111 : vector<128x128xf32>
    %113 = tpu.iota {dimensions = array<i32: 0>} : vector<16x128xi32>
    %c0_53 = arith.constant 0 : index
    %c0_54 = arith.constant 0 : index
    %114 = vector.load %arg1[%c0_53, %c0_54] : memref<1x128xi32, #tpu.memory_space<vmem>>, vector<1x128xi32>
    %115 = vector.broadcast %114 : vector<1x128xi32> to vector<16x128xi32>
    %116 = arith.cmpi eq, %113, %115 : vector<16x128xi32>
    %117 = arith.extui %116 : vector<16x128xi1> to vector<16x128xi32>
    %118 = arith.sitofp %117 : vector<16x128xi32> to vector<16x128xf32>
    %119 = arith.truncf %118 : vector<16x128xf32> to vector<16x128xbf16>
    %c0_55 = arith.constant 0 : index
    %c0_56 = arith.constant 0 : index
    %120 = vector.load %arg20[%c0_55, %c0_56] : memref<1x128xf32, #tpu.memory_space<vmem>>, vector<1x128xf32>
    %cst_57 = arith.constant dense<0xFF800000> : vector<128xf32>
    %121 = vector.multi_reduction <maximumf>, %112, %cst_57 [0] : vector<128x128xf32> to vector<128xf32>
    %122 = vector.shape_cast %121 : vector<128xf32> to vector<1x128xf32>
    %123 = arith.maximumf %120, %122 : vector<1x128xf32>
    %124 = arith.subf %120, %123 : vector<1x128xf32>
    %125 = math.exp %124 : vector<1x128xf32>
    %126 = vector.broadcast %123 : vector<1x128xf32> to vector<128x128xf32>
    %127 = arith.subf %112, %126 : vector<128x128xf32>
    %128 = math.exp %127 : vector<128x128xf32>
    %c0_58 = arith.constant 0 : index
    %c0_59 = arith.constant 0 : index
    %129 = vector.load %arg21[%c0_58, %c0_59] : memref<16x128xf32, #tpu.memory_space<vmem>>, vector<16x128xf32>
    %130 = vector.broadcast %125 : vector<1x128xf32> to vector<16x128xf32>
    %131 = arith.mulf %129, %130 : vector<16x128xf32>
    %132 = arith.truncf %128 : vector<128x128xf32> to vector<128x128xbf16>
    %cst_60 = arith.constant dense<0.000000e+00> : vector<16x128xf32>
    %133 = tpu.matmul %119, %132, %cst_60 {dimension_numbers = #tpu.dot_dimension_numbers<[1], [0], [0], [1], [0, 0, 1, 1], [], []>} : vector<16x128xbf16>, vector<128x128xbf16>, vector<16x128xf32> -> vector<16x128xf32>
    %134 = arith.addf %131, %133 : vector<16x128xf32>
    %c0_61 = arith.constant 0 : index
    %c0_62 = arith.constant 0 : index
    %135 = vector.load %arg21[%c0_61, %c0_62] : memref<16x128xf32, #tpu.memory_space<vmem>>, vector<16x128xf32>
    tpu.vector_store %arg21[%c0_61, %c0_62], %134 {strides = array<i32>} : memref<16x128xf32, #tpu.memory_space<vmem>>, vector<16x128xf32>,
    %c0_63 = arith.constant 0 : index
    %c0_64 = arith.constant 0 : index
    %136 = vector.load %arg22[%c0_63, %c0_64] : memref<16x128xf32, #tpu.memory_space<vmem>>, vector<16x128xf32>
    %137 = vector.broadcast %125 : vector<1x128xf32> to vector<16x128xf32>
    %138 = arith.mulf %136, %137 : vector<16x128xf32>
    %139 = arith.mulf %107, %128 : vector<128x128xf32>
    %140 = arith.truncf %139 : vector<128x128xf32> to vector<128x128xbf16>
    %cst_65 = arith.constant dense<0.000000e+00> : vector<16x128xf32>
    %141 = tpu.matmul %119, %140, %cst_65 {dimension_numbers = #tpu.dot_dimension_numbers<[1], [0], [0], [1], [0, 0, 1, 1], [], []>} : vector<16x128xbf16>, vector<128x128xbf16>, vector<16x128xf32> -> vector<16x128xf32>
    %142 = arith.addf %138, %141 : vector<16x128xf32>
    %c0_66 = arith.constant 0 : index
    %c0_67 = arith.constant 0 : index
    %143 = vector.load %arg22[%c0_66, %c0_67] : memref<16x128xf32, #tpu.memory_space<vmem>>, vector<16x128xf32>
    tpu.vector_store %arg22[%c0_66, %c0_67], %142 {strides = array<i32>} : memref<16x128xf32, #tpu.memory_space<vmem>>, vector<16x128xf32>,
    %c0_68 = arith.constant 0 : index
    %c0_69 = arith.constant 0 : index
    %144 = vector.load %arg20[%c0_68, %c0_69] : memref<1x128xf32, #tpu.memory_space<vmem>>, vector<1x128xf32>
    tpu.vector_store %arg20[%c0_68, %c0_69], %123 {strides = array<i32>} : memref<1x128xf32, #tpu.memory_space<vmem>>, vector<1x128xf32>,
    %c0_i32_70 = arith.constant 0 : i32
    %145 = arith.cmpi eq, %arg0, %c0_i32_70 : i32
    %146 = arith.extui %145 : i1 to i32
    %c0_i32_71 = arith.constant 0 : i32
    %147 = arith.cmpi ne, %146, %c0_i32_71 : i32
    scf.if %147 {
      %c0_72 = arith.constant 0 : index
      %c0_73 = arith.constant 0 : index
      %148 = vector.load %arg3[%c0_72, %c0_73] : memref<16x128xf32, #tpu.memory_space<vmem>>, vector<16x128xf32>
      %c0_74 = arith.constant 0 : index
      %c0_75 = arith.constant 0 : index
      %149 = vector.load %arg22[%c0_74, %c0_75] : memref<16x128xf32, #tpu.memory_space<vmem>>, vector<16x128xf32>
      %c0_76 = arith.constant 0 : index
      %c0_77 = arith.constant 0 : index
      %150 = vector.load %arg21[%c0_76, %c0_77] : memref<16x128xf32, #tpu.memory_space<vmem>>, vector<16x128xf32>
      %cst_78 = arith.constant 9.99999996E-13 : f32
      %151 = vector.broadcast %cst_78 : f32 to vector<16x128xf32>
      %152 = arith.maximumf %150, %151 : vector<16x128xf32>
      %153 = arith.divf %149, %152 : vector<16x128xf32>
      %c0_79 = arith.constant 0 : index
      %c0_80 = arith.constant 0 : index
      %154 = vector.load %arg14[%c0_79, %c0_80] : memref<1x128xf32, #tpu.memory_space<vmem>>, vector<1x128xf32>
      %c0_81 = arith.constant 0 : index
      %c0_82 = arith.constant 0 : index
      %155 = vector.load %arg15[%c0_81, %c0_82] : memref<1x128xf32, #tpu.memory_space<vmem>>, vector<1x128xf32>
      %cst_83 = arith.constant dense<0.000000e+00> : vector<16xf32>
      %156 = vector.multi_reduction <add>, %148, %cst_83 [1] : vector<16x128xf32> to vector<16xf32>
      %157 = vector.shape_cast %156 : vector<16xf32> to vector<16x1xf32>
      %cst_84 = arith.constant 3.200000e+01 : f32
      %158 = vector.broadcast %cst_84 : f32 to vector<16x1xf32>
      %159 = arith.divf %157, %158 : vector<16x1xf32>
      %160 = arith.mulf %148, %148 : vector<16x128xf32>
      %cst_85 = arith.constant dense<0.000000e+00> : vector<16xf32>
      %161 = vector.multi_reduction <add>, %160, %cst_85 [1] : vector<16x128xf32> to vector<16xf32>
      %162 = vector.shape_cast %161 : vector<16xf32> to vector<16x1xf32>
      %cst_86 = arith.constant 3.200000e+01 : f32
      %163 = vector.broadcast %cst_86 : f32 to vector<16x1xf32>
      %164 = arith.divf %162, %163 : vector<16x1xf32>
      %165 = arith.mulf %159, %159 : vector<16x1xf32>
      %166 = arith.subf %164, %165 : vector<16x1xf32>
      %cst_87 = arith.constant 0.000000e+00 : f32
      %167 = vector.broadcast %cst_87 : f32 to vector<16x1xf32>
      %168 = arith.maximumf %166, %167 : vector<16x1xf32>
      %169 = vector.broadcast %159 : vector<16x1xf32> to vector<16x128xf32>
      %170 = arith.subf %148, %169 : vector<16x128xf32>
      %cst_88 = arith.constant 9.99999974E-6 : f32
      %171 = vector.broadcast %cst_88 : f32 to vector<16x1xf32>
      %172 = arith.addf %168, %171 : vector<16x1xf32>
      %173 = math.rsqrt %172 : vector<16x1xf32>
      %174 = vector.broadcast %173 : vector<16x1xf32> to vector<16x128xf32>
      %175 = arith.mulf %170, %174 : vector<16x128xf32>
      %176 = vector.broadcast %154 : vector<1x128xf32> to vector<16x128xf32>
      %177 = arith.mulf %175, %176 : vector<16x128xf32>
      %178 = vector.broadcast %155 : vector<1x128xf32> to vector<16x128xf32>
      %179 = arith.addf %177, %178 : vector<16x128xf32>
      %cst_89 = arith.constant 0.000000e+00 : f32
      %180 = vector.broadcast %cst_89 : f32 to vector<16x128xf32>
      %181 = arith.maximumf %179, %180 : vector<16x128xf32>
      %182 = arith.addf %148, %153 : vector<16x128xf32>
      %183 = arith.truncf %181 : vector<16x128xf32> to vector<16x128xbf16>
      %c0_90 = arith.constant 0 : index
      %c0_91 = arith.constant 0 : index
      %184 = vector.load %arg13[%c0_90, %c0_91] : memref<128x128xbf16, #tpu.memory_space<vmem>>, vector<128x128xbf16>
      %cst_92 = arith.constant dense<0.000000e+00> : vector<16x128xf32>
      %185 = tpu.matmul %183, %184, %cst_92 {dimension_numbers = #tpu.dot_dimension_numbers<[1], [0], [0], [1], [0, 0, 1, 1], [], []>} : vector<16x128xbf16>, vector<128x128xbf16>, vector<16x128xf32> -> vector<16x128xf32>
      %186 = arith.addf %182, %185 : vector<16x128xf32>
      %c0_93 = arith.constant 0 : index
      %c0_94 = arith.constant 0 : index
      %187 = vector.load %arg18[%c0_93, %c0_94] : memref<16x128xf32, #tpu.memory_space<vmem>>, vector<16x128xf32>
      tpu.vector_store %arg18[%c0_93, %c0_94], %186 {strides = array<i32>} : memref<16x128xf32, #tpu.memory_space<vmem>>, vector<16x128xf32>,
    } else {
    }
    return
  }
  func.func @transform_0(%arg0: i32) -> (i32, i32) {
    %c0_i32 = arith.constant 0 : i32
    %c0_i32_0 = arith.constant 0 : i32
    return %c0_i32, %arg0 : i32, i32
  }
  func.func @transform_1(%arg0: i32) -> i32 {
    %c0_i32 = arith.constant 0 : i32
    %c0_i32_0 = arith.constant 0 : i32
    return %c0_i32 : i32
  }
  func.func @transform_2(%arg0: i32) -> (i32, i32) {
    %c0_i32 = arith.constant 0 : i32
    %c0_i32_0 = arith.constant 0 : i32
    %c0_i32_1 = arith.constant 0 : i32
    return %c0_i32, %c0_i32_0 : i32, i32
  }
  func.func @transform_3(%arg0: i32) -> (i32, i32) {
    %c0_i32 = arith.constant 0 : i32
    %c0_i32_0 = arith.constant 0 : i32
    return %arg0, %c0_i32 : i32, i32
  }
  func.func @transform_4(%arg0: i32) -> (i32, i32) {
    %c0_i32 = arith.constant 0 : i32
    %c0_i32_0 = arith.constant 0 : i32
    return %arg0, %c0_i32 : i32, i32
  }
  func.func @transform_5(%arg0: i32) -> (i32, i32) {
    %c0_i32 = arith.constant 0 : i32
    %c0_i32_0 = arith.constant 0 : i32
    return %arg0, %c0_i32 : i32, i32
  }
  func.func @transform_6(%arg0: i32) -> (i32, i32) {
    %c0_i32 = arith.constant 0 : i32
    %c0_i32_0 = arith.constant 0 : i32
    %c0_i32_1 = arith.constant 0 : i32
    return %c0_i32, %c0_i32_0 : i32, i32
  }
  func.func @transform_7(%arg0: i32) -> (i32, i32) {
    %c0_i32 = arith.constant 0 : i32
    %c0_i32_0 = arith.constant 0 : i32
    %c0_i32_1 = arith.constant 0 : i32
    return %c0_i32, %c0_i32_0 : i32, i32
  }
  func.func @transform_8(%arg0: i32) -> (i32, i32) {
    %c0_i32 = arith.constant 0 : i32
    %c0_i32_0 = arith.constant 0 : i32
    %c0_i32_1 = arith.constant 0 : i32
    return %c0_i32, %c0_i32_0 : i32, i32
  }
  func.func @transform_9(%arg0: i32) -> (i32, i32) {
    %c0_i32 = arith.constant 0 : i32
    %c0_i32_0 = arith.constant 0 : i32
    %c0_i32_1 = arith.constant 0 : i32
    return %c0_i32, %c0_i32_0 : i32, i32
  }
  func.func @transform_10(%arg0: i32) -> (i32, i32) {
    %c0_i32 = arith.constant 0 : i32
    %c0_i32_0 = arith.constant 0 : i32
    %c0_i32_1 = arith.constant 0 : i32
    return %c0_i32, %c0_i32_0 : i32, i32
  }
  func.func @transform_11(%arg0: i32) -> (i32, i32) {
    %c0_i32 = arith.constant 0 : i32
    %c0_i32_0 = arith.constant 0 : i32
    %c0_i32_1 = arith.constant 0 : i32
    return %c0_i32, %c0_i32_0 : i32, i32
  }
  func.func @transform_12(%arg0: i32) -> (i32, i32) {
    %c0_i32 = arith.constant 0 : i32
    %c0_i32_0 = arith.constant 0 : i32
    %c0_i32_1 = arith.constant 0 : i32
    return %c0_i32, %c0_i32_0 : i32, i32
  }
  func.func @transform_13(%arg0: i32) -> (i32, i32) {
    %c0_i32 = arith.constant 0 : i32
    %c0_i32_0 = arith.constant 0 : i32
    %c0_i32_1 = arith.constant 0 : i32
    return %c0_i32, %c0_i32_0 : i32, i32
  }
  func.func @transform_14(%arg0: i32) -> (i32, i32) {
    %c0_i32 = arith.constant 0 : i32
    %c0_i32_0 = arith.constant 0 : i32
    %c0_i32_1 = arith.constant 0 : i32
    return %c0_i32, %c0_i32_0 : i32, i32
  }
  func.func @transform_15(%arg0: i32) -> (i32, i32) {
    %c0_i32 = arith.constant 0 : i32
    %c0_i32_0 = arith.constant 0 : i32
    %c0_i32_1 = arith.constant 0 : i32
    return %c0_i32, %c0_i32_0 : i32, i32
  }
  func.func @transform_16(%arg0: i32) -> (i32, i32) {
    %c0_i32 = arith.constant 0 : i32
    %c0_i32_0 = arith.constant 0 : i32
    %c0_i32_1 = arith.constant 0 : i32
    return %c0_i32, %c0_i32_0 : i32, i32
  }
  func.func @transform_17(%arg0: i32) -> (i32, i32) {
    %c0_i32 = arith.constant 0 : i32
    %c0_i32_0 = arith.constant 0 : i32
    %c0_i32_1 = arith.constant 0 : i32
    return %c0_i32, %c0_i32_0 : i32, i32
  }
  func.func @transform_18(%arg0: i32) -> (i32, i32) {
    %c0_i32 = arith.constant 0 : i32
    %c0_i32_0 = arith.constant 0 : i32
    return %arg0, %c0_i32 : i32, i32
  }
}

module attributes {stable_mosaic.version = 11 : i64} {
  func.func @linear_ln_kernel(%arg0: i32, %arg1: memref<128x128xf32, #tpu.memory_space<vmem>>, %arg2: memref<128x128xbf16, #tpu.memory_space<vmem>>, %arg3: memref<1x128xf32, #tpu.memory_space<vmem>>, %arg4: memref<1x128xf32, #tpu.memory_space<vmem>>, %arg5: memref<1x128xf32, #tpu.memory_space<vmem>>, %arg6: memref<128x128xf32, #tpu.memory_space<vmem>>) attributes {dimension_semantics = [#tpu.dimension_semantics<parallel>], iteration_bounds = array<i64: 1>, scalar_prefetch = 0 : i64, scratch_operands = 0 : i64, tpu.core_type = #tpu.core_type<tc>, window_params = [{transform_indices = @transform_0, window_bounds = array<i64: 128, 128>}, {pipeline_mode = #tpu.pipeline_mode<synchronous>, transform_indices = @transform_1, window_bounds = array<i64: 128, 128>}, {pipeline_mode = #tpu.pipeline_mode<synchronous>, transform_indices = @transform_2, window_bounds = array<i64: 1, 128>}, {pipeline_mode = #tpu.pipeline_mode<synchronous>, transform_indices = @transform_3, window_bounds = array<i64: 1, 128>}, {pipeline_mode = #tpu.pipeline_mode<synchronous>, transform_indices = @transform_4, window_bounds = array<i64: 1, 128>}, {transform_indices = @transform_5, window_bounds = array<i64: 128, 128>}]} {
    %c0 = arith.constant 0 : index
    %c0_0 = arith.constant 0 : index
    %0 = vector.load %arg1[%c0, %c0_0] : memref<128x128xf32, #tpu.memory_space<vmem>>, vector<128x128xf32>
    %1 = arith.truncf %0 : vector<128x128xf32> to vector<128x128xbf16>
    %c0_1 = arith.constant 0 : index
    %c0_2 = arith.constant 0 : index
    %2 = vector.load %arg2[%c0_1, %c0_2] : memref<128x128xbf16, #tpu.memory_space<vmem>>, vector<128x128xbf16>
    %cst = arith.constant dense<0.000000e+00> : vector<128x128xf32>
    %3 = tpu.matmul %1, %2, %cst {dimension_numbers = #tpu.dot_dimension_numbers<[1], [0], [0], [1], [0, 0, 1, 1], [], []>} : vector<128x128xbf16>, vector<128x128xbf16>, vector<128x128xf32> -> vector<128x128xf32>
    %c0_3 = arith.constant 0 : index
    %c0_4 = arith.constant 0 : index
    %4 = vector.load %arg3[%c0_3, %c0_4] : memref<1x128xf32, #tpu.memory_space<vmem>>, vector<1x128xf32>
    %5 = vector.broadcast %4 : vector<1x128xf32> to vector<128x128xf32>
    %6 = arith.addf %3, %5 : vector<128x128xf32>
    %c0_5 = arith.constant 0 : index
    %c0_6 = arith.constant 0 : index
    %7 = vector.load %arg4[%c0_5, %c0_6] : memref<1x128xf32, #tpu.memory_space<vmem>>, vector<1x128xf32>
    %c0_7 = arith.constant 0 : index
    %c0_8 = arith.constant 0 : index
    %8 = vector.load %arg5[%c0_7, %c0_8] : memref<1x128xf32, #tpu.memory_space<vmem>>, vector<1x128xf32>
    %cst_9 = arith.constant dense<0.000000e+00> : vector<128xf32>
    %9 = vector.multi_reduction <add>, %6, %cst_9 [1] : vector<128x128xf32> to vector<128xf32>
    %10 = vector.shape_cast %9 : vector<128xf32> to vector<128x1xf32>
    %cst_10 = arith.constant 3.200000e+01 : f32
    %11 = vector.broadcast %cst_10 : f32 to vector<128x1xf32>
    %12 = arith.divf %10, %11 : vector<128x1xf32>
    %13 = arith.mulf %6, %6 : vector<128x128xf32>
    %cst_11 = arith.constant dense<0.000000e+00> : vector<128xf32>
    %14 = vector.multi_reduction <add>, %13, %cst_11 [1] : vector<128x128xf32> to vector<128xf32>
    %15 = vector.shape_cast %14 : vector<128xf32> to vector<128x1xf32>
    %cst_12 = arith.constant 3.200000e+01 : f32
    %16 = vector.broadcast %cst_12 : f32 to vector<128x1xf32>
    %17 = arith.divf %15, %16 : vector<128x1xf32>
    %18 = arith.mulf %12, %12 : vector<128x1xf32>
    %19 = arith.subf %17, %18 : vector<128x1xf32>
    %cst_13 = arith.constant 0.000000e+00 : f32
    %20 = vector.broadcast %cst_13 : f32 to vector<128x1xf32>
    %21 = arith.maximumf %19, %20 : vector<128x1xf32>
    %22 = vector.broadcast %12 : vector<128x1xf32> to vector<128x128xf32>
    %23 = arith.subf %6, %22 : vector<128x128xf32>
    %cst_14 = arith.constant 9.99999974E-6 : f32
    %24 = vector.broadcast %cst_14 : f32 to vector<128x1xf32>
    %25 = arith.addf %21, %24 : vector<128x1xf32>
    %26 = math.rsqrt %25 : vector<128x1xf32>
    %27 = vector.broadcast %26 : vector<128x1xf32> to vector<128x128xf32>
    %28 = arith.mulf %23, %27 : vector<128x128xf32>
    %29 = vector.broadcast %7 : vector<1x128xf32> to vector<128x128xf32>
    %30 = arith.mulf %28, %29 : vector<128x128xf32>
    %31 = vector.broadcast %8 : vector<1x128xf32> to vector<128x128xf32>
    %32 = arith.addf %30, %31 : vector<128x128xf32>
    %c0_15 = arith.constant 0 : index
    %c0_16 = arith.constant 0 : index
    %33 = vector.load %arg6[%c0_15, %c0_16] : memref<128x128xf32, #tpu.memory_space<vmem>>, vector<128x128xf32>
    tpu.vector_store %arg6[%c0_15, %c0_16], %32 {strides = array<i32>} : memref<128x128xf32, #tpu.memory_space<vmem>>, vector<128x128xf32>,
    return
  }
  func.func @transform_0(%arg0: i32) -> (i32, i32) {
    %c0_i32 = arith.constant 0 : i32
    %c0_i32_0 = arith.constant 0 : i32
    return %arg0, %c0_i32 : i32, i32
  }
  func.func @transform_1(%arg0: i32) -> (i32, i32) {
    %c0_i32 = arith.constant 0 : i32
    %c0_i32_0 = arith.constant 0 : i32
    %c0_i32_1 = arith.constant 0 : i32
    return %c0_i32, %c0_i32_0 : i32, i32
  }
  func.func @transform_2(%arg0: i32) -> (i32, i32) {
    %c0_i32 = arith.constant 0 : i32
    %c0_i32_0 = arith.constant 0 : i32
    %c0_i32_1 = arith.constant 0 : i32
    return %c0_i32, %c0_i32_0 : i32, i32
  }
  func.func @transform_3(%arg0: i32) -> (i32, i32) {
    %c0_i32 = arith.constant 0 : i32
    %c0_i32_0 = arith.constant 0 : i32
    %c0_i32_1 = arith.constant 0 : i32
    return %c0_i32, %c0_i32_0 : i32, i32
  }
  func.func @transform_4(%arg0: i32) -> (i32, i32) {
    %c0_i32 = arith.constant 0 : i32
    %c0_i32_0 = arith.constant 0 : i32
    %c0_i32_1 = arith.constant 0 : i32
    return %c0_i32, %c0_i32_0 : i32, i32
  }
  func.func @transform_5(%arg0: i32) -> (i32, i32) {
    %c0_i32 = arith.constant 0 : i32
    %c0_i32_0 = arith.constant 0 : i32
    return %arg0, %c0_i32 : i32, i32
  }
}

module attributes {stable_mosaic.version = 11 : i64} {
  func.func @sage_layer_kernel(%arg0: i32, %arg1: memref<1x128xi32, #tpu.memory_space<vmem>>, %arg2: memref<1xf32, #tpu.memory_space<smem>>, %arg3: memref<16x128xf32, #tpu.memory_space<vmem>>, %arg4: memref<128x128xf32, #tpu.memory_space<vmem>>, %arg5: memref<128x128xf32, #tpu.memory_space<vmem>>, %arg6: memref<128x128xf32, #tpu.memory_space<vmem>>, %arg7: memref<128x128xbf16, #tpu.memory_space<vmem>>, %arg8: memref<128x128xbf16, #tpu.memory_space<vmem>>, %arg9: memref<128x128xbf16, #tpu.memory_space<vmem>>, %arg10: memref<1x128xf32, #tpu.memory_space<vmem>>, %arg11: memref<128x128xbf16, #tpu.memory_space<vmem>>, %arg12: memref<1x128xf32, #tpu.memory_space<vmem>>, %arg13: memref<128x128xbf16, #tpu.memory_space<vmem>>, %arg14: memref<1x128xf32, #tpu.memory_space<vmem>>, %arg15: memref<1x128xf32, #tpu.memory_space<vmem>>, %arg16: memref<1x128xf32, #tpu.memory_space<vmem>>, %arg17: memref<1x128xf32, #tpu.memory_space<vmem>>, %arg18: memref<16x128xf32, #tpu.memory_space<vmem>>, %arg19: memref<128x128xf32, #tpu.memory_space<vmem>>, %arg20: memref<1x128xf32, #tpu.memory_space<vmem>>, %arg21: memref<16x128xf32, #tpu.memory_space<vmem>>, %arg22: memref<16x128xf32, #tpu.memory_space<vmem>>) attributes {dimension_semantics = [#tpu.dimension_semantics<arbitrary>], iteration_bounds = array<i64: 1>, scalar_prefetch = 0 : i64, scratch_operands = 3 : i64, tpu.core_type = #tpu.core_type<tc>, window_params = [{transform_indices = @transform_0, window_bounds = array<i64: 1, 128>}, {transform_indices = @transform_1, window_bounds = array<i64: 1>}, {pipeline_mode = #tpu.pipeline_mode<synchronous>, transform_indices = @transform_2, window_bounds = array<i64: 16, 128>}, {transform_indices = @transform_3, window_bounds = array<i64: 128, 128>}, {transform_indices = @transform_4, window_bounds = array<i64: 128, 128>}, {transform_indices = @transform_5, window_bounds = array<i64: 128, 128>}, {pipeline_mode = #tpu.pipeline_mode<synchronous>, transform_indices = @transform_6, window_bounds = array<i64: 128, 128>}, {pipeline_mode = #tpu.pipeline_mode<synchronous>, transform_indices = @transform_7, window_bounds = array<i64: 128, 128>}, {pipeline_mode = #tpu.pipeline_mode<synchronous>, transform_indices = @transform_8, window_bounds = array<i64: 128, 128>}, {pipeline_mode = #tpu.pipeline_mode<synchronous>, transform_indices = @transform_9, window_bounds = array<i64: 1, 128>}, {pipeline_mode = #tpu.pipeline_mode<synchronous>, transform_indices = @transform_10, window_bounds = array<i64: 128, 128>}, {pipeline_mode = #tpu.pipeline_mode<synchronous>, transform_indices = @transform_11, window_bounds = array<i64: 1, 128>}, {pipeline_mode = #tpu.pipeline_mode<synchronous>, transform_indices = @transform_12, window_bounds = array<i64: 128, 128>}, {pipeline_mode = #tpu.pipeline_mode<synchronous>, transform_indices = @transform_13, window_bounds = array<i64: 1, 128>}, {pipeline_mode = #tpu.pipeline_mode<synchronous>, transform_indices = @transform_14, window_bounds = array<i64: 1, 128>}, {pipeline_mode = #tpu.pipeline_mode<synchronous>, transform_indices = @transform_15, window_bounds = array<i64: 1, 128>}, {pipeline_mode = #tpu.pipeline_mode<synchronous>, transform_indices = @transform_16, window_bounds = array<i64: 1, 128>}, {pipeline_mode = #tpu.pipeline_mode<synchronous>, transform_indices = @transform_17, window_bounds = array<i64: 16, 128>}, {transform_indices = @transform_18, window_bounds = array<i64: 128, 128>}]} {
    %c0_i32 = arith.constant 0 : i32
    %0 = arith.cmpi eq, %arg0, %c0_i32 : i32
    %1 = arith.extui %0 : i1 to i32
    %c0_i32_0 = arith.constant 0 : i32
    %2 = arith.cmpi ne, %1, %c0_i32_0 : i32
    scf.if %2 {
      %cst_44 = arith.constant -1.000000e+30 : f32
      %67 = vector.broadcast %cst_44 : f32 to vector<1x128xf32>
      %c0_45 = arith.constant 0 : index
      %c0_46 = arith.constant 0 : index
      %68 = vector.load %arg20[%c0_45, %c0_46] : memref<1x128xf32, #tpu.memory_space<vmem>>, vector<1x128xf32>
      tpu.vector_store %arg20[%c0_45, %c0_46], %67 {strides = array<i32>} : memref<1x128xf32, #tpu.memory_space<vmem>>, vector<1x128xf32>,
      %cst_47 = arith.constant 0.000000e+00 : f32
      %69 = vector.broadcast %cst_47 : f32 to vector<16x128xf32>
      %c0_48 = arith.constant 0 : index
      %c0_49 = arith.constant 0 : index
      %70 = vector.load %arg21[%c0_48, %c0_49] : memref<16x128xf32, #tpu.memory_space<vmem>>, vector<16x128xf32>
      tpu.vector_store %arg21[%c0_48, %c0_49], %69 {strides = array<i32>} : memref<16x128xf32, #tpu.memory_space<vmem>>, vector<16x128xf32>,
      %cst_50 = arith.constant 0.000000e+00 : f32
      %71 = vector.broadcast %cst_50 : f32 to vector<16x128xf32>
      %c0_51 = arith.constant 0 : index
      %c0_52 = arith.constant 0 : index
      %72 = vector.load %arg22[%c0_51, %c0_52] : memref<16x128xf32, #tpu.memory_space<vmem>>, vector<16x128xf32>
      tpu.vector_store %arg22[%c0_51, %c0_52], %71 {strides = array<i32>} : memref<16x128xf32, #tpu.memory_space<vmem>>, vector<16x128xf32>,
    } else {
    }
    %c0 = arith.constant 0 : index
    %c0_1 = arith.constant 0 : index
    %3 = vector.load %arg4[%c0, %c0_1] : memref<128x128xf32, #tpu.memory_space<vmem>>, vector<128x128xf32>
    %c0_2 = arith.constant 0 : index
    %c0_3 = arith.constant 0 : index
    %4 = vector.load %arg5[%c0_2, %c0_3] : memref<128x128xf32, #tpu.memory_space<vmem>>, vector<128x128xf32>
    %c0_4 = arith.constant 0 : index
    %c0_5 = arith.constant 0 : index
    %5 = vector.load %arg6[%c0_4, %c0_5] : memref<128x128xf32, #tpu.memory_space<vmem>>, vector<128x128xf32>
    %6 = arith.truncf %3 : vector<128x128xf32> to vector<128x128xbf16>
    %c0_6 = arith.constant 0 : index
    %c0_7 = arith.constant 0 : index
    %7 = vector.load %arg7[%c0_6, %c0_7] : memref<128x128xbf16, #tpu.memory_space<vmem>>, vector<128x128xbf16>
    %cst = arith.constant dense<0.000000e+00> : vector<128x128xf32>
    %8 = tpu.matmul %6, %7, %cst {dimension_numbers = #tpu.dot_dimension_numbers<[1], [0], [0], [1], [0, 0, 1, 1], [], []>} : vector<128x128xbf16>, vector<128x128xbf16>, vector<128x128xf32> -> vector<128x128xf32>
    %9 = arith.truncf %4 : vector<128x128xf32> to vector<128x128xbf16>
    %c0_8 = arith.constant 0 : index
    %c0_9 = arith.constant 0 : index
    %10 = vector.load %arg8[%c0_8, %c0_9] : memref<128x128xbf16, #tpu.memory_space<vmem>>, vector<128x128xbf16>
    %cst_10 = arith.constant dense<0.000000e+00> : vector<128x128xf32>
    %11 = tpu.matmul %9, %10, %cst_10 {dimension_numbers = #tpu.dot_dimension_numbers<[1], [0], [0], [1], [0, 0, 1, 1], [], []>} : vector<128x128xbf16>, vector<128x128xbf16>, vector<128x128xf32> -> vector<128x128xf32>
    %12 = arith.addf %8, %11 : vector<128x128xf32>
    %13 = arith.truncf %5 : vector<128x128xf32> to vector<128x128xbf16>
    %c0_11 = arith.constant 0 : index
    %c0_12 = arith.constant 0 : index
    %14 = vector.load %arg9[%c0_11, %c0_12] : memref<128x128xbf16, #tpu.memory_space<vmem>>, vector<128x128xbf16>
    %cst_13 = arith.constant dense<0.000000e+00> : vector<128x128xf32>
    %15 = tpu.matmul %13, %14, %cst_13 {dimension_numbers = #tpu.dot_dimension_numbers<[1], [0], [0], [1], [0, 0, 1, 1], [], []>} : vector<128x128xbf16>, vector<128x128xbf16>, vector<128x128xf32> -> vector<128x128xf32>
    %16 = arith.addf %12, %15 : vector<128x128xf32>
    %c0_14 = arith.constant 0 : index
    %c0_15 = arith.constant 0 : index
    %17 = vector.load %arg10[%c0_14, %c0_15] : memref<1x128xf32, #tpu.memory_space<vmem>>, vector<1x128xf32>
    %18 = vector.broadcast %17 : vector<1x128xf32> to vector<128x128xf32>
    %19 = arith.addf %16, %18 : vector<128x128xf32>
    %cst_16 = arith.constant 0.000000e+00 : f32
    %20 = vector.broadcast %cst_16 : f32 to vector<128x128xf32>
    %21 = arith.maximumf %19, %20 : vector<128x128xf32>
    %22 = arith.truncf %21 : vector<128x128xf32> to vector<128x128xbf16>
    %c0_17 = arith.constant 0 : index
    %c0_18 = arith.constant 0 : index
    %23 = vector.load %arg11[%c0_17, %c0_18] : memref<128x128xbf16, #tpu.memory_space<vmem>>, vector<128x128xbf16>
    %cst_19 = arith.constant dense<0.000000e+00> : vector<128x128xf32>
    %24 = tpu.matmul %22, %23, %cst_19 {dimension_numbers = #tpu.dot_dimension_numbers<[1], [0], [0], [1], [0, 0, 1, 1], [], []>} : vector<128x128xbf16>, vector<128x128xbf16>, vector<128x128xf32> -> vector<128x128xf32>
    %c0_20 = arith.constant 0 : index
    %c0_21 = arith.constant 0 : index
    %25 = vector.load %arg12[%c0_20, %c0_21] : memref<1x128xf32, #tpu.memory_space<vmem>>, vector<1x128xf32>
    %26 = vector.broadcast %25 : vector<1x128xf32> to vector<128x128xf32>
    %27 = arith.addf %24, %26 : vector<128x128xf32>
    %c0_22 = arith.constant 0 : index
    %c0_23 = arith.constant 0 : index
    %28 = vector.load %arg19[%c0_22, %c0_23] : memref<128x128xf32, #tpu.memory_space<vmem>>, vector<128x128xf32>
    tpu.vector_store %arg19[%c0_22, %c0_23], %27 {strides = array<i32>} : memref<128x128xf32, #tpu.memory_space<vmem>>, vector<128x128xf32>,
    %c0_24 = arith.constant 0 : index
    %29 = memref.load %arg2[%c0_24] : memref<1xf32, #tpu.memory_space<smem>>
    %30 = vector.broadcast %29 : f32 to vector<128x128xf32>
    %31 = arith.mulf %27, %30 : vector<128x128xf32>
    %32 = tpu.iota {dimensions = array<i32: 0>} : vector<16x128xi32>
    %c0_25 = arith.constant 0 : index
    %c0_26 = arith.constant 0 : index
    %33 = vector.load %arg1[%c0_25, %c0_26] : memref<1x128xi32, #tpu.memory_space<vmem>>, vector<1x128xi32>
    %34 = vector.broadcast %33 : vector<1x128xi32> to vector<16x128xi32>
    %35 = arith.cmpi eq, %32, %34 : vector<16x128xi32>
    %36 = arith.extui %35 : vector<16x128xi1> to vector<16x128xi32>
    %37 = arith.sitofp %36 : vector<16x128xi32> to vector<16x128xf32>
    %38 = arith.truncf %37 : vector<16x128xf32> to vector<16x128xbf16>
    %c0_27 = arith.constant 0 : index
    %c0_28 = arith.constant 0 : index
    %39 = vector.load %arg20[%c0_27, %c0_28] : memref<1x128xf32, #tpu.memory_space<vmem>>, vector<1x128xf32>
    %cst_29 = arith.constant dense<0xFF800000> : vector<128xf32>
    %40 = vector.multi_reduction <maximumf>, %31, %cst_29 [0] : vector<128x128xf32> to vector<128xf32>
    %41 = vector.shape_cast %40 : vector<128xf32> to vector<1x128xf32>
    %42 = arith.maximumf %39, %41 : vector<1x128xf32>
    %43 = arith.subf %39, %42 : vector<1x128xf32>
    %44 = math.exp %43 : vector<1x128xf32>
    %45 = vector.broadcast %42 : vector<1x128xf32> to vector<128x128xf32>
    %46 = arith.subf %31, %45 : vector<128x128xf32>
    %47 = math.exp %46 : vector<128x128xf32>
    %c0_30 = arith.constant 0 : index
    %c0_31 = arith.constant 0 : index
    %48 = vector.load %arg21[%c0_30, %c0_31] : memref<16x128xf32, #tpu.memory_space<vmem>>, vector<16x128xf32>
    %49 = vector.broadcast %44 : vector<1x128xf32> to vector<16x128xf32>
    %50 = arith.mulf %48, %49 : vector<16x128xf32>
    %51 = arith.truncf %47 : vector<128x128xf32> to vector<128x128xbf16>
    %cst_32 = arith.constant dense<0.000000e+00> : vector<16x128xf32>
    %52 = tpu.matmul %38, %51, %cst_32 {dimension_numbers = #tpu.dot_dimension_numbers<[1], [0], [0], [1], [0, 0, 1, 1], [], []>} : vector<16x128xbf16>, vector<128x128xbf16>, vector<16x128xf32> -> vector<16x128xf32>
    %53 = arith.addf %50, %52 : vector<16x128xf32>
    %c0_33 = arith.constant 0 : index
    %c0_34 = arith.constant 0 : index
    %54 = vector.load %arg21[%c0_33, %c0_34] : memref<16x128xf32, #tpu.memory_space<vmem>>, vector<16x128xf32>
    tpu.vector_store %arg21[%c0_33, %c0_34], %53 {strides = array<i32>} : memref<16x128xf32, #tpu.memory_space<vmem>>, vector<16x128xf32>,
    %c0_35 = arith.constant 0 : index
    %c0_36 = arith.constant 0 : index
    %55 = vector.load %arg22[%c0_35, %c0_36] : memref<16x128xf32, #tpu.memory_space<vmem>>, vector<16x128xf32>
    %56 = vector.broadcast %44 : vector<1x128xf32> to vector<16x128xf32>
    %57 = arith.mulf %55, %56 : vector<16x128xf32>
    %58 = arith.mulf %27, %47 : vector<128x128xf32>
    %59 = arith.truncf %58 : vector<128x128xf32> to vector<128x128xbf16>
    %cst_37 = arith.constant dense<0.000000e+00> : vector<16x128xf32>
    %60 = tpu.matmul %38, %59, %cst_37 {dimension_numbers = #tpu.dot_dimension_numbers<[1], [0], [0], [1], [0, 0, 1, 1], [], []>} : vector<16x128xbf16>, vector<128x128xbf16>, vector<16x128xf32> -> vector<16x128xf32>
    %61 = arith.addf %57, %60 : vector<16x128xf32>
    %c0_38 = arith.constant 0 : index
    %c0_39 = arith.constant 0 : index
    %62 = vector.load %arg22[%c0_38, %c0_39] : memref<16x128xf32, #tpu.memory_space<vmem>>, vector<16x128xf32>
    tpu.vector_store %arg22[%c0_38, %c0_39], %61 {strides = array<i32>} : memref<16x128xf32, #tpu.memory_space<vmem>>, vector<16x128xf32>,
    %c0_40 = arith.constant 0 : index
    %c0_41 = arith.constant 0 : index
    %63 = vector.load %arg20[%c0_40, %c0_41] : memref<1x128xf32, #tpu.memory_space<vmem>>, vector<1x128xf32>
    tpu.vector_store %arg20[%c0_40, %c0_41], %42 {strides = array<i32>} : memref<1x128xf32, #tpu.memory_space<vmem>>, vector<1x128xf32>,
    %c0_i32_42 = arith.constant 0 : i32
    %64 = arith.cmpi eq, %arg0, %c0_i32_42 : i32
    %65 = arith.extui %64 : i1 to i32
    %c0_i32_43 = arith.constant 0 : i32
    %66 = arith.cmpi ne, %65, %c0_i32_43 : i32
    scf.if %66 {
      %c0_44 = arith.constant 0 : index
      %c0_45 = arith.constant 0 : index
      %67 = vector.load %arg3[%c0_44, %c0_45] : memref<16x128xf32, #tpu.memory_space<vmem>>, vector<16x128xf32>
      %c0_46 = arith.constant 0 : index
      %c0_47 = arith.constant 0 : index
      %68 = vector.load %arg22[%c0_46, %c0_47] : memref<16x128xf32, #tpu.memory_space<vmem>>, vector<16x128xf32>
      %c0_48 = arith.constant 0 : index
      %c0_49 = arith.constant 0 : index
      %69 = vector.load %arg21[%c0_48, %c0_49] : memref<16x128xf32, #tpu.memory_space<vmem>>, vector<16x128xf32>
      %cst_50 = arith.constant 9.99999996E-13 : f32
      %70 = vector.broadcast %cst_50 : f32 to vector<16x128xf32>
      %71 = arith.maximumf %69, %70 : vector<16x128xf32>
      %72 = arith.divf %68, %71 : vector<16x128xf32>
      %cst_51 = arith.constant 0.000000e+00 : f32
      %73 = vector.broadcast %cst_51 : f32 to vector<16x128xf32>
      %74 = arith.addf %73, %72 : vector<16x128xf32>
      %75 = arith.truncf %67 : vector<16x128xf32> to vector<16x128xbf16>
      %c0_52 = arith.constant 0 : index
      %c0_53 = arith.constant 0 : index
      %76 = vector.load %arg13[%c0_52, %c0_53] : memref<128x128xbf16, #tpu.memory_space<vmem>>, vector<128x128xbf16>
      %cst_54 = arith.constant dense<0.000000e+00> : vector<16x128xf32>
      %77 = tpu.matmul %75, %76, %cst_54 {dimension_numbers = #tpu.dot_dimension_numbers<[1], [0], [0], [1], [0, 0, 1, 1], [], []>} : vector<16x128xbf16>, vector<128x128xbf16>, vector<16x128xf32> -> vector<16x128xf32>
      %78 = arith.addf %74, %77 : vector<16x128xf32>
      %c0_55 = arith.constant 0 : index
      %c0_56 = arith.constant 0 : index
      %79 = vector.load %arg18[%c0_55, %c0_56] : memref<16x128xf32, #tpu.memory_space<vmem>>, vector<16x128xf32>
      tpu.vector_store %arg18[%c0_55, %c0_56], %78 {strides = array<i32>} : memref<16x128xf32, #tpu.memory_space<vmem>>, vector<16x128xf32>,
    } else {
    }
    return
  }
  func.func @transform_0(%arg0: i32) -> (i32, i32) {
    %c0_i32 = arith.constant 0 : i32
    %c0_i32_0 = arith.constant 0 : i32
    return %c0_i32, %arg0 : i32, i32
  }
  func.func @transform_1(%arg0: i32) -> i32 {
    %c0_i32 = arith.constant 0 : i32
    %c0_i32_0 = arith.constant 0 : i32
    return %c0_i32 : i32
  }
  func.func @transform_2(%arg0: i32) -> (i32, i32) {
    %c0_i32 = arith.constant 0 : i32
    %c0_i32_0 = arith.constant 0 : i32
    %c0_i32_1 = arith.constant 0 : i32
    return %c0_i32, %c0_i32_0 : i32, i32
  }
  func.func @transform_3(%arg0: i32) -> (i32, i32) {
    %c0_i32 = arith.constant 0 : i32
    %c0_i32_0 = arith.constant 0 : i32
    return %arg0, %c0_i32 : i32, i32
  }
  func.func @transform_4(%arg0: i32) -> (i32, i32) {
    %c0_i32 = arith.constant 0 : i32
    %c0_i32_0 = arith.constant 0 : i32
    return %arg0, %c0_i32 : i32, i32
  }
  func.func @transform_5(%arg0: i32) -> (i32, i32) {
    %c0_i32 = arith.constant 0 : i32
    %c0_i32_0 = arith.constant 0 : i32
    return %arg0, %c0_i32 : i32, i32
  }
  func.func @transform_6(%arg0: i32) -> (i32, i32) {
    %c0_i32 = arith.constant 0 : i32
    %c0_i32_0 = arith.constant 0 : i32
    %c0_i32_1 = arith.constant 0 : i32
    return %c0_i32, %c0_i32_0 : i32, i32
  }
  func.func @transform_7(%arg0: i32) -> (i32, i32) {
    %c0_i32 = arith.constant 0 : i32
    %c0_i32_0 = arith.constant 0 : i32
    %c0_i32_1 = arith.constant 0 : i32
    return %c0_i32, %c0_i32_0 : i32, i32
  }
  func.func @transform_8(%arg0: i32) -> (i32, i32) {
    %c0_i32 = arith.constant 0 : i32
    %c0_i32_0 = arith.constant 0 : i32
    %c0_i32_1 = arith.constant 0 : i32
    return %c0_i32, %c0_i32_0 : i32, i32
  }
  func.func @transform_9(%arg0: i32) -> (i32, i32) {
    %c0_i32 = arith.constant 0 : i32
    %c0_i32_0 = arith.constant 0 : i32
    %c0_i32_1 = arith.constant 0 : i32
    return %c0_i32, %c0_i32_0 : i32, i32
  }
  func.func @transform_10(%arg0: i32) -> (i32, i32) {
    %c0_i32 = arith.constant 0 : i32
    %c0_i32_0 = arith.constant 0 : i32
    %c0_i32_1 = arith.constant 0 : i32
    return %c0_i32, %c0_i32_0 : i32, i32
  }
  func.func @transform_11(%arg0: i32) -> (i32, i32) {
    %c0_i32 = arith.constant 0 : i32
    %c0_i32_0 = arith.constant 0 : i32
    %c0_i32_1 = arith.constant 0 : i32
    return %c0_i32, %c0_i32_0 : i32, i32
  }
  func.func @transform_12(%arg0: i32) -> (i32, i32) {
    %c0_i32 = arith.constant 0 : i32
    %c0_i32_0 = arith.constant 0 : i32
    %c0_i32_1 = arith.constant 0 : i32
    return %c0_i32, %c0_i32_0 : i32, i32
  }
  func.func @transform_13(%arg0: i32) -> (i32, i32) {
    %c0_i32 = arith.constant 0 : i32
    %c0_i32_0 = arith.constant 0 : i32
    %c0_i32_1 = arith.constant 0 : i32
    return %c0_i32, %c0_i32_0 : i32, i32
  }
  func.func @transform_14(%arg0: i32) -> (i32, i32) {
    %c0_i32 = arith.constant 0 : i32
    %c0_i32_0 = arith.constant 0 : i32
    %c0_i32_1 = arith.constant 0 : i32
    return %c0_i32, %c0_i32_0 : i32, i32
  }
  func.func @transform_15(%arg0: i32) -> (i32, i32) {
    %c0_i32 = arith.constant 0 : i32
    %c0_i32_0 = arith.constant 0 : i32
    %c0_i32_1 = arith.constant 0 : i32
    return %c0_i32, %c0_i32_0 : i32, i32
  }
  func.func @transform_16(%arg0: i32) -> (i32, i32) {
    %c0_i32 = arith.constant 0 : i32
    %c0_i32_0 = arith.constant 0 : i32
    %c0_i32_1 = arith.constant 0 : i32
    return %c0_i32, %c0_i32_0 : i32, i32
  }
  func.func @transform_17(%arg0: i32) -> (i32, i32) {
    %c0_i32 = arith.constant 0 : i32
    %c0_i32_0 = arith.constant 0 : i32
    %c0_i32_1 = arith.constant 0 : i32
    return %c0_i32, %c0_i32_0 : i32, i32
  }
  func.func @transform_18(%arg0: i32) -> (i32, i32) {
    %c0_i32 = arith.constant 0 : i32
    %c0_i32_0 = arith.constant 0 : i32
    return %arg0, %c0_i32 : i32, i32
  }
}

module attributes {stable_mosaic.version = 11 : i64} {
  func.func @ln_relu_kernel(%arg0: i32, %arg1: memref<16x128xf32, #tpu.memory_space<vmem>>, %arg2: memref<1x128xf32, #tpu.memory_space<vmem>>, %arg3: memref<1x128xf32, #tpu.memory_space<vmem>>, %arg4: memref<16x128xf32, #tpu.memory_space<vmem>>) attributes {dimension_semantics = [#tpu.dimension_semantics<parallel>], iteration_bounds = array<i64: 1>, scalar_prefetch = 0 : i64, scratch_operands = 0 : i64, tpu.core_type = #tpu.core_type<tc>, window_params = [{transform_indices = @transform_0, window_bounds = array<i64: 16, 128>}, {pipeline_mode = #tpu.pipeline_mode<synchronous>, transform_indices = @transform_1, window_bounds = array<i64: 1, 128>}, {pipeline_mode = #tpu.pipeline_mode<synchronous>, transform_indices = @transform_2, window_bounds = array<i64: 1, 128>}, {transform_indices = @transform_3, window_bounds = array<i64: 16, 128>}]} {
    %c0 = arith.constant 0 : index
    %c0_0 = arith.constant 0 : index
    %0 = vector.load %arg1[%c0, %c0_0] : memref<16x128xf32, #tpu.memory_space<vmem>>, vector<16x128xf32>
    %c0_1 = arith.constant 0 : index
    %c0_2 = arith.constant 0 : index
    %1 = vector.load %arg2[%c0_1, %c0_2] : memref<1x128xf32, #tpu.memory_space<vmem>>, vector<1x128xf32>
    %c0_3 = arith.constant 0 : index
    %c0_4 = arith.constant 0 : index
    %2 = vector.load %arg3[%c0_3, %c0_4] : memref<1x128xf32, #tpu.memory_space<vmem>>, vector<1x128xf32>
    %cst = arith.constant dense<0.000000e+00> : vector<16xf32>
    %3 = vector.multi_reduction <add>, %0, %cst [1] : vector<16x128xf32> to vector<16xf32>
    %4 = vector.shape_cast %3 : vector<16xf32> to vector<16x1xf32>
    %cst_5 = arith.constant 3.200000e+01 : f32
    %5 = vector.broadcast %cst_5 : f32 to vector<16x1xf32>
    %6 = arith.divf %4, %5 : vector<16x1xf32>
    %7 = arith.mulf %0, %0 : vector<16x128xf32>
    %cst_6 = arith.constant dense<0.000000e+00> : vector<16xf32>
    %8 = vector.multi_reduction <add>, %7, %cst_6 [1] : vector<16x128xf32> to vector<16xf32>
    %9 = vector.shape_cast %8 : vector<16xf32> to vector<16x1xf32>
    %cst_7 = arith.constant 3.200000e+01 : f32
    %10 = vector.broadcast %cst_7 : f32 to vector<16x1xf32>
    %11 = arith.divf %9, %10 : vector<16x1xf32>
    %12 = arith.mulf %6, %6 : vector<16x1xf32>
    %13 = arith.subf %11, %12 : vector<16x1xf32>
    %cst_8 = arith.constant 0.000000e+00 : f32
    %14 = vector.broadcast %cst_8 : f32 to vector<16x1xf32>
    %15 = arith.maximumf %13, %14 : vector<16x1xf32>
    %16 = vector.broadcast %6 : vector<16x1xf32> to vector<16x128xf32>
    %17 = arith.subf %0, %16 : vector<16x128xf32>
    %cst_9 = arith.constant 9.99999974E-6 : f32
    %18 = vector.broadcast %cst_9 : f32 to vector<16x1xf32>
    %19 = arith.addf %15, %18 : vector<16x1xf32>
    %20 = math.rsqrt %19 : vector<16x1xf32>
    %21 = vector.broadcast %20 : vector<16x1xf32> to vector<16x128xf32>
    %22 = arith.mulf %17, %21 : vector<16x128xf32>
    %23 = vector.broadcast %1 : vector<1x128xf32> to vector<16x128xf32>
    %24 = arith.mulf %22, %23 : vector<16x128xf32>
    %25 = vector.broadcast %2 : vector<1x128xf32> to vector<16x128xf32>
    %26 = arith.addf %24, %25 : vector<16x128xf32>
    %cst_10 = arith.constant 0.000000e+00 : f32
    %27 = vector.broadcast %cst_10 : f32 to vector<16x128xf32>
    %28 = arith.maximumf %26, %27 : vector<16x128xf32>
    %c0_11 = arith.constant 0 : index
    %c0_12 = arith.constant 0 : index
    %29 = vector.load %arg4[%c0_11, %c0_12] : memref<16x128xf32, #tpu.memory_space<vmem>>, vector<16x128xf32>
    tpu.vector_store %arg4[%c0_11, %c0_12], %28 {strides = array<i32>} : memref<16x128xf32, #tpu.memory_space<vmem>>, vector<16x128xf32>,
    return
  }
  func.func @transform_0(%arg0: i32) -> (i32, i32) {
    %c0_i32 = arith.constant 0 : i32
    %c0_i32_0 = arith.constant 0 : i32
    return %arg0, %c0_i32 : i32, i32
  }
  func.func @transform_1(%arg0: i32) -> (i32, i32) {
    %c0_i32 = arith.constant 0 : i32
    %c0_i32_0 = arith.constant 0 : i32
    %c0_i32_1 = arith.constant 0 : i32
    return %c0_i32, %c0_i32_0 : i32, i32
  }
  func.func @transform_2(%arg0: i32) -> (i32, i32) {
    %c0_i32 = arith.constant 0 : i32
    %c0_i32_0 = arith.constant 0 : i32
    %c0_i32_1 = arith.constant 0 : i32
    return %c0_i32, %c0_i32_0 : i32, i32
  }
  func.func @transform_3(%arg0: i32) -> (i32, i32) {
    %c0_i32 = arith.constant 0 : i32
    %c0_i32_0 = arith.constant 0 : i32
    return %arg0, %c0_i32 : i32, i32
  }
}

module attributes {stable_mosaic.version = 11 : i64} {
  func.func @sage_layer_kernel(%arg0: i32, %arg1: memref<1x128xi32, #tpu.memory_space<vmem>>, %arg2: memref<1xf32, #tpu.memory_space<smem>>, %arg3: memref<16x128xf32, #tpu.memory_space<vmem>>, %arg4: memref<128x128xf32, #tpu.memory_space<vmem>>, %arg5: memref<128x128xf32, #tpu.memory_space<vmem>>, %arg6: memref<128x128xf32, #tpu.memory_space<vmem>>, %arg7: memref<128x128xbf16, #tpu.memory_space<vmem>>, %arg8: memref<128x128xbf16, #tpu.memory_space<vmem>>, %arg9: memref<128x128xbf16, #tpu.memory_space<vmem>>, %arg10: memref<1x128xf32, #tpu.memory_space<vmem>>, %arg11: memref<128x128xbf16, #tpu.memory_space<vmem>>, %arg12: memref<1x128xf32, #tpu.memory_space<vmem>>, %arg13: memref<128x128xbf16, #tpu.memory_space<vmem>>, %arg14: memref<1x128xf32, #tpu.memory_space<vmem>>, %arg15: memref<1x128xf32, #tpu.memory_space<vmem>>, %arg16: memref<1x128xf32, #tpu.memory_space<vmem>>, %arg17: memref<1x128xf32, #tpu.memory_space<vmem>>, %arg18: memref<16x128xf32, #tpu.memory_space<vmem>>, %arg19: memref<128x128xf32, #tpu.memory_space<vmem>>, %arg20: memref<1x128xf32, #tpu.memory_space<vmem>>, %arg21: memref<16x128xf32, #tpu.memory_space<vmem>>, %arg22: memref<16x128xf32, #tpu.memory_space<vmem>>) attributes {dimension_semantics = [#tpu.dimension_semantics<arbitrary>], iteration_bounds = array<i64: 1>, scalar_prefetch = 0 : i64, scratch_operands = 3 : i64, tpu.core_type = #tpu.core_type<tc>, window_params = [{transform_indices = @transform_0, window_bounds = array<i64: 1, 128>}, {transform_indices = @transform_1, window_bounds = array<i64: 1>}, {pipeline_mode = #tpu.pipeline_mode<synchronous>, transform_indices = @transform_2, window_bounds = array<i64: 16, 128>}, {transform_indices = @transform_3, window_bounds = array<i64: 128, 128>}, {transform_indices = @transform_4, window_bounds = array<i64: 128, 128>}, {transform_indices = @transform_5, window_bounds = array<i64: 128, 128>}, {pipeline_mode = #tpu.pipeline_mode<synchronous>, transform_indices = @transform_6, window_bounds = array<i64: 128, 128>}, {pipeline_mode = #tpu.pipeline_mode<synchronous>, transform_indices = @transform_7, window_bounds = array<i64: 128, 128>}, {pipeline_mode = #tpu.pipeline_mode<synchronous>, transform_indices = @transform_8, window_bounds = array<i64: 128, 128>}, {pipeline_mode = #tpu.pipeline_mode<synchronous>, transform_indices = @transform_9, window_bounds = array<i64: 1, 128>}, {pipeline_mode = #tpu.pipeline_mode<synchronous>, transform_indices = @transform_10, window_bounds = array<i64: 128, 128>}, {pipeline_mode = #tpu.pipeline_mode<synchronous>, transform_indices = @transform_11, window_bounds = array<i64: 1, 128>}, {pipeline_mode = #tpu.pipeline_mode<synchronous>, transform_indices = @transform_12, window_bounds = array<i64: 128, 128>}, {pipeline_mode = #tpu.pipeline_mode<synchronous>, transform_indices = @transform_13, window_bounds = array<i64: 1, 128>}, {pipeline_mode = #tpu.pipeline_mode<synchronous>, transform_indices = @transform_14, window_bounds = array<i64: 1, 128>}, {pipeline_mode = #tpu.pipeline_mode<synchronous>, transform_indices = @transform_15, window_bounds = array<i64: 1, 128>}, {pipeline_mode = #tpu.pipeline_mode<synchronous>, transform_indices = @transform_16, window_bounds = array<i64: 1, 128>}, {pipeline_mode = #tpu.pipeline_mode<synchronous>, transform_indices = @transform_17, window_bounds = array<i64: 16, 128>}, {transform_indices = @transform_18, window_bounds = array<i64: 128, 128>}]} {
    %c0_i32 = arith.constant 0 : i32
    %0 = arith.cmpi eq, %arg0, %c0_i32 : i32
    %1 = arith.extui %0 : i1 to i32
    %c0_i32_0 = arith.constant 0 : i32
    %2 = arith.cmpi ne, %1, %c0_i32_0 : i32
    scf.if %2 {
      %cst_72 = arith.constant -1.000000e+30 : f32
      %148 = vector.broadcast %cst_72 : f32 to vector<1x128xf32>
      %c0_73 = arith.constant 0 : index
      %c0_74 = arith.constant 0 : index
      %149 = vector.load %arg20[%c0_73, %c0_74] : memref<1x128xf32, #tpu.memory_space<vmem>>, vector<1x128xf32>
      tpu.vector_store %arg20[%c0_73, %c0_74], %148 {strides = array<i32>} : memref<1x128xf32, #tpu.memory_space<vmem>>, vector<1x128xf32>,
      %cst_75 = arith.constant 0.000000e+00 : f32
      %150 = vector.broadcast %cst_75 : f32 to vector<16x128xf32>
      %c0_76 = arith.constant 0 : index
      %c0_77 = arith.constant 0 : index
      %151 = vector.load %arg21[%c0_76, %c0_77] : memref<16x128xf32, #tpu.memory_space<vmem>>, vector<16x128xf32>
      tpu.vector_store %arg21[%c0_76, %c0_77], %150 {strides = array<i32>} : memref<16x128xf32, #tpu.memory_space<vmem>>, vector<16x128xf32>,
      %cst_78 = arith.constant 0.000000e+00 : f32
      %152 = vector.broadcast %cst_78 : f32 to vector<16x128xf32>
      %c0_79 = arith.constant 0 : index
      %c0_80 = arith.constant 0 : index
      %153 = vector.load %arg22[%c0_79, %c0_80] : memref<16x128xf32, #tpu.memory_space<vmem>>, vector<16x128xf32>
      tpu.vector_store %arg22[%c0_79, %c0_80], %152 {strides = array<i32>} : memref<16x128xf32, #tpu.memory_space<vmem>>, vector<16x128xf32>,
    } else {
    }
    %c0 = arith.constant 0 : index
    %c0_1 = arith.constant 0 : index
    %3 = vector.load %arg4[%c0, %c0_1] : memref<128x128xf32, #tpu.memory_space<vmem>>, vector<128x128xf32>
    %c0_2 = arith.constant 0 : index
    %c0_3 = arith.constant 0 : index
    %4 = vector.load %arg5[%c0_2, %c0_3] : memref<128x128xf32, #tpu.memory_space<vmem>>, vector<128x128xf32>
    %c0_4 = arith.constant 0 : index
    %c0_5 = arith.constant 0 : index
    %5 = vector.load %arg6[%c0_4, %c0_5] : memref<128x128xf32, #tpu.memory_space<vmem>>, vector<128x128xf32>
    %c0_6 = arith.constant 0 : index
    %c0_7 = arith.constant 0 : index
    %6 = vector.load %arg14[%c0_6, %c0_7] : memref<1x128xf32, #tpu.memory_space<vmem>>, vector<1x128xf32>
    %c0_8 = arith.constant 0 : index
    %c0_9 = arith.constant 0 : index
    %7 = vector.load %arg15[%c0_8, %c0_9] : memref<1x128xf32, #tpu.memory_space<vmem>>, vector<1x128xf32>
    %cst = arith.constant dense<0.000000e+00> : vector<128xf32>
    %8 = vector.multi_reduction <add>, %3, %cst [1] : vector<128x128xf32> to vector<128xf32>
    %9 = vector.shape_cast %8 : vector<128xf32> to vector<128x1xf32>
    %cst_10 = arith.constant 3.200000e+01 : f32
    %10 = vector.broadcast %cst_10 : f32 to vector<128x1xf32>
    %11 = arith.divf %9, %10 : vector<128x1xf32>
    %12 = arith.mulf %3, %3 : vector<128x128xf32>
    %cst_11 = arith.constant dense<0.000000e+00> : vector<128xf32>
    %13 = vector.multi_reduction <add>, %12, %cst_11 [1] : vector<128x128xf32> to vector<128xf32>
    %14 = vector.shape_cast %13 : vector<128xf32> to vector<128x1xf32>
    %cst_12 = arith.constant 3.200000e+01 : f32
    %15 = vector.broadcast %cst_12 : f32 to vector<128x1xf32>
    %16 = arith.divf %14, %15 : vector<128x1xf32>
    %17 = arith.mulf %11, %11 : vector<128x1xf32>
    %18 = arith.subf %16, %17 : vector<128x1xf32>
    %cst_13 = arith.constant 0.000000e+00 : f32
    %19 = vector.broadcast %cst_13 : f32 to vector<128x1xf32>
    %20 = arith.maximumf %18, %19 : vector<128x1xf32>
    %21 = vector.broadcast %11 : vector<128x1xf32> to vector<128x128xf32>
    %22 = arith.subf %3, %21 : vector<128x128xf32>
    %cst_14 = arith.constant 9.99999974E-6 : f32
    %23 = vector.broadcast %cst_14 : f32 to vector<128x1xf32>
    %24 = arith.addf %20, %23 : vector<128x1xf32>
    %25 = math.rsqrt %24 : vector<128x1xf32>
    %26 = vector.broadcast %25 : vector<128x1xf32> to vector<128x128xf32>
    %27 = arith.mulf %22, %26 : vector<128x128xf32>
    %28 = vector.broadcast %6 : vector<1x128xf32> to vector<128x128xf32>
    %29 = arith.mulf %27, %28 : vector<128x128xf32>
    %30 = vector.broadcast %7 : vector<1x128xf32> to vector<128x128xf32>
    %31 = arith.addf %29, %30 : vector<128x128xf32>
    %cst_15 = arith.constant 0.000000e+00 : f32
    %32 = vector.broadcast %cst_15 : f32 to vector<128x128xf32>
    %33 = arith.maximumf %31, %32 : vector<128x128xf32>
    %cst_16 = arith.constant dense<0.000000e+00> : vector<128xf32>
    %34 = vector.multi_reduction <add>, %4, %cst_16 [1] : vector<128x128xf32> to vector<128xf32>
    %35 = vector.shape_cast %34 : vector<128xf32> to vector<128x1xf32>
    %cst_17 = arith.constant 3.200000e+01 : f32
    %36 = vector.broadcast %cst_17 : f32 to vector<128x1xf32>
    %37 = arith.divf %35, %36 : vector<128x1xf32>
    %38 = arith.mulf %4, %4 : vector<128x128xf32>
    %cst_18 = arith.constant dense<0.000000e+00> : vector<128xf32>
    %39 = vector.multi_reduction <add>, %38, %cst_18 [1] : vector<128x128xf32> to vector<128xf32>
    %40 = vector.shape_cast %39 : vector<128xf32> to vector<128x1xf32>
    %cst_19 = arith.constant 3.200000e+01 : f32
    %41 = vector.broadcast %cst_19 : f32 to vector<128x1xf32>
    %42 = arith.divf %40, %41 : vector<128x1xf32>
    %43 = arith.mulf %37, %37 : vector<128x1xf32>
    %44 = arith.subf %42, %43 : vector<128x1xf32>
    %cst_20 = arith.constant 0.000000e+00 : f32
    %45 = vector.broadcast %cst_20 : f32 to vector<128x1xf32>
    %46 = arith.maximumf %44, %45 : vector<128x1xf32>
    %47 = vector.broadcast %37 : vector<128x1xf32> to vector<128x128xf32>
    %48 = arith.subf %4, %47 : vector<128x128xf32>
    %cst_21 = arith.constant 9.99999974E-6 : f32
    %49 = vector.broadcast %cst_21 : f32 to vector<128x1xf32>
    %50 = arith.addf %46, %49 : vector<128x1xf32>
    %51 = math.rsqrt %50 : vector<128x1xf32>
    %52 = vector.broadcast %51 : vector<128x1xf32> to vector<128x128xf32>
    %53 = arith.mulf %48, %52 : vector<128x128xf32>
    %54 = vector.broadcast %6 : vector<1x128xf32> to vector<128x128xf32>
    %55 = arith.mulf %53, %54 : vector<128x128xf32>
    %56 = vector.broadcast %7 : vector<1x128xf32> to vector<128x128xf32>
    %57 = arith.addf %55, %56 : vector<128x128xf32>
    %cst_22 = arith.constant 0.000000e+00 : f32
    %58 = vector.broadcast %cst_22 : f32 to vector<128x128xf32>
    %59 = arith.maximumf %57, %58 : vector<128x128xf32>
    %c0_23 = arith.constant 0 : index
    %c0_24 = arith.constant 0 : index
    %60 = vector.load %arg16[%c0_23, %c0_24] : memref<1x128xf32, #tpu.memory_space<vmem>>, vector<1x128xf32>
    %c0_25 = arith.constant 0 : index
    %c0_26 = arith.constant 0 : index
    %61 = vector.load %arg17[%c0_25, %c0_26] : memref<1x128xf32, #tpu.memory_space<vmem>>, vector<1x128xf32>
    %cst_27 = arith.constant dense<0.000000e+00> : vector<128xf32>
    %62 = vector.multi_reduction <add>, %5, %cst_27 [1] : vector<128x128xf32> to vector<128xf32>
    %63 = vector.shape_cast %62 : vector<128xf32> to vector<128x1xf32>
    %cst_28 = arith.constant 3.200000e+01 : f32
    %64 = vector.broadcast %cst_28 : f32 to vector<128x1xf32>
    %65 = arith.divf %63, %64 : vector<128x1xf32>
    %66 = arith.mulf %5, %5 : vector<128x128xf32>
    %cst_29 = arith.constant dense<0.000000e+00> : vector<128xf32>
    %67 = vector.multi_reduction <add>, %66, %cst_29 [1] : vector<128x128xf32> to vector<128xf32>
    %68 = vector.shape_cast %67 : vector<128xf32> to vector<128x1xf32>
    %cst_30 = arith.constant 3.200000e+01 : f32
    %69 = vector.broadcast %cst_30 : f32 to vector<128x1xf32>
    %70 = arith.divf %68, %69 : vector<128x1xf32>
    %71 = arith.mulf %65, %65 : vector<128x1xf32>
    %72 = arith.subf %70, %71 : vector<128x1xf32>
    %cst_31 = arith.constant 0.000000e+00 : f32
    %73 = vector.broadcast %cst_31 : f32 to vector<128x1xf32>
    %74 = arith.maximumf %72, %73 : vector<128x1xf32>
    %75 = vector.broadcast %65 : vector<128x1xf32> to vector<128x128xf32>
    %76 = arith.subf %5, %75 : vector<128x128xf32>
    %cst_32 = arith.constant 9.99999974E-6 : f32
    %77 = vector.broadcast %cst_32 : f32 to vector<128x1xf32>
    %78 = arith.addf %74, %77 : vector<128x1xf32>
    %79 = math.rsqrt %78 : vector<128x1xf32>
    %80 = vector.broadcast %79 : vector<128x1xf32> to vector<128x128xf32>
    %81 = arith.mulf %76, %80 : vector<128x128xf32>
    %82 = vector.broadcast %60 : vector<1x128xf32> to vector<128x128xf32>
    %83 = arith.mulf %81, %82 : vector<128x128xf32>
    %84 = vector.broadcast %61 : vector<1x128xf32> to vector<128x128xf32>
    %85 = arith.addf %83, %84 : vector<128x128xf32>
    %86 = arith.truncf %33 : vector<128x128xf32> to vector<128x128xbf16>
    %c0_33 = arith.constant 0 : index
    %c0_34 = arith.constant 0 : index
    %87 = vector.load %arg7[%c0_33, %c0_34] : memref<128x128xbf16, #tpu.memory_space<vmem>>, vector<128x128xbf16>
    %cst_35 = arith.constant dense<0.000000e+00> : vector<128x128xf32>
    %88 = tpu.matmul %86, %87, %cst_35 {dimension_numbers = #tpu.dot_dimension_numbers<[1], [0], [0], [1], [0, 0, 1, 1], [], []>} : vector<128x128xbf16>, vector<128x128xbf16>, vector<128x128xf32> -> vector<128x128xf32>
    %89 = arith.truncf %59 : vector<128x128xf32> to vector<128x128xbf16>
    %c0_36 = arith.constant 0 : index
    %c0_37 = arith.constant 0 : index
    %90 = vector.load %arg8[%c0_36, %c0_37] : memref<128x128xbf16, #tpu.memory_space<vmem>>, vector<128x128xbf16>
    %cst_38 = arith.constant dense<0.000000e+00> : vector<128x128xf32>
    %91 = tpu.matmul %89, %90, %cst_38 {dimension_numbers = #tpu.dot_dimension_numbers<[1], [0], [0], [1], [0, 0, 1, 1], [], []>} : vector<128x128xbf16>, vector<128x128xbf16>, vector<128x128xf32> -> vector<128x128xf32>
    %92 = arith.addf %88, %91 : vector<128x128xf32>
    %93 = arith.truncf %85 : vector<128x128xf32> to vector<128x128xbf16>
    %c0_39 = arith.constant 0 : index
    %c0_40 = arith.constant 0 : index
    %94 = vector.load %arg9[%c0_39, %c0_40] : memref<128x128xbf16, #tpu.memory_space<vmem>>, vector<128x128xbf16>
    %cst_41 = arith.constant dense<0.000000e+00> : vector<128x128xf32>
    %95 = tpu.matmul %93, %94, %cst_41 {dimension_numbers = #tpu.dot_dimension_numbers<[1], [0], [0], [1], [0, 0, 1, 1], [], []>} : vector<128x128xbf16>, vector<128x128xbf16>, vector<128x128xf32> -> vector<128x128xf32>
    %96 = arith.addf %92, %95 : vector<128x128xf32>
    %c0_42 = arith.constant 0 : index
    %c0_43 = arith.constant 0 : index
    %97 = vector.load %arg10[%c0_42, %c0_43] : memref<1x128xf32, #tpu.memory_space<vmem>>, vector<1x128xf32>
    %98 = vector.broadcast %97 : vector<1x128xf32> to vector<128x128xf32>
    %99 = arith.addf %96, %98 : vector<128x128xf32>
    %cst_44 = arith.constant 0.000000e+00 : f32
    %100 = vector.broadcast %cst_44 : f32 to vector<128x128xf32>
    %101 = arith.maximumf %99, %100 : vector<128x128xf32>
    %102 = arith.truncf %101 : vector<128x128xf32> to vector<128x128xbf16>
    %c0_45 = arith.constant 0 : index
    %c0_46 = arith.constant 0 : index
    %103 = vector.load %arg11[%c0_45, %c0_46] : memref<128x128xbf16, #tpu.memory_space<vmem>>, vector<128x128xbf16>
    %cst_47 = arith.constant dense<0.000000e+00> : vector<128x128xf32>
    %104 = tpu.matmul %102, %103, %cst_47 {dimension_numbers = #tpu.dot_dimension_numbers<[1], [0], [0], [1], [0, 0, 1, 1], [], []>} : vector<128x128xbf16>, vector<128x128xbf16>, vector<128x128xf32> -> vector<128x128xf32>
    %c0_48 = arith.constant 0 : index
    %c0_49 = arith.constant 0 : index
    %105 = vector.load %arg12[%c0_48, %c0_49] : memref<1x128xf32, #tpu.memory_space<vmem>>, vector<1x128xf32>
    %106 = vector.broadcast %105 : vector<1x128xf32> to vector<128x128xf32>
    %107 = arith.addf %104, %106 : vector<128x128xf32>
    %108 = arith.addf %5, %107 : vector<128x128xf32>
    %c0_50 = arith.constant 0 : index
    %c0_51 = arith.constant 0 : index
    %109 = vector.load %arg19[%c0_50, %c0_51] : memref<128x128xf32, #tpu.memory_space<vmem>>, vector<128x128xf32>
    tpu.vector_store %arg19[%c0_50, %c0_51], %108 {strides = array<i32>} : memref<128x128xf32, #tpu.memory_space<vmem>>, vector<128x128xf32>,
    %c0_52 = arith.constant 0 : index
    %110 = memref.load %arg2[%c0_52] : memref<1xf32, #tpu.memory_space<smem>>
    %111 = vector.broadcast %110 : f32 to vector<128x128xf32>
    %112 = arith.mulf %107, %111 : vector<128x128xf32>
    %113 = tpu.iota {dimensions = array<i32: 0>} : vector<16x128xi32>
    %c0_53 = arith.constant 0 : index
    %c0_54 = arith.constant 0 : index
    %114 = vector.load %arg1[%c0_53, %c0_54] : memref<1x128xi32, #tpu.memory_space<vmem>>, vector<1x128xi32>
    %115 = vector.broadcast %114 : vector<1x128xi32> to vector<16x128xi32>
    %116 = arith.cmpi eq, %113, %115 : vector<16x128xi32>
    %117 = arith.extui %116 : vector<16x128xi1> to vector<16x128xi32>
    %118 = arith.sitofp %117 : vector<16x128xi32> to vector<16x128xf32>
    %119 = arith.truncf %118 : vector<16x128xf32> to vector<16x128xbf16>
    %c0_55 = arith.constant 0 : index
    %c0_56 = arith.constant 0 : index
    %120 = vector.load %arg20[%c0_55, %c0_56] : memref<1x128xf32, #tpu.memory_space<vmem>>, vector<1x128xf32>
    %cst_57 = arith.constant dense<0xFF800000> : vector<128xf32>
    %121 = vector.multi_reduction <maximumf>, %112, %cst_57 [0] : vector<128x128xf32> to vector<128xf32>
    %122 = vector.shape_cast %121 : vector<128xf32> to vector<1x128xf32>
    %123 = arith.maximumf %120, %122 : vector<1x128xf32>
    %124 = arith.subf %120, %123 : vector<1x128xf32>
    %125 = math.exp %124 : vector<1x128xf32>
    %126 = vector.broadcast %123 : vector<1x128xf32> to vector<128x128xf32>
    %127 = arith.subf %112, %126 : vector<128x128xf32>
    %128 = math.exp %127 : vector<128x128xf32>
    %c0_58 = arith.constant 0 : index
    %c0_59 = arith.constant 0 : index
    %129 = vector.load %arg21[%c0_58, %c0_59] : memref<16x128xf32, #tpu.memory_space<vmem>>, vector<16x128xf32>
    %130 = vector.broadcast %125 : vector<1x128xf32> to vector<16x128xf32>
    %131 = arith.mulf %129, %130 : vector<16x128xf32>
    %132 = arith.truncf %128 : vector<128x128xf32> to vector<128x128xbf16>
    %cst_60 = arith.constant dense<0.000000e+00> : vector<16x128xf32>
    %133 = tpu.matmul %119, %132, %cst_60 {dimension_numbers = #tpu.dot_dimension_numbers<[1], [0], [0], [1], [0, 0, 1, 1], [], []>} : vector<16x128xbf16>, vector<128x128xbf16>, vector<16x128xf32> -> vector<16x128xf32>
    %134 = arith.addf %131, %133 : vector<16x128xf32>
    %c0_61 = arith.constant 0 : index
    %c0_62 = arith.constant 0 : index
    %135 = vector.load %arg21[%c0_61, %c0_62] : memref<16x128xf32, #tpu.memory_space<vmem>>, vector<16x128xf32>
    tpu.vector_store %arg21[%c0_61, %c0_62], %134 {strides = array<i32>} : memref<16x128xf32, #tpu.memory_space<vmem>>, vector<16x128xf32>,
    %c0_63 = arith.constant 0 : index
    %c0_64 = arith.constant 0 : index
    %136 = vector.load %arg22[%c0_63, %c0_64] : memref<16x128xf32, #tpu.memory_space<vmem>>, vector<16x128xf32>
    %137 = vector.broadcast %125 : vector<1x128xf32> to vector<16x128xf32>
    %138 = arith.mulf %136, %137 : vector<16x128xf32>
    %139 = arith.mulf %107, %128 : vector<128x128xf32>
    %140 = arith.truncf %139 : vector<128x128xf32> to vector<128x128xbf16>
    %cst_65 = arith.constant dense<0.000000e+00> : vector<16x128xf32>
    %141 = tpu.matmul %119, %140, %cst_65 {dimension_numbers = #tpu.dot_dimension_numbers<[1], [0], [0], [1], [0, 0, 1, 1], [], []>} : vector<16x128xbf16>, vector<128x128xbf16>, vector<16x128xf32> -> vector<16x128xf32>
    %142 = arith.addf %138, %141 : vector<16x128xf32>
    %c0_66 = arith.constant 0 : index
    %c0_67 = arith.constant 0 : index
    %143 = vector.load %arg22[%c0_66, %c0_67] : memref<16x128xf32, #tpu.memory_space<vmem>>, vector<16x128xf32>
    tpu.vector_store %arg22[%c0_66, %c0_67], %142 {strides = array<i32>} : memref<16x128xf32, #tpu.memory_space<vmem>>, vector<16x128xf32>,
    %c0_68 = arith.constant 0 : index
    %c0_69 = arith.constant 0 : index
    %144 = vector.load %arg20[%c0_68, %c0_69] : memref<1x128xf32, #tpu.memory_space<vmem>>, vector<1x128xf32>
    tpu.vector_store %arg20[%c0_68, %c0_69], %123 {strides = array<i32>} : memref<1x128xf32, #tpu.memory_space<vmem>>, vector<1x128xf32>,
    %c0_i32_70 = arith.constant 0 : i32
    %145 = arith.cmpi eq, %arg0, %c0_i32_70 : i32
    %146 = arith.extui %145 : i1 to i32
    %c0_i32_71 = arith.constant 0 : i32
    %147 = arith.cmpi ne, %146, %c0_i32_71 : i32
    scf.if %147 {
      %c0_72 = arith.constant 0 : index
      %c0_73 = arith.constant 0 : index
      %148 = vector.load %arg3[%c0_72, %c0_73] : memref<16x128xf32, #tpu.memory_space<vmem>>, vector<16x128xf32>
      %c0_74 = arith.constant 0 : index
      %c0_75 = arith.constant 0 : index
      %149 = vector.load %arg22[%c0_74, %c0_75] : memref<16x128xf32, #tpu.memory_space<vmem>>, vector<16x128xf32>
      %c0_76 = arith.constant 0 : index
      %c0_77 = arith.constant 0 : index
      %150 = vector.load %arg21[%c0_76, %c0_77] : memref<16x128xf32, #tpu.memory_space<vmem>>, vector<16x128xf32>
      %cst_78 = arith.constant 9.99999996E-13 : f32
      %151 = vector.broadcast %cst_78 : f32 to vector<16x128xf32>
      %152 = arith.maximumf %150, %151 : vector<16x128xf32>
      %153 = arith.divf %149, %152 : vector<16x128xf32>
      %c0_79 = arith.constant 0 : index
      %c0_80 = arith.constant 0 : index
      %154 = vector.load %arg14[%c0_79, %c0_80] : memref<1x128xf32, #tpu.memory_space<vmem>>, vector<1x128xf32>
      %c0_81 = arith.constant 0 : index
      %c0_82 = arith.constant 0 : index
      %155 = vector.load %arg15[%c0_81, %c0_82] : memref<1x128xf32, #tpu.memory_space<vmem>>, vector<1x128xf32>
      %cst_83 = arith.constant dense<0.000000e+00> : vector<16xf32>
      %156 = vector.multi_reduction <add>, %148, %cst_83 [1] : vector<16x128xf32> to vector<16xf32>
      %157 = vector.shape_cast %156 : vector<16xf32> to vector<16x1xf32>
      %cst_84 = arith.constant 3.200000e+01 : f32
      %158 = vector.broadcast %cst_84 : f32 to vector<16x1xf32>
      %159 = arith.divf %157, %158 : vector<16x1xf32>
      %160 = arith.mulf %148, %148 : vector<16x128xf32>
      %cst_85 = arith.constant dense<0.000000e+00> : vector<16xf32>
      %161 = vector.multi_reduction <add>, %160, %cst_85 [1] : vector<16x128xf32> to vector<16xf32>
      %162 = vector.shape_cast %161 : vector<16xf32> to vector<16x1xf32>
      %cst_86 = arith.constant 3.200000e+01 : f32
      %163 = vector.broadcast %cst_86 : f32 to vector<16x1xf32>
      %164 = arith.divf %162, %163 : vector<16x1xf32>
      %165 = arith.mulf %159, %159 : vector<16x1xf32>
      %166 = arith.subf %164, %165 : vector<16x1xf32>
      %cst_87 = arith.constant 0.000000e+00 : f32
      %167 = vector.broadcast %cst_87 : f32 to vector<16x1xf32>
      %168 = arith.maximumf %166, %167 : vector<16x1xf32>
      %169 = vector.broadcast %159 : vector<16x1xf32> to vector<16x128xf32>
      %170 = arith.subf %148, %169 : vector<16x128xf32>
      %cst_88 = arith.constant 9.99999974E-6 : f32
      %171 = vector.broadcast %cst_88 : f32 to vector<16x1xf32>
      %172 = arith.addf %168, %171 : vector<16x1xf32>
      %173 = math.rsqrt %172 : vector<16x1xf32>
      %174 = vector.broadcast %173 : vector<16x1xf32> to vector<16x128xf32>
      %175 = arith.mulf %170, %174 : vector<16x128xf32>
      %176 = vector.broadcast %154 : vector<1x128xf32> to vector<16x128xf32>
      %177 = arith.mulf %175, %176 : vector<16x128xf32>
      %178 = vector.broadcast %155 : vector<1x128xf32> to vector<16x128xf32>
      %179 = arith.addf %177, %178 : vector<16x128xf32>
      %cst_89 = arith.constant 0.000000e+00 : f32
      %180 = vector.broadcast %cst_89 : f32 to vector<16x128xf32>
      %181 = arith.maximumf %179, %180 : vector<16x128xf32>
      %182 = arith.addf %148, %153 : vector<16x128xf32>
      %183 = arith.truncf %181 : vector<16x128xf32> to vector<16x128xbf16>
      %c0_90 = arith.constant 0 : index
      %c0_91 = arith.constant 0 : index
      %184 = vector.load %arg13[%c0_90, %c0_91] : memref<128x128xbf16, #tpu.memory_space<vmem>>, vector<128x128xbf16>
      %cst_92 = arith.constant dense<0.000000e+00> : vector<16x128xf32>
      %185 = tpu.matmul %183, %184, %cst_92 {dimension_numbers = #tpu.dot_dimension_numbers<[1], [0], [0], [1], [0, 0, 1, 1], [], []>} : vector<16x128xbf16>, vector<128x128xbf16>, vector<16x128xf32> -> vector<16x128xf32>
      %186 = arith.addf %182, %185 : vector<16x128xf32>
      %c0_93 = arith.constant 0 : index
      %c0_94 = arith.constant 0 : index
      %187 = vector.load %arg18[%c0_93, %c0_94] : memref<16x128xf32, #tpu.memory_space<vmem>>, vector<16x128xf32>
      tpu.vector_store %arg18[%c0_93, %c0_94], %186 {strides = array<i32>} : memref<16x128xf32, #tpu.memory_space<vmem>>, vector<16x128xf32>,
    } else {
    }
    return
  }
  func.func @transform_0(%arg0: i32) -> (i32, i32) {
    %c0_i32 = arith.constant 0 : i32
    %c0_i32_0 = arith.constant 0 : i32
    return %c0_i32, %arg0 : i32, i32
  }
  func.func @transform_1(%arg0: i32) -> i32 {
    %c0_i32 = arith.constant 0 : i32
    %c0_i32_0 = arith.constant 0 : i32
    return %c0_i32 : i32
  }
  func.func @transform_2(%arg0: i32) -> (i32, i32) {
    %c0_i32 = arith.constant 0 : i32
    %c0_i32_0 = arith.constant 0 : i32
    %c0_i32_1 = arith.constant 0 : i32
    return %c0_i32, %c0_i32_0 : i32, i32
  }
  func.func @transform_3(%arg0: i32) -> (i32, i32) {
    %c0_i32 = arith.constant 0 : i32
    %c0_i32_0 = arith.constant 0 : i32
    return %arg0, %c0_i32 : i32, i32
  }
  func.func @transform_4(%arg0: i32) -> (i32, i32) {
    %c0_i32 = arith.constant 0 : i32
    %c0_i32_0 = arith.constant 0 : i32
    return %arg0, %c0_i32 : i32, i32
  }
  func.func @transform_5(%arg0: i32) -> (i32, i32) {
    %c0_i32 = arith.constant 0 : i32
    %c0_i32_0 = arith.constant 0 : i32
    return %arg0, %c0_i32 : i32, i32
  }
  func.func @transform_6(%arg0: i32) -> (i32, i32) {
    %c0_i32 = arith.constant 0 : i32
    %c0_i32_0 = arith.constant 0 : i32
    %c0_i32_1 = arith.constant 0 : i32
    return %c0_i32, %c0_i32_0 : i32, i32
  }
  func.func @transform_7(%arg0: i32) -> (i32, i32) {
    %c0_i32 = arith.constant 0 : i32
    %c0_i32_0 = arith.constant 0 : i32
    %c0_i32_1 = arith.constant 0 : i32
    return %c0_i32, %c0_i32_0 : i32, i32
  }
  func.func @transform_8(%arg0: i32) -> (i32, i32) {
    %c0_i32 = arith.constant 0 : i32
    %c0_i32_0 = arith.constant 0 : i32
    %c0_i32_1 = arith.constant 0 : i32
    return %c0_i32, %c0_i32_0 : i32, i32
  }
  func.func @transform_9(%arg0: i32) -> (i32, i32) {
    %c0_i32 = arith.constant 0 : i32
    %c0_i32_0 = arith.constant 0 : i32
    %c0_i32_1 = arith.constant 0 : i32
    return %c0_i32, %c0_i32_0 : i32, i32
  }
  func.func @transform_10(%arg0: i32) -> (i32, i32) {
    %c0_i32 = arith.constant 0 : i32
    %c0_i32_0 = arith.constant 0 : i32
    %c0_i32_1 = arith.constant 0 : i32
    return %c0_i32, %c0_i32_0 : i32, i32
  }
  func.func @transform_11(%arg0: i32) -> (i32, i32) {
    %c0_i32 = arith.constant 0 : i32
    %c0_i32_0 = arith.constant 0 : i32
    %c0_i32_1 = arith.constant 0 : i32
    return %c0_i32, %c0_i32_0 : i32, i32
  }
  func.func @transform_12(%arg0: i32) -> (i32, i32) {
    %c0_i32 = arith.constant 0 : i32
    %c0_i32_0 = arith.constant 0 : i32
    %c0_i32_1 = arith.constant 0 : i32
    return %c0_i32, %c0_i32_0 : i32, i32
  }
  func.func @transform_13(%arg0: i32) -> (i32, i32) {
    %c0_i32 = arith.constant 0 : i32
    %c0_i32_0 = arith.constant 0 : i32
    %c0_i32_1 = arith.constant 0 : i32
    return %c0_i32, %c0_i32_0 : i32, i32
  }
  func.func @transform_14(%arg0: i32) -> (i32, i32) {
    %c0_i32 = arith.constant 0 : i32
    %c0_i32_0 = arith.constant 0 : i32
    %c0_i32_1 = arith.constant 0 : i32
    return %c0_i32, %c0_i32_0 : i32, i32
  }
  func.func @transform_15(%arg0: i32) -> (i32, i32) {
    %c0_i32 = arith.constant 0 : i32
    %c0_i32_0 = arith.constant 0 : i32
    %c0_i32_1 = arith.constant 0 : i32
    return %c0_i32, %c0_i32_0 : i32, i32
  }
  func.func @transform_16(%arg0: i32) -> (i32, i32) {
    %c0_i32 = arith.constant 0 : i32
    %c0_i32_0 = arith.constant 0 : i32
    %c0_i32_1 = arith.constant 0 : i32
    return %c0_i32, %c0_i32_0 : i32, i32
  }
  func.func @transform_17(%arg0: i32) -> (i32, i32) {
    %c0_i32 = arith.constant 0 : i32
    %c0_i32_0 = arith.constant 0 : i32
    %c0_i32_1 = arith.constant 0 : i32
    return %c0_i32, %c0_i32_0 : i32, i32
  }
  func.func @transform_18(%arg0: i32) -> (i32, i32) {
    %c0_i32 = arith.constant 0 : i32
    %c0_i32_0 = arith.constant 0 : i32
    return %arg0, %c0_i32 : i32, i32
  }
}

</mosaic_0001>

<bundles_post_ra>
// kernel: deeper_gcn_forward.10
= control target key start
LH: loop header
LB: loop body
LE: loop exit
PB: predicated region body
PF: predicated region fallthrough
CT: control target
= control target key end

     0   :  { %v243_v0 = vmov 0.0   ;;  %vm244_vm0 = vmmov 0   ;;  %s320_s1 = inlined_call_operand.vmem [shape: bf16[128,128], index: 1, kind: input, shape index: {}]   ;;  %s321_s0 = inlined_call_operand.vmem [shape: f32[16,128], index: 0, kind: input, shape index: {}]   ;;  %s322_s2 = inlined_call_operand.vmem [shape: f32[1,128], index: 2, kind: input, shape index: {}]   ;;  %s323_s3 = inlined_call_operand.vmem [shape: f32[1,128], index: 3, kind: input, shape index: {}]   ;;  %s324_s4 = inlined_call_operand.vmem [shape: f32[1,128], index: 4, kind: input, shape index: {}]   ;;  %s325_s5 = inlined_call_operand.vmem [shape: f32[16,128], index: 5, kind: output, shape index: {}]  }
   0x1   :  { %209 = vmatprep.subr.bf16.mxu0 %v243_v0  ;;  %v231_v1 = vld [vmem:[%s320_s1] sm:$0xff]   ;;  %225 = vmatprep.mubr.msk.bf16.mxu0 %vm244_vm0, %v243_v0  ;;  %v232_v2 = vld [vmem:[%s320_s1 + $0x8] sm:$0xff]   ;;  %v233_v3 = vld [vmem:[%s320_s1 + $0x10] sm:$0xff]  }
   0x2   :  { %210 = vmatpush3.bf16.msra.mxu0 %v231_v1  ;;  %v234_v4 = vld [vmem:[%s320_s1 + $0x18] sm:$0xff]   ;;  %v235_v5 = vld [vmem:[%s320_s1 + $0x20] sm:$0xff]   ;;  %v236_v6 = vld [vmem:[%s320_s1 + $0x28] sm:$0xff]  }
   0x3   :  { %211 = vmatprep.subr.bf16.mxu0 %v243_v0  ;;  %v237_v7 = vld [vmem:[%s320_s1 + $0x30] sm:$0xff]   ;;  %v238_v8 = vld [vmem:[%s320_s1 + $0x38] sm:$0xff]   ;;  %v21_v9 = vld [vmem:[%s321_s0] sm:$0xff] }
   0x4   :  { %v22_v10 = vld [vmem:[%s321_s0 + $0x8] sm:$0xff]  ;;  %v189_v12 = vld [vmem:[%s322_s2] ss:$0 sm:$0xff] }
   0x5   :  { %v23_v11 = vpack.c.bf16 %v22_v10, %v21_v9  ;;  %v198_v39 = vld [vmem:[%s323_s3] ss:$0 sm:$0xff] }
   0x6   :  { %212 = vmatpush3.bf16.msra.mxu0 %v232_v2  ;;  %v199_v41 = vld [vmem:[%s324_s4] ss:$0 sm:$0xff] }
   0x7   :  { %213 = vmatprep.subr.bf16.mxu0 %v243_v0 }
   0xa   :  { %214 = vmatpush3.bf16.msra.mxu0 %v233_v3 }
   0xb   :  { %215 = vmatprep.subr.bf16.mxu0 %v243_v0 }
   0xe   :  { %216 = vmatpush3.bf16.msra.mxu0 %v234_v4 }
   0xf   :  { %217 = vmatprep.subr.bf16.mxu0 %v243_v0 }
  0x12   :  { %218 = vmatpush3.bf16.msra.mxu0 %v235_v5 }
  0x13   :  { %219 = vmatprep.subr.bf16.mxu0 %v243_v0 }
  0x16   :  { %220 = vmatpush3.bf16.msra.mxu0 %v236_v6 }
  0x17   :  { %221 = vmatprep.subr.bf16.mxu0 %v243_v0 }
  0x1a   :  { %222 = vmatpush3.bf16.msra.mxu0 %v237_v7 }
  0x1b   :  { %223 = vmatprep.subr.bf16.mxu0 %v243_v0 }
  0x1e   :  { %224 = vmatpush3.bf16.msra.mxu0 %v238_v8 }
  0x21   :  { %226 = vmatmul.mubr.bf16.vlgmr.msra.gmra.mrb[0].mxu0 %v23_v11 }
  0xf4   :  { %v129_v13 = vpop.f32.mrb[0].mxu0 }
  0xf5   :  { %v130_v14 = vadd.f32 %v189_v12, %v129_v13  ;;  %v227_v15 = vpop.f32.mrb[1].mxu0 }
  0xf6   :  { %v132_v16 = vpop.f32.mrb[2].mxu0 }
  0xf7   :  { %v133_v17 = vadd.f32 %v189_v12, %v132_v16  ;;  %138 = vadd.xlane.f32.xlu0 %v130_v14  ;;  %v228_v18 = vpop.f32.mrb[3].mxu0  ;;  %v145_v19 = vmul.f32 %v130_v14, %v130_v14 }
  0xf9   :  { %147 = vadd.xlane.f32.xlu1 %v145_v19  ;;  %v146_v20 = vmul.f32 %v133_v17, %v133_v17 }
  0xfb   :  { %140 = vadd.xlane.f32.xlu0 %v133_v17 }
  0xfd   :  { %149 = vadd.xlane.f32.xlu1 %v146_v20 }
 0x184   :  { %v139_v21 = vpop.xlane.xlu0 %138 }
 0x185   :  { %v143_v22 = vmul.f32 0.03125, %v139_v21 }
 0x186   :  { %v148_v23 = vpop.xlane.xlu1 %147 }
 0x187   :  { %v153_v24 = vmul.f32 %v143_v22, %v143_v22  ;;  %v151_v25 = vmul.f32 0.03125, %v148_v23  ;;  %v159_v37 = vsub.f32 %v130_v14, %v143_v22 }
 0x188   :  { %v141_v26 = vpop.xlane.xlu0 %140 }
 0x189   :  { %v155_v27 = vsub.f32 %v151_v25, %v153_v24  ;;  %v144_v28 = vmul.f32 0.03125, %v141_v26 }
 0x18a   :  { %v150_v29 = vpop.xlane.xlu1 %149 }
 0x18b   :  { %v157_v30 = vmax.f32 %v155_v27, 0.0  ;;  %v154_v31 = vmul.f32 %v144_v28, %v144_v28  ;;  %v152_v32 = vmul.f32 0.03125, %v150_v29  ;;  %v160_v43 = vsub.f32 %v133_v17, %v144_v28 }
 0x18d   :  { %v161_v33 = vadd.f32 1e-05, %v157_v30  ;;  %v156_v34 = vsub.f32 %v152_v32, %v154_v31 }
 0x18f   :  { %239 = vrsqrt.f32 %v161_v33  ;;  %v158_v35 = vmax.f32 %v156_v34, 0.0 }
 0x191   :  { %v162_v36 = vadd.f32 1e-05, %v158_v35 }
 0x193   :  { %241 = vrsqrt.f32 %v162_v36 }
 0x199   :  { %v240_v38 = vpop.eup %239 }
 0x19a   :  { %v165_v40 = vmul.f32 %v240_v38, %v159_v37 }
 0x19c   :  { %v173_v42 = vmul.f32 %v198_v39, %v165_v40 }
 0x19d   :  { %v242_v44 = vpop.eup %241 }
 0x19e   :  { %v181_v45 = vadd.f32 %v199_v41, %v173_v42  ;;  %v166_v46 = vmul.f32 %v242_v44, %v160_v43 }
 0x1a0   :  { %183 = vst [vmem:[%s325_s5] sm:$0xff] %v181_v45  ;;  %v174_v47 = vmul.f32 %v198_v39, %v166_v46 }
 0x1a2   :  { %v182_v48 = vadd.f32 %v199_v41, %v174_v47 }
 0x1a4   :  { %184 = vst [vmem:[%s325_s5 + $0x8] sm:$0xff] %v182_v48 }

// kernel: deeper_gcn_forward.11
= control target key start
LH: loop header
LB: loop body
LE: loop exit
PB: predicated region body
PF: predicated region fallthrough
CT: control target
= control target key end

     0   :  { %s996_s1 = inlined_call_operand.vmem [shape: bf16[128,128], index: 1, kind: input, shape index: {}]   ;;  %s997_s0 = inlined_call_operand.vmem [shape: f32[128,128], index: 0, kind: input, shape index: {}]   ;;  %s998_s2 = inlined_call_operand.vmem [shape: f32[1,128], index: 2, kind: input, shape index: {}]   ;;  %s999_s3 = inlined_call_operand.vmem [shape: f32[1,128], index: 3, kind: input, shape index: {}]   ;;  %s1000_s4 = inlined_call_operand.vmem [shape: f32[1,128], index: 4, kind: input, shape index: {}]   ;;  %s1001_s5 = inlined_call_operand.vmem [shape: f32[128,128], index: 5, kind: output, shape index: {}]  }
   0x1   :  { %v579_v0 = vld [vmem:[%s996_s1] sm:$0xff]   ;;  %v580_v1 = vld [vmem:[%s996_s1 + $0x8] sm:$0xff]   ;;  %v581_v2 = vld [vmem:[%s996_s1 + $0x10] sm:$0xff]  }
   0x2   :  { %531 = vmatprep.subr.bf16.mxu0 %v579_v0  ;;  %563 = vmatprep.subr.bf16.mxu1 %v579_v0  ;;  %v582_v3 = vld [vmem:[%s996_s1 + $0x18] sm:$0xff]   ;;  %v21_v4 = vld [vmem:[%s997_s0] sm:$0xff]  ;;  %v22_v5 = vld [vmem:[%s997_s0 + $0x8] sm:$0xff] }
   0x3   :  { %532 = vmatpush3.bf16.msra.mxu0 %v579_v0  ;;  %571 = vmatpush3.bf16.msra.mxu1 %v579_v0  ;;  %v29_v6 = vld [vmem:[%s997_s0 + $0x40] sm:$0xff]  ;;  %v37_v7 = vpack.c.bf16 %v22_v5, %v21_v4  ;;  %v30_v8 = vld [vmem:[%s997_s0 + $0x48] sm:$0xff]  ;;  %v585_v12 = vld [vmem:[%s996_s1 + $0x30] sm:$0xff]  }
   0x4   :  { %533 = vmatprep.subr.bf16.mxu0 %v580_v1  ;;  %564 = vmatprep.subr.bf16.mxu1 %v580_v1  ;;  %v41_v9 = vpack.c.bf16 %v30_v8, %v29_v6  ;;  %v583_v10 = vld [vmem:[%s996_s1 + $0x20] sm:$0xff]   ;;  %v584_v11 = vld [vmem:[%s996_s1 + $0x28] sm:$0xff]   ;;  %v586_v13 = vld [vmem:[%s996_s1 + $0x38] sm:$0xff]  }
   0x5   :  { %547 = vmatprep.mubr.bf16.mxu0 %v37_v7  ;;  %v23_v14 = vld [vmem:[%s997_s0 + $0x10] sm:$0xff]  ;;  %v24_v15 = vld [vmem:[%s997_s0 + $0x18] sm:$0xff]  ;;  %v25_v18 = vld [vmem:[%s997_s0 + $0x20] sm:$0xff] }
   0x6   :  { %555 = vmatprep.mubr.bf16.mxu1 %v41_v9  ;;  %v31_v16 = vld [vmem:[%s997_s0 + $0x50] sm:$0xff]  ;;  %v32_v17 = vld [vmem:[%s997_s0 + $0x58] sm:$0xff]  ;;  %v26_v19 = vld [vmem:[%s997_s0 + $0x28] sm:$0xff]  ;;  %v38_v22 = vpack.c.bf16 %v24_v15, %v23_v14 }
   0x7   :  { %534 = vmatpush3.bf16.msra.mxu0 %v580_v1  ;;  %572 = vmatpush3.bf16.msra.mxu1 %v580_v1  ;;  %v33_v20 = vld [vmem:[%s997_s0 + $0x60] sm:$0xff]  ;;  %v34_v21 = vld [vmem:[%s997_s0 + $0x68] sm:$0xff]  ;;  %v42_v23 = vpack.c.bf16 %v32_v17, %v31_v16  ;;  %v39_v24 = vpack.c.bf16 %v26_v19, %v25_v18  ;;  %v27_v26 = vld [vmem:[%s997_s0 + $0x30] sm:$0xff] }
   0x8   :  { %535 = vmatprep.subr.bf16.mxu0 %v581_v2  ;;  %565 = vmatprep.subr.bf16.mxu1 %v581_v2  ;;  %v43_v25 = vpack.c.bf16 %v34_v21, %v33_v20  ;;  %v28_v27 = vld [vmem:[%s997_s0 + $0x38] sm:$0xff]  ;;  %v35_v28 = vld [vmem:[%s997_s0 + $0x70] sm:$0xff]  ;;  %v504_v32 = vld [vmem:[%s998_s2] ss:$0 sm:$0xff] }
   0x9   :  { %v36_v29 = vld [vmem:[%s997_s0 + $0x78] sm:$0xff]  ;;  %v40_v30 = vpack.c.bf16 %v28_v27, %v27_v26 }
   0xa   :  { %v44_v31 = vpack.c.bf16 %v36_v29, %v35_v28 }
   0xb   :  { %536 = vmatpush3.bf16.msra.mxu0 %v581_v2  ;;  %573 = vmatpush3.bf16.msra.mxu1 %v581_v2 }
   0xc   :  { %537 = vmatprep.subr.bf16.mxu0 %v582_v3  ;;  %566 = vmatprep.subr.bf16.mxu1 %v582_v3 }
   0xf   :  { %538 = vmatpush3.bf16.msra.mxu0 %v582_v3  ;;  %574 = vmatpush3.bf16.msra.mxu1 %v582_v3 }
  0x10   :  { %539 = vmatprep.subr.bf16.mxu0 %v583_v10  ;;  %567 = vmatprep.subr.bf16.mxu1 %v583_v10 }
  0x13   :  { %540 = vmatpush3.bf16.msra.mxu0 %v583_v10  ;;  %575 = vmatpush3.bf16.msra.mxu1 %v583_v10 }
  0x14   :  { %541 = vmatprep.subr.bf16.mxu0 %v584_v11  ;;  %568 = vmatprep.subr.bf16.mxu1 %v584_v11 }
  0x17   :  { %542 = vmatpush3.bf16.msra.mxu0 %v584_v11  ;;  %576 = vmatpush3.bf16.msra.mxu1 %v584_v11 }
  0x18   :  { %543 = vmatprep.subr.bf16.mxu0 %v585_v12  ;;  %569 = vmatprep.subr.bf16.mxu1 %v585_v12 }
  0x1b   :  { %544 = vmatpush3.bf16.msra.mxu0 %v585_v12  ;;  %577 = vmatpush3.bf16.msra.mxu1 %v585_v12 }
  0x1c   :  { %545 = vmatprep.subr.bf16.mxu0 %v586_v13  ;;  %570 = vmatprep.subr.bf16.mxu1 %v586_v13 }
  0x1f   :  { %546 = vmatpush3.bf16.msra.mxu0 %v586_v13  ;;  %578 = vmatpush3.bf16.msra.mxu1 %v586_v13 }
  0x22   :  { %548 = vmatmul.mubr.bf16.vlgmr.msra.gmra.mrb[0].mxu0 %v38_v22  ;;  %556 = vmatmul.mubr.bf16.vlgmr.msra.gmra.mrb[0].mxu1 %v42_v23 }
  0x23   :  { %551 = vmatprep.mubr.bf16.mxu0 %v39_v24  ;;  %559 = vmatprep.mubr.bf16.mxu1 %v43_v25 }
  0x2a   :  { %552 = vmatmul.mubr.bf16.gmra.mrb[4].mxu0 %v40_v30  ;;  %560 = vmatmul.mubr.bf16.gmra.mrb[4].mxu1 %v44_v31 }
  0xf5   :  { %v549_v33 = vpop.f32.mrb[0].mxu0  ;;  %v557_v34 = vpop.f32.mrb[0].mxu1 }
  0xf6   :  { %v724_v35 = vadd.f32 %v549_v33, %v504_v32  ;;  %v726_v36 = vadd.f32 %v557_v34, %v504_v32  ;;  %v150_v37 = vpop.f32.mrb[1].mxu0  ;;  %v182_v38 = vpop.f32.mrb[1].mxu1 }
  0xf7   :  { %v550_v39 = vpop.f32.mrb[2].mxu0  ;;  %v558_v40 = vpop.f32.mrb[2].mxu1  ;;  %v730_v43 = vadd.f32 %v504_v32, %v150_v37  ;;  %v736_v47 = vadd.f32 %v504_v32, %v182_v38 }
  0xf8   :  { %235 = vadd.xlane.f32.xlu0 %v726_v36  ;;  %v185_v41 = vpop.f32.mrb[3].mxu1  ;;  %219 = vadd.xlane.f32.xlu1 %v724_v35  ;;  %v153_v42 = vpop.f32.mrb[3].mxu0  ;;  %v732_v44 = vadd.f32 %v550_v39, %v504_v32  ;;  %v738_v48 = vadd.f32 %v558_v40, %v504_v32  ;;  %v266_v56 = vmul.f32 %v724_v35, %v724_v35 }
  0xf9   :  { %v742_v55 = vadd.f32 %v504_v32, %v185_v41  ;;  %v274_v58 = vmul.f32 %v726_v36, %v726_v36  ;;  %v751_v59 = vadd.f32 %v504_v32, %v153_v42  ;;  %v264_v62 = vmul.f32 %v730_v43, %v730_v43 }
  0xfa   :  { %v267_v57 = vmul.f32 %v732_v44, %v732_v44  ;;  %v275_v60 = vmul.f32 %v738_v48, %v738_v48  ;;  %v272_v0 = vmul.f32 %v736_v47, %v736_v47 }
  0xfb   :  { %v265_v61 = vmul.f32 %v751_v59, %v751_v59  ;;  %v273_v63 = vmul.f32 %v742_v55, %v742_v55 }
  0xfc   :  { %221 = vadd.xlane.f32.xlu1 %v732_v44  ;;  %215 = vadd.xlane.f32.xlu0 %v730_v43 }
  0xfd   :  { %v553_v45 = vpop.f32.mrb[4].mxu0  ;;  %v561_v46 = vpop.f32.mrb[4].mxu1 }
  0xfe   :  { %v166_v49 = vpop.f32.mrb[5].mxu0  ;;  %v198_v50 = vpop.f32.mrb[5].mxu1  ;;  %v764_v1 = vadd.f32 %v553_v45, %v504_v32  ;;  %v770_v3 = vadd.f32 %v561_v46, %v504_v32 }
  0xff   :  { %v554_v51 = vpop.f32.mrb[6].mxu0  ;;  %v562_v52 = vpop.f32.mrb[6].mxu1  ;;  %v776_v5 = vadd.f32 %v504_v32, %v166_v49  ;;  %v782_v7 = vadd.f32 %v504_v32, %v198_v50 }
 0x100   :  { %237 = vadd.xlane.f32.xlu1 %v738_v48  ;;  %231 = vadd.xlane.f32.xlu0 %v736_v47  ;;  %v169_v53 = vpop.f32.mrb[7].mxu0  ;;  %v201_v54 = vpop.f32.mrb[7].mxu1  ;;  %v766_v2 = vadd.f32 %v554_v51, %v504_v32  ;;  %v772_v4 = vadd.f32 %v562_v52, %v504_v32  ;;  %v270_v10 = vmul.f32 %v764_v1, %v764_v1 }
 0x101   :  { %v778_v6 = vadd.f32 %v504_v32, %v169_v53  ;;  %v784_v8 = vadd.f32 %v504_v32, %v201_v54  ;;  %v268_v12 = vmul.f32 %v776_v5, %v776_v5  ;;  %v276_v14 = vmul.f32 %v782_v7, %v782_v7 }
 0x102   :  { %v271_v9 = vmul.f32 %v766_v2, %v766_v2  ;;  %v279_v15 = vmul.f32 %v772_v4, %v772_v4  ;;  %v278_v16 = vmul.f32 %v770_v3, %v770_v3 }
 0x103   :  { %v269_v11 = vmul.f32 %v778_v6, %v778_v6  ;;  %v277_v13 = vmul.f32 %v784_v8, %v784_v8 }
 0x104   :  { %233 = vadd.xlane.f32.xlu1 %v742_v55  ;;  %284 = vadd.xlane.f32.xlu0 %v266_v56 }
 0x108   :  { %286 = vadd.xlane.f32.xlu1 %v267_v57  ;;  %300 = vadd.xlane.f32.xlu0 %v274_v58 }
 0x10c   :  { %302 = vadd.xlane.f32.xlu1 %v275_v60  ;;  %217 = vadd.xlane.f32.xlu0 %v751_v59 }
 0x110   :  { %282 = vadd.xlane.f32.xlu1 %v265_v61  ;;  %280 = vadd.xlane.f32.xlu0 %v264_v62 }
 0x114   :  { %298 = vadd.xlane.f32.xlu1 %v273_v63  ;;  %296 = vadd.xlane.f32.xlu0 %v272_v0 }
 0x118   :  { %229 = vadd.xlane.f32.xlu1 %v766_v2  ;;  %227 = vadd.xlane.f32.xlu0 %v764_v1 }
 0x11c   :  { %245 = vadd.xlane.f32.xlu1 %v772_v4  ;;  %243 = vadd.xlane.f32.xlu0 %v770_v3 }
 0x120   :  { %225 = vadd.xlane.f32.xlu1 %v778_v6  ;;  %223 = vadd.xlane.f32.xlu0 %v776_v5 }
 0x124   :  { %241 = vadd.xlane.f32.xlu1 %v784_v8  ;;  %239 = vadd.xlane.f32.xlu0 %v782_v7 }
 0x128   :  { %294 = vadd.xlane.f32.xlu1 %v271_v9  ;;  %292 = vadd.xlane.f32.xlu0 %v270_v10 }
 0x12c   :  { %290 = vadd.xlane.f32.xlu1 %v269_v11  ;;  %288 = vadd.xlane.f32.xlu0 %v268_v12 }
 0x130   :  { %306 = vadd.xlane.f32.xlu1 %v277_v13  ;;  %304 = vadd.xlane.f32.xlu0 %v276_v14 }
 0x134   :  { %310 = vadd.xlane.f32.xlu1 %v279_v15  ;;  %308 = vadd.xlane.f32.xlu0 %v278_v16 }
 0x185   :  { %v236_v17 = vpop.xlane.xlu0 %235  ;;  %v220_v18 = vpop.xlane.xlu1 %219 }
 0x186   :  { %v804_v23 = vmul.f32 0.03125, %v220_v18  ;;  %v806_v24 = vmul.f32 0.03125, %v236_v17 }
 0x188   :  { %v330_v27 = vmul.f32 %v804_v23, %v804_v23  ;;  %v338_v31 = vmul.f32 %v806_v24, %v806_v24 }
 0x189   :  { %v222_v19 = vpop.xlane.xlu1 %221  ;;  %v216_v20 = vpop.xlane.xlu0 %215 }
 0x18a   :  { %v810_v28 = vmul.f32 0.03125, %v222_v19  ;;  %v818_v46 = vmul.f32 0.03125, %v216_v20 }
 0x18c   :  { %v331_v37 = vmul.f32 %v810_v28, %v810_v28  ;;  %v328_v61 = vmul.f32 %v818_v46, %v818_v46 }
 0x18d   :  { %v238_v21 = vpop.xlane.xlu1 %237  ;;  %v232_v22 = vpop.xlane.xlu0 %231 }
 0x18e   :  { %v814_v32 = vmul.f32 0.03125, %v238_v21  ;;  %v830_v13 = vmul.f32 0.03125, %v232_v22 }
 0x190   :  { %v339_v49 = vmul.f32 %v814_v32, %v814_v32  ;;  %v336_v22 = vmul.f32 %v830_v13, %v830_v13 }
 0x191   :  { %v234_v25 = vpop.xlane.xlu1 %233  ;;  %v285_v26 = vpop.xlane.xlu0 %284 }
 0x192   :  { %v314_v29 = vmul.f32 0.03125, %v285_v26  ;;  %v826_v62 = vmul.f32 0.03125, %v234_v25  ;;  %v378_v26 = vsub.f32 %v724_v35, %v804_v23  ;;  %v846_v35 = vld [vmem:[%s1000_s4] ss:$0 sm:$0xff] }
 0x194   :  { %v346_v30 = vsub.f32 %v314_v29, %v330_v27  ;;  %v337_v17 = vmul.f32 %v826_v62, %v826_v62 }
 0x195   :  { %v287_v33 = vpop.xlane.xlu1 %286  ;;  %v301_v34 = vpop.xlane.xlu0 %300 }
 0x196   :  { %v362_v38 = vmax.f32 %v346_v30, 0.0  ;;  %v315_v39 = vmul.f32 0.03125, %v287_v33  ;;  %v322_v40 = vmul.f32 0.03125, %v301_v34  ;;  %v841_v30 = vld [vmem:[%s999_s3] ss:$0 sm:$0xff] }
 0x198   :  { %v394_v41 = vadd.f32 1e-05, %v362_v38  ;;  %v347_v42 = vsub.f32 %v315_v39, %v331_v37  ;;  %v354_v45 = vsub.f32 %v322_v40, %v338_v31 }
 0x199   :  { %v303_v50 = vpop.xlane.xlu1 %302  ;;  %v218_v51 = vpop.xlane.xlu0 %217 }
 0x19a   :  { %587 = vrsqrt.f32 %v394_v41  ;;  %v363_v52 = vmax.f32 %v347_v42, 0.0  ;;  %v370_v53 = vmax.f32 %v354_v45, 0.0  ;;  %v323_v54 = vmul.f32 0.03125, %v303_v50 }
 0x19b   :  { %v822_v56 = vmul.f32 0.03125, %v218_v51  ;;  %v379_v41 = vsub.f32 %v732_v44, %v810_v28  ;;  %v386_v50 = vsub.f32 %v726_v36, %v806_v24  ;;  %v387_v44 = vsub.f32 %v738_v48, %v814_v32 }
 0x19c   :  { %v395_v57 = vadd.f32 1e-05, %v363_v52  ;;  %v402_v58 = vadd.f32 1e-05, %v370_v53  ;;  %v355_v60 = vsub.f32 %v323_v54, %v339_v49 }
 0x19d   :  { %v329_v63 = vmul.f32 %v822_v56, %v822_v56  ;;  %v283_v0 = vpop.xlane.xlu1 %282  ;;  %v281_v9 = vpop.xlane.xlu0 %280  ;;  %v377_v32 = vsub.f32 %v751_v59, %v822_v56  ;;  %v385_v59 = vsub.f32 %v742_v55, %v826_v62  ;;  %v384_v56 = vsub.f32 %v736_v47, %v830_v13 }
 0x19e   :  { %589 = vrsqrt.f32 %v395_v57  ;;  %v371_v10 = vmax.f32 %v355_v60, 0.0  ;;  %v313_v11 = vmul.f32 0.03125, %v283_v0  ;;  %v312_v12 = vmul.f32 0.03125, %v281_v9 }
 0x19f   :  { %591 = vrsqrt.f32 %v402_v58 }
 0x1a0   :  { %v403_v14 = vadd.f32 1e-05, %v371_v10  ;;  %v345_v15 = vsub.f32 %v313_v11, %v329_v63  ;;  %v344_v16 = vsub.f32 %v312_v12, %v328_v61 }
 0x1a1   :  { %v299_v18 = vpop.xlane.xlu1 %298  ;;  %v297_v19 = vpop.xlane.xlu0 %296 }
 0x1a2   :  { %593 = vrsqrt.f32 %v403_v14  ;;  %v361_v20 = vmax.f32 %v345_v15, 0.0  ;;  %v360_v21 = vmax.f32 %v344_v16, 0.0  ;;  %v321_v25 = vmul.f32 0.03125, %v299_v18 }
 0x1a3   :  { %v320_v27 = vmul.f32 0.03125, %v297_v19  ;;  %v376_v14 = vsub.f32 %v730_v43, %v818_v46 }
 0x1a4   :  { %v588_v29 = vpop.eup %587  ;;  %v393_v31 = vadd.f32 1e-05, %v361_v20  ;;  %v392_v33 = vadd.f32 1e-05, %v360_v21  ;;  %v353_v34 = vsub.f32 %v321_v25, %v337_v17 }
 0x1a5   :  { %v426_v37 = vmul.f32 %v588_v29, %v378_v26  ;;  %v352_v38 = vsub.f32 %v320_v27, %v336_v22  ;;  %v230_v39 = vpop.xlane.xlu1 %229  ;;  %v228_v40 = vpop.xlane.xlu0 %227 }
 0x1a6   :  { %595 = vrsqrt.f32 %v393_v31  ;;  %v369_v23 = vmax.f32 %v353_v34, 0.0  ;;  %v878_v15 = vmul.f32 0.03125, %v230_v39  ;;  %v881_v19 = vmul.f32 0.03125, %v228_v40 }
 0x1a7   :  { %v448_v42 = vmul.f32 %v841_v30, %v426_v37  ;;  %597 = vrsqrt.f32 %v392_v33  ;;  %v368_v45 = vmax.f32 %v352_v38, 0.0 }
 0x1a8   :  { %v590_v49 = vpop.eup %589  ;;  %v401_v51 = vadd.f32 1e-05, %v369_v23  ;;  %v335_v22 = vmul.f32 %v878_v15, %v878_v15  ;;  %v334_v55 = vmul.f32 %v881_v19, %v881_v19 }
 0x1a9   :  { %v592_v52 = vpop.eup %591  ;;  %v470_v53 = vadd.f32 %v846_v35, %v448_v42  ;;  %v427_v54 = vmul.f32 %v590_v49, %v379_v41  ;;  %v400_v57 = vadd.f32 1e-05, %v368_v45  ;;  %v854_v58 = vpop.xlane.xlu1 %245 }
 0x1aa   :  { %v856_v60 = vpop.xlane.xlu0 %243  ;;  %v434_v61 = vmul.f32 %v592_v52, %v386_v50  ;;  %599 = vrsqrt.f32 %v401_v51 }
 0x1ab   :  { %486 = vst [vmem:[%s1001_s5 + $0x10] sm:$0xff] %v470_v53  ;;  %v449_v36 = vmul.f32 %v841_v30, %v427_v54  ;;  %601 = vrsqrt.f32 %v400_v57 }
 0x1ac   :  { %v594_v24 = vpop.eup %593  ;;  %v456_v28 = vmul.f32 %v841_v30, %v434_v61 }
 0x1ad   :  { %v471_v63 = vadd.f32 %v846_v35, %v449_v36  ;;  %v435_v0 = vmul.f32 %v594_v24, %v387_v44  ;;  %v226_v9 = vpop.xlane.xlu1 %225 }
 0x1ae   :  { %v224_v10 = vpop.xlane.xlu0 %223  ;;  %v478_v11 = vadd.f32 %v846_v35, %v456_v28  ;;  %v897_v62 = vmul.f32 0.03125, %v226_v9  ;;  %v927_v9 = vmul.f32 0.03125, %v854_v58 }
 0x1af   :  { %487 = vst [vmem:[%s1001_s5 + $0x18] sm:$0xff] %v471_v63  ;;  %v457_v48 = vmul.f32 %v841_v30, %v435_v0  ;;  %v904_v40 = vmul.f32 0.03125, %v224_v10 }
 0x1b0   :  { %v596_v12 = vpop.eup %595  ;;  %494 = vst [vmem:[%s1001_s5 + $0x50] sm:$0xff] %v478_v11  ;;  %v333_v49 = vmul.f32 %v897_v62, %v897_v62 }
 0x1b1   :  { %v598_v16 = vpop.eup %597  ;;  %v479_v17 = vadd.f32 %v846_v35, %v457_v48  ;;  %v425_v18 = vmul.f32 %v596_v12, %v377_v32  ;;  %v242_v20 = vpop.xlane.xlu1 %241  ;;  %v332_v36 = vmul.f32 %v904_v40, %v904_v40 }
 0x1b2   :  { %v240_v21 = vpop.xlane.xlu0 %239  ;;  %v424_v25 = vmul.f32 %v598_v16, %v376_v14  ;;  %v913_v50 = vmul.f32 0.03125, %v242_v20 }
 0x1b3   :  { %495 = vst [vmem:[%s1001_s5 + $0x58] sm:$0xff] %v479_v17  ;;  %v447_v43 = vmul.f32 %v841_v30, %v425_v18  ;;  %v915_v51 = vmul.f32 0.03125, %v240_v21  ;;  %v934_v18 = vmul.f32 0.03125, %v856_v60 }
 0x1b4   :  { %v600_v46 = vpop.eup %599  ;;  %v446_v26 = vmul.f32 %v841_v30, %v424_v25  ;;  %v341_v10 = vmul.f32 %v913_v50, %v913_v50 }
 0x1b5   :  { %v602_v27 = vpop.eup %601  ;;  %v469_v29 = vadd.f32 %v846_v35, %v447_v43  ;;  %v433_v31 = vmul.f32 %v600_v46, %v385_v59  ;;  %v295_v33 = vpop.xlane.xlu1 %294  ;;  %v340_v11 = vmul.f32 %v915_v51, %v915_v51  ;;  %v343_v59 = vmul.f32 %v927_v9, %v927_v9 }
 0x1b6   :  { %v293_v34 = vpop.xlane.xlu0 %292  ;;  %v468_v37 = vadd.f32 %v846_v35, %v446_v26  ;;  %v432_v38 = vmul.f32 %v602_v27, %v384_v56  ;;  %v319_v47 = vmul.f32 0.03125, %v295_v33 }
 0x1b7   :  { %v318_v13 = vmul.f32 0.03125, %v293_v34  ;;  %485 = vst [vmem:[%s1001_s5 + $0x8] sm:$0xff] %v469_v29  ;;  %v455_v39 = vmul.f32 %v841_v30, %v433_v31  ;;  %v342_v29 = vmul.f32 %v934_v18, %v934_v18 }
 0x1b8   :  { %484 = vst [vmem:[%s1001_s5] sm:$0xff] %v468_v37  ;;  %v454_v23 = vmul.f32 %v841_v30, %v432_v38  ;;  %v351_v41 = vsub.f32 %v319_v47, %v335_v22  ;;  %v383_v38 = vsub.f32 %v766_v2, %v878_v15  ;;  %v380_v2 = vsub.f32 %v776_v5, %v904_v40 }
 0x1b9   :  { %v350_v42 = vsub.f32 %v318_v13, %v334_v55  ;;  %v477_v45 = vadd.f32 %v846_v35, %v455_v39  ;;  %v291_v52 = vpop.xlane.xlu1 %290  ;;  %v382_v39 = vsub.f32 %v764_v1, %v881_v19  ;;  %v388_v5 = vsub.f32 %v782_v7, %v915_v51 }
 0x1ba   :  { %v289_v53 = vpop.xlane.xlu0 %288  ;;  %v476_v54 = vadd.f32 %v846_v35, %v454_v23  ;;  %v367_v57 = vmax.f32 %v351_v41, 0.0  ;;  %v317_v44 = vmul.f32 0.03125, %v291_v52  ;;  %v381_v52 = vsub.f32 %v778_v6, %v897_v62 }
 0x1bb   :  { %v366_v61 = vmax.f32 %v350_v42, 0.0  ;;  %493 = vst [vmem:[%s1001_s5 + $0x48] sm:$0xff] %v477_v45  ;;  %v316_v24 = vmul.f32 0.03125, %v289_v53 }
 0x1bc   :  { %492 = vst [vmem:[%s1001_s5 + $0x40] sm:$0xff] %v476_v54  ;;  %v399_v28 = vadd.f32 1e-05, %v367_v57  ;;  %v349_v0 = vsub.f32 %v317_v44, %v333_v49 }
 0x1bd   :  { %v398_v63 = vadd.f32 1e-05, %v366_v61  ;;  %v348_v48 = vsub.f32 %v316_v24, %v332_v36  ;;  %v307_v32 = vpop.xlane.xlu1 %306  ;;  %v389_v36 = vsub.f32 %v784_v8, %v913_v50 }
 0x1be   :  { %v305_v12 = vpop.xlane.xlu0 %304  ;;  %603 = vrsqrt.f32 %v399_v28  ;;  %v365_v14 = vmax.f32 %v349_v0, 0.0  ;;  %v325_v16 = vmul.f32 0.03125, %v307_v32  ;;  %v391_v0 = vsub.f32 %v772_v4, %v927_v9 }
 0x1bf   :  { %v324_v17 = vmul.f32 0.03125, %v305_v12  ;;  %605 = vrsqrt.f32 %v398_v63  ;;  %v364_v20 = vmax.f32 %v348_v48, 0.0 }
 0x1c0   :  { %v397_v58 = vadd.f32 1e-05, %v365_v14  ;;  %v357_v21 = vsub.f32 %v325_v16, %v341_v10  ;;  %v390_v10 = vsub.f32 %v770_v3, %v934_v18 }
 0x1c1   :  { %v356_v25 = vsub.f32 %v324_v17, %v340_v11  ;;  %v396_v43 = vadd.f32 1e-05, %v364_v20  ;;  %v311_v46 = vpop.xlane.xlu1 %310 }
 0x1c2   :  { %v309_v56 = vpop.xlane.xlu0 %308  ;;  %607 = vrsqrt.f32 %v397_v58  ;;  %v373_v26 = vmax.f32 %v357_v21, 0.0  ;;  %v327_v27 = vmul.f32 0.03125, %v311_v46 }
 0x1c3   :  { %v372_v22 = vmax.f32 %v356_v25, 0.0  ;;  %609 = vrsqrt.f32 %v396_v43  ;;  %v326_v60 = vmul.f32 0.03125, %v309_v56 }
 0x1c4   :  { %v405_v31 = vadd.f32 1e-05, %v373_v26  ;;  %v359_v33 = vsub.f32 %v327_v27, %v343_v59 }
 0x1c5   :  { %v404_v55 = vadd.f32 1e-05, %v372_v22  ;;  %v358_v34 = vsub.f32 %v326_v60, %v342_v29 }
 0x1c6   :  { %611 = vrsqrt.f32 %v405_v31  ;;  %v375_v37 = vmax.f32 %v359_v33, 0.0 }
 0x1c7   :  { %613 = vrsqrt.f32 %v404_v55  ;;  %v374_v47 = vmax.f32 %v358_v34, 0.0 }
 0x1c8   :  { %v604_v13 = vpop.eup %603  ;;  %v407_v23 = vadd.f32 1e-05, %v375_v37 }
 0x1c9   :  { %v606_v41 = vpop.eup %605  ;;  %v431_v42 = vmul.f32 %v604_v13, %v383_v38  ;;  %v406_v45 = vadd.f32 1e-05, %v374_v47 }
 0x1ca   :  { %v430_v49 = vmul.f32 %v606_v41, %v382_v39  ;;  %615 = vrsqrt.f32 %v407_v23 }
 0x1cb   :  { %v453_v53 = vmul.f32 %v841_v30, %v431_v42  ;;  %617 = vrsqrt.f32 %v406_v45 }
 0x1cc   :  { %v608_v54 = vpop.eup %607  ;;  %v452_v15 = vmul.f32 %v841_v30, %v430_v49 }
 0x1cd   :  { %v610_v57 = vpop.eup %609  ;;  %v475_v1 = vadd.f32 %v846_v35, %v453_v53  ;;  %v429_v19 = vmul.f32 %v608_v54, %v381_v52 }
 0x1ce   :  { %v474_v61 = vadd.f32 %v846_v35, %v452_v15  ;;  %v428_v44 = vmul.f32 %v610_v57, %v380_v2 }
 0x1cf   :  { %491 = vst [vmem:[%s1001_s5 + $0x38] sm:$0xff] %v475_v1  ;;  %v451_v6 = vmul.f32 %v841_v30, %v429_v19 }
 0x1d0   :  { %v612_v62 = vpop.eup %611  ;;  %490 = vst [vmem:[%s1001_s5 + $0x30] sm:$0xff] %v474_v61  ;;  %v450_v40 = vmul.f32 %v841_v30, %v428_v44 }
 0x1d1   :  { %v614_v24 = vpop.eup %613  ;;  %v473_v28 = vadd.f32 %v846_v35, %v451_v6  ;;  %v437_v8 = vmul.f32 %v612_v62, %v389_v36 }
 0x1d2   :  { %v472_v50 = vadd.f32 %v846_v35, %v450_v40  ;;  %v436_v63 = vmul.f32 %v614_v24, %v388_v5 }
 0x1d3   :  { %489 = vst [vmem:[%s1001_s5 + $0x28] sm:$0xff] %v473_v28  ;;  %v459_v7 = vmul.f32 %v841_v30, %v437_v8 }
 0x1d4   :  { %v616_v51 = vpop.eup %615  ;;  %488 = vst [vmem:[%s1001_s5 + $0x20] sm:$0xff] %v472_v50  ;;  %v458_v11 = vmul.f32 %v841_v30, %v436_v63 }
 0x1d5   :  { %v618_v48 = vpop.eup %617  ;;  %v481_v32 = vadd.f32 %v846_v35, %v459_v7  ;;  %v439_v4 = vmul.f32 %v616_v51, %v391_v0 }
 0x1d6   :  { %v480_v9 = vadd.f32 %v846_v35, %v458_v11  ;;  %v438_v12 = vmul.f32 %v618_v48, %v390_v10 }
 0x1d7   :  { %497 = vst [vmem:[%s1001_s5 + $0x68] sm:$0xff] %v481_v32  ;;  %v461_v14 = vmul.f32 %v841_v30, %v439_v4 }
 0x1d8   :  { %496 = vst [vmem:[%s1001_s5 + $0x60] sm:$0xff] %v480_v9  ;;  %v460_v3 = vmul.f32 %v841_v30, %v438_v12 }
 0x1d9   :  { %v483_v16 = vadd.f32 %v846_v35, %v461_v14 }
 0x1da   :  { %v482_v17 = vadd.f32 %v846_v35, %v460_v3 }
 0x1db   :  { %499 = vst [vmem:[%s1001_s5 + $0x78] sm:$0xff] %v483_v16 }
 0x1dc   :  { %498 = vst [vmem:[%s1001_s5 + $0x70] sm:$0xff] %v482_v17 }

// kernel: deeper_gcn_forward.15
= control target key start
LH: loop header
LB: loop body
LE: loop exit
PB: predicated region body
PF: predicated region fallthrough
CT: control target
= control target key end

     0   :  { %s115_s0 = inlined_call_operand.vmem [shape: f32[16,128], index: 0, kind: input, shape index: {}]   ;;  %s116_s1 = inlined_call_operand.vmem [shape: f32[1,128], index: 1, kind: input, shape index: {}]   ;;  %s117_s2 = inlined_call_operand.vmem [shape: f32[1,128], index: 2, kind: input, shape index: {}]   ;;  %s118_s3 = inlined_call_operand.vmem [shape: f32[16,128], index: 3, kind: output, shape index: {}]  }
   0x1   :  { %v14_v0 = vld [vmem:[%s115_s0] sm:$0xff]  ;;  %v15_v1 = vld [vmem:[%s115_s0 + $0x8] sm:$0xff] }
   0x2   :  { %18 = vadd.xlane.f32.xlu0 %v14_v0  ;;  %v25_v2 = vmul.f32 %v14_v0, %v14_v0  ;;  %v26_v3 = vmul.f32 %v15_v1, %v15_v1  ;;  %v71_v22 = vld [vmem:[%s116_s1] ss:$0 sm:$0xff] }
   0x3   :  { %v72_v24 = vld [vmem:[%s117_s2] ss:$0 sm:$0xff] }
   0x4   :  { %27 = vadd.xlane.f32.xlu1 %v25_v2 }
   0x6   :  { %20 = vadd.xlane.f32.xlu0 %v15_v1 }
   0x8   :  { %29 = vadd.xlane.f32.xlu1 %v26_v3 }
  0x8f   :  { %v19_v4 = vpop.xlane.xlu0 %18 }
  0x90   :  { %v23_v5 = vmul.f32 0.03125, %v19_v4 }
  0x91   :  { %v28_v6 = vpop.xlane.xlu1 %27 }
  0x92   :  { %v33_v7 = vmul.f32 %v23_v5, %v23_v5  ;;  %v31_v8 = vmul.f32 0.03125, %v28_v6  ;;  %v39_v20 = vsub.f32 %v14_v0, %v23_v5 }
  0x93   :  { %v21_v9 = vpop.xlane.xlu0 %20 }
  0x94   :  { %v35_v10 = vsub.f32 %v31_v8, %v33_v7  ;;  %v24_v11 = vmul.f32 0.03125, %v21_v9 }
  0x95   :  { %v30_v12 = vpop.xlane.xlu1 %29 }
  0x96   :  { %v37_v13 = vmax.f32 %v35_v10, 0.0  ;;  %v34_v14 = vmul.f32 %v24_v11, %v24_v11  ;;  %v32_v15 = vmul.f32 0.03125, %v30_v12  ;;  %v40_v26 = vsub.f32 %v15_v1, %v24_v11 }
  0x98   :  { %v41_v16 = vadd.f32 1e-05, %v37_v13  ;;  %v36_v17 = vsub.f32 %v32_v15, %v34_v14 }
  0x9a   :  { %73 = vrsqrt.f32 %v41_v16  ;;  %v38_v18 = vmax.f32 %v36_v17, 0.0 }
  0x9c   :  { %v42_v19 = vadd.f32 1e-05, %v38_v18 }
  0x9e   :  { %75 = vrsqrt.f32 %v42_v19 }
  0xa4   :  { %v74_v21 = vpop.eup %73 }
  0xa5   :  { %v45_v23 = vmul.f32 %v74_v21, %v39_v20 }
  0xa7   :  { %v53_v25 = vmul.f32 %v71_v22, %v45_v23 }
  0xa8   :  { %v76_v27 = vpop.eup %75 }
  0xa9   :  { %v61_v28 = vadd.f32 %v72_v24, %v53_v25  ;;  %v46_v29 = vmul.f32 %v76_v27, %v40_v26 }
  0xab   :  { %v63_v30 = vmax.f32 %v61_v28, 0.0  ;;  %v54_v31 = vmul.f32 %v71_v22, %v46_v29 }
  0xad   :  { %65 = vst [vmem:[%s118_s3] sm:$0xff] %v63_v30  ;;  %v62_v32 = vadd.f32 %v72_v24, %v54_v31 }
  0xaf   :  { %v64_v33 = vmax.f32 %v62_v32, 0.0 }
  0xb1   :  { %66 = vst [vmem:[%s118_s3 + $0x8] sm:$0xff] %v64_v33 }

// kernel: deeper_gcn_forward.12
= control target key start
LH: loop header
LB: loop body
LE: loop exit
PB: predicated region body
PF: predicated region fallthrough
CT: control target
= control target key end

     0   :  { %vm1700_vm0 = vmmov 0   ;;  %s2350_s7 = inlined_call_operand.vmem [shape: bf16[128,128], index: 7, kind: input, shape index: {}]   ;;  %s2351_s13 = inlined_call_operand.vmem [shape: f32[1,128], index: 13, kind: input, shape index: {}]   ;;  %s2352_s14 = inlined_call_operand.vmem [shape: f32[1,128], index: 14, kind: input, shape index: {}]   ;;  %s2353_s15 = inlined_call_operand.vmem [shape: f32[1,128], index: 15, kind: input, shape index: {}]   ;;  %s2354_s16 = inlined_call_operand.vmem [shape: f32[1,128], index: 16, kind: input, shape index: {}]   ;;  %s2355_s4 = inlined_call_operand.vmem [shape: f32[128,128], index: 4, kind: input, shape index: {}]   ;;  %s2356_s6 = inlined_call_operand.vmem [shape: bf16[128,128], index: 6, kind: input, shape index: {}]   ;;  %s2357_s8 = inlined_call_operand.vmem [shape: bf16[128,128], index: 8, kind: input, shape index: {}]   ;;  %s2358_s10 = inlined_call_operand.vmem [shape: bf16[128,128], index: 10, kind: input, shape index: {}]   ;;  %s2359_s3 = inlined_call_operand.vmem [shape: f32[128,128], index: 3, kind: input, shape index: {}]   ;;  %s2360_s5 = inlined_call_operand.vmem [shape: f32[128,128], index: 5, kind: input, shape index: {}]   ;;  %s2361_s9 = inlined_call_operand.vmem [shape: f32[1,128], index: 9, kind: input, shape index: {}]   ;;  %s2362_s12 = inlined_call_operand.vmem [shape: bf16[128,128], index: 12, kind: input, shape index: {}]   ;;  %s2363_s11 = inlined_call_operand.vmem [shape: f32[1,128], index: 11, kind: input, shape index: {}]   ;;  %s2364_s18 = inlined_call_operand.vmem [shape: f32[128,128], index: 18, kind: output, shape index: {1}]   ;;  %s2365_s2 = inlined_call_operand.vmem [shape: f32[16,128], index: 2, kind: input, shape index: {}]   ;;  %s2366_s1 = inlined_call_operand.<no memory space> [shape: f32[1], index: 1, kind: input, shape index: {}]   ;;  %s2367_s0 = inlined_call_operand.vmem [shape: s32[1,128], index: 0, kind: input, shape index: {}]   ;;  %s2368_s17 = inlined_call_operand.vmem [shape: f32[16,128], index: 17, kind: output, shape index: {0}]  }
   0x1   :  { %2370 = sst [smem:[#allocation6_spill]] %s2350_s7  ;;  %v85_v4 = vld [vmem:[%s2355_s4] sm:$0xff]  ;;  %v86_v5 = vld [vmem:[%s2355_s4 + $0x8] sm:$0xff]  ;;  %v87_v11 = vld [vmem:[%s2355_s4 + $0x10] sm:$0xff] }
   0x2   :  { %s2371_s16 = sld [smem:[#allocation6_spill]]  ;;  %v141_v6 = vpack.c.bf16 %v86_v5, %v85_v4  ;;  %v88_v12 = vld [vmem:[%s2355_s4 + $0x18] sm:$0xff]  ;;  %v1628_v13 = vld [vmem:[%s2356_s6] sm:$0xff]   ;;  %v90_v15 = vld [vmem:[%s2355_s4 + $0x28] sm:$0xff] }
   0x3   :  { %v89_v14 = vld [vmem:[%s2355_s4 + $0x20] sm:$0xff]  ;;  %v142_v16 = vpack.c.bf16 %v88_v12, %v87_v11  ;;  %v1629_v18 = vld [vmem:[%s2356_s6 + $0x8] sm:$0xff]   ;;  %v91_v19 = vld [vmem:[%s2355_s4 + $0x30] sm:$0xff] }
   0x4   :  { %1412 = vmatprep.mubr.bf16.mxu0 %v141_v6  ;;  %v143_v17 = vpack.c.bf16 %v90_v15, %v89_v14  ;;  %v92_v20 = vld [vmem:[%s2355_s4 + $0x38] sm:$0xff]  ;;  %v1630_v21 = vld [vmem:[%s2356_s6 + $0x10] sm:$0xff]   ;;  %v93_v22 = vld [vmem:[%s2355_s4 + $0x40] sm:$0xff] }
   0x5   :  { %v94_v23 = vld [vmem:[%s2355_s4 + $0x48] sm:$0xff]  ;;  %v144_v24 = vpack.c.bf16 %v92_v20, %v91_v19  ;;  %v1631_v25 = vld [vmem:[%s2356_s6 + $0x18] sm:$0xff]   ;;  %v1644_v27 = vld [vmem:[%s2358_s10] sm:$0xff]  }
   0x6   :  { %v145_v26 = vpack.c.bf16 %v94_v23, %v93_v22  ;;  %v95_v28 = vld [vmem:[%s2355_s4 + $0x50] sm:$0xff]  ;;  %v96_v29 = vld [vmem:[%s2355_s4 + $0x58] sm:$0xff]  ;;  %v1645_v30 = vld [vmem:[%s2358_s10 + $0x8] sm:$0xff]   ;;  %1492 = vmatprep.subr.bf16.mxu1 %v1644_v27 }
   0x7   :  { %v1632_v31 = vld [vmem:[%s2356_s6 + $0x20] sm:$0xff]   ;;  %v98_v33 = vld [vmem:[%s2355_s4 + $0x68] sm:$0xff]  ;;  %1493 = vmatpush3.bf16.msra.mxu1 %v1644_v27  ;;  %v1646_v34 = vld [vmem:[%s2358_s10 + $0x10] sm:$0xff]   ;;  %v146_v35 = vpack.c.bf16 %v96_v29, %v95_v28 }
   0x8   :  { %v1620_v0 = vld [vmem:[%s2371_s16] sm:$0xff]   ;;  %v1621_v1 = vld [vmem:[%s2371_s16 + $0x8] sm:$0xff]   ;;  %v1622_v2 = vld [vmem:[%s2371_s16 + $0x10] sm:$0xff]   ;;  %1494 = vmatprep.subr.bf16.mxu1 %v1645_v30 }
   0x9   :  { %1396 = vmatprep.subr.bf16.mxu0 %v1620_v0  ;;  %v1623_v3 = vld [vmem:[%s2371_s16 + $0x18] sm:$0xff]   ;;  %v1624_v7 = vld [vmem:[%s2371_s16 + $0x20] sm:$0xff]   ;;  %v1625_v8 = vld [vmem:[%s2371_s16 + $0x28] sm:$0xff]  }
   0xa   :  { %1397 = vmatpush3.bf16.msra.mxu0 %v1620_v0  ;;  %v1626_v9 = vld [vmem:[%s2371_s16 + $0x30] sm:$0xff]   ;;  %v1627_v10 = vld [vmem:[%s2371_s16 + $0x38] sm:$0xff]   ;;  %v97_v32 = vld [vmem:[%s2355_s4 + $0x60] sm:$0xff] }
   0xb   :  { %1398 = vmatprep.subr.bf16.mxu0 %v1621_v1  ;;  %v147_v36 = vpack.c.bf16 %v98_v33, %v97_v32  ;;  %v1633_v37 = vld [vmem:[%s2356_s6 + $0x28] sm:$0xff]   ;;  %1495 = vmatpush3.bf16.msra.mxu1 %v1645_v30  ;;  %v1647_v38 = vld [vmem:[%s2358_s10 + $0x18] sm:$0xff]   ;;  %v99_v39 = vld [vmem:[%s2355_s4 + $0x70] sm:$0xff] }
   0xc   :  { %1496 = vmatprep.subr.bf16.mxu1 %v1646_v34  ;;  %v100_v40 = vld [vmem:[%s2355_s4 + $0x78] sm:$0xff]  ;;  %v1634_v41 = vld [vmem:[%s2356_s6 + $0x30] sm:$0xff]   ;;  %v69_v42 = vld [vmem:[%s2359_s3] sm:$0xff] }
   0xd   :  { %v70_v43 = vld [vmem:[%s2359_s3 + $0x8] sm:$0xff]  ;;  %v1648_v44 = vld [vmem:[%s2358_s10 + $0x20] sm:$0xff]   ;;  %v148_v45 = vpack.c.bf16 %v100_v40, %v99_v39  ;;  %v1635_v47 = vld [vmem:[%s2356_s6 + $0x38] sm:$0xff]  }
   0xe   :  { %1399 = vmatpush3.bf16.msra.mxu0 %v1621_v1  ;;  %v117_v46 = vpack.c.bf16 %v70_v43, %v69_v42  ;;  %v1649_v48 = vld [vmem:[%s2358_s10 + $0x28] sm:$0xff]   ;;  %v71_v49 = vld [vmem:[%s2359_s3 + $0x10] sm:$0xff]  ;;  %v72_v50 = vld [vmem:[%s2359_s3 + $0x18] sm:$0xff] }
   0xf   :  { %1400 = vmatprep.subr.bf16.mxu0 %v1622_v2  ;;  %1497 = vmatpush3.bf16.msra.mxu1 %v1646_v34  ;;  %v1636_v51 = vld [vmem:[%s2357_s8] sm:$0xff]   ;;  %v74_v53 = vld [vmem:[%s2359_s3 + $0x28] sm:$0xff]  ;;  %v118_v54 = vpack.c.bf16 %v72_v50, %v71_v49  ;;  %v75_v57 = vld [vmem:[%s2359_s3 + $0x30] sm:$0xff] }
  0x10   :  { %1498 = vmatprep.subr.bf16.mxu1 %v1647_v38  ;;  %v73_v52 = vld [vmem:[%s2359_s3 + $0x20] sm:$0xff]  ;;  %v1637_v56 = vld [vmem:[%s2357_s8 + $0x8] sm:$0xff]   ;;  %v76_v58 = vld [vmem:[%s2359_s3 + $0x38] sm:$0xff] }
  0x11   :  { %v119_v55 = vpack.c.bf16 %v74_v53, %v73_v52  ;;  %v1638_v59 = vld [vmem:[%s2357_s8 + $0x10] sm:$0xff]   ;;  %v77_v60 = vld [vmem:[%s2359_s3 + $0x40] sm:$0xff]  ;;  %v78_v61 = vld [vmem:[%s2359_s3 + $0x48] sm:$0xff]  ;;  %v120_v62 = vpack.c.bf16 %v76_v58, %v75_v57 }
  0x12   :  { %1401 = vmatpush3.bf16.msra.mxu0 %v1622_v2  ;;  %v121_v63 = vpack.c.bf16 %v78_v61, %v77_v60  ;;  %v1639_v0 = vld [vmem:[%s2357_s8 + $0x18] sm:$0xff]   ;;  %v79_v1 = vld [vmem:[%s2359_s3 + $0x50] sm:$0xff]  ;;  %v81_v4 = vld [vmem:[%s2359_s3 + $0x60] sm:$0xff] }
  0x13   :  { %1402 = vmatprep.subr.bf16.mxu0 %v1623_v3  ;;  %1499 = vmatpush3.bf16.msra.mxu1 %v1647_v38  ;;  %v80_v2 = vld [vmem:[%s2359_s3 + $0x58] sm:$0xff]  ;;  %v82_v5 = vld [vmem:[%s2359_s3 + $0x68] sm:$0xff]  ;;  %v1642_v11 = vld [vmem:[%s2357_s8 + $0x30] sm:$0xff]  }
  0x14   :  { %1500 = vmatprep.subr.bf16.mxu1 %v1648_v44  ;;  %v122_v6 = vpack.c.bf16 %v80_v2, %v79_v1  ;;  %v101_v12 = vld [vmem:[%s2360_s5] sm:$0xff]  ;;  %v106_v20 = vld [vmem:[%s2360_s5 + $0x28] sm:$0xff]  ;;  %v107_v23 = vld [vmem:[%s2360_s5 + $0x30] sm:$0xff] }
  0x15   :  { %v105_v19 = vld [vmem:[%s2360_s5 + $0x20] sm:$0xff]  ;;  %v111_v29 = vld [vmem:[%s2360_s5 + $0x50] sm:$0xff]  ;;  %v112_v30 = vld [vmem:[%s2360_s5 + $0x58] sm:$0xff] }
  0x16   :  { %1403 = vmatpush3.bf16.msra.mxu0 %v1623_v3  ;;  %v1640_v3 = vld [vmem:[%s2357_s8 + $0x20] sm:$0xff]   ;;  %v457_v22 = vpack.c.bf16 %v106_v20, %v105_v19  ;;  %v114_v32 = vld [vmem:[%s2360_s5 + $0x68] sm:$0xff]  ;;  %v460_v33 = vpack.c.bf16 %v112_v30, %v111_v29  ;;  %v1650_v38 = vld [vmem:[%s2358_s10 + $0x30] sm:$0xff]  }
  0x17   :  { %1404 = vmatprep.subr.bf16.mxu0 %v1624_v7  ;;  %1501 = vmatpush3.bf16.msra.mxu1 %v1648_v44  ;;  %v1651_v39 = vld [vmem:[%s2358_s10 + $0x38] sm:$0xff]   ;;  %v1280_v40 = vld [vmem:[%s2361_s9] ss:$0 sm:$0xff] }
  0x18   :  { %1502 = vmatprep.subr.bf16.mxu1 %v1649_v48 }
  0x1a   :  { %1405 = vmatpush3.bf16.msra.mxu0 %v1624_v7  ;;  %v123_v7 = vpack.c.bf16 %v82_v5, %v81_v4 }
  0x1b   :  { %1406 = vmatprep.subr.bf16.mxu0 %v1625_v8  ;;  %1503 = vmatpush3.bf16.msra.mxu1 %v1649_v48 }
  0x1c   :  { %1504 = vmatprep.subr.bf16.mxu1 %v1650_v38 }
  0x1e   :  { %1407 = vmatpush3.bf16.msra.mxu0 %v1625_v8  ;;  %v1641_v8 = vld [vmem:[%s2357_s8 + $0x28] sm:$0xff]  }
  0x1f   :  { %1408 = vmatprep.subr.bf16.mxu0 %v1626_v9  ;;  %1505 = vmatpush3.bf16.msra.mxu1 %v1650_v38  ;;  %v1655_v38 = vld [vmem:[%s2362_s12 + $0x18] sm:$0xff]  }
  0x20   :  { %1506 = vmatprep.subr.bf16.mxu1 %v1651_v39 }
  0x22   :  { %1409 = vmatpush3.bf16.msra.mxu0 %v1626_v9  ;;  %v83_v9 = vld [vmem:[%s2359_s3 + $0x70] sm:$0xff] }
  0x23   :  { %1410 = vmatprep.subr.bf16.mxu0 %v1627_v10  ;;  %1507 = vmatpush3.bf16.msra.mxu1 %v1651_v39  ;;  %v1656_v39 = vld [vmem:[%s2362_s12 + $0x20] sm:$0xff]  }
  0x26   :  { %1411 = vmatpush3.bf16.msra.mxu0 %v1627_v10  ;;  %v84_v10 = vld [vmem:[%s2359_s3 + $0x78] sm:$0xff] }
  0x27   :  { %1428 = vmatprep.subr.bf16.mxu0 %v1628_v13  ;;  %v124_v14 = vpack.c.bf16 %v84_v10, %v83_v9 }
  0x29   :  { %1413 = vmatmul.mubr.bf16.vlgmr.msra.gmra.mrb[0].mxu0 %v142_v16  ;;  %v1643_v16 = vld [vmem:[%s2357_s8 + $0x38] sm:$0xff]  }
  0x2a   :  { %1429 = vmatpush3.bf16.msra.mxu0 %v1628_v13  ;;  %1416 = vmatprep.mubr.bf16.mxu0 %v143_v17  ;;  %v102_v13 = vld [vmem:[%s2360_s5 + $0x8] sm:$0xff]  ;;  %v103_v17 = vld [vmem:[%s2360_s5 + $0x10] sm:$0xff] }
  0x2b   :  { %1430 = vmatprep.subr.bf16.mxu0 %v1629_v18  ;;  %v455_v15 = vpack.c.bf16 %v102_v13, %v101_v12 }
  0x2e   :  { %1431 = vmatpush3.bf16.msra.mxu0 %v1629_v18  ;;  %v104_v18 = vld [vmem:[%s2360_s5 + $0x18] sm:$0xff] }
  0x2f   :  { %1432 = vmatprep.subr.bf16.mxu0 %v1630_v21 }
  0x31   :  { %1417 = vmatmul.mubr.bf16.gmra.mrb[4].mxu0 %v144_v24  ;;  %v108_v24 = vld [vmem:[%s2360_s5 + $0x38] sm:$0xff] }
  0x32   :  { %1433 = vmatpush3.bf16.msra.mxu0 %v1630_v21  ;;  %1420 = vmatprep.mubr.bf16.mxu0 %v145_v26  ;;  %v456_v21 = vpack.c.bf16 %v104_v18, %v103_v17  ;;  %v110_v26 = vld [vmem:[%s2360_s5 + $0x48] sm:$0xff]  ;;  %v458_v27 = vpack.c.bf16 %v108_v24, %v107_v23 }
  0x33   :  { %1434 = vmatprep.subr.bf16.mxu0 %v1631_v25 }
  0x36   :  { %1435 = vmatpush3.bf16.msra.mxu0 %v1631_v25  ;;  %v109_v25 = vld [vmem:[%s2360_s5 + $0x40] sm:$0xff] }
  0x37   :  { %1436 = vmatprep.subr.bf16.mxu0 %v1632_v31  ;;  %v459_v28 = vpack.c.bf16 %v110_v26, %v109_v25 }
  0x39   :  { %1421 = vmatmul.mubr.bf16.gmra.mrb[8].mxu0 %v146_v35  ;;  %v115_v35 = vld [vmem:[%s2360_s5 + $0x70] sm:$0xff] }
  0x3a   :  { %1437 = vmatpush3.bf16.msra.mxu0 %v1632_v31  ;;  %1424 = vmatprep.mubr.bf16.mxu0 %v147_v36  ;;  %v113_v31 = vld [vmem:[%s2360_s5 + $0x60] sm:$0xff]  ;;  %v116_v36 = vld [vmem:[%s2360_s5 + $0x78] sm:$0xff] }
  0x3b   :  { %1438 = vmatprep.subr.bf16.mxu0 %v1633_v37  ;;  %v461_v34 = vpack.c.bf16 %v114_v32, %v113_v31 }
  0x3e   :  { %1439 = vmatpush3.bf16.msra.mxu0 %v1633_v37  ;;  %v462_v37 = vpack.c.bf16 %v116_v36, %v115_v35  ;;  %v1652_v35 = vld [vmem:[%s2362_s12] sm:$0xff]   ;;  %v1653_v36 = vld [vmem:[%s2362_s12 + $0x8] sm:$0xff]  }
  0x3f   :  { %1440 = vmatprep.subr.bf16.mxu0 %v1634_v41 }
  0x41   :  { %1425 = vmatmul.mubr.bf16.gmra.mrb[12].mxu0 %v148_v45 }
  0x42   :  { %1441 = vmatpush3.bf16.msra.mxu0 %v1634_v41  ;;  %1444 = vmatprep.mubr.bf16.mxu0 %v117_v46 }
  0x43   :  { %1442 = vmatprep.subr.bf16.mxu0 %v1635_v47 }
  0x46   :  { %1443 = vmatpush3.bf16.msra.mxu0 %v1635_v47 }
  0x47   :  { %1460 = vmatprep.subr.bf16.mxu0 %v1636_v51 }
  0x49   :  { %1445 = vmatmul.mubr.bf16.vlgmr.msra.gmra.mrb[0].mxu0 %v118_v54 }
  0x4a   :  { %1461 = vmatpush3.bf16.msra.mxu0 %v1636_v51  ;;  %1448 = vmatprep.mubr.bf16.mxu0 %v119_v55 }
  0x4b   :  { %1462 = vmatprep.subr.bf16.mxu0 %v1637_v56 }
  0x4e   :  { %1463 = vmatpush3.bf16.msra.mxu0 %v1637_v56 }
  0x4f   :  { %1464 = vmatprep.subr.bf16.mxu0 %v1638_v59 }
  0x51   :  { %1449 = vmatmul.mubr.bf16.gmra.mrb[4].mxu0 %v120_v62 }
  0x52   :  { %1465 = vmatpush3.bf16.msra.mxu0 %v1638_v59  ;;  %1452 = vmatprep.mubr.bf16.mxu0 %v121_v63 }
  0x53   :  { %1466 = vmatprep.subr.bf16.mxu0 %v1639_v0 }
  0x56   :  { %1467 = vmatpush3.bf16.msra.mxu0 %v1639_v0 }
  0x57   :  { %1468 = vmatprep.subr.bf16.mxu0 %v1640_v3 }
  0x59   :  { %1453 = vmatmul.mubr.bf16.gmra.mrb[8].mxu0 %v122_v6 }
  0x5a   :  { %1469 = vmatpush3.bf16.msra.mxu0 %v1640_v3  ;;  %1456 = vmatprep.mubr.bf16.mxu0 %v123_v7 }
  0x5b   :  { %1470 = vmatprep.subr.bf16.mxu0 %v1641_v8 }
  0x5e   :  { %1471 = vmatpush3.bf16.msra.mxu0 %v1641_v8 }
  0x5f   :  { %1472 = vmatprep.subr.bf16.mxu0 %v1642_v11 }
  0x61   :  { %1457 = vmatmul.mubr.bf16.gmra.mrb[12].mxu0 %v124_v14 }
  0x62   :  { %1473 = vmatpush3.bf16.msra.mxu0 %v1642_v11  ;;  %1476 = vmatprep.mubr.bf16.mxu0 %v455_v15 }
  0x63   :  { %1474 = vmatprep.subr.bf16.mxu0 %v1643_v16 }
  0x66   :  { %1475 = vmatpush3.bf16.msra.mxu0 %v1643_v16 }
  0x69   :  { %1477 = vmatmul.mubr.bf16.vlgmr.msra.gmra.mrb[0].mxu0 %v456_v21 }
  0x6a   :  { %1480 = vmatprep.mubr.bf16.mxu0 %v457_v22 }
  0x71   :  { %1481 = vmatmul.mubr.bf16.gmra.mrb[4].mxu0 %v458_v27 }
  0x72   :  { %1484 = vmatprep.mubr.bf16.mxu0 %v459_v28 }
  0x79   :  { %1485 = vmatmul.mubr.bf16.gmra.mrb[8].mxu0 %v460_v33  ;;  %v1698_v33 = vmov -1e+30  }
  0x7a   :  { %1488 = vmatprep.mubr.bf16.mxu0 %v461_v34  ;;  %64 = vst [vmem:[#allocation2] sm:$0x1] %v1698_v33  ;;  %v1699_v34 = vmov 0.0  }
  0x7b   :  { %1524 = vmatprep.subr.bf16.mxu1 %v1699_v34  ;;  %1564 = vmatprep.subr.bf16.mxu0 %v1699_v34 }
  0x7c   :  { %1565 = vmatpush3.bf16.msra.mxu0 %v1652_v35 }
  0x7d   :  { %1566 = vmatprep.subr.bf16.mxu0 %v1699_v34 }
  0x80   :  { %1567 = vmatpush3.bf16.msra.mxu0 %v1653_v36 }
  0x81   :  { %1489 = vmatmul.mubr.bf16.gmra.mrb[12].mxu0 %v462_v37  ;;  %1568 = vmatprep.subr.bf16.mxu0 %v1699_v34  ;;  %v1654_v37 = vld [vmem:[%s2362_s12 + $0x10] sm:$0xff]  }
  0x82   :  { %1580 = vmatprep.mubr.msk.bf16.mxu0 %vm1700_vm0, %v1699_v34 }
  0x84   :  { %1569 = vmatpush3.bf16.msra.mxu0 %v1654_v37 }
  0x85   :  { %1570 = vmatprep.subr.bf16.mxu0 %v1699_v34 }
  0x88   :  { %1571 = vmatpush3.bf16.msra.mxu0 %v1655_v38 }
  0x89   :  { %1572 = vmatprep.subr.bf16.mxu0 %v1699_v34 }
  0x8c   :  { %1573 = vmatpush3.bf16.msra.mxu0 %v1656_v39 }
  0x8d   :  { %1574 = vmatprep.subr.bf16.mxu0 %v1699_v34 }
 0x13c   :  { %v1478_v41 = vpop.f32.mrb[0].mxu0 }
 0x13d   :  { %v649_v42 = vadd.f32 %v1478_v41, %v1280_v40  ;;  %v561_v43 = vpop.f32.mrb[1].mxu0  ;;  %v1657_v41 = vld [vmem:[%s2362_s12 + $0x28] sm:$0xff]  }
 0x13e   :  { %v647_v44 = vadd.f32 %v1280_v40, %v561_v43  ;;  %v1479_v45 = vpop.f32.mrb[2].mxu0  ;;  %1575 = vmatpush3.bf16.msra.mxu0 %v1657_v41 }
 0x13f   :  { %v650_v46 = vadd.f32 %v1479_v45, %v1280_v40  ;;  %v564_v47 = vpop.f32.mrb[3].mxu0  ;;  %v665_v49 = vmax.f32 %v649_v42, 0.0  ;;  %1576 = vmatprep.subr.bf16.mxu0 %v1699_v34 }
 0x140   :  { %v648_v48 = vadd.f32 %v1280_v40, %v564_v47  ;;  %v663_v51 = vmax.f32 %v647_v44, 0.0  ;;  %v1658_v47 = vld [vmem:[%s2362_s12 + $0x30] sm:$0xff]  }
 0x141   :  { %v666_v50 = vmax.f32 %v650_v46, 0.0 }
 0x142   :  { %v664_v52 = vmax.f32 %v648_v48, 0.0  ;;  %1577 = vmatpush3.bf16.msra.mxu0 %v1658_v47 }
 0x143   :  { %v680_v53 = vpack.c.bf16 %v666_v50, %v665_v49  ;;  %1578 = vmatprep.subr.bf16.mxu0 %v1699_v34 }
 0x144   :  { %v1482_v54 = vpop.f32.mrb[4].mxu0  ;;  %v679_v55 = vpack.c.bf16 %v664_v52, %v663_v51  ;;  %v1659_v51 = vld [vmem:[%s2362_s12 + $0x38] sm:$0xff]  }
 0x145   :  { %v653_v56 = vadd.f32 %v1482_v54, %v1280_v40  ;;  %v577_v57 = vpop.f32.mrb[5].mxu0 }
 0x146   :  { %v651_v58 = vadd.f32 %v1280_v40, %v577_v57  ;;  %v1483_v59 = vpop.f32.mrb[6].mxu0  ;;  %1508 = vmatprep.mubr.bf16.mxu1 %v679_v55  ;;  %1579 = vmatpush3.bf16.msra.mxu0 %v1659_v51  ;;  %v1124_v57 = vld [vmem:[%s2365_s2] sm:$0xff] }
 0x147   :  { %v654_v60 = vadd.f32 %v1483_v59, %v1280_v40  ;;  %v580_v61 = vpop.f32.mrb[7].mxu0  ;;  %1509 = vmatmul.mubr.bf16.vlgmr.msra.gmra.mrb[0].mxu1 %v680_v53  ;;  %v669_v63 = vmax.f32 %v653_v56, 0.0 }
 0x148   :  { %v652_v62 = vadd.f32 %v1280_v40, %v580_v61  ;;  %v667_v1 = vmax.f32 %v651_v58, 0.0  ;;  %v1125_v58 = vld [vmem:[%s2365_s2 + $0x8] sm:$0xff] }
 0x149   :  { %v670_v0 = vmax.f32 %v654_v60, 0.0  ;;  %v1138_v61 = vpack.c.bf16 %v1125_v58, %v1124_v57 }
 0x14a   :  { %v668_v2 = vmax.f32 %v652_v62, 0.0 }
 0x14b   :  { %v682_v3 = vpack.c.bf16 %v670_v0, %v669_v63  ;;  %1581 = vmatmul.mubr.bf16.vlgmr.msra.gmra.mrb[16].mxu0 %v1138_v61  ;;  %v872_v63 = vstv %s2366_s1 }
 0x14c   :  { %v681_v4 = vpack.c.bf16 %v668_v2, %v667_v1  ;;  %v1486_v5 = vpop.f32.mrb[8].mxu0 }
 0x14d   :  { %v657_v6 = vadd.f32 %v1486_v5, %v1280_v40  ;;  %v593_v7 = vpop.f32.mrb[9].mxu0 }
 0x14e   :  { %v655_v8 = vadd.f32 %v1280_v40, %v593_v7  ;;  %v1487_v9 = vpop.f32.mrb[10].mxu0  ;;  %1512 = vmatprep.mubr.bf16.mxu1 %v681_v4 }
 0x14f   :  { %v658_v10 = vadd.f32 %v1487_v9, %v1280_v40  ;;  %v596_v11 = vpop.f32.mrb[11].mxu0  ;;  %1513 = vmatmul.mubr.bf16.gmra.mrb[4].mxu1 %v682_v3  ;;  %v673_v13 = vmax.f32 %v657_v6, 0.0 }
 0x150   :  { %v656_v12 = vadd.f32 %v1280_v40, %v596_v11  ;;  %v671_v15 = vmax.f32 %v655_v8, 0.0 }
 0x151   :  { %v674_v14 = vmax.f32 %v658_v10, 0.0 }
 0x152   :  { %v672_v16 = vmax.f32 %v656_v12, 0.0 }
 0x153   :  { %v684_v17 = vpack.c.bf16 %v674_v14, %v673_v13 }
 0x154   :  { %v683_v18 = vpack.c.bf16 %v672_v16, %v671_v15  ;;  %v1490_v19 = vpop.f32.mrb[12].mxu0 }
 0x155   :  { %v661_v20 = vadd.f32 %v1490_v19, %v1280_v40  ;;  %v609_v21 = vpop.f32.mrb[13].mxu0 }
 0x156   :  { %v659_v22 = vadd.f32 %v1280_v40, %v609_v21  ;;  %v1491_v23 = vpop.f32.mrb[14].mxu0  ;;  %1516 = vmatprep.mubr.bf16.mxu1 %v683_v18 }
 0x157   :  { %v662_v24 = vadd.f32 %v1491_v23, %v1280_v40  ;;  %v612_v25 = vpop.f32.mrb[15].mxu0  ;;  %1517 = vmatmul.mubr.bf16.gmra.mrb[8].mxu1 %v684_v17  ;;  %v677_v27 = vmax.f32 %v661_v20, 0.0 }
 0x158   :  { %v660_v26 = vadd.f32 %v1280_v40, %v612_v25  ;;  %v675_v29 = vmax.f32 %v659_v22, 0.0  ;;  %v2068_v40 = vld [vmem:[%s2363_s11] ss:$0 sm:$0xff] }
 0x159   :  { %v678_v28 = vmax.f32 %v662_v24, 0.0 }
 0x15a   :  { %v676_v30 = vmax.f32 %v660_v26, 0.0 }
 0x15b   :  { %v686_v31 = vpack.c.bf16 %v678_v28, %v677_v27 }
 0x15c   :  { %v685_v32 = vpack.c.bf16 %v676_v30, %v675_v29 }
 0x15e   :  { %1520 = vmatprep.mubr.bf16.mxu1 %v685_v32 }
 0x15f   :  { %1521 = vmatmul.mubr.bf16.gmra.mrb[12].mxu1 %v686_v31 }
 0x160   :  { %1540 = vmatprep.mubr.msk.bf16.mxu1 %vm1700_vm0, %v1699_v34 }
 0x21a   :  { %v1510_v42 = vpop.f32.mrb[0].mxu1 }
 0x21b   :  { %v2075_v43 = vadd.f32 %v1510_v42, %v2068_v40  ;;  %v792_v44 = vpop.f32.mrb[1].mxu1 }
 0x21c   :  { %v2078_v45 = vadd.f32 %v2068_v40, %v792_v44  ;;  %v1511_v46 = vpop.f32.mrb[2].mxu1 }
 0x21d   :  { %857 = vst [vmem:[%s2364_s18 + $0x10] sm:$0xff] %v2075_v43  ;;  %v2089_v48 = vadd.f32 %v1511_v46, %v2068_v40  ;;  %v795_v49 = vpop.f32.mrb[3].mxu1  ;;  %v875_v18 = vmul.f32 %v872_v63, %v2075_v43 }
 0x21e   :  { %855 = vst [vmem:[%s2364_s18] sm:$0xff] %v2078_v45  ;;  %v2096_v50 = vadd.f32 %v2068_v40, %v795_v49  ;;  %v2154_v4 = vmul.f32 %v872_v63, %v2078_v45 }
 0x21f   :  { %858 = vst [vmem:[%s2364_s18 + $0x18] sm:$0xff] %v2089_v48  ;;  %v876_v23 = vmul.f32 %v872_v63, %v2089_v48 }
 0x220   :  { %856 = vst [vmem:[%s2364_s18 + $0x8] sm:$0xff] %v2096_v50  ;;  %v2170_v10 = vmul.f32 %v872_v63, %v2096_v50 }
 0x222   :  { %v1514_v52 = vpop.f32.mrb[4].mxu1 }
 0x223   :  { %v2111_v53 = vadd.f32 %v1514_v52, %v2068_v40  ;;  %v808_v54 = vpop.f32.mrb[5].mxu1 }
 0x224   :  { %v2114_v55 = vadd.f32 %v2068_v40, %v808_v54  ;;  %v1515_v56 = vpop.f32.mrb[6].mxu1  ;;  %v889_v54 = vlaneseq }
 0x225   :  { %861 = vst [vmem:[%s2364_s18 + $0x30] sm:$0xff] %v2111_v53  ;;  %v2127_v59 = vadd.f32 %v1515_v56, %v2068_v40  ;;  %v811_v60 = vpop.f32.mrb[7].mxu1  ;;  %v2185_v14 = vmul.f32 %v872_v63, %v2111_v53 }
 0x226   :  { %859 = vst [vmem:[%s2364_s18 + $0x20] sm:$0xff] %v2114_v55  ;;  %v2134_v62 = vadd.f32 %v2068_v40, %v811_v60  ;;  %v2148_v0 = vmul.f32 %v872_v63, %v2114_v55  ;;  %v2255_v58 = vshrl.u32 %v889_v54, 7 }
 0x227   :  { %862 = vst [vmem:[%s2364_s18 + $0x38] sm:$0xff] %v2127_v59  ;;  %v2203_v19 = vmul.f32 %v872_v63, %v2127_v59  ;;  %v907_v24 = vmax.f32 %v875_v18, %v2185_v14 }
 0x228   :  { %860 = vst [vmem:[%s2364_s18 + $0x28] sm:$0xff] %v2134_v62  ;;  %v2157_v5 = vmul.f32 %v872_v63, %v2134_v62  ;;  %v905_v11 = vmax.f32 %v2154_v4, %v2148_v0 }
 0x229   :  { %v908_v30 = vmax.f32 %v876_v23, %v2203_v19 }
 0x22a   :  { %v1518_v1 = vpop.f32.mrb[8].mxu1  ;;  %v906_v15 = vmax.f32 %v2170_v10, %v2157_v5 }
 0x22b   :  { %v2151_v2 = vadd.f32 %v1518_v1, %v2068_v40  ;;  %v824_v3 = vpop.f32.mrb[9].mxu1  ;;  %v904_v1 = vld [vmem:[#allocation2] sm:$0x1] }
 0x22c   :  { %v2160_v6 = vadd.f32 %v2068_v40, %v824_v3  ;;  %v1519_v7 = vpop.f32.mrb[10].mxu1 }
 0x22d   :  { %865 = vst [vmem:[%s2364_s18 + $0x50] sm:$0xff] %v2151_v2  ;;  %v2167_v8 = vadd.f32 %v1519_v7, %v2068_v40  ;;  %v827_v9 = vpop.f32.mrb[11].mxu1  ;;  %v2206_v20 = vmul.f32 %v872_v63, %v2151_v2  ;;  %v933_v7 = vsub.s32 0, %v2255_v58 }
 0x22e   :  { %863 = vst [vmem:[%s2364_s18 + $0x40] sm:$0xff] %v2160_v6  ;;  %v2179_v12 = vmul.f32 %v872_v63, %v2160_v6  ;;  %v2182_v13 = vadd.f32 %v2068_v40, %v827_v9 }
 0x22f   :  { %866 = vst [vmem:[%s2364_s18 + $0x58] sm:$0xff] %v2167_v8  ;;  %v2212_v25 = vmul.f32 %v872_v63, %v2167_v8  ;;  %v911_v31 = vmax.f32 %v907_v24, %v2206_v20 }
 0x230   :  { %v909_v16 = vmax.f32 %v905_v11, %v2179_v12  ;;  %864 = vst [vmem:[%s2364_s18 + $0x48] sm:$0xff] %v2182_v13  ;;  %v2199_v17 = vmul.f32 %v872_v63, %v2182_v13 }
 0x231   :  { %v912_v38 = vmax.f32 %v908_v30, %v2212_v25 }
 0x232   :  { %v910_v21 = vmax.f32 %v906_v15, %v2199_v17  ;;  %v1522_v22 = vpop.f32.mrb[12].mxu1 }
 0x233   :  { %v2215_v26 = vadd.f32 %v1522_v22, %v2068_v40  ;;  %v840_v27 = vpop.f32.mrb[13].mxu1 }
 0x234   :  { %v2218_v28 = vadd.f32 %v2068_v40, %v840_v27  ;;  %v1523_v29 = vpop.f32.mrb[14].mxu1 }
 0x235   :  { %869 = vst [vmem:[%s2364_s18 + $0x70] sm:$0xff] %v2215_v26  ;;  %v2227_v32 = vmul.f32 %v872_v63, %v2215_v26  ;;  %v2230_v33 = vadd.f32 %v1523_v29, %v2068_v40  ;;  %v843_v35 = vpop.f32.mrb[15].mxu1 }
 0x236   :  { %867 = vst [vmem:[%s2364_s18 + $0x60] sm:$0xff] %v2218_v28  ;;  %v885_v36 = vmul.f32 %v872_v63, %v2218_v28  ;;  %v2238_v37 = vadd.f32 %v2068_v40, %v843_v35 }
 0x237   :  { %v915_v39 = vmax.f32 %v911_v31, %v2227_v32  ;;  %870 = vst [vmem:[%s2364_s18 + $0x78] sm:$0xff] %v2230_v33  ;;  %v2247_v41 = vmul.f32 %v872_v63, %v2230_v33 }
 0x238   :  { %v913_v42 = vmax.f32 %v909_v16, %v885_v36  ;;  %868 = vst [vmem:[%s2364_s18 + $0x68] sm:$0xff] %v2238_v37  ;;  %v886_v40 = vmul.f32 %v872_v63, %v2238_v37 }
 0x239   :  { %v916_v44 = vmax.f32 %v912_v38, %v2247_v41 }
 0x23a   :  { %v914_v46 = vmax.f32 %v910_v21, %v886_v40 }
 0x23b   :  { %v918_v47 = vmax.f32 %v915_v39, %v916_v44 }
 0x23c   :  { %v917_v49 = vmax.f32 %v913_v42, %v914_v46 }
 0x23e   :  { %v919_v51 = vmax.f32 %v917_v49, %v918_v47 }
 0x240   :  { %v920_v52 = vrot.slane %v919_v51, 4 }
 0x242   :  { %v921_v56 = vmax.f32 %v919_v51, %v920_v52 }
 0x244   :  { %v922_v57 = vrot.slane %v921_v56, 2 }
 0x246   :  { %v923_v60 = vmax.f32 %v921_v56, %v922_v57 }
 0x248   :  { %v924_v61 = vrot.slane %v923_v60, 1 }
 0x24a   :  { %v925_v3 = vmax.f32 %v923_v60, %v924_v61 }
 0x24c   :  { %v926_v9 = vmax.f32 %v904_v1, %v925_v3 }
 0x24e   :  { %v934_v63 = vrot.slane %v926_v9, %v933_v7  ;;  %1120 = vst [vmem:[#allocation2] sm:$0x1] %v926_v9  ;;  %v927_v11 = vsub.f32 %v904_v1, %v926_v9 }
 0x250   :  { %v948_v15 = vsub.f32 %v885_v36, %v934_v63  ;;  %v949_v16 = vsub.f32 %v886_v40, %v934_v63  ;;  %v936_v21 = vsub.f32 %v2154_v4, %v934_v63  ;;  %v937_v22 = vsub.f32 %v2170_v10, %v934_v63 }
 0x251   :  { %v938_v24 = vsub.f32 %v875_v18, %v934_v63  ;;  %v939_v27 = vsub.f32 %v876_v23, %v934_v63  ;;  %v940_v29 = vsub.f32 %v2148_v0, %v934_v63  ;;  %v941_v30 = vsub.f32 %v2157_v5, %v934_v63 }
 0x252   :  { %v976_v31 = vmul.f32 1.442695, %v948_v15  ;;  %v978_v35 = vmul.f32 1.442695, %v949_v16  ;;  %v952_v38 = vmul.f32 1.442695, %v936_v21  ;;  %v942_v42 = vsub.f32 %v2185_v14, %v934_v63 }
 0x253   :  { %v954_v39 = vmul.f32 1.442695, %v937_v22  ;;  %v956_v44 = vmul.f32 1.442695, %v938_v24  ;;  %v958_v36 = vmul.f32 1.442695, %v939_v27  ;;  %v943_v40 = vsub.f32 %v2203_v19, %v934_v63 }
 0x254   :  { %1660 = vpow2.f32 %v976_v31  ;;  %v960_v4 = vmul.f32 1.442695, %v940_v29  ;;  %v944_v10 = vsub.f32 %v2179_v12, %v934_v63  ;;  %v945_v18 = vsub.f32 %v2199_v17, %v934_v63 }
 0x255   :  { %1662 = vpow2.f32 %v978_v35  ;;  %v946_v0 = vsub.f32 %v2206_v20, %v934_v63  ;;  %v947_v5 = vsub.f32 %v2212_v25, %v934_v63  ;;  %v950_v23 = vsub.f32 %v2227_v32, %v934_v63 }
 0x256   :  { %1664 = vpow2.f32 %v952_v38  ;;  %v962_v14 = vmul.f32 1.442695, %v941_v30  ;;  %v951_v46 = vsub.f32 %v2247_v41, %v934_v63  ;;  %v964_v47 = vmul.f32 1.442695, %v942_v42 }
 0x257   :  { %1666 = vpow2.f32 %v954_v39  ;;  %v966_v19 = vmul.f32 1.442695, %v943_v40  ;;  %v968_v49 = vmul.f32 1.442695, %v944_v10  ;;  %v970_v12 = vmul.f32 1.442695, %v945_v18 }
 0x258   :  { %1668 = vpow2.f32 %v956_v44  ;;  %v972_v17 = vmul.f32 1.442695, %v946_v0  ;;  %v974_v20 = vmul.f32 1.442695, %v947_v5  ;;  %v980_v25 = vmul.f32 1.442695, %v950_v23 }
 0x259   :  { %1670 = vpow2.f32 %v958_v36  ;;  %v982_v52 = vmul.f32 1.442695, %v951_v46  ;;  %v928_v60 = vmul.f32 1.442695, %v927_v11 }
 0x25a   :  { %1672 = vpow2.f32 %v960_v4 }
 0x25b   :  { %1674 = vpow2.f32 %v962_v14 }
 0x25c   :  { %1676 = vpow2.f32 %v964_v47 }
 0x25d   :  { %1678 = vpow2.f32 %v966_v19 }
 0x25e   :  { %v2272_v51 = vpop.eup %1660  ;;  %1680 = vpow2.f32 %v968_v49  ;;  %v1701_v49 = vmov 1.0|1.0  }
 0x25f   :  { %v2274_v32 = vpop.eup %1662  ;;  %v2278_v41 = vmul.f32 %v2272_v51, %v2218_v28  ;;  %1682 = vpow2.f32 %v970_v12 }
 0x260   :  { %v2280_v54 = vpop.eup %1664  ;;  %v2284_v56 = vmul.f32 %v2274_v32, %v2238_v37  ;;  %1684 = vpow2.f32 %v972_v17  ;;  %v1000_v57 = vpack.c.bf16 %v2274_v32, %v2272_v51 }
 0x261   :  { %v1667_v61 = vpop.eup %1666  ;;  %1686 = vpow2.f32 %v974_v20 }
 0x262   :  { %v1669_v1 = vpop.eup %1668  ;;  %v1073_v28 = vpack.c.bf16 %v2284_v56, %v2278_v41  ;;  %v994_v3 = vpack.c.bf16 %v1667_v61, %v2280_v54  ;;  %1688 = vpow2.f32 %v980_v25 }
 0x263   :  { %v1671_v9 = vpop.eup %1670  ;;  %1690 = vpow2.f32 %v982_v52  ;;  %v1053_v47 = vmul.f32 %v1669_v1, %v2075_v43 }
 0x264   :  { %v1673_v63 = vpop.eup %1672  ;;  %1525 = vmatpush3.bf16.msra.mxu1 %v994_v3  ;;  %1692 = vpow2.f32 %v928_v60  ;;  %v995_v16 = vpack.c.bf16 %v1671_v9, %v1669_v1  ;;  %v1054_v19 = vmul.f32 %v1671_v9, %v2089_v48 }
 0x265   :  { %v1675_v37 = vpop.eup %1674  ;;  %1526 = vmatprep.subr.bf16.mxu1 %v1699_v34  ;;  %v2293_v15 = vmul.f32 %v1673_v63, %v2114_v55 }
 0x266   :  { %v1677_v11 = vpop.eup %1676  ;;  %v996_v21 = vpack.c.bf16 %v1675_v37, %v1673_v63  ;;  %v1056_v22 = vmul.f32 %v1675_v37, %v2134_v62 }
 0x267   :  { %v1679_v24 = vpop.eup %1678 }
 0x268   :  { %v1681_v27 = vpop.eup %1680  ;;  %1527 = vmatpush3.bf16.msra.mxu1 %v995_v16  ;;  %v1069_v29 = vpack.c.bf16 %v1056_v22, %v2293_v15  ;;  %v1058_v43 = vmul.f32 %v1679_v24, %v2127_v59 }
 0x269   :  { %v1683_v30 = vpop.eup %1682  ;;  %1528 = vmatprep.subr.bf16.mxu1 %v1699_v34  ;;  %v1059_v31 = vmul.f32 %v1681_v27, %v2160_v6  ;;  %v997_v6 = vpack.c.bf16 %v1679_v24, %v1677_v11 }
 0x26a   :  { %v1685_v35 = vpop.eup %1684  ;;  %v998_v38 = vpack.c.bf16 %v1683_v30, %v1681_v27  ;;  %v1060_v55 = vmul.f32 %v1683_v30, %v2182_v13 }
 0x26b   :  { %v1687_v39 = vpop.eup %1686  ;;  %v1061_v42 = vmul.f32 %v1685_v35, %v2151_v2 }
 0x26c   :  { %v1689_v44 = vpop.eup %1688  ;;  %1529 = vmatpush3.bf16.msra.mxu1 %v996_v21  ;;  %v999_v62 = vpack.c.bf16 %v1687_v39, %v1685_v35  ;;  %v1071_v36 = vpack.c.bf16 %v1060_v55, %v1059_v31  ;;  %v1062_v40 = vmul.f32 %v1687_v39, %v2167_v8  ;;  %v891_v8 = vadd.s32 8, %v2255_v58 }
 0x26d   :  { %v1691_v4 = vpop.eup %1690  ;;  %1530 = vmatprep.subr.bf16.mxu1 %v1699_v34  ;;  %v1065_v10 = vmul.f32 %v1689_v44, %v2215_v26  ;;  %v1290_v26 = vld [vmem:[%s2367_s0] ss:$0 sm:$0xff] }
 0x26e   :  { %v1693_v18 = vpop.eup %1692  ;;  %v1001_v0 = vpack.c.bf16 %v1691_v4, %v1689_v44  ;;  %v1072_v5 = vpack.c.bf16 %v1062_v40, %v1061_v42  ;;  %v1066_v13 = vmul.f32 %v1691_v4, %v2230_v33  ;;  %vm897_vm1 = vcmp.eq.s32.totalorder %v2255_v58, %v1290_v26 }
 0x26f   :  { %v990_v2 = vrot.slane %v1693_v18, %v933_v7  ;;  %vm898_vm2 = vcmp.eq.s32.totalorder %v891_v8, %v1290_v26  ;;  %v1051_v33 = vmul.f32 %v2280_v54, %v2078_v45  ;;  %v1052_v7 = vmul.f32 %v1667_v61, %v2096_v50 }
 0x270   :  { %1531 = vmatpush3.bf16.msra.mxu1 %v997_v6  ;;  %v1074_v23 = vpack.c.bf16 %v1066_v13, %v1065_v10  ;;  %vm2319_vm3 = vmpackc.low %vm898_vm2, %vm897_vm1  ;;  %v1068_v45 = vpack.c.bf16 %v1054_v19, %v1053_v47  ;;  %v1057_v50 = vmul.f32 %v1677_v11, %v2111_v53  ;;  %v1237_v53 = vpop.f32.mrb[16].mxu0 }
 0x271   :  { %1532 = vmatprep.subr.bf16.mxu1 %v1699_v34  ;;  %v1067_v46 = vpack.c.bf16 %v1052_v7, %v1051_v33  ;;  %v1582_v59 = vpop.f32.mrb[17].mxu0  ;;  %v992_v17 = vmul.f32 0.0, %v990_v2 }
 0x272   :  { %v1070_v48 = vpack.c.bf16 %v1058_v43, %v1057_v50  ;;  %v1240_v58 = vpop.f32.mrb[18].mxu0 }
 0x273   :  { %v1583_v12 = vpop.f32.mrb[19].mxu0 }
 0x274   :  { %1533 = vmatpush3.bf16.msra.mxu1 %v998_v38 }
 0x275   :  { %1534 = vmatprep.subr.bf16.mxu1 %v1699_v34 }
 0x278   :  { %1535 = vmatpush3.bf16.msra.mxu1 %v999_v62 }
 0x279   :  { %1536 = vmatprep.subr.bf16.mxu1 %v1699_v34 }
 0x27c   :  { %1537 = vmatpush3.bf16.msra.mxu1 %v1000_v57 }
 0x27d   :  { %1538 = vmatprep.subr.bf16.mxu1 %v1699_v34 }
 0x280   :  { %1539 = vmatpush3.bf16.msra.mxu1 %v1001_v0 }
 0x281   :  { %1544 = vmatprep.subr.bf16.mxu1 %v1699_v34 }
 0x283   :  { %1541 = vmatmul.mubr.msk.bf16.vlgmr.msra.gmra.mrb[16].mxu1 %vm2319_vm3, %v1701_v49 }
 0x284   :  { %1545 = vmatpush3.bf16.msra.mxu1 %v1067_v46  ;;  %1560 = vmatprep.mubr.msk.bf16.mxu1 %vm1700_vm0, %v1699_v34 }
 0x285   :  { %1546 = vmatprep.subr.bf16.mxu1 %v1699_v34 }
 0x288   :  { %1547 = vmatpush3.bf16.msra.mxu1 %v1068_v45 }
 0x289   :  { %1548 = vmatprep.subr.bf16.mxu1 %v1699_v34 }
 0x28c   :  { %1549 = vmatpush3.bf16.msra.mxu1 %v1069_v29 }
 0x28d   :  { %1550 = vmatprep.subr.bf16.mxu1 %v1699_v34 }
 0x290   :  { %1551 = vmatpush3.bf16.msra.mxu1 %v1070_v48 }
 0x291   :  { %1552 = vmatprep.subr.bf16.mxu1 %v1699_v34 }
 0x294   :  { %1553 = vmatpush3.bf16.msra.mxu1 %v1071_v36 }
 0x295   :  { %1554 = vmatprep.subr.bf16.mxu1 %v1699_v34 }
 0x298   :  { %1555 = vmatpush3.bf16.msra.mxu1 %v1072_v5 }
 0x299   :  { %1556 = vmatprep.subr.bf16.mxu1 %v1699_v34 }
 0x29c   :  { %1557 = vmatpush3.bf16.msra.mxu1 %v1073_v28 }
 0x29d   :  { %1558 = vmatprep.subr.bf16.mxu1 %v1699_v34 }
 0x2a0   :  { %1559 = vmatpush3.bf16.msra.mxu1 %v1074_v23 }
 0x2a3   :  { %1561 = vmatmul.mubr.msk.bf16.vlgmr.msra.gmra.mrb[20].mxu1 %vm2319_vm3, %v1701_v49 }
 0x356   :  { %v1036_v20 = vpop.f32.mrb[16].mxu1 }
 0x357   :  { %v1043_v51 = vadd.f32 %v1036_v20, %v992_v17  ;;  %v1542_v25 = vpop.f32.mrb[17].mxu1 }
 0x358   :  { %v1039_v32 = vpop.f32.mrb[18].mxu1 }
 0x359   :  { %v1044_v52 = vadd.f32 %v1039_v32, %v992_v17  ;;  %v1543_v54 = vpop.f32.mrb[19].mxu1  ;;  %v1130_v57 = vmax.f32 %v1043_v51, 1e-12 }
 0x35b   :  { %v1131_v41 = vmax.f32 %v1044_v52, 1e-12  ;;  %1694 = vrcp.f32 %v1130_v57 }
 0x35d   :  { %1696 = vrcp.f32 %v1131_v41 }
 0x365   :  { %v1695_v61 = vpop.eup %1694 }
 0x367   :  { %v1697_v63 = vpop.eup %1696 }
 0x376   :  { %v1109_v34 = vpop.f32.mrb[20].mxu1 }
 0x377   :  { %v1116_v56 = vadd.f32 %v1109_v34, %v992_v17  ;;  %v1562_v60 = vpop.f32.mrb[21].mxu1 }
 0x378   :  { %v1112_v1 = vpop.f32.mrb[22].mxu1 }
 0x379   :  { %v1117_v28 = vadd.f32 %v1112_v1, %v992_v17  ;;  %v1133_v3 = vmul.f32 %v1695_v61, %v1116_v56  ;;  %v1563_v9 = vpop.f32.mrb[23].mxu1 }
 0x37b   :  { %v1244_v37 = vadd.f32 %v1237_v53, %v1133_v3  ;;  %v1135_v15 = vmul.f32 %v1697_v63, %v1117_v28 }
 0x37d   :  { %1246 = vst [vmem:[%s2368_s17] sm:$0xff] %v1244_v37  ;;  %v1245_v11 = vadd.f32 %v1240_v58, %v1135_v15 }
 0x37f   :  { %1247 = vst [vmem:[%s2368_s17 + $0x8] sm:$0xff] %v1245_v11 }

// kernel: deeper_gcn_forward.13
= control target key start
LH: loop header
LB: loop body
LE: loop exit
PB: predicated region body
PF: predicated region fallthrough
CT: control target
= control target key end

     0   :  { %vm2731_vm0 = vmmov 0   ;;  %s4055_s4 = inlined_call_operand.vmem [shape: f32[128,128], index: 4, kind: input, shape index: {}]   ;;  %s4056_s7 = inlined_call_operand.vmem [shape: bf16[128,128], index: 7, kind: input, shape index: {}]   ;;  %s4057_s3 = inlined_call_operand.vmem [shape: f32[128,128], index: 3, kind: input, shape index: {}]   ;;  %s4058_s6 = inlined_call_operand.vmem [shape: bf16[128,128], index: 6, kind: input, shape index: {}]   ;;  %s4059_s5 = inlined_call_operand.vmem [shape: f32[128,128], index: 5, kind: input, shape index: {}]   ;;  %s4060_s8 = inlined_call_operand.vmem [shape: bf16[128,128], index: 8, kind: input, shape index: {}]   ;;  %s4061_s13 = inlined_call_operand.vmem [shape: f32[1,128], index: 13, kind: input, shape index: {}]   ;;  %s4062_s14 = inlined_call_operand.vmem [shape: f32[1,128], index: 14, kind: input, shape index: {}]   ;;  %s4063_s10 = inlined_call_operand.vmem [shape: bf16[128,128], index: 10, kind: input, shape index: {}]   ;;  %s4064_s15 = inlined_call_operand.vmem [shape: f32[1,128], index: 15, kind: input, shape index: {}]   ;;  %s4065_s16 = inlined_call_operand.vmem [shape: f32[1,128], index: 16, kind: input, shape index: {}]   ;;  %s4066_s2 = inlined_call_operand.vmem [shape: f32[16,128], index: 2, kind: input, shape index: {}]   ;;  %s4067_s9 = inlined_call_operand.vmem [shape: f32[1,128], index: 9, kind: input, shape index: {}]   ;;  %s4068_s12 = inlined_call_operand.vmem [shape: bf16[128,128], index: 12, kind: input, shape index: {}]   ;;  %s4069_s11 = inlined_call_operand.vmem [shape: f32[1,128], index: 11, kind: input, shape index: {}]   ;;  %s4070_s18 = inlined_call_operand.vmem [shape: f32[128,128], index: 18, kind: output, shape index: {1}]   ;;  %s4071_s1 = inlined_call_operand.<no memory space> [shape: f32[1], index: 1, kind: input, shape index: {}]   ;;  %s4072_s0 = inlined_call_operand.vmem [shape: s32[1,128], index: 0, kind: input, shape index: {}]   ;;  %s4073_s17 = inlined_call_operand.vmem [shape: f32[16,128], index: 17, kind: output, shape index: {0}]  }
   0x1   :  { %4077 = sst [smem:[#allocation6_spill]] %s4055_s4  ;;  %v3017_v56 = vld [vmem:[%s4058_s6] sm:$0xff]  }
   0x2   :  { %4078 = sst [smem:[#allocation7_spill]] %s4056_s7  ;;  %s4080_s29 = sld [smem:[#allocation6_spill]] }
   0x3   :  { %4079 = sst [smem:[#allocation8_spill]] %s4057_s3  ;;  %s4081_s19 = sld [smem:[#allocation7_spill]] }
   0x4   :  { %s4082_s3 = sld [smem:[#allocation8_spill]] }
   0x8   :  { %v2831_v0 = vld [vmem:[%s4080_s29 + $0x10] sm:$0xff]  ;;  %v2836_v1 = vld [vmem:[%s4080_s29] sm:$0xff]  ;;  %v2843_v2 = vld [vmem:[%s4080_s29 + $0x18] sm:$0xff] }
   0x9   :  { %408 = vadd.xlane.f32.xlu1 %v2831_v0  ;;  %404 = vadd.xlane.f32.xlu0 %v2836_v1  ;;  %v2848_v3 = vld [vmem:[%s4080_s29 + $0x8] sm:$0xff]  ;;  %v452_v5 = vmul.f32 %v2836_v1, %v2836_v1  ;;  %v455_v6 = vmul.f32 %v2843_v2, %v2843_v2  ;;  %v454_v7 = vmul.f32 %v2831_v0, %v2831_v0  ;;  %v2868_v9 = vld [vmem:[%s4080_s29 + $0x20] sm:$0xff]  ;;  %v2875_v10 = vld [vmem:[%s4080_s29 + $0x38] sm:$0xff] }
   0xa   :  { %v453_v4 = vmul.f32 %v2848_v3, %v2848_v3  ;;  %v2863_v8 = vld [vmem:[%s4080_s29 + $0x28] sm:$0xff]  ;;  %v2880_v11 = vld [vmem:[%s4080_s29 + $0x30] sm:$0xff]  ;;  %v456_v13 = vmul.f32 %v2868_v9, %v2868_v9  ;;  %v2519_v14 = vld [vmem:[%s4081_s19] sm:$0xff]   ;;  %v459_v15 = vmul.f32 %v2875_v10, %v2875_v10 }
   0xb   :  { %v457_v12 = vmul.f32 %v2863_v8, %v2863_v8  ;;  %v458_v16 = vmul.f32 %v2880_v11, %v2880_v11  ;;  %2295 = vmatprep.subr.bf16.mxu0 %v2519_v14  ;;  %v2520_v17 = vld [vmem:[%s4081_s19 + $0x8] sm:$0xff]   ;;  %v2906_v19 = vld [vmem:[%s4080_s29 + $0x40] sm:$0xff]  ;;  %v2521_v20 = vld [vmem:[%s4081_s19 + $0x10] sm:$0xff]  }
   0xc   :  { %2296 = vmatpush3.bf16.msra.mxu0 %v2519_v14  ;;  %v2901_v18 = vld [vmem:[%s4080_s29 + $0x48] sm:$0xff]  ;;  %v2916_v21 = vld [vmem:[%s4080_s29 + $0x58] sm:$0xff]  ;;  %v2921_v22 = vld [vmem:[%s4080_s29 + $0x50] sm:$0xff]  ;;  %v460_v25 = vmul.f32 %v2906_v19, %v2906_v19 }
   0xd   :  { %410 = vadd.xlane.f32.xlu1 %v2843_v2  ;;  %406 = vadd.xlane.f32.xlu0 %v2848_v3  ;;  %v2522_v23 = vld [vmem:[%s4081_s19 + $0x18] sm:$0xff]   ;;  %v461_v24 = vmul.f32 %v2901_v18, %v2901_v18  ;;  %v2523_v26 = vld [vmem:[%s4081_s19 + $0x20] sm:$0xff]   ;;  %v463_v27 = vmul.f32 %v2916_v21, %v2916_v21  ;;  %v462_v28 = vmul.f32 %v2921_v22, %v2921_v22  ;;  %v2524_v29 = vld [vmem:[%s4081_s19 + $0x28] sm:$0xff]  }
   0xe   :  { %2297 = vmatprep.subr.bf16.mxu0 %v2520_v17  ;;  %v2945_v30 = vld [vmem:[%s4080_s29 + $0x68] sm:$0xff]  ;;  %v2950_v31 = vld [vmem:[%s4080_s29 + $0x60] sm:$0xff]  ;;  %v2525_v32 = vld [vmem:[%s4081_s19 + $0x30] sm:$0xff]  }
   0xf   :  { %v2960_v33 = vld [vmem:[%s4080_s29 + $0x78] sm:$0xff]  ;;  %v2965_v34 = vld [vmem:[%s4080_s29 + $0x70] sm:$0xff]  ;;  %v465_v36 = vmul.f32 %v2945_v30, %v2945_v30  ;;  %v464_v37 = vmul.f32 %v2950_v31, %v2950_v31  ;;  %v2983_v40 = vld [vmem:[%s4082_s3 + $0x8] sm:$0xff] }
  0x10   :  { %2298 = vmatpush3.bf16.msra.mxu0 %v2520_v17  ;;  %v2526_v35 = vld [vmem:[%s4081_s19 + $0x38] sm:$0xff]   ;;  %v467_v38 = vmul.f32 %v2960_v33, %v2960_v33  ;;  %v466_v39 = vmul.f32 %v2965_v34, %v2965_v34  ;;  %v2988_v41 = vld [vmem:[%s4082_s3] sm:$0xff]  ;;  %v71_v43 = vld [vmem:[%s4082_s3 + $0x10] sm:$0xff]  ;;  %v169_v44 = vmul.f32 %v2983_v40, %v2983_v40 }
  0x11   :  { %470 = vadd.xlane.f32.xlu1 %v453_v4  ;;  %468 = vadd.xlane.f32.xlu0 %v452_v5  ;;  %v72_v42 = vld [vmem:[%s4082_s3 + $0x18] sm:$0xff]  ;;  %v168_v45 = vmul.f32 %v2988_v41, %v2988_v41  ;;  %v170_v47 = vmul.f32 %v71_v43, %v71_v43  ;;  %v74_v48 = vld [vmem:[%s4082_s3 + $0x28] sm:$0xff]  ;;  %v73_v49 = vld [vmem:[%s4082_s3 + $0x20] sm:$0xff] }
  0x12   :  { %2299 = vmatprep.subr.bf16.mxu0 %v2521_v20  ;;  %v171_v46 = vmul.f32 %v72_v42, %v72_v42  ;;  %v76_v50 = vld [vmem:[%s4082_s3 + $0x38] sm:$0xff]  ;;  %v75_v51 = vld [vmem:[%s4082_s3 + $0x30] sm:$0xff]  ;;  %v173_v52 = vmul.f32 %v74_v48, %v74_v48  ;;  %v172_v53 = vmul.f32 %v73_v49, %v73_v49  ;;  %v78_v57 = vld [vmem:[%s4082_s3 + $0x48] sm:$0xff] }
  0x13   :  { %v175_v54 = vmul.f32 %v76_v50, %v76_v50  ;;  %v174_v55 = vmul.f32 %v75_v51, %v75_v51  ;;  %v77_v58 = vld [vmem:[%s4082_s3 + $0x40] sm:$0xff]  ;;  %v80_v59 = vld [vmem:[%s4082_s3 + $0x58] sm:$0xff]  ;;  %v79_v60 = vld [vmem:[%s4082_s3 + $0x50] sm:$0xff]  ;;  %v177_v61 = vmul.f32 %v78_v57, %v78_v57 }
  0x14   :  { %2300 = vmatpush3.bf16.msra.mxu0 %v2521_v20  ;;  %v176_v62 = vmul.f32 %v77_v58, %v77_v58  ;;  %v179_v63 = vmul.f32 %v80_v59, %v80_v59  ;;  %v178_v4 = vmul.f32 %v79_v60, %v79_v60  ;;  %v82_v5 = vld [vmem:[%s4082_s3 + $0x68] sm:$0xff]  ;;  %v101_v20 = vld [vmem:[%s4059_s5] sm:$0xff] }
  0x15   :  { %474 = vadd.xlane.f32.xlu1 %v455_v6  ;;  %472 = vadd.xlane.f32.xlu0 %v454_v7  ;;  %v81_v6 = vld [vmem:[%s4082_s3 + $0x60] sm:$0xff]  ;;  %v84_v7 = vld [vmem:[%s4082_s3 + $0x78] sm:$0xff]  ;;  %v102_v17 = vld [vmem:[%s4059_s5 + $0x8] sm:$0xff] }
  0x16   :  { %2301 = vmatprep.subr.bf16.mxu0 %v2522_v23  ;;  %v180_v14 = vmul.f32 %v81_v6, %v81_v6 }
  0x18   :  { %2302 = vmatpush3.bf16.msra.mxu0 %v2522_v23  ;;  %v104_v23 = vld [vmem:[%s4059_s5 + $0x18] sm:$0xff] }
  0x19   :  { %414 = vadd.xlane.f32.xlu1 %v2863_v8  ;;  %412 = vadd.xlane.f32.xlu0 %v2868_v9 }
  0x1a   :  { %2303 = vmatprep.subr.bf16.mxu0 %v2523_v26 }
  0x1c   :  { %2304 = vmatpush3.bf16.msra.mxu0 %v2523_v26  ;;  %v726_v26 = vmul.f32 %v101_v20, %v101_v20 }
  0x1d   :  { %418 = vadd.xlane.f32.xlu1 %v2875_v10  ;;  %416 = vadd.xlane.f32.xlu0 %v2880_v11 }
  0x1e   :  { %2305 = vmatprep.subr.bf16.mxu0 %v2524_v29 }
  0x20   :  { %2306 = vmatpush3.bf16.msra.mxu0 %v2524_v29 }
  0x21   :  { %478 = vadd.xlane.f32.xlu1 %v457_v12  ;;  %476 = vadd.xlane.f32.xlu0 %v456_v13  ;;  %v83_v12 = vld [vmem:[%s4082_s3 + $0x70] sm:$0xff]  ;;  %v181_v13 = vmul.f32 %v82_v5, %v82_v5 }
  0x22   :  { %2307 = vmatprep.subr.bf16.mxu0 %v2525_v32 }
  0x24   :  { %2308 = vmatpush3.bf16.msra.mxu0 %v2525_v32 }
  0x25   :  { %482 = vadd.xlane.f32.xlu1 %v459_v15  ;;  %480 = vadd.xlane.f32.xlu0 %v458_v16  ;;  %v183_v15 = vmul.f32 %v84_v7, %v84_v7  ;;  %v182_v16 = vmul.f32 %v83_v12, %v83_v12 }
  0x26   :  { %2309 = vmatprep.subr.bf16.mxu0 %v2526_v35 }
  0x28   :  { %2310 = vmatpush3.bf16.msra.mxu0 %v2526_v35  ;;  %v106_v35 = vld [vmem:[%s4059_s5 + $0x28] sm:$0xff] }
  0x29   :  { %422 = vadd.xlane.f32.xlu1 %v2901_v18  ;;  %420 = vadd.xlane.f32.xlu0 %v2906_v19 }
  0x2a   :  { %2327 = vmatprep.subr.bf16.mxu0 %v3017_v56 }
  0x2d   :  { %426 = vadd.xlane.f32.xlu1 %v2916_v21  ;;  %424 = vadd.xlane.f32.xlu0 %v2921_v22 }
  0x31   :  { %486 = vadd.xlane.f32.xlu1 %v461_v24  ;;  %484 = vadd.xlane.f32.xlu0 %v460_v25  ;;  %v103_v24 = vld [vmem:[%s4059_s5 + $0x10] sm:$0xff]  ;;  %v727_v25 = vmul.f32 %v102_v17, %v102_v17 }
  0x35   :  { %490 = vadd.xlane.f32.xlu1 %v463_v27  ;;  %488 = vadd.xlane.f32.xlu0 %v462_v28  ;;  %v729_v27 = vmul.f32 %v104_v23, %v104_v23  ;;  %v728_v28 = vmul.f32 %v103_v24, %v103_v24 }
  0x39   :  { %430 = vadd.xlane.f32.xlu1 %v2945_v30  ;;  %428 = vadd.xlane.f32.xlu0 %v2950_v31 }
  0x3d   :  { %434 = vadd.xlane.f32.xlu1 %v2960_v33  ;;  %432 = vadd.xlane.f32.xlu0 %v2965_v34 }
  0x41   :  { %494 = vadd.xlane.f32.xlu1 %v465_v36  ;;  %492 = vadd.xlane.f32.xlu0 %v464_v37  ;;  %v105_v36 = vld [vmem:[%s4059_s5 + $0x20] sm:$0xff] }
  0x45   :  { %498 = vadd.xlane.f32.xlu1 %v467_v38  ;;  %496 = vadd.xlane.f32.xlu0 %v466_v39  ;;  %v108_v39 = vld [vmem:[%s4059_s5 + $0x38] sm:$0xff] }
  0x49   :  { %121 = vadd.xlane.f32.xlu1 %v2983_v40  ;;  %119 = vadd.xlane.f32.xlu0 %v2988_v41 }
  0x4d   :  { %125 = vadd.xlane.f32.xlu1 %v72_v42  ;;  %123 = vadd.xlane.f32.xlu0 %v71_v43 }
  0x51   :  { %186 = vadd.xlane.f32.xlu1 %v169_v44  ;;  %184 = vadd.xlane.f32.xlu0 %v168_v45  ;;  %v107_v44 = vld [vmem:[%s4059_s5 + $0x30] sm:$0xff]  ;;  %v731_v45 = vmul.f32 %v106_v35, %v106_v35 }
  0x55   :  { %190 = vadd.xlane.f32.xlu1 %v171_v46  ;;  %188 = vadd.xlane.f32.xlu0 %v170_v47 }
  0x59   :  { %129 = vadd.xlane.f32.xlu1 %v74_v48  ;;  %127 = vadd.xlane.f32.xlu0 %v73_v49 }
  0x5d   :  { %133 = vadd.xlane.f32.xlu1 %v76_v50  ;;  %131 = vadd.xlane.f32.xlu0 %v75_v51  ;;  %v730_v50 = vmul.f32 %v105_v36, %v105_v36 }
  0x61   :  { %194 = vadd.xlane.f32.xlu1 %v173_v52  ;;  %192 = vadd.xlane.f32.xlu0 %v172_v53 }
  0x65   :  { %198 = vadd.xlane.f32.xlu1 %v175_v54  ;;  %196 = vadd.xlane.f32.xlu0 %v174_v55 }
  0x69   :  { %137 = vadd.xlane.f32.xlu1 %v78_v57  ;;  %135 = vadd.xlane.f32.xlu0 %v77_v58  ;;  %v733_v58 = vmul.f32 %v108_v39, %v108_v39 }
  0x6d   :  { %141 = vadd.xlane.f32.xlu1 %v80_v59  ;;  %139 = vadd.xlane.f32.xlu0 %v79_v60 }
  0x71   :  { %202 = vadd.xlane.f32.xlu1 %v177_v61  ;;  %200 = vadd.xlane.f32.xlu0 %v176_v62 }
  0x75   :  { %206 = vadd.xlane.f32.xlu1 %v179_v63  ;;  %204 = vadd.xlane.f32.xlu0 %v178_v4  ;;  %v732_v63 = vmul.f32 %v107_v44, %v107_v44 }
  0x79   :  { %145 = vadd.xlane.f32.xlu1 %v82_v5  ;;  %143 = vadd.xlane.f32.xlu0 %v81_v6 }
  0x7d   :  { %149 = vadd.xlane.f32.xlu1 %v84_v7  ;;  %147 = vadd.xlane.f32.xlu0 %v83_v12 }
  0x81   :  { %210 = vadd.xlane.f32.xlu1 %v181_v13  ;;  %208 = vadd.xlane.f32.xlu0 %v180_v14 }
  0x85   :  { %214 = vadd.xlane.f32.xlu1 %v183_v15  ;;  %212 = vadd.xlane.f32.xlu0 %v182_v16 }
  0x89   :  { %680 = vadd.xlane.f32.xlu1 %v102_v17  ;;  %678 = vadd.xlane.f32.xlu0 %v101_v20  ;;  %v110_v20 = vld [vmem:[%s4059_s5 + $0x48] sm:$0xff] }
  0x8d   :  { %684 = vadd.xlane.f32.xlu1 %v104_v23  ;;  %682 = vadd.xlane.f32.xlu0 %v103_v24 }
  0x91   :  { %744 = vadd.xlane.f32.xlu1 %v727_v25  ;;  %742 = vadd.xlane.f32.xlu0 %v726_v26  ;;  %v109_v25 = vld [vmem:[%s4059_s5 + $0x40] sm:$0xff] }
  0x95   :  { %748 = vadd.xlane.f32.xlu1 %v729_v27  ;;  %746 = vadd.xlane.f32.xlu0 %v728_v28 }
  0x96   :  { %v409_v29 = vpop.xlane.xlu1 %408  ;;  %v405_v32 = vpop.xlane.xlu0 %404 }
  0x97   :  { %v3065_v42 = vmul.f32 0.03125, %v405_v32  ;;  %v3072_v46 = vmul.f32 0.03125, %v409_v29  ;;  %v112_v32 = vld [vmem:[%s4059_s5 + $0x58] sm:$0xff] }
  0x99   :  { %688 = vadd.xlane.f32.xlu1 %v106_v35  ;;  %686 = vadd.xlane.f32.xlu0 %v105_v36  ;;  %v516_v51 = vmul.f32 %v3065_v42, %v3065_v42  ;;  %v518_v59 = vmul.f32 %v3072_v46, %v3072_v46 }
  0x9a   :  { %v411_v37 = vpop.xlane.xlu1 %410  ;;  %v407_v38 = vpop.xlane.xlu0 %406 }
  0x9b   :  { %v3067_v43 = vmul.f32 0.03125, %v407_v38  ;;  %v3074_v47 = vmul.f32 0.03125, %v411_v37  ;;  %v111_v37 = vld [vmem:[%s4059_s5 + $0x50] sm:$0xff]  ;;  %v735_v38 = vmul.f32 %v110_v20, %v110_v20 }
  0x9d   :  { %692 = vadd.xlane.f32.xlu1 %v108_v39  ;;  %690 = vadd.xlane.f32.xlu0 %v107_v44  ;;  %v517_v52 = vmul.f32 %v3067_v43, %v3067_v43  ;;  %v519_v60 = vmul.f32 %v3074_v47, %v3074_v47 }
  0x9e   :  { %v471_v48 = vpop.xlane.xlu1 %470  ;;  %v469_v49 = vpop.xlane.xlu0 %468 }
  0x9f   :  { %v501_v53 = vmul.f32 0.03125, %v471_v48  ;;  %v500_v54 = vmul.f32 0.03125, %v469_v49  ;;  %v734_v49 = vmul.f32 %v109_v25, %v109_v25 }
  0xa1   :  { %v533_v55 = vsub.f32 %v501_v53, %v517_v52  ;;  %v532_v57 = vsub.f32 %v500_v54, %v516_v51  ;;  %752 = vadd.xlane.f32.xlu1 %v731_v45  ;;  %750 = vadd.xlane.f32.xlu0 %v730_v50  ;;  %v565_v54 = vsub.f32 %v2848_v3, %v3067_v43 }
  0xa2   :  { %v475_v61 = vpop.xlane.xlu1 %474  ;;  %v473_v62 = vpop.xlane.xlu0 %472 }
  0xa3   :  { %v549_v4 = vmax.f32 %v533_v55, 0.0  ;;  %v548_v5 = vmax.f32 %v532_v57, 0.0  ;;  %v503_v6 = vmul.f32 0.03125, %v475_v61  ;;  %v502_v7 = vmul.f32 0.03125, %v473_v62  ;;  %v3113_v61 = vld [vmem:[%s4061_s13] ss:$0 sm:$0xff] }
  0xa5   :  { %v581_v12 = vadd.f32 1e-05, %v549_v4  ;;  %v580_v13 = vadd.f32 1e-05, %v548_v5  ;;  %v535_v14 = vsub.f32 %v503_v6, %v519_v60  ;;  %v534_v15 = vsub.f32 %v502_v7, %v518_v59  ;;  %756 = vadd.xlane.f32.xlu1 %v733_v58  ;;  %754 = vadd.xlane.f32.xlu0 %v732_v63 }
  0xa6   :  { %v415_v16 = vpop.xlane.xlu1 %414  ;;  %v413_v17 = vpop.xlane.xlu0 %412  ;;  %v737_v59 = vmul.f32 %v112_v32, %v112_v32  ;;  %v736_v60 = vmul.f32 %v111_v37, %v111_v37  ;;  %v564_v63 = vsub.f32 %v2836_v1, %v3065_v42  ;;  %v567_v1 = vsub.f32 %v2843_v2, %v3074_v47 }
  0xa7   :  { %2559 = vrsqrt.f32 %v581_v12  ;;  %v551_v23 = vmax.f32 %v535_v14, 0.0  ;;  %v550_v24 = vmax.f32 %v534_v15, 0.0  ;;  %v3093_v35 = vmul.f32 0.03125, %v415_v16  ;;  %v3124_v15 = vld [vmem:[%s4062_s14] ss:$0 sm:$0xff] }
  0xa8   :  { %2561 = vrsqrt.f32 %v580_v13  ;;  %v3095_v36 = vmul.f32 0.03125, %v413_v17 }
  0xa9   :  { %v583_v26 = vadd.f32 1e-05, %v551_v23  ;;  %v582_v27 = vadd.f32 1e-05, %v550_v24  ;;  %696 = vadd.xlane.f32.xlu1 %v110_v20  ;;  %694 = vadd.xlane.f32.xlu0 %v109_v25  ;;  %v521_v50 = vmul.f32 %v3093_v35, %v3093_v35 }
  0xaa   :  { %v419_v28 = vpop.xlane.xlu1 %418  ;;  %v417_v29 = vpop.xlane.xlu0 %416  ;;  %v520_v51 = vmul.f32 %v3095_v36, %v3095_v36 }
  0xab   :  { %2563 = vrsqrt.f32 %v583_v26  ;;  %v3100_v39 = vmul.f32 0.03125, %v419_v28  ;;  %v3102_v44 = vmul.f32 0.03125, %v417_v29  ;;  %v114_v28 = vld [vmem:[%s4059_s5 + $0x68] sm:$0xff] }
  0xac   :  { %2565 = vrsqrt.f32 %v582_v27 }
  0xad   :  { %700 = vadd.xlane.f32.xlu1 %v112_v32  ;;  %698 = vadd.xlane.f32.xlu0 %v111_v37  ;;  %v523_v4 = vmul.f32 %v3100_v39, %v3100_v39  ;;  %v522_v3 = vmul.f32 %v3102_v44, %v3102_v44 }
  0xae   :  { %v479_v45 = vpop.xlane.xlu1 %478  ;;  %v477_v48 = vpop.xlane.xlu0 %476 }
  0xaf   :  { %v505_v52 = vmul.f32 0.03125, %v479_v45  ;;  %v504_v53 = vmul.f32 0.03125, %v477_v48  ;;  %v566_v48 = vsub.f32 %v2831_v0, %v3072_v46  ;;  %v115_v46 = vld [vmem:[%s4059_s5 + $0x70] sm:$0xff] }
  0xb1   :  { %v2560_v55 = vpop.eup %2559  ;;  %v537_v57 = vsub.f32 %v505_v52, %v521_v50  ;;  %v536_v58 = vsub.f32 %v504_v53, %v520_v51  ;;  %760 = vadd.xlane.f32.xlu1 %v735_v38  ;;  %758 = vadd.xlane.f32.xlu0 %v734_v49  ;;  %v113_v38 = vld [vmem:[%s4059_s5 + $0x60] sm:$0xff] }
  0xb2   :  { %v2562_v62 = vpop.eup %2561  ;;  %v483_v43 = vpop.xlane.xlu1 %482  ;;  %v613_v6 = vmul.f32 %v2560_v55, %v565_v54 }
  0xb3   :  { %v481_v5 = vpop.xlane.xlu0 %480  ;;  %v553_v7 = vmax.f32 %v537_v57, 0.0  ;;  %v552_v12 = vmax.f32 %v536_v58, 0.0  ;;  %v507_v13 = vmul.f32 0.03125, %v483_v43  ;;  %v612_v42 = vmul.f32 %v2562_v62, %v564_v63  ;;  %v116_v57 = vld [vmem:[%s4059_s5 + $0x78] sm:$0xff] }
  0xb4   :  { %v506_v14 = vmul.f32 0.03125, %v481_v5  ;;  %v629_v16 = vmul.f32 %v3113_v61, %v613_v6 }
  0xb5   :  { %v2564_v17 = vpop.eup %2563  ;;  %v585_v20 = vadd.f32 1e-05, %v553_v7  ;;  %v584_v23 = vadd.f32 1e-05, %v552_v12  ;;  %v539_v24 = vsub.f32 %v507_v13, %v523_v4  ;;  %764 = vadd.xlane.f32.xlu1 %v737_v59  ;;  %762 = vadd.xlane.f32.xlu0 %v736_v60  ;;  %v628_v29 = vmul.f32 %v3113_v61, %v612_v42 }
  0xb6   :  { %v538_v25 = vsub.f32 %v506_v14, %v522_v3  ;;  %v423_v26 = vpop.xlane.xlu1 %422  ;;  %v645_v2 = vadd.f32 %v3124_v15, %v629_v16  ;;  %v2566_v47 = vpop.eup %2565  ;;  %v615_v45 = vmul.f32 %v2564_v17, %v567_v1  ;;  %v739_v4 = vmul.f32 %v114_v28, %v114_v28 }
  0xb7   :  { %v421_v27 = vpop.xlane.xlu0 %420  ;;  %2567 = vrsqrt.f32 %v585_v20  ;;  %v555_v32 = vmax.f32 %v539_v24, 0.0  ;;  %v644_v49 = vadd.f32 %v3124_v15, %v628_v29  ;;  %v614_v58 = vmul.f32 %v2566_v47, %v566_v48 }
  0xb8   :  { %v554_v37 = vmax.f32 %v538_v25, 0.0  ;;  %2569 = vrsqrt.f32 %v584_v23  ;;  %v661_v50 = vmax.f32 %v645_v2, 0.0  ;;  %v3143_v59 = vmul.f32 0.03125, %v423_v26 }
  0xb9   :  { %v587_v51 = vadd.f32 1e-05, %v555_v32  ;;  %704 = vadd.xlane.f32.xlu1 %v114_v28  ;;  %702 = vadd.xlane.f32.xlu0 %v113_v38  ;;  %v660_v55 = vmax.f32 %v644_v49, 0.0  ;;  %v3145_v0 = vmul.f32 0.03125, %v421_v27  ;;  %v631_v60 = vmul.f32 %v3113_v61, %v615_v45 }
  0xba   :  { %v586_v52 = vadd.f32 1e-05, %v554_v37  ;;  %v427_v53 = vpop.xlane.xlu1 %426  ;;  %v630_v63 = vmul.f32 %v3113_v61, %v614_v58  ;;  %v738_v3 = vmul.f32 %v113_v38, %v113_v38  ;;  %v525_v14 = vmul.f32 %v3143_v59, %v3143_v59 }
  0xbb   :  { %v425_v54 = vpop.xlane.xlu0 %424  ;;  %2571 = vrsqrt.f32 %v587_v51  ;;  %v970_v62 = vpack.c.bf16 %v661_v50, %v660_v55  ;;  %v3152_v43 = vmul.f32 0.03125, %v427_v53  ;;  %v647_v13 = vadd.f32 %v3124_v15, %v631_v60 }
  0xbc   :  { %2573 = vrsqrt.f32 %v586_v52  ;;  %v3154_v5 = vmul.f32 0.03125, %v425_v54  ;;  %v646_v12 = vadd.f32 %v3124_v15, %v630_v63  ;;  %v524_v1 = vmul.f32 %v3145_v0, %v3145_v0 }
  0xbd   :  { %708 = vadd.xlane.f32.xlu1 %v116_v57  ;;  %2311 = vmatprep.mubr.bf16.mxu0 %v970_v62  ;;  %v569_v17 = vsub.f32 %v2863_v8, %v3093_v35  ;;  %v663_v23 = vmax.f32 %v647_v13, 0.0  ;;  %v741_v24 = vmul.f32 %v116_v57, %v116_v57  ;;  %v568_v26 = vsub.f32 %v2868_v9, %v3095_v36  ;;  %v2528_v9 = vld [vmem:[%s4058_s6 + $0x8] sm:$0xff]  }
  0xbe   :  { %706 = vadd.xlane.f32.xlu0 %v115_v46  ;;  %v487_v6 = vpop.xlane.xlu1 %486  ;;  %v662_v20 = vmax.f32 %v646_v12, 0.0  ;;  %v740_v29 = vmul.f32 %v115_v46, %v115_v46  ;;  %v527_v47 = vmul.f32 %v3152_v43, %v3152_v43  ;;  %v526_v32 = vmul.f32 %v3154_v5, %v3154_v5 }
  0xbf   :  { %v485_v7 = vpop.xlane.xlu0 %484  ;;  %v509_v42 = vmul.f32 0.03125, %v487_v6  ;;  %v571_v50 = vsub.f32 %v2875_v10, %v3100_v39  ;;  %v2529_v10 = vld [vmem:[%s4058_s6 + $0x10] sm:$0xff]  }
  0xc0   :  { %v508_v16 = vmul.f32 0.03125, %v485_v7  ;;  %v971_v37 = vpack.c.bf16 %v663_v23, %v662_v20  ;;  %v2530_v20 = vld [vmem:[%s4058_s6 + $0x18] sm:$0xff]  }
  0xc1   :  { %v2568_v25 = vpop.eup %2567  ;;  %v541_v27 = vsub.f32 %v509_v42, %v525_v14  ;;  %768 = vadd.xlane.f32.xlu1 %v739_v4 }
  0xc2   :  { %v540_v28 = vsub.f32 %v508_v16, %v524_v1  ;;  %v2570_v2 = vpop.eup %2569  ;;  %766 = vadd.xlane.f32.xlu0 %v738_v3  ;;  %v491_v8 = vpop.xlane.xlu1 %490  ;;  %v617_v38 = vmul.f32 %v2568_v25, %v569_v17  ;;  %2312 = vmatmul.mubr.bf16.vlgmr.msra.gmra.mrb[0].mxu0 %v971_v37 }
  0xc3   :  { %v489_v35 = vpop.xlane.xlu0 %488  ;;  %v557_v36 = vmax.f32 %v541_v27, 0.0  ;;  %v511_v48 = vmul.f32 0.03125, %v491_v8  ;;  %v616_v51 = vmul.f32 %v2570_v2, %v568_v26  ;;  %2328 = vmatpush3.bf16.msra.mxu0 %v3017_v56  ;;  %v570_v56 = vsub.f32 %v2880_v11, %v3102_v44 }
  0xc4   :  { %v556_v45 = vmax.f32 %v540_v28, 0.0  ;;  %v510_v49 = vmul.f32 0.03125, %v489_v35  ;;  %v633_v52 = vmul.f32 %v3113_v61, %v617_v38  ;;  %2329 = vmatprep.subr.bf16.mxu0 %v2528_v9 }
  0xc5   :  { %v2572_v53 = vpop.eup %2571  ;;  %v589_v54 = vadd.f32 1e-05, %v557_v36  ;;  %v543_v57 = vsub.f32 %v511_v48, %v527_v47  ;;  %772 = vadd.xlane.f32.xlu1 %v741_v24  ;;  %v632_v62 = vmul.f32 %v3113_v61, %v616_v51 }
  0xc6   :  { %v588_v55 = vadd.f32 1e-05, %v556_v45  ;;  %v542_v58 = vsub.f32 %v510_v49, %v526_v32  ;;  %770 = vadd.xlane.f32.xlu0 %v740_v29  ;;  %v431_v46 = vpop.xlane.xlu1 %430  ;;  %v649_v63 = vadd.f32 %v3124_v15, %v633_v52  ;;  %v2574_v39 = vpop.eup %2573  ;;  %v619_v6 = vmul.f32 %v2572_v53, %v571_v50  ;;  %v2531_v32 = vld [vmem:[%s4058_s6 + $0x20] sm:$0xff]  }
  0xc7   :  { %v429_v60 = vpop.xlane.xlu0 %428  ;;  %2575 = vrsqrt.f32 %v589_v54  ;;  %v559_v4 = vmax.f32 %v543_v57, 0.0  ;;  %v648_v7 = vadd.f32 %v3124_v15, %v632_v62  ;;  %2330 = vmatpush3.bf16.msra.mxu0 %v2528_v9  ;;  %v618_v17 = vmul.f32 %v2574_v39, %v570_v56 }
  0xc8   :  { %v558_v3 = vmax.f32 %v542_v58, 0.0  ;;  %2577 = vrsqrt.f32 %v588_v55  ;;  %v665_v12 = vmax.f32 %v649_v63, 0.0  ;;  %2331 = vmatprep.subr.bf16.mxu0 %v2529_v10  ;;  %v3188_v23 = vmul.f32 0.03125, %v431_v46 }
  0xc9   :  { %v591_v13 = vadd.f32 1e-05, %v559_v4  ;;  %v664_v16 = vmax.f32 %v648_v7, 0.0  ;;  %v3190_v11 = vmul.f32 0.03125, %v429_v60  ;;  %v635_v44 = vmul.f32 %v3113_v61, %v619_v6 }
  0xca   :  { %v590_v14 = vadd.f32 1e-05, %v558_v3  ;;  %v435_v1 = vpop.xlane.xlu1 %434  ;;  %v634_v25 = vmul.f32 %v3113_v61, %v618_v17  ;;  %v529_v37 = vmul.f32 %v3188_v23, %v3188_v23  ;;  %v573_v9 = vsub.f32 %v2901_v18, %v3143_v59  ;;  %v2532_v59 = vld [vmem:[%s4058_s6 + $0x28] sm:$0xff]  }
  0xcb   :  { %v433_v42 = vpop.xlane.xlu0 %432  ;;  %2579 = vrsqrt.f32 %v591_v13  ;;  %v972_v24 = vpack.c.bf16 %v665_v12, %v664_v16  ;;  %2332 = vmatpush3.bf16.msra.mxu0 %v2529_v10  ;;  %v3194_v26 = vmul.f32 0.03125, %v435_v1  ;;  %v651_v47 = vadd.f32 %v3124_v15, %v635_v44 }
  0xcc   :  { %2581 = vrsqrt.f32 %v590_v14  ;;  %v3196_v27 = vmul.f32 0.03125, %v433_v42  ;;  %v650_v2 = vadd.f32 %v3124_v15, %v634_v25  ;;  %2333 = vmatprep.subr.bf16.mxu0 %v2530_v20  ;;  %v528_v8 = vmul.f32 %v3190_v11, %v3190_v11 }
  0xcd   :  { %2315 = vmatprep.mubr.bf16.mxu0 %v972_v24  ;;  %v667_v45 = vmax.f32 %v651_v47, 0.0  ;;  %v572_v49 = vsub.f32 %v2906_v19, %v3145_v0  ;;  %v531_v53 = vmul.f32 %v3194_v26, %v3194_v26  ;;  %v575_v62 = vsub.f32 %v2916_v21, %v3152_v43  ;;  %v2533_v21 = vld [vmem:[%s4058_s6 + $0x30] sm:$0xff]  }
  0xce   :  { %v495_v28 = vpop.xlane.xlu1 %494  ;;  %v666_v36 = vmax.f32 %v650_v2, 0.0  ;;  %v530_v54 = vmul.f32 %v3196_v27, %v3196_v27  ;;  %v574_v17 = vsub.f32 %v2921_v22, %v3154_v5 }
  0xcf   :  { %v493_v29 = vpop.xlane.xlu0 %492  ;;  %v513_v35 = vmul.f32 0.03125, %v495_v28  ;;  %2334 = vmatpush3.bf16.msra.mxu0 %v2530_v20 }
  0xd0   :  { %v512_v38 = vmul.f32 0.03125, %v493_v29  ;;  %v973_v55 = vpack.c.bf16 %v667_v45, %v666_v36  ;;  %2335 = vmatprep.subr.bf16.mxu0 %v2531_v32 }
  0xd1   :  { %v2576_v48 = vpop.eup %2575  ;;  %v545_v50 = vsub.f32 %v513_v35, %v529_v37 }
  0xd2   :  { %v544_v51 = vsub.f32 %v512_v38, %v528_v8  ;;  %v2578_v52 = vpop.eup %2577  ;;  %v499_v57 = vpop.xlane.xlu1 %498  ;;  %v621_v18 = vmul.f32 %v2576_v48, %v573_v9  ;;  %2316 = vmatmul.mubr.bf16.gmra.mrb[4].mxu0 %v973_v55  ;;  %v577_v55 = vsub.f32 %v2945_v30, %v3188_v23 }
  0xd3   :  { %v497_v58 = vpop.xlane.xlu0 %496  ;;  %v561_v19 = vmax.f32 %v545_v50, 0.0  ;;  %v515_v46 = vmul.f32 0.03125, %v499_v57  ;;  %v620_v63 = vmul.f32 %v2578_v52, %v572_v49  ;;  %2336 = vmatpush3.bf16.msra.mxu0 %v2531_v32  ;;  %v2534_v32 = vld [vmem:[%s4058_s6 + $0x38] sm:$0xff]   ;;  %v3247_v50 = vld [vmem:[%s4060_s8] sm:$0xff]  }
  0xd4   :  { %v560_v0 = vmax.f32 %v544_v51, 0.0  ;;  %v514_v60 = vmul.f32 0.03125, %v497_v58  ;;  %v637_v10 = vmul.f32 %v3113_v61, %v621_v18  ;;  %2337 = vmatprep.subr.bf16.mxu0 %v2532_v59 }
  0xd5   :  { %v2580_v39 = vpop.eup %2579  ;;  %v593_v4 = vadd.f32 1e-05, %v561_v19  ;;  %v547_v6 = vsub.f32 %v515_v46, %v531_v53  ;;  %v636_v13 = vmul.f32 %v3113_v61, %v620_v63 }
  0xd6   :  { %v592_v3 = vadd.f32 1e-05, %v560_v0  ;;  %v546_v56 = vsub.f32 %v514_v60, %v530_v54  ;;  %v122_v7 = vpop.xlane.xlu1 %121  ;;  %v653_v14 = vadd.f32 %v3124_v15, %v637_v10  ;;  %v2582_v43 = vpop.eup %2581  ;;  %v623_v16 = vmul.f32 %v2580_v39, %v575_v62 }
  0xd7   :  { %v120_v12 = vpop.xlane.xlu0 %119  ;;  %2583 = vrsqrt.f32 %v593_v4  ;;  %v563_v1 = vmax.f32 %v547_v6, 0.0  ;;  %v652_v20 = vadd.f32 %v3124_v15, %v636_v13  ;;  %2338 = vmatpush3.bf16.msra.mxu0 %v2532_v59  ;;  %v622_v47 = vmul.f32 %v2582_v43, %v574_v17 }
  0xd8   :  { %v562_v42 = vmax.f32 %v546_v56, 0.0  ;;  %2585 = vrsqrt.f32 %v592_v3  ;;  %v669_v44 = vmax.f32 %v653_v14, 0.0  ;;  %2339 = vmatprep.subr.bf16.mxu0 %v2533_v21  ;;  %v3232_v37 = vmul.f32 0.03125, %v122_v7 }
  0xd9   :  { %v595_v24 = vadd.f32 1e-05, %v563_v1  ;;  %v668_v2 = vmax.f32 %v652_v20, 0.0  ;;  %v3234_v22 = vmul.f32 0.03125, %v120_v12  ;;  %v639_v5 = vmul.f32 %v3113_v61, %v623_v16 }
  0xda   :  { %v594_v25 = vadd.f32 1e-05, %v562_v42  ;;  %v126_v28 = vpop.xlane.xlu1 %125  ;;  %v638_v35 = vmul.f32 %v3113_v61, %v622_v47  ;;  %v233_v51 = vmul.f32 %v3232_v37, %v3232_v37  ;;  %v576_v59 = vsub.f32 %v2950_v31, %v3190_v11 }
  0xdb   :  { %v124_v29 = vpop.xlane.xlu0 %123  ;;  %2587 = vrsqrt.f32 %v595_v24  ;;  %v974_v8 = vpack.c.bf16 %v669_v44, %v668_v2  ;;  %2340 = vmatpush3.bf16.msra.mxu0 %v2533_v21  ;;  %v3238_v38 = vmul.f32 0.03125, %v126_v28  ;;  %v655_v49 = vadd.f32 %v3124_v15, %v639_v5 }
  0xdc   :  { %2589 = vrsqrt.f32 %v594_v25  ;;  %v3240_v9 = vmul.f32 0.03125, %v124_v29  ;;  %v654_v48 = vadd.f32 %v3124_v15, %v638_v35  ;;  %2341 = vmatprep.subr.bf16.mxu0 %v2534_v32  ;;  %v232_v52 = vmul.f32 %v3234_v22, %v3234_v22 }
  0xdd   :  { %2319 = vmatprep.mubr.bf16.mxu0 %v974_v8  ;;  %v671_v58 = vmax.f32 %v655_v49, 0.0  ;;  %v235_v60 = vmul.f32 %v3238_v38, %v3238_v38  ;;  %v579_v11 = vsub.f32 %v2960_v33, %v3194_v26  ;;  %v578_v26 = vsub.f32 %v2965_v34, %v3196_v27 }
  0xde   :  { %v187_v36 = vpop.xlane.xlu1 %186  ;;  %v670_v57 = vmax.f32 %v654_v48, 0.0  ;;  %v234_v62 = vmul.f32 %v3240_v9, %v3240_v9 }
  0xdf   :  { %v185_v45 = vpop.xlane.xlu0 %184  ;;  %v217_v53 = vmul.f32 0.03125, %v187_v36  ;;  %2342 = vmatpush3.bf16.msra.mxu0 %v2534_v32 }
  0xe0   :  { %v216_v54 = vmul.f32 0.03125, %v185_v45  ;;  %v975_v63 = vpack.c.bf16 %v671_v58, %v670_v57  ;;  %2359 = vmatprep.subr.bf16.mxu0 %v3247_v50 }
  0xe1   :  { %v2584_v18 = vpop.eup %2583  ;;  %v249_v19 = vsub.f32 %v217_v53, %v233_v51 }
  0xe2   :  { %v248_v0 = vsub.f32 %v216_v54, %v232_v52  ;;  %v2586_v46 = vpop.eup %2585  ;;  %v191_v10 = vpop.xlane.xlu1 %190  ;;  %v625_v30 = vmul.f32 %v2584_v18, %v577_v55  ;;  %2320 = vmatmul.mubr.bf16.gmra.mrb[8].mxu0 %v975_v63  ;;  %v281_v18 = vsub.f32 %v2983_v40, %v3232_v37  ;;  %v2543_v63 = vld [vmem:[%s4063_s10] sm:$0xff]  }
  0xe3   :  { %v189_v39 = vpop.xlane.xlu0 %188  ;;  %v265_v23 = vmax.f32 %v249_v19, 0.0  ;;  %v219_v3 = vmul.f32 0.03125, %v191_v10  ;;  %v624_v6 = vmul.f32 %v2586_v46, %v576_v59  ;;  %v280_v46 = vsub.f32 %v2988_v41, %v3234_v22  ;;  %v2544_v41 = vld [vmem:[%s4063_s10 + $0x8] sm:$0xff]   ;;  %2391 = vmatprep.subr.bf16.mxu1 %v2543_v63 }
  0xe4   :  { %v264_v4 = vmax.f32 %v248_v0, 0.0  ;;  %v218_v31 = vmul.f32 0.03125, %v189_v39  ;;  %v641_v56 = vmul.f32 %v3113_v61, %v625_v30  ;;  %2392 = vmatpush3.bf16.msra.mxu1 %v2543_v63 }
  0xe5   :  { %v2588_v7 = vpop.eup %2587  ;;  %v297_v12 = vadd.f32 1e-05, %v265_v23  ;;  %v251_v14 = vsub.f32 %v219_v3, %v235_v60  ;;  %v640_v42 = vmul.f32 %v3113_v61, %v624_v6  ;;  %v2545_v6 = vld [vmem:[%s4063_s10 + $0x10] sm:$0xff]   ;;  %2393 = vmatprep.subr.bf16.mxu1 %v2544_v41 }
  0xe6   :  { %v296_v13 = vadd.f32 1e-05, %v264_v4  ;;  %v250_v21 = vsub.f32 %v218_v31, %v234_v62  ;;  %v130_v43 = vpop.xlane.xlu1 %129  ;;  %v657_v16 = vadd.f32 %v3124_v15, %v641_v56  ;;  %v2590_v17 = vpop.eup %2589  ;;  %v627_v33 = vmul.f32 %v2588_v7, %v579_v11  ;;  %v2697_v56 = vld [vmem:[%s4082_s3 + $0x10] sm:$0xff] }
  0xe7   :  { %v128_v1 = vpop.xlane.xlu0 %127  ;;  %2591 = vrsqrt.f32 %v297_v12  ;;  %v267_v20 = vmax.f32 %v251_v14, 0.0  ;;  %v656_v24 = vadd.f32 %v3124_v15, %v640_v42  ;;  %v626_v5 = vmul.f32 %v2590_v17, %v578_v26  ;;  %v2698_v17 = vld [vmem:[%s4082_s3 + $0x18] sm:$0xff] }
  0xe8   :  { %v266_v44 = vmax.f32 %v250_v21, 0.0  ;;  %2593 = vrsqrt.f32 %v296_v13  ;;  %v673_v25 = vmax.f32 %v657_v16, 0.0  ;;  %v3270_v8 = vmul.f32 0.03125, %v130_v43  ;;  %2394 = vmatpush3.bf16.msra.mxu1 %v2544_v41 }
  0xe9   :  { %v299_v28 = vadd.f32 1e-05, %v267_v20  ;;  %v672_v32 = vmax.f32 %v656_v24, 0.0  ;;  %v3272_v35 = vmul.f32 0.03125, %v128_v1  ;;  %v643_v36 = vmul.f32 %v3113_v61, %v627_v33  ;;  %2395 = vmatprep.subr.bf16.mxu1 %v2545_v6 }
  0xea   :  { %v298_v29 = vadd.f32 1e-05, %v266_v44  ;;  %v134_v2 = vpop.xlane.xlu1 %133  ;;  %v642_v34 = vmul.f32 %v3113_v61, %v626_v5  ;;  %v237_v54 = vmul.f32 %v3270_v8, %v3270_v8  ;;  %v282_v7 = vsub.f32 %v2697_v56, %v3240_v9 }
  0xeb   :  { %v132_v47 = vpop.xlane.xlu0 %131  ;;  %2595 = vrsqrt.f32 %v299_v28  ;;  %v976_v45 = vpack.c.bf16 %v673_v25, %v672_v32  ;;  %v3276_v27 = vmul.f32 0.03125, %v134_v2  ;;  %v659_v53 = vadd.f32 %v3124_v15, %v643_v36 }
  0xec   :  { %2597 = vrsqrt.f32 %v298_v29  ;;  %v3278_v48 = vmul.f32 0.03125, %v132_v47  ;;  %v658_v52 = vadd.f32 %v3124_v15, %v642_v34  ;;  %v236_v55 = vmul.f32 %v3272_v35, %v3272_v35  ;;  %2396 = vmatpush3.bf16.msra.mxu1 %v2545_v6 }
  0xed   :  { %2323 = vmatprep.mubr.bf16.mxu0 %v976_v45  ;;  %v675_v19 = vmax.f32 %v659_v53, 0.0  ;;  %v239_v39 = vmul.f32 %v3276_v27, %v3276_v27  ;;  %v283_v20 = vsub.f32 %v2698_v17, %v3238_v38  ;;  %v2546_v38 = vld [vmem:[%s4063_s10 + $0x18] sm:$0xff]  }
  0xee   :  { %v195_v49 = vpop.xlane.xlu1 %194  ;;  %v674_v59 = vmax.f32 %v658_v52, 0.0  ;;  %v238_v30 = vmul.f32 %v3278_v48, %v3278_v48  ;;  %2397 = vmatprep.subr.bf16.mxu1 %v2546_v38 }
  0xef   :  { %v193_v51 = vpop.xlane.xlu0 %192  ;;  %v221_v57 = vmul.f32 0.03125, %v195_v49 }
  0xf0   :  { %v220_v58 = vmul.f32 0.03125, %v193_v51  ;;  %v977_v40 = vpack.c.bf16 %v675_v19, %v674_v59  ;;  %2398 = vmatpush3.bf16.msra.mxu1 %v2546_v38 }
  0xf1   :  { %v2592_v0 = vpop.eup %2591  ;;  %v253_v60 = vsub.f32 %v221_v57, %v237_v54  ;;  %v2547_v57 = vld [vmem:[%s4063_s10 + $0x20] sm:$0xff]  }
  0xf2   :  { %v252_v62 = vsub.f32 %v220_v58, %v236_v55  ;;  %v2594_v10 = vpop.eup %2593  ;;  %v199_v37 = vpop.xlane.xlu1 %198  ;;  %v329_v4 = vmul.f32 %v2592_v0, %v281_v18  ;;  %2324 = vmatmul.mubr.bf16.gmra.mrb[12].mxu0 %v977_v40  ;;  %2399 = vmatprep.subr.bf16.mxu1 %v2547_v57 }
  0xf3   :  { %v197_v23 = vpop.xlane.xlu0 %196  ;;  %v269_v22 = vmax.f32 %v253_v60, 0.0  ;;  %v223_v31 = vmul.f32 0.03125, %v199_v37  ;;  %v328_v12 = vmul.f32 %v2594_v10, %v280_v46 }
  0xf4   :  { %v268_v3 = vmax.f32 %v252_v62, 0.0  ;;  %v222_v11 = vmul.f32 0.03125, %v197_v23  ;;  %v351_v13 = vmul.f32 %v3113_v61, %v329_v4  ;;  %v2700_v23 = vld [vmem:[%s4082_s3 + $0x20] sm:$0xff]  ;;  %2400 = vmatpush3.bf16.msra.mxu1 %v2547_v57 }
  0xf5   :  { %v2596_v14 = vpop.eup %2595  ;;  %v301_v21 = vadd.f32 1e-05, %v269_v22  ;;  %v255_v1 = vsub.f32 %v223_v31, %v239_v39  ;;  %v350_v33 = vmul.f32 %v3113_v61, %v328_v12  ;;  %v2699_v39 = vld [vmem:[%s4082_s3 + $0x28] sm:$0xff]  ;;  %v284_v4 = vsub.f32 %v2700_v23, %v3272_v35 }
  0xf6   :  { %v300_v43 = vadd.f32 1e-05, %v268_v3  ;;  %v254_v42 = vsub.f32 %v222_v11, %v238_v30  ;;  %v2598_v16 = vpop.eup %2597  ;;  %v138_v44 = vpop.xlane.xlu1 %137  ;;  %v373_v26 = vadd.f32 %v3124_v15, %v351_v13  ;;  %v331_v29 = vmul.f32 %v2596_v14, %v283_v20  ;;  %v2548_v3 = vld [vmem:[%s4063_s10 + $0x28] sm:$0xff]  }
  0xf7   :  { %v136_v9 = vpop.xlane.xlu0 %135  ;;  %v330_v24 = vmul.f32 %v2598_v16, %v282_v7  ;;  %2599 = vrsqrt.f32 %v301_v21  ;;  %v271_v25 = vmax.f32 %v255_v1, 0.0  ;;  %v372_v2 = vadd.f32 %v3124_v15, %v350_v33  ;;  %v2536_v35 = vld [vmem:[%s4060_s8 + $0x8] sm:$0xff]   ;;  %v2701_v1 = vld [vmem:[%s4082_s3 + $0x38] sm:$0xff]  ;;  %2401 = vmatprep.subr.bf16.mxu1 %v2548_v3 }
  0xf8   :  { %v270_v28 = vmax.f32 %v254_v42, 0.0  ;;  %2601 = vrsqrt.f32 %v300_v43  ;;  %v389_v34 = vmax.f32 %v373_v26, 0.0  ;;  %v3319_v49 = vmul.f32 0.03125, %v138_v44  ;;  %2402 = vmatpush3.bf16.msra.mxu1 %v2548_v3  ;;  %v2703_v3 = vld [vmem:[%s4082_s3 + $0x48] sm:$0xff] }
  0xf9   :  { %v303_v47 = vadd.f32 1e-05, %v271_v25  ;;  %v352_v5 = vmul.f32 %v3113_v61, %v330_v24  ;;  %v3321_v51 = vmul.f32 0.03125, %v136_v9  ;;  %v388_v52 = vmax.f32 %v372_v2, 0.0 }
  0xfa   :  { %v302_v32 = vadd.f32 1e-05, %v270_v28  ;;  %v142_v36 = vpop.xlane.xlu1 %141  ;;  %v353_v53 = vmul.f32 %v3113_v61, %v331_v29  ;;  %v241_v60 = vmul.f32 %v3319_v49, %v3319_v49  ;;  %v285_v30 = vsub.f32 %v2699_v39, %v3270_v8 }
  0xfb   :  { %v140_v45 = vpop.xlane.xlu0 %139  ;;  %2603 = vrsqrt.f32 %v303_v47  ;;  %v374_v54 = vadd.f32 %v3124_v15, %v352_v5  ;;  %v3325_v55 = vmul.f32 0.03125, %v142_v36  ;;  %v946_v18 = vpack.c.bf16 %v389_v34, %v388_v52 }
  0xfc   :  { %2605 = vrsqrt.f32 %v302_v32  ;;  %v3330_v58 = vmul.f32 0.03125, %v140_v45  ;;  %v375_v0 = vadd.f32 %v3124_v15, %v353_v53  ;;  %v240_v62 = vmul.f32 %v3321_v51, %v3321_v51 }
  0xfd   :  { %v390_v46 = vmax.f32 %v374_v54, 0.0  ;;  %2343 = vmatprep.mubr.bf16.mxu0 %v946_v18  ;;  %v243_v8 = vmul.f32 %v3325_v55, %v3325_v55  ;;  %v287_v42 = vsub.f32 %v2701_v1, %v3276_v27  ;;  %v2537_v27 = vld [vmem:[%s4060_s8 + $0x10] sm:$0xff]  }
  0xfe   :  { %v203_v59 = vpop.xlane.xlu1 %202  ;;  %v391_v40 = vmax.f32 %v375_v0, 0.0  ;;  %v242_v11 = vmul.f32 %v3330_v58, %v3330_v58 }
  0xff   :  { %v201_v19 = vpop.xlane.xlu0 %200  ;;  %v225_v63 = vmul.f32 0.03125, %v203_v59  ;;  %v2538_v59 = vld [vmem:[%s4060_s8 + $0x18] sm:$0xff]  }
 0x100   :  { %v224_v10 = vmul.f32 0.03125, %v201_v19  ;;  %v947_v6 = vpack.c.bf16 %v391_v40, %v390_v46 }
 0x101   :  { %v2600_v37 = vpop.eup %2599  ;;  %v257_v41 = vsub.f32 %v225_v63, %v241_v60 }
 0x102   :  { %v256_v22 = vsub.f32 %v224_v10, %v240_v62  ;;  %v2602_v31 = vpop.eup %2601  ;;  %v207_v56 = vpop.xlane.xlu1 %206  ;;  %v333_v12 = vmul.f32 %v2600_v37, %v285_v30  ;;  %2344 = vmatmul.mubr.bf16.vlgmr.msra.gmra.mrb[0].mxu0 %v947_v6  ;;  %v2539_v37 = vld [vmem:[%s4060_s8 + $0x20] sm:$0xff]  }
 0x103   :  { %v205_v7 = vpop.xlane.xlu0 %204  ;;  %v273_v13 = vmax.f32 %v257_v41, 0.0  ;;  %v227_v21 = vmul.f32 0.03125, %v207_v56  ;;  %v332_v16 = vmul.f32 %v2602_v31, %v284_v4  ;;  %2360 = vmatpush3.bf16.msra.mxu0 %v3247_v50  ;;  %v2702_v50 = vld [vmem:[%s4082_s3 + $0x30] sm:$0xff]  ;;  %v289_v31 = vsub.f32 %v2703_v3, %v3319_v49  ;;  %v2704_v56 = vld [vmem:[%s4082_s3 + $0x40] sm:$0xff] }
 0x104   :  { %v272_v14 = vmax.f32 %v256_v22, 0.0  ;;  %v226_v43 = vmul.f32 0.03125, %v205_v7  ;;  %v355_v17 = vmul.f32 %v3113_v61, %v333_v12  ;;  %2361 = vmatprep.subr.bf16.mxu0 %v2536_v35  ;;  %v286_v38 = vsub.f32 %v2702_v50, %v3278_v48  ;;  %v3444_v3 = vld [vmem:[%s4062_s14] ss:$0 sm:$0xff] }
 0x105   :  { %v2604_v20 = vpop.eup %2603  ;;  %v305_v44 = vadd.f32 1e-05, %v273_v13  ;;  %v259_v33 = vsub.f32 %v227_v21, %v243_v8  ;;  %v354_v28 = vmul.f32 %v3113_v61, %v332_v16  ;;  %v288_v7 = vsub.f32 %v2704_v56, %v3321_v51  ;;  %v2540_v16 = vld [vmem:[%s4060_s8 + $0x28] sm:$0xff]  }
 0x106   :  { %v304_v9 = vadd.f32 1e-05, %v272_v14  ;;  %v258_v26 = vsub.f32 %v226_v43, %v242_v11  ;;  %v146_v24 = vpop.xlane.xlu1 %145  ;;  %v377_v29 = vadd.f32 %v3124_v15, %v355_v17  ;;  %v2606_v2 = vpop.eup %2605  ;;  %v335_v5 = vmul.f32 %v2604_v20, %v287_v42 }
 0x107   :  { %v144_v25 = vpop.xlane.xlu0 %143  ;;  %2607 = vrsqrt.f32 %v305_v44  ;;  %v275_v47 = vmax.f32 %v259_v33, 0.0  ;;  %v376_v36 = vadd.f32 %v3124_v15, %v354_v28  ;;  %2362 = vmatpush3.bf16.msra.mxu0 %v2536_v35  ;;  %v334_v18 = vmul.f32 %v2606_v2, %v286_v38 }
 0x108   :  { %v274_v32 = vmax.f32 %v258_v26, 0.0  ;;  %2609 = vrsqrt.f32 %v304_v9  ;;  %v393_v45 = vmax.f32 %v377_v29, 0.0  ;;  %2363 = vmatprep.subr.bf16.mxu0 %v2537_v27  ;;  %v3374_v19 = vmul.f32 0.03125, %v146_v24  ;;  %v2705_v9 = vld [vmem:[%s4082_s3 + $0x58] sm:$0xff] }
 0x109   :  { %v307_v34 = vadd.f32 1e-05, %v275_v47  ;;  %v392_v57 = vmax.f32 %v376_v36, 0.0  ;;  %v3376_v48 = vmul.f32 0.03125, %v144_v25  ;;  %v357_v0 = vmul.f32 %v3113_v61, %v335_v5 }
 0x10a   :  { %v306_v52 = vadd.f32 1e-05, %v274_v32  ;;  %v150_v53 = vpop.xlane.xlu1 %149  ;;  %v356_v60 = vmul.f32 %v3113_v61, %v334_v18  ;;  %v245_v23 = vmul.f32 %v3374_v19, %v3374_v19  ;;  %v291_v33 = vsub.f32 %v2705_v9, %v3325_v55  ;;  %v2541_v55 = vld [vmem:[%s4060_s8 + $0x30] sm:$0xff]  }
 0x10b   :  { %v148_v54 = vpop.xlane.xlu0 %147  ;;  %2611 = vrsqrt.f32 %v307_v34  ;;  %v948_v46 = vpack.c.bf16 %v393_v45, %v392_v57  ;;  %2364 = vmatpush3.bf16.msra.mxu0 %v2537_v27  ;;  %v3380_v62 = vmul.f32 0.03125, %v150_v53  ;;  %v379_v40 = vadd.f32 %v3124_v15, %v357_v0 }
 0x10c   :  { %2613 = vrsqrt.f32 %v306_v52  ;;  %v3382_v63 = vmul.f32 0.03125, %v148_v54  ;;  %v378_v30 = vadd.f32 %v3124_v15, %v356_v60  ;;  %2365 = vmatprep.subr.bf16.mxu0 %v2538_v59  ;;  %v244_v4 = vmul.f32 %v3376_v48, %v3376_v48  ;;  %v2706_v52 = vld [vmem:[%s4082_s3 + $0x50] sm:$0xff] }
 0x10d   :  { %2347 = vmatprep.mubr.bf16.mxu0 %v948_v46  ;;  %v395_v11 = vmax.f32 %v379_v40, 0.0  ;;  %v247_v14 = vmul.f32 %v3380_v62, %v3380_v62  ;;  %v290_v53 = vsub.f32 %v2706_v52, %v3330_v58 }
 0x10e   :  { %v211_v10 = vpop.xlane.xlu1 %210  ;;  %v394_v8 = vmax.f32 %v378_v30, 0.0  ;;  %v246_v21 = vmul.f32 %v3382_v63, %v3382_v63 }
 0x10f   :  { %v209_v39 = vpop.xlane.xlu0 %208  ;;  %v229_v41 = vmul.f32 0.03125, %v211_v10  ;;  %2366 = vmatpush3.bf16.msra.mxu0 %v2538_v59  ;;  %v2542_v10 = vld [vmem:[%s4060_s8 + $0x38] sm:$0xff]  }
 0x110   :  { %v228_v22 = vmul.f32 0.03125, %v209_v39  ;;  %v949_v49 = vpack.c.bf16 %v395_v11, %v394_v8  ;;  %2367 = vmatprep.subr.bf16.mxu0 %v2539_v37 }
 0x111   :  { %v2608_v6 = vpop.eup %2607  ;;  %v261_v12 = vsub.f32 %v229_v41, %v245_v23 }
 0x112   :  { %v260_v35 = vsub.f32 %v228_v22, %v244_v4  ;;  %v2610_v13 = vpop.eup %2609  ;;  %v215_v43 = vpop.xlane.xlu1 %214  ;;  %v337_v42 = vmul.f32 %v2608_v6, %v289_v31  ;;  %2348 = vmatmul.mubr.bf16.gmra.mrb[4].mxu0 %v949_v49  ;;  %v2710_v49 = vld [vmem:[%s4082_s3 + $0x60] sm:$0xff] }
 0x113   :  { %v213_v1 = vpop.xlane.xlu0 %212  ;;  %v277_v51 = vmax.f32 %v261_v12, 0.0  ;;  %v231_v20 = vmul.f32 0.03125, %v215_v43  ;;  %v336_v26 = vmul.f32 %v2610_v13, %v288_v7  ;;  %2368 = vmatpush3.bf16.msra.mxu0 %v2539_v37  ;;  %v2709_v12 = vld [vmem:[%s4082_s3 + $0x68] sm:$0xff]  ;;  %v292_v43 = vsub.f32 %v2710_v49, %v3376_v48  ;;  %v2711_v48 = vld [vmem:[%s4082_s3 + $0x78] sm:$0xff] }
 0x114   :  { %v276_v17 = vmax.f32 %v260_v35, 0.0  ;;  %v230_v44 = vmul.f32 0.03125, %v213_v1  ;;  %v359_v24 = vmul.f32 %v3113_v61, %v337_v42  ;;  %2369 = vmatprep.subr.bf16.mxu0 %v2540_v16  ;;  %v293_v35 = vsub.f32 %v2709_v12, %v3374_v19 }
 0x115   :  { %v2612_v25 = vpop.eup %2611  ;;  %v309_v28 = vadd.f32 1e-05, %v277_v51  ;;  %v263_v27 = vsub.f32 %v231_v20, %v247_v14  ;;  %v358_v5 = vmul.f32 %v3113_v61, %v336_v26 }
 0x116   :  { %v308_v29 = vadd.f32 1e-05, %v276_v17  ;;  %v262_v2 = vsub.f32 %v230_v44, %v246_v21  ;;  %v681_v47 = vpop.xlane.xlu1 %680  ;;  %v381_v50 = vadd.f32 %v3124_v15, %v359_v24  ;;  %v2614_v38 = vpop.eup %2613  ;;  %v339_v34 = vmul.f32 %v2612_v25, %v291_v33 }
 0x117   :  { %v679_v32 = vpop.xlane.xlu0 %678  ;;  %2615 = vrsqrt.f32 %v309_v28  ;;  %v279_v36 = vmax.f32 %v263_v27, 0.0  ;;  %v380_v61 = vadd.f32 %v3124_v15, %v358_v5  ;;  %2370 = vmatpush3.bf16.msra.mxu0 %v2540_v16  ;;  %v338_v60 = vmul.f32 %v2614_v38, %v290_v53  ;;  %v3433_v15 = vld [vmem:[%s4061_s13] ss:$0 sm:$0xff] }
 0x118   :  { %v278_v45 = vmax.f32 %v262_v2, 0.0  ;;  %2617 = vrsqrt.f32 %v308_v29  ;;  %v397_v54 = vmax.f32 %v381_v50, 0.0  ;;  %2371 = vmatprep.subr.bf16.mxu0 %v2541_v55  ;;  %v3426_v39 = vmul.f32 0.03125, %v681_v47 }
 0x119   :  { %v311_v57 = vadd.f32 1e-05, %v279_v36  ;;  %v396_v46 = vmax.f32 %v380_v61, 0.0  ;;  %v3428_v58 = vmul.f32 0.03125, %v679_v32  ;;  %v361_v30 = vmul.f32 %v3433_v15, %v339_v34  ;;  %v2712_v61 = vld [vmem:[%s4082_s3 + $0x70] sm:$0xff] }
 0x11a   :  { %v310_v18 = vadd.f32 1e-05, %v278_v45  ;;  %v685_v59 = vpop.xlane.xlu1 %684  ;;  %v360_v37 = vmul.f32 %v3433_v15, %v338_v60  ;;  %v791_v11 = vmul.f32 %v3426_v39, %v3426_v39  ;;  %v295_v28 = vsub.f32 %v2711_v48, %v3380_v62  ;;  %v3523_v48 = vld [vmem:[%s4065_s16] ss:$0 sm:$0xff] }
 0x11b   :  { %v683_v0 = vpop.xlane.xlu0 %682  ;;  %2619 = vrsqrt.f32 %v311_v57  ;;  %v950_v40 = vpack.c.bf16 %v397_v54, %v396_v46  ;;  %2372 = vmatpush3.bf16.msra.mxu0 %v2541_v55  ;;  %v3437_v23 = vmul.f32 0.03125, %v685_v59  ;;  %v383_v8 = vadd.f32 %v3444_v3, %v361_v30 }
 0x11c   :  { %2621 = vrsqrt.f32 %v310_v18  ;;  %v3439_v4 = vmul.f32 0.03125, %v683_v0  ;;  %v382_v31 = vadd.f32 %v3444_v3, %v360_v37  ;;  %2373 = vmatprep.subr.bf16.mxu0 %v2542_v10  ;;  %v790_v6 = vmul.f32 %v3428_v58, %v3428_v58 }
 0x11d   :  { %2351 = vmatprep.mubr.bf16.mxu0 %v950_v40  ;;  %v399_v14 = vmax.f32 %v383_v8, 0.0  ;;  %v793_v51 = vmul.f32 %v3437_v23, %v3437_v23  ;;  %v294_v54 = vsub.f32 %v2712_v61, %v3382_v63  ;;  %v3486_v8 = vld [vmem:[%s4059_s5 + $0x8] sm:$0xff] }
 0x11e   :  { %v745_v41 = vpop.xlane.xlu1 %744  ;;  %v398_v13 = vmax.f32 %v382_v31, 0.0  ;;  %v792_v17 = vmul.f32 %v3439_v4, %v3439_v4 }
 0x11f   :  { %v743_v22 = vpop.xlane.xlu0 %742  ;;  %v775_v56 = vmul.f32 0.03125, %v745_v41  ;;  %2374 = vmatpush3.bf16.msra.mxu0 %v2542_v10 }
 0x120   :  { %v774_v7 = vmul.f32 0.03125, %v743_v22  ;;  %v951_v19 = vpack.c.bf16 %v399_v14, %v398_v13 }
 0x121   :  { %v2616_v21 = vpop.eup %2615  ;;  %v807_v1 = vsub.f32 %v775_v56, %v791_v11  ;;  %v839_v11 = vsub.f32 %v3486_v8, %v3426_v39 }
 0x122   :  { %v806_v42 = vsub.f32 %v774_v7, %v790_v6  ;;  %v2618_v16 = vpop.eup %2617  ;;  %v749_v20 = vpop.xlane.xlu1 %748  ;;  %v341_v9 = vmul.f32 %v2616_v21, %v293_v35  ;;  %2352 = vmatmul.mubr.bf16.gmra.mrb[8].mxu0 %v951_v19 }
 0x123   :  { %v747_v44 = vpop.xlane.xlu0 %746  ;;  %v823_v33 = vmax.f32 %v807_v1, 0.0  ;;  %v777_v24 = vmul.f32 0.03125, %v749_v20  ;;  %v340_v29 = vmul.f32 %v2618_v16, %v292_v43  ;;  %v3509_v16 = vld [vmem:[%s4064_s15] ss:$0 sm:$0xff] }
 0x124   :  { %v822_v26 = vmax.f32 %v806_v42, 0.0  ;;  %v776_v25 = vmul.f32 0.03125, %v747_v44  ;;  %v363_v27 = vmul.f32 %v3433_v15, %v341_v9 }
 0x125   :  { %v2620_v2 = vpop.eup %2619  ;;  %v855_v47 = vadd.f32 1e-05, %v823_v33  ;;  %v809_v5 = vsub.f32 %v777_v24, %v793_v51  ;;  %v362_v38 = vmul.f32 %v3433_v15, %v340_v29 }
 0x126   :  { %v854_v32 = vadd.f32 1e-05, %v822_v26  ;;  %v808_v50 = vsub.f32 %v776_v25, %v792_v17  ;;  %v689_v55 = vpop.xlane.xlu1 %688  ;;  %v385_v36 = vadd.f32 %v3444_v3, %v363_v27  ;;  %v2622_v45 = vpop.eup %2621  ;;  %v343_v62 = vmul.f32 %v2620_v2, %v295_v28  ;;  %v3514_v17 = vld [vmem:[%s4059_s5 + $0x18] sm:$0xff] }
 0x127   :  { %2623 = vrsqrt.f32 %v855_v47  ;;  %v825_v34 = vmax.f32 %v809_v5, 0.0  ;;  %v687_v53 = vpop.xlane.xlu0 %686  ;;  %v384_v57 = vadd.f32 %v3444_v3, %v362_v38  ;;  %v342_v10 = vmul.f32 %v2622_v45, %v294_v54 }
 0x128   :  { %v824_v52 = vmax.f32 %v808_v50, 0.0  ;;  %2625 = vrsqrt.f32 %v854_v32  ;;  %v401_v18 = vmax.f32 %v385_v36, 0.0  ;;  %v3476_v30 = vmul.f32 0.03125, %v689_v55  ;;  %v3531_v32 = vld [vmem:[%s4059_s5 + $0x10] sm:$0xff] }
 0x129   :  { %v857_v59 = vadd.f32 1e-05, %v825_v34  ;;  %v400_v60 = vmax.f32 %v384_v57, 0.0  ;;  %v365_v37 = vmul.f32 %v3433_v15, %v343_v62  ;;  %v3479_v41 = vmul.f32 0.03125, %v687_v53 }
 0x12a   :  { %v856_v0 = vadd.f32 1e-05, %v824_v52  ;;  %v693_v46 = vpop.xlane.xlu1 %692  ;;  %v364_v63 = vmul.f32 %v3433_v15, %v342_v10  ;;  %v795_v7 = vmul.f32 %v3476_v30, %v3476_v30  ;;  %v841_v19 = vsub.f32 %v3514_v17, %v3437_v23 }
 0x12b   :  { %2627 = vrsqrt.f32 %v857_v59  ;;  %v691_v40 = vpop.xlane.xlu0 %690  ;;  %v952_v22 = vpack.c.bf16 %v401_v18, %v400_v60  ;;  %v387_v31 = vadd.f32 %v3444_v3, %v365_v37  ;;  %v3493_v12 = vmul.f32 0.03125, %v693_v46 }
 0x12c   :  { %2629 = vrsqrt.f32 %v856_v0  ;;  %v386_v56 = vadd.f32 %v3444_v3, %v364_v63  ;;  %v794_v14 = vmul.f32 %v3479_v41, %v3479_v41  ;;  %v3497_v21 = vmul.f32 0.03125, %v691_v40  ;;  %v3502_v3 = vld [vmem:[%s4059_s5] sm:$0xff] }
 0x12d   :  { %2355 = vmatprep.mubr.bf16.mxu0 %v952_v22  ;;  %v403_v13 = vmax.f32 %v387_v31, 0.0  ;;  %v838_v1 = vsub.f32 %v3502_v3, %v3428_v58  ;;  %v797_v58 = vmul.f32 %v3493_v12, %v3493_v12  ;;  %v840_v5 = vsub.f32 %v3531_v32, %v3439_v4 }
 0x12e   :  { %v753_v6 = vpop.xlane.xlu1 %752  ;;  %v402_v43 = vmax.f32 %v386_v56, 0.0  ;;  %v796_v29 = vmul.f32 %v3497_v21, %v3497_v21 }
 0x12f   :  { %v779_v15 = vmul.f32 0.03125, %v753_v6  ;;  %v751_v35 = vpop.xlane.xlu0 %750 }
 0x130   :  { %v778_v49 = vmul.f32 0.03125, %v751_v35  ;;  %v953_v44 = vpack.c.bf16 %v403_v13, %v402_v43 }
 0x131   :  { %v2624_v39 = vpop.eup %2623  ;;  %v811_v42 = vsub.f32 %v779_v15, %v795_v7 }
 0x132   :  { %v2626_v51 = vpop.eup %2625  ;;  %v810_v20 = vsub.f32 %v778_v49, %v794_v14  ;;  %v757_v9 = vpop.xlane.xlu1 %756  ;;  %v887_v33 = vmul.f32 %v2624_v39, %v839_v11  ;;  %2356 = vmatmul.mubr.bf16.gmra.mrb[12].mxu0 %v953_v44  ;;  %v3553_v14 = vld [vmem:[%s4059_s5 + $0x28] sm:$0xff] }
 0x133   :  { %v827_v26 = vmax.f32 %v811_v42, 0.0  ;;  %v781_v24 = vmul.f32 0.03125, %v757_v9  ;;  %v755_v25 = vpop.xlane.xlu0 %754  ;;  %v886_v28 = vmul.f32 %v2626_v51, %v838_v1  ;;  %v843_v49 = vsub.f32 %v3553_v14, %v3476_v30  ;;  %v3564_v51 = vld [vmem:[%s4059_s5 + $0x20] sm:$0xff] }
 0x134   :  { %v826_v23 = vmax.f32 %v810_v20, 0.0  ;;  %v780_v27 = vmul.f32 0.03125, %v755_v25  ;;  %v909_v2 = vmul.f32 %v3509_v16, %v887_v33 }
 0x135   :  { %v2628_v47 = vpop.eup %2627  ;;  %v859_v50 = vadd.f32 1e-05, %v827_v26  ;;  %v813_v55 = vsub.f32 %v781_v24, %v797_v58  ;;  %v908_v38 = vmul.f32 %v3509_v16, %v886_v28 }
 0x136   :  { %v2630_v36 = vpop.eup %2629  ;;  %v858_v45 = vadd.f32 1e-05, %v826_v23  ;;  %v812_v34 = vsub.f32 %v780_v27, %v796_v29  ;;  %v697_v52 = vpop.xlane.xlu1 %696  ;;  %v931_v53 = vadd.f32 %v3523_v48, %v909_v2  ;;  %v889_v62 = vmul.f32 %v2628_v47, %v841_v19  ;;  %v3576_v47 = vld [vmem:[%s4059_s5 + $0x38] sm:$0xff] }
 0x137   :  { %v888_v61 = vmul.f32 %v2630_v36, %v840_v5  ;;  %2631 = vrsqrt.f32 %v859_v50  ;;  %v829_v54 = vmax.f32 %v813_v55, 0.0  ;;  %v695_v57 = vpop.xlane.xlu0 %694  ;;  %v930_v59 = vadd.f32 %v3523_v48, %v908_v38 }
 0x138   :  { %2633 = vrsqrt.f32 %v858_v45  ;;  %v828_v18 = vmax.f32 %v812_v34, 0.0  ;;  %v3539_v40 = vmul.f32 0.03125, %v697_v52  ;;  %v911_v22 = vmul.f32 %v3509_v16, %v889_v62  ;;  %v3584_v45 = vld [vmem:[%s4059_s5 + $0x30] sm:$0xff] }
 0x139   :  { %v861_v4 = vadd.f32 1e-05, %v829_v54  ;;  %v910_v0 = vmul.f32 %v3509_v16, %v888_v61  ;;  %v1284_v10 = vpack.c.bf16 %v931_v53, %v930_v59  ;;  %v3543_v31 = vmul.f32 0.03125, %v695_v57 }
 0x13a   :  { %v860_v46 = vadd.f32 1e-05, %v828_v18  ;;  %v701_v60 = vpop.xlane.xlu1 %700  ;;  %v933_v11 = vadd.f32 %v3523_v48, %v911_v22  ;;  %v799_v56 = vmul.f32 %v3539_v40, %v3539_v40  ;;  %v842_v19 = vsub.f32 %v3564_v51, %v3479_v41 }
 0x13b   :  { %2635 = vrsqrt.f32 %v861_v4  ;;  %v699_v37 = vpop.xlane.xlu0 %698  ;;  %v932_v63 = vadd.f32 %v3523_v48, %v910_v0  ;;  %2375 = vmatprep.mubr.bf16.mxu0 %v1284_v10  ;;  %v3548_v7 = vmul.f32 0.03125, %v701_v60  ;;  %v798_v43 = vmul.f32 %v3543_v31, %v3543_v31 }
 0x13c   :  { %2637 = vrsqrt.f32 %v860_v46  ;;  %v3559_v39 = vmul.f32 0.03125, %v699_v37  ;;  %v845_v5 = vsub.f32 %v3576_v47, %v3493_v12  ;;  %v844_v34 = vsub.f32 %v3584_v45, %v3497_v21 }
 0x13d   :  { %v1285_v35 = vpack.c.bf16 %v933_v11, %v932_v63  ;;  %v801_v58 = vmul.f32 %v3548_v7, %v3548_v7 }
 0x13e   :  { %v761_v6 = vpop.xlane.xlu1 %760  ;;  %v800_v29 = vmul.f32 %v3559_v39, %v3559_v39 }
 0x13f   :  { %v783_v15 = vmul.f32 0.03125, %v761_v6  ;;  %v759_v13 = vpop.xlane.xlu0 %758  ;;  %2376 = vmatmul.mubr.bf16.vlgmr.msra.gmra.mrb[0].mxu0 %v1285_v35 }
 0x140   :  { %v782_v1 = vmul.f32 0.03125, %v759_v13 }
 0x141   :  { %v2632_v42 = vpop.eup %2631  ;;  %v815_v20 = vsub.f32 %v783_v15, %v799_v56 }
 0x142   :  { %v2634_v44 = vpop.eup %2633  ;;  %v814_v9 = vsub.f32 %v782_v1, %v798_v43  ;;  %v765_v30 = vpop.xlane.xlu1 %764  ;;  %v891_v33 = vmul.f32 %v2632_v42, %v843_v49  ;;  %v3605_v42 = vld [vmem:[%s4059_s5 + $0x48] sm:$0xff] }
 0x143   :  { %v831_v26 = vmax.f32 %v815_v20, 0.0  ;;  %v785_v24 = vmul.f32 0.03125, %v765_v30  ;;  %v763_v25 = vpop.xlane.xlu0 %762  ;;  %v890_v28 = vmul.f32 %v2634_v44, %v842_v19  ;;  %v847_v19 = vsub.f32 %v3605_v42, %v3539_v40  ;;  %v3623_v40 = vld [vmem:[%s4059_s5 + $0x58] sm:$0xff] }
 0x144   :  { %v830_v23 = vmax.f32 %v814_v9, 0.0  ;;  %v784_v27 = vmul.f32 0.03125, %v763_v25  ;;  %v913_v41 = vmul.f32 %v3509_v16, %v891_v33  ;;  %v3616_v33 = vld [vmem:[%s4059_s5 + $0x40] sm:$0xff]  ;;  %v849_v25 = vsub.f32 %v3623_v40, %v3548_v7  ;;  %v3635_v7 = vld [vmem:[%s4059_s5 + $0x50] sm:$0xff] }
 0x145   :  { %v2636_v2 = vpop.eup %2635  ;;  %v863_v50 = vadd.f32 1e-05, %v831_v26  ;;  %v817_v55 = vsub.f32 %v785_v24, %v801_v58  ;;  %v912_v38 = vmul.f32 %v3509_v16, %v890_v28  ;;  %v846_v58 = vsub.f32 %v3616_v33, %v3543_v31 }
 0x146   :  { %v2638_v36 = vpop.eup %2637  ;;  %v862_v52 = vadd.f32 1e-05, %v830_v23  ;;  %v816_v53 = vsub.f32 %v784_v27, %v800_v29  ;;  %v705_v62 = vpop.xlane.xlu1 %704  ;;  %v935_v61 = vadd.f32 %v3523_v48, %v913_v41  ;;  %v893_v18 = vmul.f32 %v2636_v2, %v845_v5 }
 0x147   :  { %2639 = vrsqrt.f32 %v863_v50  ;;  %v833_v12 = vmax.f32 %v817_v55, 0.0  ;;  %v703_v54 = vpop.xlane.xlu0 %702  ;;  %v934_v57 = vadd.f32 %v3523_v48, %v912_v38  ;;  %v892_v4 = vmul.f32 %v2638_v36, %v844_v34 }
 0x148   :  { %2641 = vrsqrt.f32 %v862_v52  ;;  %v832_v59 = vmax.f32 %v816_v53, 0.0  ;;  %v3591_v37 = vmul.f32 0.03125, %v705_v62  ;;  %v915_v63 = vmul.f32 %v3509_v16, %v893_v18 }
 0x149   :  { %v865_v0 = vadd.f32 1e-05, %v833_v12  ;;  %v1286_v46 = vpack.c.bf16 %v935_v61, %v934_v57  ;;  %v914_v21 = vmul.f32 %v3509_v16, %v892_v4  ;;  %v3594_v11 = vmul.f32 0.03125, %v703_v54 }
 0x14a   :  { %v864_v60 = vadd.f32 1e-05, %v832_v59  ;;  %v709_v10 = vpop.xlane.xlu1 %708  ;;  %v937_v56 = vadd.f32 %v3523_v48, %v915_v63  ;;  %v803_v35 = vmul.f32 %v3591_v37, %v3591_v37  ;;  %v848_v52 = vsub.f32 %v3635_v7, %v3559_v39 }
 0x14b   :  { %2643 = vrsqrt.f32 %v865_v0  ;;  %2379 = vmatprep.mubr.bf16.mxu0 %v1286_v46  ;;  %v707_v22 = vpop.xlane.xlu0 %706  ;;  %v936_v6 = vadd.f32 %v3523_v48, %v914_v21  ;;  %v3600_v13 = vmul.f32 0.03125, %v709_v10  ;;  %v802_v20 = vmul.f32 %v3594_v11, %v3594_v11 }
 0x14c   :  { %2645 = vrsqrt.f32 %v864_v60  ;;  %v3611_v44 = vmul.f32 0.03125, %v707_v22 }
 0x14d   :  { %v1287_v43 = vpack.c.bf16 %v937_v56, %v936_v6  ;;  %v805_v27 = vmul.f32 %v3600_v13, %v3600_v13 }
 0x14e   :  { %v769_v15 = vpop.xlane.xlu1 %768  ;;  %v804_v50 = vmul.f32 %v3611_v44, %v3611_v44 }
 0x14f   :  { %v787_v49 = vmul.f32 0.03125, %v769_v15  ;;  %v767_v1 = vpop.xlane.xlu0 %766  ;;  %2380 = vmatmul.mubr.bf16.gmra.mrb[4].mxu0 %v1287_v43 }
 0x150   :  { %v786_v9 = vmul.f32 0.03125, %v767_v1  ;;  %v3656_v1 = vld [vmem:[%s4059_s5 + $0x60] sm:$0xff] }
 0x151   :  { %v2640_v30 = vpop.eup %2639  ;;  %v819_v26 = vsub.f32 %v787_v49, %v803_v35  ;;  %v3649_v35 = vld [vmem:[%s4059_s5 + $0x68] sm:$0xff] }
 0x152   :  { %v2642_v24 = vpop.eup %2641  ;;  %v818_v28 = vsub.f32 %v786_v9, %v802_v20  ;;  %v773_v29 = vpop.xlane.xlu1 %772  ;;  %v895_v23 = vmul.f32 %v2640_v30, %v847_v19  ;;  %v851_v49 = vsub.f32 %v3649_v35, %v3591_v37  ;;  %v850_v19 = vsub.f32 %v3656_v1, %v3594_v11 }
 0x153   :  { %v835_v41 = vmax.f32 %v819_v26, 0.0  ;;  %v789_v2 = vmul.f32 0.03125, %v773_v29  ;;  %v771_v31 = vpop.xlane.xlu0 %770  ;;  %v894_v5 = vmul.f32 %v2642_v24, %v846_v58  ;;  %v3663_v58 = vld [vmem:[%s4059_s5 + $0x78] sm:$0xff] }
 0x154   :  { %v834_v55 = vmax.f32 %v818_v28, 0.0  ;;  %v788_v38 = vmul.f32 0.03125, %v771_v31  ;;  %v917_v36 = vmul.f32 %v3509_v16, %v895_v23  ;;  %v853_v37 = vsub.f32 %v3663_v58, %v3600_v13 }
 0x155   :  { %v2644_v34 = vpop.eup %2643  ;;  %v867_v53 = vadd.f32 1e-05, %v835_v41  ;;  %v821_v62 = vsub.f32 %v789_v2, %v805_v27  ;;  %v916_v61 = vmul.f32 %v3509_v16, %v894_v5 }
 0x156   :  { %v2646_v12 = vpop.eup %2645  ;;  %v866_v54 = vadd.f32 1e-05, %v834_v55  ;;  %v820_v57 = vsub.f32 %v788_v38, %v804_v50  ;;  %v939_v18 = vadd.f32 %v3523_v48, %v917_v36  ;;  %v897_v59 = vmul.f32 %v2644_v34, %v849_v25  ;;  %v3671_v25 = vld [vmem:[%s4059_s5 + $0x70] sm:$0xff]  ;;  %v2550_v36 = vld [vmem:[%s4063_s10 + $0x38] sm:$0xff]  }
 0x157   :  { %2647 = vrsqrt.f32 %v867_v53  ;;  %v837_v4 = vmax.f32 %v821_v62, 0.0  ;;  %v938_v0 = vadd.f32 %v3523_v48, %v916_v61  ;;  %v896_v46 = vmul.f32 %v2646_v12, %v848_v52  ;;  %v2549_v38 = vld [vmem:[%s4063_s10 + $0x30] sm:$0xff]   ;;  %v2177_v53 = vld [vmem:[%s4067_s9] ss:$0 sm:$0xff] }
 0x158   :  { %2649 = vrsqrt.f32 %v866_v54  ;;  %v836_v60 = vmax.f32 %v820_v57, 0.0  ;;  %v919_v10 = vmul.f32 %v3509_v16, %v897_v59  ;;  %v852_v11 = vsub.f32 %v3671_v25, %v3611_v44  ;;  %2403 = vmatprep.subr.bf16.mxu1 %v2549_v38 }
 0x159   :  { %v869_v39 = vadd.f32 1e-05, %v837_v4  ;;  %v1288_v21 = vpack.c.bf16 %v939_v18, %v938_v0  ;;  %v918_v22 = vmul.f32 %v3509_v16, %v896_v46  ;;  %2404 = vmatpush3.bf16.msra.mxu1 %v2549_v38 }
 0x15a   :  { %v868_v63 = vadd.f32 1e-05, %v836_v60  ;;  %v941_v6 = vadd.f32 %v3523_v48, %v919_v10  ;;  %2405 = vmatprep.subr.bf16.mxu1 %v2550_v36 }
 0x15b   :  { %2651 = vrsqrt.f32 %v869_v39  ;;  %2383 = vmatprep.mubr.bf16.mxu0 %v1288_v21  ;;  %v940_v56 = vadd.f32 %v3523_v48, %v918_v22 }
 0x15c   :  { %2653 = vrsqrt.f32 %v868_v63 }
 0x15d   :  { %v1289_v15 = vpack.c.bf16 %v941_v6, %v940_v56  ;;  %2406 = vmatpush3.bf16.msra.mxu1 %v2550_v36 }
 0x15f   :  { %2384 = vmatmul.mubr.bf16.gmra.mrb[8].mxu0 %v1289_v15 }
 0x161   :  { %v2648_v43 = vpop.eup %2647 }
 0x162   :  { %v2650_v20 = vpop.eup %2649  ;;  %v899_v9 = vmul.f32 %v2648_v43, %v851_v49 }
 0x163   :  { %v898_v30 = vmul.f32 %v2650_v20, %v850_v19 }
 0x164   :  { %v921_v26 = vmul.f32 %v3509_v16, %v899_v9 }
 0x165   :  { %v2652_v24 = vpop.eup %2651  ;;  %v920_v28 = vmul.f32 %v3509_v16, %v898_v30 }
 0x166   :  { %v2654_v29 = vpop.eup %2653  ;;  %v943_v23 = vadd.f32 %v3523_v48, %v921_v26  ;;  %v901_v27 = vmul.f32 %v2652_v24, %v853_v37 }
 0x167   :  { %v942_v41 = vadd.f32 %v3523_v48, %v920_v28  ;;  %v900_v13 = vmul.f32 %v2654_v29, %v852_v11 }
 0x168   :  { %v923_v2 = vmul.f32 %v3509_v16, %v901_v27 }
 0x169   :  { %v1290_v31 = vpack.c.bf16 %v943_v23, %v942_v41  ;;  %v922_v5 = vmul.f32 %v3509_v16, %v900_v13  ;;  %v3691_v16 = vld [vmem:[%s4066_s2 + $0x8] sm:$0xff] }
 0x16a   :  { %v945_v50 = vadd.f32 %v3523_v48, %v923_v2  ;;  %1985 = vadd.xlane.f32.xlu1 %v3691_v16  ;;  %v1990_v34 = vmul.f32 %v3691_v16, %v3691_v16 }
 0x16b   :  { %2387 = vmatprep.mubr.bf16.mxu0 %v1290_v31  ;;  %v944_v55 = vadd.f32 %v3523_v48, %v922_v5  ;;  %v3696_v48 = vld [vmem:[%s4066_s2] sm:$0xff] }
 0x16c   :  { %1983 = vadd.xlane.f32.xlu0 %v3696_v48  ;;  %v1989_v52 = vmul.f32 %v3696_v48, %v3696_v48 }
 0x16d   :  { %v1291_v44 = vpack.c.bf16 %v945_v50, %v944_v55 }
 0x16e   :  { %1993 = vadd.xlane.f32.xlu1 %v1990_v34 }
 0x16f   :  { %2388 = vmatmul.mubr.bf16.gmra.mrb[12].mxu0 %v1291_v44 }
 0x170   :  { %1991 = vadd.xlane.f32.xlu0 %v1989_v52 }
 0x212   :  { %v2377_v62 = vpop.f32.mrb[0].mxu0 }
 0x213   :  { %v1478_v61 = vadd.f32 %v2377_v62, %v2177_v53  ;;  %v1390_v12 = vpop.f32.mrb[1].mxu0 }
 0x214   :  { %v1476_v54 = vadd.f32 %v2177_v53, %v1390_v12  ;;  %v2378_v57 = vpop.f32.mrb[2].mxu0 }
 0x215   :  { %v1479_v18 = vadd.f32 %v2378_v57, %v2177_v53  ;;  %v1393_v59 = vpop.f32.mrb[3].mxu0  ;;  %v1494_v0 = vmax.f32 %v1478_v61, 0.0 }
 0x216   :  { %v1477_v4 = vadd.f32 %v2177_v53, %v1393_v59  ;;  %v1492_v60 = vmax.f32 %v1476_v54, 0.0 }
 0x217   :  { %v1495_v46 = vmax.f32 %v1479_v18, 0.0 }
 0x218   :  { %v1493_v10 = vmax.f32 %v1477_v4, 0.0 }
 0x219   :  { %v1509_v39 = vpack.c.bf16 %v1495_v46, %v1494_v0 }
 0x21a   :  { %v1508_v21 = vpack.c.bf16 %v1493_v10, %v1492_v60  ;;  %v2729_v10 = vmov -1e+30  }
 0x21b   :  { %64 = vst [vmem:[#allocation2] sm:$0x1] %v2729_v10 }
 0x21c   :  { %2407 = vmatprep.mubr.bf16.mxu1 %v1508_v21  ;;  %v1986_v21 = vpop.xlane.xlu1 %1985 }
 0x21d   :  { %2408 = vmatmul.mubr.bf16.vlgmr.msra.gmra.mrb[0].mxu1 %v1509_v39  ;;  %v2730_v39 = vmov 0.0  }
 0x21e   :  { %2423 = vmatprep.subr.bf16.mxu1 %v2730_v39  ;;  %2463 = vmatprep.subr.bf16.mxu0 %v2730_v39 }
 0x21f   :  { %2479 = vmatprep.mubr.msk.bf16.mxu0 %vm2731_vm0, %v2730_v39 }
 0x222   :  { %v2381_v22 = vpop.f32.mrb[4].mxu0 }
 0x223   :  { %v1482_v63 = vadd.f32 %v2381_v22, %v2177_v53  ;;  %v1406_v6 = vpop.f32.mrb[5].mxu0  ;;  %v1984_v22 = vpop.xlane.xlu0 %1983 }
 0x224   :  { %v1480_v56 = vadd.f32 %v2177_v53, %v1406_v6  ;;  %v2382_v15 = vpop.f32.mrb[6].mxu0  ;;  %v1987_v6 = vmul.f32 0.03125, %v1984_v22 }
 0x225   :  { %v1483_v49 = vadd.f32 %v2382_v15, %v2177_v53  ;;  %v1409_v43 = vpop.f32.mrb[7].mxu0  ;;  %v1498_v20 = vmax.f32 %v1482_v63, 0.0  ;;  %v1988_v63 = vmul.f32 0.03125, %v1986_v21  ;;  %v1994_v15 = vpop.xlane.xlu1 %1993 }
 0x226   :  { %v1481_v19 = vadd.f32 %v2177_v53, %v1409_v43  ;;  %v1496_v30 = vmax.f32 %v1480_v56, 0.0  ;;  %v1997_v56 = vmul.f32 %v1987_v6, %v1987_v6  ;;  %v2551_v43 = vld [vmem:[%s4068_s12] sm:$0xff]  }
 0x227   :  { %v1499_v9 = vmax.f32 %v1483_v49, 0.0  ;;  %v1992_v49 = vpop.xlane.xlu0 %1991  ;;  %2464 = vmatpush3.bf16.msra.mxu0 %v2551_v43 }
 0x228   :  { %v1497_v37 = vmax.f32 %v1481_v19, 0.0  ;;  %v1996_v19 = vmul.f32 0.03125, %v1994_v15  ;;  %2465 = vmatprep.subr.bf16.mxu0 %v2730_v39 }
 0x229   :  { %v1511_v26 = vpack.c.bf16 %v1499_v9, %v1498_v20  ;;  %v1995_v20 = vmul.f32 0.03125, %v1992_v49 }
 0x22a   :  { %v1510_v24 = vpack.c.bf16 %v1497_v37, %v1496_v30  ;;  %v2552_v37 = vld [vmem:[%s4068_s12 + $0x8] sm:$0xff]  }
 0x22b   :  { %v1999_v30 = vsub.f32 %v1995_v20, %v1997_v56  ;;  %2466 = vmatpush3.bf16.msra.mxu0 %v2552_v37 }
 0x22c   :  { %2411 = vmatprep.mubr.bf16.mxu1 %v1510_v24  ;;  %2467 = vmatprep.subr.bf16.mxu0 %v2730_v39 }
 0x22d   :  { %2412 = vmatmul.mubr.bf16.gmra.mrb[4].mxu1 %v1511_v26  ;;  %v2001_v24 = vmax.f32 %v1999_v30, 0.0 }
 0x232   :  { %v2385_v11 = vpop.f32.mrb[8].mxu0 }
 0x233   :  { %v1486_v28 = vadd.f32 %v2385_v11, %v2177_v53  ;;  %v1422_v29 = vpop.f32.mrb[9].mxu0 }
 0x234   :  { %v1484_v23 = vadd.f32 %v2177_v53, %v1422_v29  ;;  %v2386_v27 = vpop.f32.mrb[10].mxu0  ;;  %v2553_v29 = vld [vmem:[%s4068_s12 + $0x10] sm:$0xff]  }
 0x235   :  { %v1487_v41 = vadd.f32 %v2386_v27, %v2177_v53  ;;  %v1425_v13 = vpop.f32.mrb[11].mxu0  ;;  %v1502_v31 = vmax.f32 %v1486_v28, 0.0  ;;  %v2005_v28 = vadd.f32 1e-05, %v2001_v24  ;;  %2468 = vmatpush3.bf16.msra.mxu0 %v2553_v29  ;;  %v3731_v27 = vld [vmem:[%s4069_s11] ss:$0 sm:$0xff] }
 0x236   :  { %v1485_v2 = vadd.f32 %v2177_v53, %v1425_v13  ;;  %v1500_v50 = vmax.f32 %v1484_v23, 0.0  ;;  %2469 = vmatprep.subr.bf16.mxu0 %v2730_v39  ;;  %v2554_v23 = vld [vmem:[%s4068_s12 + $0x18] sm:$0xff]   ;;  %v2555_v13 = vld [vmem:[%s4068_s12 + $0x20] sm:$0xff]  }
 0x237   :  { %v1503_v5 = vmax.f32 %v1487_v41, 0.0 }
 0x238   :  { %v1501_v55 = vmax.f32 %v1485_v2, 0.0 }
 0x239   :  { %v1513_v44 = vpack.c.bf16 %v1503_v5, %v1502_v31  ;;  %2470 = vmatpush3.bf16.msra.mxu0 %v2554_v23 }
 0x23a   :  { %v1512_v38 = vpack.c.bf16 %v1501_v55, %v1500_v50  ;;  %2471 = vmatprep.subr.bf16.mxu0 %v2730_v39  ;;  %v2004_v55 = vsub.f32 %v3691_v16, %v1988_v63 }
 0x23c   :  { %2415 = vmatprep.mubr.bf16.mxu1 %v1512_v38 }
 0x23d   :  { %2416 = vmatmul.mubr.bf16.gmra.mrb[8].mxu1 %v1513_v44  ;;  %v2003_v44 = vsub.f32 %v3696_v48, %v1987_v6  ;;  %2472 = vmatpush3.bf16.msra.mxu0 %v2555_v13 }
 0x23e   :  { %2473 = vmatprep.subr.bf16.mxu0 %v2730_v39 }
 0x242   :  { %v2389_v36 = vpop.f32.mrb[12].mxu0 }
 0x243   :  { %v1490_v34 = vadd.f32 %v2389_v36, %v2177_v53  ;;  %v1438_v52 = vpop.f32.mrb[13].mxu0 }
 0x244   :  { %v1488_v62 = vadd.f32 %v2177_v53, %v1438_v52  ;;  %v2390_v61 = vpop.f32.mrb[14].mxu0 }
 0x245   :  { %v1491_v12 = vadd.f32 %v2390_v61, %v2177_v53  ;;  %v1441_v54 = vpop.f32.mrb[15].mxu0  ;;  %v1506_v18 = vmax.f32 %v1490_v34, 0.0 }
 0x246   :  { %v1489_v57 = vadd.f32 %v2177_v53, %v1441_v54  ;;  %v1504_v4 = vmax.f32 %v1488_v62, 0.0  ;;  %v1998_v53 = vmul.f32 %v1988_v63, %v1988_v63  ;;  %v2556_v54 = vld [vmem:[%s4068_s12 + $0x28] sm:$0xff]  }
 0x247   :  { %v1507_v59 = vmax.f32 %v1491_v12, 0.0  ;;  %2474 = vmatpush3.bf16.msra.mxu0 %v2556_v54 }
 0x248   :  { %v1505_v0 = vmax.f32 %v1489_v57, 0.0  ;;  %v2000_v9 = vsub.f32 %v1996_v19, %v1998_v53  ;;  %2475 = vmatprep.subr.bf16.mxu0 %v2730_v39 }
 0x249   :  { %v1515_v46 = vpack.c.bf16 %v1507_v59, %v1506_v18  ;;  %v2194_v59 = vld [vmem:[%s4061_s13] ss:$0 sm:$0xff] }
 0x24a   :  { %v1514_v60 = vpack.c.bf16 %v1505_v0, %v1504_v4  ;;  %v2002_v26 = vmax.f32 %v2000_v9, 0.0  ;;  %v2558_v0 = vld [vmem:[%s4068_s12 + $0x38] sm:$0xff]  }
 0x24c   :  { %2419 = vmatprep.mubr.bf16.mxu1 %v1514_v60  ;;  %v2006_v11 = vadd.f32 1e-05, %v2002_v26 }
 0x24d   :  { %2420 = vmatmul.mubr.bf16.gmra.mrb[12].mxu1 %v1515_v46  ;;  %v2195_v46 = vld [vmem:[%s4062_s14] ss:$0 sm:$0xff] }
 0x24e   :  { %2655 = vrsqrt.f32 %v2006_v11  ;;  %2439 = vmatprep.mubr.msk.bf16.mxu1 %vm2731_vm0, %v2730_v39 }
 0x24f   :  { %2657 = vrsqrt.f32 %v2005_v28 }
 0x258   :  { %v2656_v38 = vpop.eup %2655 }
 0x259   :  { %v2658_v62 = vpop.eup %2657  ;;  %v2010_v57 = vmul.f32 %v2656_v38, %v2004_v55 }
 0x25a   :  { %v2009_v18 = vmul.f32 %v2658_v62, %v2003_v44 }
 0x25c   :  { %v2017_v4 = vmul.f32 %v2194_v59, %v2009_v18 }
 0x25e   :  { %v2025_v60 = vadd.f32 %v2195_v46, %v2017_v4 }
 0x260   :  { %v2027_v22 = vmax.f32 %v2025_v60, 0.0 }
 0x2f0   :  { %v2409_v41 = vpop.f32.mrb[0].mxu1 }
 0x2f1   :  { %v3738_v2 = vadd.f32 %v2409_v41, %v3731_v27  ;;  %v1621_v31 = vpop.f32.mrb[1].mxu1 }
 0x2f2   :  { %v3741_v5 = vadd.f32 %v3731_v27, %v1621_v31  ;;  %v2410_v50 = vpop.f32.mrb[2].mxu1 }
 0x2f3   :  { %v1686_v36 = vadd.f32 %v3531_v32, %v3738_v2  ;;  %v3748_v34 = vadd.f32 %v2410_v50, %v3731_v27  ;;  %v1624_v52 = vpop.f32.mrb[3].mxu1 }
 0x2f4   :  { %v1684_v61 = vadd.f32 %v3502_v3, %v3741_v5  ;;  %v3753_v12 = vadd.f32 %v3731_v27, %v1624_v52 }
 0x2f5   :  { %1702 = vst [vmem:[%s4070_s18 + $0x10] sm:$0xff] %v1686_v36  ;;  %v1687_v32 = vadd.f32 %v3514_v17, %v3748_v34  ;;  %v2018_v17 = vmul.f32 %v2194_v59, %v2010_v57 }
 0x2f6   :  { %1700 = vst [vmem:[%s4070_s18] sm:$0xff] %v1684_v61  ;;  %v1685_v3 = vadd.f32 %v3486_v8, %v3753_v12  ;;  %v2557_v8 = vld [vmem:[%s4068_s12 + $0x30] sm:$0xff]  }
 0x2f7   :  { %1703 = vst [vmem:[%s4070_s18 + $0x18] sm:$0xff] %v1687_v32  ;;  %2476 = vmatpush3.bf16.msra.mxu0 %v2557_v8  ;;  %v2026_v10 = vadd.f32 %v2195_v46, %v2018_v17 }
 0x2f8   :  { %1701 = vst [vmem:[%s4070_s18 + $0x8] sm:$0xff] %v1685_v3  ;;  %2477 = vmatprep.subr.bf16.mxu0 %v2730_v39 }
 0x2f9   :  { %v2028_v63 = vmax.f32 %v2026_v10, 0.0 }
 0x2fb   :  { %2478 = vmatpush3.bf16.msra.mxu0 %v2558_v0  ;;  %v2031_v49 = vpack.c.bf16 %v2028_v63, %v2027_v22 }
 0x2fe   :  { %2480 = vmatmul.mubr.bf16.vlgmr.msra.gmra.mrb[16].mxu0 %v2031_v49 }
 0x300   :  { %v2413_v21 = vpop.f32.mrb[4].mxu1 }
 0x301   :  { %v3790_v6 = vadd.f32 %v2413_v21, %v3731_v27  ;;  %v1637_v53 = vpop.f32.mrb[5].mxu1 }
 0x302   :  { %v3793_v56 = vadd.f32 %v3731_v27, %v1637_v53  ;;  %v2414_v15 = vpop.f32.mrb[6].mxu1 }
 0x303   :  { %v1690_v43 = vadd.f32 %v3584_v45, %v3790_v6  ;;  %v3798_v19 = vadd.f32 %v2414_v15, %v3731_v27  ;;  %v1640_v20 = vpop.f32.mrb[7].mxu1 }
 0x304   :  { %v1688_v9 = vadd.f32 %v3564_v51, %v3793_v56  ;;  %v3803_v30 = vadd.f32 %v3731_v27, %v1640_v20 }
 0x305   :  { %1706 = vst [vmem:[%s4070_s18 + $0x30] sm:$0xff] %v1690_v43  ;;  %v1691_v37 = vadd.f32 %v3576_v47, %v3798_v19 }
 0x306   :  { %1704 = vst [vmem:[%s4070_s18 + $0x20] sm:$0xff] %v1688_v9  ;;  %v1689_v45 = vadd.f32 %v3553_v14, %v3803_v30 }
 0x307   :  { %1707 = vst [vmem:[%s4070_s18 + $0x38] sm:$0xff] %v1691_v37 }
 0x308   :  { %1705 = vst [vmem:[%s4070_s18 + $0x28] sm:$0xff] %v1689_v45 }
 0x310   :  { %v2417_v51 = vpop.f32.mrb[8].mxu1 }
 0x311   :  { %v3822_v26 = vadd.f32 %v2417_v51, %v3731_v27  ;;  %v1653_v47 = vpop.f32.mrb[9].mxu1 }
 0x312   :  { %v3825_v24 = vadd.f32 %v3731_v27, %v1653_v47  ;;  %v2418_v11 = vpop.f32.mrb[10].mxu1 }
 0x313   :  { %v1694_v14 = vadd.f32 %v3635_v7, %v3822_v26  ;;  %v3830_v28 = vadd.f32 %v2418_v11, %v3731_v27  ;;  %v1656_v29 = vpop.f32.mrb[11].mxu1 }
 0x314   :  { %v1692_v23 = vadd.f32 %v3616_v33, %v3825_v24  ;;  %v3835_v41 = vadd.f32 %v3731_v27, %v1656_v29  ;;  %v1717_v33 = vstv %s4071_s1  ;;  %v1734_v29 = vlaneseq }
 0x315   :  { %1710 = vst [vmem:[%s4070_s18 + $0x50] sm:$0xff] %v1694_v14  ;;  %v1695_v13 = vadd.f32 %v3623_v40, %v3830_v28  ;;  %v3857_v40 = vmul.f32 %v1717_v33, %v3790_v6  ;;  %v3860_v31 = vmul.f32 %v1717_v33, %v3793_v56  ;;  %v3866_v50 = vmul.f32 %v1717_v33, %v3798_v19 }
 0x316   :  { %1708 = vst [vmem:[%s4070_s18 + $0x40] sm:$0xff] %v1692_v23  ;;  %v1693_v7 = vadd.f32 %v3605_v42, %v3835_v41  ;;  %v3863_v42 = vmul.f32 %v1717_v33, %v3738_v2  ;;  %v3869_v55 = vmul.f32 %v1717_v33, %v3741_v5  ;;  %v3872_v44 = vmul.f32 %v1717_v33, %v3748_v34 }
 0x317   :  { %1711 = vst [vmem:[%s4070_s18 + $0x58] sm:$0xff] %v1695_v13  ;;  %v3875_v38 = vmul.f32 %v1717_v33, %v3753_v12  ;;  %v3878_v36 = vmul.f32 %v1717_v33, %v3803_v30  ;;  %v3883_v61 = vmul.f32 %v1717_v33, %v3822_v26  ;;  %v3886_v54 = vmul.f32 %v1717_v33, %v3830_v28 }
 0x318   :  { %1709 = vst [vmem:[%s4070_s18 + $0x48] sm:$0xff] %v1693_v7  ;;  %v1752_v62 = vmax.f32 %v3863_v42, %v3857_v40  ;;  %v1750_v57 = vmax.f32 %v3869_v55, %v3860_v31  ;;  %v3894_v18 = vmul.f32 %v1717_v33, %v3825_v24  ;;  %v3897_v59 = vmul.f32 %v1717_v33, %v3835_v41 }
 0x319   :  { %v1753_v4 = vmax.f32 %v3872_v44, %v3866_v50  ;;  %v1751_v21 = vmax.f32 %v3875_v38, %v3878_v36  ;;  %v3946_v7 = vshrl.u32 %v1734_v29, 7 }
 0x31b   :  { %v1757_v15 = vmax.f32 %v1753_v4, %v3886_v54  ;;  %v1755_v20 = vmax.f32 %v1751_v21, %v3897_v59 }
 0x320   :  { %v2421_v52 = vpop.f32.mrb[12].mxu1 }
 0x321   :  { %v3889_v32 = vadd.f32 %v2421_v52, %v3731_v27  ;;  %v1669_v3 = vpop.f32.mrb[13].mxu1 }
 0x322   :  { %v3900_v8 = vadd.f32 %v3731_v27, %v1669_v3  ;;  %v2422_v17 = vpop.f32.mrb[14].mxu1 }
 0x323   :  { %v1698_v0 = vadd.f32 %v3671_v25, %v3889_v32  ;;  %v3907_v46 = vmul.f32 %v1717_v33, %v3889_v32  ;;  %v3910_v60 = vadd.f32 %v2422_v17, %v3731_v27  ;;  %v1672_v10 = vpop.f32.mrb[15].mxu1  ;;  %v1756_v25 = vmax.f32 %v1752_v62, %v3883_v61  ;;  %v1749_v62 = vld [vmem:[#allocation2] sm:$0x1] }
 0x324   :  { %v1696_v22 = vadd.f32 %v3656_v1, %v3900_v8  ;;  %v1730_v63 = vmul.f32 %v1717_v33, %v3900_v8  ;;  %v3918_v53 = vadd.f32 %v3731_v27, %v1672_v10  ;;  %v1754_v1 = vmax.f32 %v1750_v57, %v3894_v18 }
 0x325   :  { %1714 = vst [vmem:[%s4070_s18 + $0x70] sm:$0xff] %v1698_v0  ;;  %v1699_v49 = vadd.f32 %v3663_v58, %v3910_v60  ;;  %v3928_v43 = vmul.f32 %v1717_v33, %v3910_v60  ;;  %v1760_v37 = vmax.f32 %v1756_v25, %v3907_v46  ;;  %v1778_v57 = vsub.s32 0, %v3946_v7 }
 0x326   :  { %1712 = vst [vmem:[%s4070_s18 + $0x60] sm:$0xff] %v1696_v22  ;;  %v1697_v27 = vadd.f32 %v3649_v35, %v3918_v53  ;;  %v1731_v9 = vmul.f32 %v1717_v33, %v3918_v53  ;;  %v1758_v45 = vmax.f32 %v1754_v1, %v1730_v63 }
 0x327   :  { %1715 = vst [vmem:[%s4070_s18 + $0x78] sm:$0xff] %v1699_v49  ;;  %v1761_v58 = vmax.f32 %v1757_v15, %v3928_v43 }
 0x328   :  { %1713 = vst [vmem:[%s4070_s18 + $0x68] sm:$0xff] %v1697_v27  ;;  %v1759_v51 = vmax.f32 %v1755_v20, %v1731_v9 }
 0x329   :  { %v1763_v47 = vmax.f32 %v1760_v37, %v1761_v58 }
 0x32a   :  { %v1762_v11 = vmax.f32 %v1758_v45, %v1759_v51 }
 0x32c   :  { %v1764_v14 = vmax.f32 %v1762_v11, %v1763_v47 }
 0x32e   :  { %v1765_v35 = vrot.slane %v1764_v14, 4 }
 0x330   :  { %v1766_v23 = vmax.f32 %v1764_v14, %v1765_v35 }
 0x332   :  { %v1767_v13 = vrot.slane %v1766_v23, 2 }
 0x334   :  { %v1768_v33 = vmax.f32 %v1766_v23, %v1767_v13 }
 0x336   :  { %v1769_v52 = vrot.slane %v1768_v33, 1 }
 0x338   :  { %v1770_v3 = vmax.f32 %v1768_v33, %v1769_v52 }
 0x33a   :  { %v1771_v17 = vmax.f32 %v1749_v62, %v1770_v3 }
 0x33c   :  { %v3951_v4 = vrot.slane %v1771_v17, %v1778_v57  ;;  %1965 = vst [vmem:[#allocation2] sm:$0x1] %v1771_v17  ;;  %v1772_v0 = vsub.f32 %v1749_v62, %v1771_v17 }
 0x33e   :  { %v1793_v10 = vsub.f32 %v1730_v63, %v3951_v4  ;;  %v1794_v21 = vsub.f32 %v1731_v9, %v3951_v4  ;;  %v1781_v22 = vsub.f32 %v3869_v55, %v3951_v4  ;;  %v1782_v25 = vsub.f32 %v3875_v38, %v3951_v4 }
 0x33f   :  { %v1783_v15 = vsub.f32 %v3863_v42, %v3951_v4  ;;  %v1784_v49 = vsub.f32 %v3872_v44, %v3951_v4  ;;  %v1785_v9 = vsub.f32 %v3860_v31, %v3951_v4  ;;  %v1786_v38 = vsub.f32 %v3878_v36, %v3951_v4 }
 0x340   :  { %v1821_v1 = vmul.f32 1.442695, %v1793_v10  ;;  %v1823_v20 = vmul.f32 1.442695, %v1794_v21  ;;  %v1797_v27 = vmul.f32 1.442695, %v1781_v22  ;;  %v1795_v42 = vsub.f32 %v3907_v46, %v3951_v4 }
 0x341   :  { %v1799_v37 = vmul.f32 1.442695, %v1782_v25  ;;  %v1801_v63 = vmul.f32 1.442695, %v1783_v15  ;;  %v1803_v55 = vmul.f32 1.442695, %v1784_v49  ;;  %v1787_v44 = vsub.f32 %v3857_v40, %v3951_v4 }
 0x342   :  { %2659 = vpow2.f32 %v1821_v1  ;;  %v1796_v58 = vsub.f32 %v3928_v43, %v3951_v4  ;;  %v1805_v45 = vmul.f32 1.442695, %v1785_v9  ;;  %v1788_v31 = vsub.f32 %v3866_v50, %v3951_v4 }
 0x343   :  { %2661 = vpow2.f32 %v1823_v20  ;;  %v1807_v51 = vmul.f32 1.442695, %v1786_v38  ;;  %v1789_v36 = vsub.f32 %v3894_v18, %v3951_v4  ;;  %v1809_v47 = vmul.f32 1.442695, %v1787_v44 }
 0x344   :  { %2663 = vpow2.f32 %v1797_v27  ;;  %v1811_v46 = vmul.f32 1.442695, %v1788_v31  ;;  %v1790_v40 = vsub.f32 %v3897_v59, %v3951_v4  ;;  %v1825_v43 = vmul.f32 1.442695, %v1795_v42 }
 0x345   :  { %2665 = vpow2.f32 %v1799_v37  ;;  %v1813_v11 = vmul.f32 1.442695, %v1789_v36  ;;  %v1791_v18 = vsub.f32 %v3883_v61, %v3951_v4  ;;  %v1827_v29 = vmul.f32 1.442695, %v1796_v58 }
 0x346   :  { %2667 = vpow2.f32 %v1801_v63  ;;  %v1773_v33 = vmul.f32 1.442695, %v1772_v0  ;;  %v1815_v62 = vmul.f32 1.442695, %v1790_v40 }
 0x347   :  { %2669 = vpow2.f32 %v1803_v55 }
 0x348   :  { %2671 = vpow2.f32 %v1805_v45 }
 0x349   :  { %2673 = vpow2.f32 %v1807_v51 }
 0x34a   :  { %2675 = vpow2.f32 %v1809_v47 }
 0x34b   :  { %2677 = vpow2.f32 %v1811_v46 }
 0x34c   :  { %v3979_v14 = vpop.eup %2659  ;;  %2679 = vpow2.f32 %v1813_v11 }
 0x34d   :  { %v2662_v35 = vpop.eup %2661  ;;  %v3983_v50 = vmul.f32 %v3979_v14, %v3900_v8  ;;  %v1792_v8 = vsub.f32 %v3886_v54, %v3951_v4  ;;  %2681 = vpow2.f32 %v1825_v43 }
 0x34e   :  { %v2664_v23 = vpop.eup %2663  ;;  %v3988_v13 = vmul.f32 %v2662_v35, %v3918_v53  ;;  %v1845_v59 = vpack.c.bf16 %v2662_v35, %v3979_v14  ;;  %2683 = vpow2.f32 %v1827_v29  ;;  %v1817_v53 = vmul.f32 1.442695, %v1791_v18 }
 0x34f   :  { %v2666_v52 = vpop.eup %2665  ;;  %2685 = vpow2.f32 %v1773_v33  ;;  %v1819_v0 = vmul.f32 1.442695, %v1792_v8  ;;  %v1896_v51 = vmul.f32 %v2664_v23, %v3741_v5  ;;  %v2732_v14 = vmov 1.0|1.0  }
 0x350   :  { %v2668_v3 = vpop.eup %2667  ;;  %v1918_v17 = vpack.c.bf16 %v3988_v13, %v3983_v50  ;;  %v1839_v61 = vpack.c.bf16 %v2666_v52, %v2664_v23  ;;  %2687 = vpow2.f32 %v1815_v62  ;;  %v1897_v36 = vmul.f32 %v2666_v52, %v3753_v12 }
 0x351   :  { %v2670_v10 = vpop.eup %2669  ;;  %2689 = vpow2.f32 %v1817_v53  ;;  %v1898_v40 = vmul.f32 %v2668_v3, %v3738_v2 }
 0x352   :  { %2424 = vmatpush3.bf16.msra.mxu1 %v1839_v61  ;;  %v2672_v21 = vpop.eup %2671  ;;  %v1840_v22 = vpack.c.bf16 %v2670_v10, %v2668_v3  ;;  %2691 = vpow2.f32 %v1819_v0  ;;  %v1912_v46 = vpack.c.bf16 %v1897_v36, %v1896_v51  ;;  %v1899_v11 = vmul.f32 %v2670_v10, %v3748_v34 }
 0x353   :  { %2425 = vmatprep.subr.bf16.mxu1 %v2730_v39  ;;  %v2674_v25 = vpop.eup %2673  ;;  %v1900_v12 = vmul.f32 %v2672_v21, %v3793_v56 }
 0x354   :  { %v2676_v54 = vpop.eup %2675  ;;  %v1841_v15 = vpack.c.bf16 %v2674_v25, %v2672_v21  ;;  %v1913_v5 = vpack.c.bf16 %v1899_v11, %v1898_v40 }
 0x355   :  { %v2678_v4 = vpop.eup %2677  ;;  %v1902_v34 = vmul.f32 %v2676_v54, %v3790_v6 }
 0x356   :  { %2426 = vmatpush3.bf16.msra.mxu1 %v1840_v22  ;;  %v2680_v49 = vpop.eup %2679  ;;  %v1842_v63 = vpack.c.bf16 %v2678_v4, %v2676_v54  ;;  %v1903_v43 = vmul.f32 %v2678_v4, %v3798_v19 }
 0x357   :  { %2427 = vmatprep.subr.bf16.mxu1 %v2730_v39  ;;  %v2682_v1 = vpop.eup %2681  ;;  %v1904_v18 = vmul.f32 %v2680_v49, %v3825_v24 }
 0x358   :  { %v2684_v20 = vpop.eup %2683  ;;  %v3999_v27 = vmul.f32 %v2682_v1, %v3889_v32  ;;  %v1915_v35 = vpack.c.bf16 %v1903_v43, %v1902_v34 }
 0x359   :  { %v2686_v37 = vpop.eup %2685  ;;  %v1846_v9 = vpack.c.bf16 %v2684_v20, %v2682_v1  ;;  %v1911_v55 = vmul.f32 %v2684_v20, %v3910_v60  ;;  %v1736_v60 = vadd.s32 8, %v3946_v7 }
 0x35a   :  { %2428 = vmatpush3.bf16.msra.mxu1 %v1841_v15  ;;  %v2688_v38 = vpop.eup %2687  ;;  %v1835_v42 = vrot.slane %v2686_v37, %v1778_v57  ;;  %v2187_v57 = vld [vmem:[%s4072_s0] ss:$0 sm:$0xff] }
 0x35b   :  { %2429 = vmatprep.subr.bf16.mxu1 %v2730_v39  ;;  %v1919_v44 = vpack.c.bf16 %v1911_v55, %v3999_v27  ;;  %v2690_v58 = vpop.eup %2689  ;;  %v1843_v45 = vpack.c.bf16 %v2688_v38, %v2680_v49  ;;  %vm1742_vm1 = vcmp.eq.s32.totalorder %v3946_v7, %v2187_v57  ;;  %vm1743_vm2 = vcmp.eq.s32.totalorder %v1736_v60, %v2187_v57 }
 0x35c   :  { %v2692_v31 = vpop.eup %2691  ;;  %vm4016_vm3 = vmpackc.low %vm1743_vm2, %vm1742_vm1  ;;  %v1901_v7 = vmul.f32 %v2674_v25, %v3803_v30  ;;  %v1905_v29 = vmul.f32 %v2688_v38, %v3835_v41  ;;  %v1906_v30 = vmul.f32 %v2690_v58, %v3822_v26  ;;  %v1837_v41 = vmul.f32 0.0, %v1835_v42 }
 0x35d   :  { %v1844_v32 = vpack.c.bf16 %v2692_v31, %v2690_v58  ;;  %v1907_v23 = vmul.f32 %v2692_v31, %v3830_v28 }
 0x35e   :  { %2430 = vmatpush3.bf16.msra.mxu1 %v1842_v63  ;;  %v1914_v2 = vpack.c.bf16 %v1901_v7, %v1900_v12  ;;  %v1916_v56 = vpack.c.bf16 %v1905_v29, %v1904_v18 }
 0x35f   :  { %2431 = vmatprep.subr.bf16.mxu1 %v2730_v39  ;;  %v1917_v6 = vpack.c.bf16 %v1907_v23, %v1906_v30 }
 0x362   :  { %2432 = vmatpush3.bf16.msra.mxu1 %v1843_v45 }
 0x363   :  { %2433 = vmatprep.subr.bf16.mxu1 %v2730_v39 }
 0x366   :  { %2434 = vmatpush3.bf16.msra.mxu1 %v1844_v32 }
 0x367   :  { %2435 = vmatprep.subr.bf16.mxu1 %v2730_v39 }
 0x36a   :  { %2436 = vmatpush3.bf16.msra.mxu1 %v1845_v59 }
 0x36b   :  { %2437 = vmatprep.subr.bf16.mxu1 %v2730_v39 }
 0x36e   :  { %2438 = vmatpush3.bf16.msra.mxu1 %v1846_v9 }
 0x36f   :  { %2443 = vmatprep.subr.bf16.mxu1 %v2730_v39 }
 0x371   :  { %2440 = vmatmul.mubr.msk.bf16.vlgmr.msra.gmra.mrb[16].mxu1 %vm4016_vm3, %v2732_v14 }
 0x372   :  { %2444 = vmatpush3.bf16.msra.mxu1 %v1912_v46  ;;  %2459 = vmatprep.mubr.msk.bf16.mxu1 %vm2731_vm0, %v2730_v39 }
 0x373   :  { %2445 = vmatprep.subr.bf16.mxu1 %v2730_v39 }
 0x376   :  { %2446 = vmatpush3.bf16.msra.mxu1 %v1913_v5 }
 0x377   :  { %2447 = vmatprep.subr.bf16.mxu1 %v2730_v39 }
 0x37a   :  { %2448 = vmatpush3.bf16.msra.mxu1 %v1914_v2 }
 0x37b   :  { %2449 = vmatprep.subr.bf16.mxu1 %v2730_v39 }
 0x37e   :  { %2450 = vmatpush3.bf16.msra.mxu1 %v1915_v35 }
 0x37f   :  { %2451 = vmatprep.subr.bf16.mxu1 %v2730_v39 }
 0x382   :  { %2452 = vmatpush3.bf16.msra.mxu1 %v1916_v56 }
 0x383   :  { %2453 = vmatprep.subr.bf16.mxu1 %v2730_v39 }
 0x386   :  { %2454 = vmatpush3.bf16.msra.mxu1 %v1917_v6 }
 0x387   :  { %2455 = vmatprep.subr.bf16.mxu1 %v2730_v39 }
 0x38a   :  { %2456 = vmatpush3.bf16.msra.mxu1 %v1918_v17 }
 0x38b   :  { %2457 = vmatprep.subr.bf16.mxu1 %v2730_v39 }
 0x38e   :  { %2458 = vmatpush3.bf16.msra.mxu1 %v1919_v44 }
 0x391   :  { %2460 = vmatmul.mubr.msk.bf16.vlgmr.msra.gmra.mrb[20].mxu1 %vm4016_vm3, %v2732_v14 }
 0x3d1   :  { %v2130_v19 = vpop.f32.mrb[16].mxu0 }
 0x3d2   :  { %v2481_v26 = vpop.f32.mrb[17].mxu0 }
 0x3d3   :  { %v2133_v24 = vpop.f32.mrb[18].mxu0 }
 0x3d4   :  { %v2482_v28 = vpop.f32.mrb[19].mxu0 }
 0x444   :  { %v1881_v59 = vpop.f32.mrb[16].mxu1 }
 0x445   :  { %v1888_v33 = vadd.f32 %v1881_v59, %v1837_v41  ;;  %v2441_v52 = vpop.f32.mrb[17].mxu1 }
 0x446   :  { %v1884_v62 = vpop.f32.mrb[18].mxu1 }
 0x447   :  { %v1889_v8 = vadd.f32 %v1884_v62, %v1837_v41  ;;  %v2442_v3 = vpop.f32.mrb[19].mxu1  ;;  %v1975_v61 = vmax.f32 %v1888_v33, 1e-12 }
 0x449   :  { %v1976_v50 = vmax.f32 %v1889_v8, 1e-12  ;;  %2693 = vrcp.f32 %v1975_v61 }
 0x44b   :  { %2695 = vrcp.f32 %v1976_v50 }
 0x453   :  { %v2694_v10 = vpop.eup %2693 }
 0x455   :  { %v2696_v25 = vpop.eup %2695 }
 0x464   :  { %v1954_v39 = vpop.f32.mrb[20].mxu1 }
 0x465   :  { %v1961_v13 = vadd.f32 %v1954_v39, %v1837_v41  ;;  %v2461_v17 = vpop.f32.mrb[21].mxu1 }
 0x466   :  { %v1957_v53 = vpop.f32.mrb[22].mxu1 }
 0x467   :  { %v1978_v0 = vmul.f32 %v2694_v10, %v1961_v13  ;;  %v1962_v21 = vadd.f32 %v1957_v53, %v1837_v41  ;;  %v2462_v22 = vpop.f32.mrb[23].mxu1 }
 0x469   :  { %v2029_v54 = vadd.f32 %v1978_v0, %v3696_v48  ;;  %v1980_v4 = vmul.f32 %v2696_v25, %v1962_v21 }
 0x46b   :  { %v2137_v15 = vadd.f32 %v2130_v19, %v2029_v54  ;;  %v2030_v49 = vadd.f32 %v1980_v4, %v3691_v16 }
 0x46d   :  { %2139 = vst [vmem:[%s4073_s17] sm:$0xff] %v2137_v15  ;;  %v2138_v1 = vadd.f32 %v2133_v24, %v2030_v49 }
 0x46f   :  { %2140 = vst [vmem:[%s4073_s17 + $0x8] sm:$0xff] %v2138_v1 }

// kernel: deeper_gcn_forward.18
= control target key start
LH: loop header
LB: loop body
LE: loop exit
PB: predicated region body
PF: predicated region fallthrough
CT: control target
= control target key end

     0   :  { %s4054_s0 = inlined_call_operand.vmem [shape: s32[1,128], index: 0, kind: input, shape index: {}]   ;;  %s4055_s1 = inlined_call_operand.<no memory space> [shape: f32[1], index: 1, kind: input, shape index: {}]   ;;  %s4056_s2 = inlined_call_operand.vmem [shape: f32[16,128], index: 2, kind: input, shape index: {}]   ;;  %s4057_s3 = inlined_call_operand.vmem [shape: f32[128,128], index: 3, kind: input, shape index: {}]   ;;  %s4058_s4 = inlined_call_operand.vmem [shape: f32[128,128], index: 4, kind: input, shape index: {}]   ;;  %s4059_s5 = inlined_call_operand.vmem [shape: f32[128,128], index: 5, kind: input, shape index: {}]   ;;  %s4060_s6 = inlined_call_operand.vmem [shape: bf16[128,128], index: 6, kind: input, shape index: {}]   ;;  %s4061_s7 = inlined_call_operand.vmem [shape: bf16[128,128], index: 7, kind: input, shape index: {}]   ;;  %s4062_s8 = inlined_call_operand.vmem [shape: bf16[128,128], index: 8, kind: input, shape index: {}]   ;;  %s4063_s9 = inlined_call_operand.vmem [shape: f32[1,128], index: 9, kind: input, shape index: {}]   ;;  %s4064_s10 = inlined_call_operand.vmem [shape: bf16[128,128], index: 10, kind: input, shape index: {}]   ;;  %s4065_s11 = inlined_call_operand.vmem [shape: f32[1,128], index: 11, kind: input, shape index: {}]   ;;  %s4066_s12 = inlined_call_operand.vmem [shape: bf16[128,128], index: 12, kind: input, shape index: {}]   ;;  %s4067_s13 = inlined_call_operand.vmem [shape: f32[1,128], index: 13, kind: input, shape index: {}]   ;;  %s4068_s14 = inlined_call_operand.vmem [shape: f32[1,128], index: 14, kind: input, shape index: {}]   ;;  %s4069_s15 = inlined_call_operand.vmem [shape: f32[1,128], index: 15, kind: input, shape index: {}]   ;;  %s4070_s16 = inlined_call_operand.vmem [shape: f32[1,128], index: 16, kind: input, shape index: {}]   ;;  %s4071_s17 = inlined_call_operand.vmem [shape: f32[16,128], index: 17, kind: output, shape index: {0}]   ;;  %s4072_s18 = inlined_call_operand.hbm [shape: f32[128,128], index: 18, kind: output, shape index: {1}]  }
   0x1   :  { %4074 = sst [smem:[#allocation9_spill]] %s4054_s0 }
   0x2   :  { %4075 = sst [smem:[#allocation10_spill]] %s4055_s1 }
   0x3   :  { %4076 = sst [smem:[#allocation11_spill]] %s4056_s2 }
   0x4   :  { %v2872_v0 = vld [vmem:[%s4058_s4 + $0x10] sm:$0xff]  ;;  %v2877_v1 = vld [vmem:[%s4058_s4] sm:$0xff]  ;;  %v2884_v2 = vld [vmem:[%s4058_s4 + $0x18] sm:$0xff] }
   0x5   :  { %409 = vadd.xlane.f32.xlu1 %v2872_v0  ;;  %405 = vadd.xlane.f32.xlu0 %v2877_v1  ;;  %v2889_v3 = vld [vmem:[%s4058_s4 + $0x8] sm:$0xff]  ;;  %v453_v5 = vmul.f32 %v2877_v1, %v2877_v1  ;;  %v456_v6 = vmul.f32 %v2884_v2, %v2884_v2  ;;  %v455_v7 = vmul.f32 %v2872_v0, %v2872_v0  ;;  %v2909_v9 = vld [vmem:[%s4058_s4 + $0x20] sm:$0xff]  ;;  %v2914_v10 = vld [vmem:[%s4058_s4 + $0x38] sm:$0xff] }
   0x6   :  { %v454_v4 = vmul.f32 %v2889_v3, %v2889_v3  ;;  %v2904_v8 = vld [vmem:[%s4058_s4 + $0x28] sm:$0xff]  ;;  %v2919_v11 = vld [vmem:[%s4058_s4 + $0x30] sm:$0xff]  ;;  %v457_v13 = vmul.f32 %v2909_v9, %v2909_v9  ;;  %v2535_v14 = vld [vmem:[%s4061_s7] sm:$0xff]   ;;  %v460_v15 = vmul.f32 %v2914_v10, %v2914_v10 }
   0x7   :  { %v458_v12 = vmul.f32 %v2904_v8, %v2904_v8  ;;  %v459_v16 = vmul.f32 %v2919_v11, %v2919_v11  ;;  %2308 = vmatprep.subr.bf16.mxu0 %v2535_v14  ;;  %v2536_v17 = vld [vmem:[%s4061_s7 + $0x8] sm:$0xff]   ;;  %v2947_v19 = vld [vmem:[%s4058_s4 + $0x40] sm:$0xff]  ;;  %v2537_v20 = vld [vmem:[%s4061_s7 + $0x10] sm:$0xff]  }
   0x8   :  { %2309 = vmatpush3.bf16.msra.mxu0 %v2535_v14  ;;  %v2942_v18 = vld [vmem:[%s4058_s4 + $0x48] sm:$0xff]  ;;  %v2957_v21 = vld [vmem:[%s4058_s4 + $0x58] sm:$0xff]  ;;  %v2962_v22 = vld [vmem:[%s4058_s4 + $0x50] sm:$0xff]  ;;  %v461_v25 = vmul.f32 %v2947_v19, %v2947_v19 }
   0x9   :  { %411 = vadd.xlane.f32.xlu1 %v2884_v2  ;;  %407 = vadd.xlane.f32.xlu0 %v2889_v3  ;;  %v2538_v23 = vld [vmem:[%s4061_s7 + $0x18] sm:$0xff]   ;;  %v462_v24 = vmul.f32 %v2942_v18, %v2942_v18  ;;  %v2539_v26 = vld [vmem:[%s4061_s7 + $0x20] sm:$0xff]   ;;  %v464_v27 = vmul.f32 %v2957_v21, %v2957_v21  ;;  %v463_v28 = vmul.f32 %v2962_v22, %v2962_v22  ;;  %v2540_v29 = vld [vmem:[%s4061_s7 + $0x28] sm:$0xff]  }
   0xa   :  { %2310 = vmatprep.subr.bf16.mxu0 %v2536_v17 }
   0xc   :  { %2311 = vmatpush3.bf16.msra.mxu0 %v2536_v17 }
   0xd   :  { %471 = vadd.xlane.f32.xlu1 %v454_v4  ;;  %469 = vadd.xlane.f32.xlu0 %v453_v5 }
   0xe   :  { %2312 = vmatprep.subr.bf16.mxu0 %v2537_v20 }
  0x10   :  { %2313 = vmatpush3.bf16.msra.mxu0 %v2537_v20 }
  0x11   :  { %475 = vadd.xlane.f32.xlu1 %v456_v6  ;;  %473 = vadd.xlane.f32.xlu0 %v455_v7 }
  0x12   :  { %2314 = vmatprep.subr.bf16.mxu0 %v2538_v23 }
  0x14   :  { %2315 = vmatpush3.bf16.msra.mxu0 %v2538_v23 }
  0x15   :  { %415 = vadd.xlane.f32.xlu1 %v2904_v8  ;;  %413 = vadd.xlane.f32.xlu0 %v2909_v9 }
  0x16   :  { %2316 = vmatprep.subr.bf16.mxu0 %v2539_v26 }
  0x18   :  { %2317 = vmatpush3.bf16.msra.mxu0 %v2539_v26 }
  0x19   :  { %419 = vadd.xlane.f32.xlu1 %v2914_v10  ;;  %417 = vadd.xlane.f32.xlu0 %v2919_v11 }
  0x1d   :  { %479 = vadd.xlane.f32.xlu1 %v458_v12  ;;  %477 = vadd.xlane.f32.xlu0 %v457_v13 }
  0x21   :  { %483 = vadd.xlane.f32.xlu1 %v460_v15  ;;  %481 = vadd.xlane.f32.xlu0 %v459_v16 }
  0x25   :  { %423 = vadd.xlane.f32.xlu1 %v2942_v18  ;;  %421 = vadd.xlane.f32.xlu0 %v2947_v19 }
  0x29   :  { %427 = vadd.xlane.f32.xlu1 %v2957_v21  ;;  %425 = vadd.xlane.f32.xlu0 %v2962_v22 }
  0x2d   :  { %487 = vadd.xlane.f32.xlu1 %v462_v24  ;;  %485 = vadd.xlane.f32.xlu0 %v461_v25 }
  0x2e   :  { %25 = vsyncpa [#allocation7], 0  ;;  %v2986_v30 = vld [vmem:[%s4058_s4 + $0x68] sm:$0xff]  ;;  %v2991_v31 = vld [vmem:[%s4058_s4 + $0x60] sm:$0xff]  ;;  %2318 = vmatprep.subr.bf16.mxu0 %v2540_v29  ;;  %s4077_s27 = sld [smem:[#allocation11_spill]]  ;;  %vm2769_vm0 = vmmov 0  }
  0x2f   :  { %2319 = vmatpush3.bf16.msra.mxu0 %v2540_v29  ;;  %v2541_v32 = vld [vmem:[%s4061_s7 + $0x30] sm:$0xff]   ;;  %v3001_v33 = vld [vmem:[%s4058_s4 + $0x78] sm:$0xff]  ;;  %v466_v36 = vmul.f32 %v2986_v30, %v2986_v30  ;;  %v465_v37 = vmul.f32 %v2991_v31, %v2991_v31  ;;  %v3024_v40 = vld [vmem:[%s4057_s3 + $0x8] sm:$0xff] }
  0x30   :  { %v3006_v34 = vld [vmem:[%s4058_s4 + $0x70] sm:$0xff]  ;;  %2320 = vmatprep.subr.bf16.mxu0 %v2541_v32  ;;  %v2542_v35 = vld [vmem:[%s4061_s7 + $0x38] sm:$0xff]   ;;  %v468_v38 = vmul.f32 %v3001_v33, %v3001_v33  ;;  %v3029_v41 = vld [vmem:[%s4057_s3] sm:$0xff]  ;;  %v170_v44 = vmul.f32 %v3024_v40, %v3024_v40 }
  0x31   :  { %491 = vadd.xlane.f32.xlu1 %v464_v27  ;;  %489 = vadd.xlane.f32.xlu0 %v463_v28  ;;  %v467_v39 = vmul.f32 %v3006_v34, %v3006_v34  ;;  %v3036_v42 = vld [vmem:[%s4057_s3 + $0x18] sm:$0xff]  ;;  %v3041_v43 = vld [vmem:[%s4057_s3 + $0x10] sm:$0xff]  ;;  %v169_v45 = vmul.f32 %v3029_v41, %v3029_v41  ;;  %v75_v48 = vld [vmem:[%s4057_s3 + $0x28] sm:$0xff] }
  0x32   :  { %v172_v46 = vmul.f32 %v3036_v42, %v3036_v42  ;;  %v171_v47 = vmul.f32 %v3041_v43, %v3041_v43  ;;  %v74_v49 = vld [vmem:[%s4057_s3 + $0x20] sm:$0xff]  ;;  %v77_v50 = vld [vmem:[%s4057_s3 + $0x38] sm:$0xff]  ;;  %v76_v51 = vld [vmem:[%s4057_s3 + $0x30] sm:$0xff]  ;;  %v174_v52 = vmul.f32 %v75_v48, %v75_v48 }
  0x33   :  { %2321 = vmatpush3.bf16.msra.mxu0 %v2541_v32  ;;  %v173_v53 = vmul.f32 %v74_v49, %v74_v49  ;;  %v176_v54 = vmul.f32 %v77_v50, %v77_v50  ;;  %v175_v55 = vmul.f32 %v76_v51, %v76_v51  ;;  %v3068_v56 = vld [vmem:[%s4060_s6] sm:$0xff]   ;;  %v79_v57 = vld [vmem:[%s4057_s3 + $0x48] sm:$0xff]  ;;  %v81_v59 = vld [vmem:[%s4057_s3 + $0x58] sm:$0xff] }
  0x34   :  { %2322 = vmatprep.subr.bf16.mxu0 %v2542_v35  ;;  %v78_v58 = vld [vmem:[%s4057_s3 + $0x40] sm:$0xff]  ;;  %v80_v60 = vld [vmem:[%s4057_s3 + $0x50] sm:$0xff]  ;;  %v178_v61 = vmul.f32 %v79_v57, %v79_v57  ;;  %v180_v63 = vmul.f32 %v81_v59, %v81_v59  ;;  %v83_v5 = vld [vmem:[%s4057_s3 + $0x68] sm:$0xff] }
  0x35   :  { %431 = vadd.xlane.f32.xlu1 %v2986_v30  ;;  %429 = vadd.xlane.f32.xlu0 %v2991_v31  ;;  %v177_v62 = vmul.f32 %v78_v58, %v78_v58  ;;  %v179_v4 = vmul.f32 %v80_v60, %v80_v60  ;;  %v82_v6 = vld [vmem:[%s4057_s3 + $0x60] sm:$0xff]  ;;  %v85_v7 = vld [vmem:[%s4057_s3 + $0x78] sm:$0xff]  ;;  %v84_v12 = vld [vmem:[%s4057_s3 + $0x70] sm:$0xff]  ;;  %v182_v13 = vmul.f32 %v83_v5, %v83_v5 }
  0x36   :  { %v181_v14 = vmul.f32 %v82_v6, %v82_v6  ;;  %v184_v15 = vmul.f32 %v85_v7, %v85_v7  ;;  %v183_v16 = vmul.f32 %v84_v12, %v84_v12  ;;  %v103_v17 = vld [vmem:[%s4059_s5 + $0x8] sm:$0xff]  ;;  %v102_v20 = vld [vmem:[%s4059_s5] sm:$0xff]  ;;  %v105_v23 = vld [vmem:[%s4059_s5 + $0x18] sm:$0xff] }
  0x37   :  { %2323 = vmatpush3.bf16.msra.mxu0 %v2542_v35  ;;  %v104_v24 = vld [vmem:[%s4059_s5 + $0x10] sm:$0xff]  ;;  %v728_v25 = vmul.f32 %v103_v17, %v103_v17  ;;  %v727_v26 = vmul.f32 %v102_v20, %v102_v20  ;;  %v730_v27 = vmul.f32 %v105_v23, %v105_v23  ;;  %v107_v35 = vld [vmem:[%s4059_s5 + $0x28] sm:$0xff] }
  0x38   :  { %2340 = vmatprep.subr.bf16.mxu0 %v3068_v56  ;;  %v729_v28 = vmul.f32 %v104_v24, %v104_v24 }
  0x39   :  { %435 = vadd.xlane.f32.xlu1 %v3001_v33  ;;  %433 = vadd.xlane.f32.xlu0 %v3006_v34 }
  0x3d   :  { %495 = vadd.xlane.f32.xlu1 %v466_v36  ;;  %493 = vadd.xlane.f32.xlu0 %v465_v37  ;;  %v106_v36 = vld [vmem:[%s4059_s5 + $0x20] sm:$0xff] }
  0x41   :  { %499 = vadd.xlane.f32.xlu1 %v468_v38  ;;  %497 = vadd.xlane.f32.xlu0 %v467_v39  ;;  %v109_v39 = vld [vmem:[%s4059_s5 + $0x38] sm:$0xff] }
  0x45   :  { %122 = vadd.xlane.f32.xlu1 %v3024_v40  ;;  %120 = vadd.xlane.f32.xlu0 %v3029_v41 }
  0x49   :  { %126 = vadd.xlane.f32.xlu1 %v3036_v42  ;;  %124 = vadd.xlane.f32.xlu0 %v3041_v43 }
  0x4d   :  { %187 = vadd.xlane.f32.xlu1 %v170_v44  ;;  %185 = vadd.xlane.f32.xlu0 %v169_v45 }
  0x51   :  { %191 = vadd.xlane.f32.xlu1 %v172_v46  ;;  %189 = vadd.xlane.f32.xlu0 %v171_v47  ;;  %v108_v46 = vld [vmem:[%s4059_s5 + $0x30] sm:$0xff]  ;;  %v732_v47 = vmul.f32 %v107_v35, %v107_v35 }
  0x55   :  { %130 = vadd.xlane.f32.xlu1 %v75_v48  ;;  %128 = vadd.xlane.f32.xlu0 %v74_v49 }
  0x59   :  { %134 = vadd.xlane.f32.xlu1 %v77_v50  ;;  %132 = vadd.xlane.f32.xlu0 %v76_v51 }
  0x5d   :  { %195 = vadd.xlane.f32.xlu1 %v174_v52  ;;  %193 = vadd.xlane.f32.xlu0 %v173_v53  ;;  %v731_v52 = vmul.f32 %v106_v36, %v106_v36 }
  0x61   :  { %199 = vadd.xlane.f32.xlu1 %v176_v54  ;;  %197 = vadd.xlane.f32.xlu0 %v175_v55 }
  0x65   :  { %138 = vadd.xlane.f32.xlu1 %v79_v57  ;;  %136 = vadd.xlane.f32.xlu0 %v78_v58 }
  0x69   :  { %142 = vadd.xlane.f32.xlu1 %v81_v59  ;;  %140 = vadd.xlane.f32.xlu0 %v80_v60  ;;  %v734_v60 = vmul.f32 %v109_v39, %v109_v39 }
  0x6d   :  { %203 = vadd.xlane.f32.xlu1 %v178_v61  ;;  %201 = vadd.xlane.f32.xlu0 %v177_v62 }
  0x71   :  { %207 = vadd.xlane.f32.xlu1 %v180_v63  ;;  %205 = vadd.xlane.f32.xlu0 %v179_v4 }
  0x75   :  { %146 = vadd.xlane.f32.xlu1 %v83_v5  ;;  %144 = vadd.xlane.f32.xlu0 %v82_v6  ;;  %v733_v5 = vmul.f32 %v108_v46, %v108_v46 }
  0x79   :  { %150 = vadd.xlane.f32.xlu1 %v85_v7  ;;  %148 = vadd.xlane.f32.xlu0 %v84_v12 }
  0x7d   :  { %211 = vadd.xlane.f32.xlu1 %v182_v13  ;;  %209 = vadd.xlane.f32.xlu0 %v181_v14 }
  0x81   :  { %215 = vadd.xlane.f32.xlu1 %v184_v15  ;;  %213 = vadd.xlane.f32.xlu0 %v183_v16 }
  0x85   :  { %681 = vadd.xlane.f32.xlu1 %v103_v17  ;;  %679 = vadd.xlane.f32.xlu0 %v102_v20 }
  0x89   :  { %685 = vadd.xlane.f32.xlu1 %v105_v23  ;;  %683 = vadd.xlane.f32.xlu0 %v104_v24  ;;  %v111_v24 = vld [vmem:[%s4059_s5 + $0x48] sm:$0xff] }
  0x8d   :  { %745 = vadd.xlane.f32.xlu1 %v728_v25  ;;  %743 = vadd.xlane.f32.xlu0 %v727_v26 }
  0x91   :  { %749 = vadd.xlane.f32.xlu1 %v730_v27  ;;  %747 = vadd.xlane.f32.xlu0 %v729_v28  ;;  %v110_v27 = vld [vmem:[%s4059_s5 + $0x40] sm:$0xff] }
  0x92   :  { %v410_v29 = vpop.xlane.xlu1 %409  ;;  %v406_v32 = vpop.xlane.xlu0 %405 }
  0x93   :  { %v3116_v44 = vmul.f32 0.03125, %v406_v32  ;;  %v3123_v48 = vmul.f32 0.03125, %v410_v29 }
  0x95   :  { %689 = vadd.xlane.f32.xlu1 %v107_v35  ;;  %687 = vadd.xlane.f32.xlu0 %v106_v36  ;;  %v517_v53 = vmul.f32 %v3116_v44, %v3116_v44  ;;  %v519_v61 = vmul.f32 %v3123_v48, %v3123_v48  ;;  %v113_v36 = vld [vmem:[%s4059_s5 + $0x58] sm:$0xff] }
  0x96   :  { %v412_v37 = vpop.xlane.xlu1 %411  ;;  %v408_v38 = vpop.xlane.xlu0 %407 }
  0x97   :  { %v3118_v45 = vmul.f32 0.03125, %v408_v38  ;;  %v3125_v49 = vmul.f32 0.03125, %v412_v37 }
  0x99   :  { %693 = vadd.xlane.f32.xlu1 %v109_v39  ;;  %691 = vadd.xlane.f32.xlu0 %v108_v46  ;;  %v518_v54 = vmul.f32 %v3118_v45, %v3118_v45  ;;  %v520_v62 = vmul.f32 %v3125_v49, %v3125_v49  ;;  %v112_v39 = vld [vmem:[%s4059_s5 + $0x50] sm:$0xff]  ;;  %v736_v46 = vmul.f32 %v111_v24, %v111_v24 }
  0x9a   :  { %v472_v50 = vpop.xlane.xlu1 %471  ;;  %v470_v51 = vpop.xlane.xlu0 %469 }
  0x9b   :  { %v502_v55 = vmul.f32 0.03125, %v472_v50  ;;  %v501_v57 = vmul.f32 0.03125, %v470_v51 }
  0x9d   :  { %v534_v58 = vsub.f32 %v502_v55, %v518_v54  ;;  %v533_v59 = vsub.f32 %v501_v57, %v517_v53  ;;  %753 = vadd.xlane.f32.xlu1 %v732_v47  ;;  %751 = vadd.xlane.f32.xlu0 %v731_v52  ;;  %v735_v53 = vmul.f32 %v110_v27, %v110_v27 }
  0x9e   :  { %v476_v63 = vpop.xlane.xlu1 %475  ;;  %v474_v4 = vpop.xlane.xlu0 %473 }
  0x9f   :  { %v550_v6 = vmax.f32 %v534_v58, 0.0  ;;  %v549_v7 = vmax.f32 %v533_v59, 0.0  ;;  %v504_v12 = vmul.f32 0.03125, %v476_v63  ;;  %v503_v13 = vmul.f32 0.03125, %v474_v4 }
  0xa0   :  { %v566_v59 = vsub.f32 %v2889_v3, %v3118_v45  ;;  %v738_v63 = vmul.f32 %v113_v36, %v113_v36  ;;  %v737_v4 = vmul.f32 %v112_v39, %v112_v39 }
  0xa1   :  { %v582_v14 = vadd.f32 1e-05, %v550_v6  ;;  %v581_v15 = vadd.f32 1e-05, %v549_v7  ;;  %v536_v16 = vsub.f32 %v504_v12, %v520_v62  ;;  %v535_v17 = vsub.f32 %v503_v13, %v519_v61  ;;  %757 = vadd.xlane.f32.xlu1 %v734_v60  ;;  %755 = vadd.xlane.f32.xlu0 %v733_v5  ;;  %v3164_v5 = vld [vmem:[%s4067_s13] ss:$0 sm:$0xff] }
  0xa2   :  { %v416_v20 = vpop.xlane.xlu1 %415  ;;  %v414_v23 = vpop.xlane.xlu0 %413  ;;  %v565_v7 = vsub.f32 %v2877_v1, %v3116_v44  ;;  %v568_v1 = vsub.f32 %v2884_v2, %v3125_v49 }
  0xa3   :  { %2575 = vrsqrt.f32 %v582_v14  ;;  %v552_v25 = vmax.f32 %v536_v16, 0.0  ;;  %v551_v26 = vmax.f32 %v535_v17, 0.0  ;;  %v3144_v37 = vmul.f32 0.03125, %v416_v20 }
  0xa4   :  { %2577 = vrsqrt.f32 %v581_v15  ;;  %v3146_v38 = vmul.f32 0.03125, %v414_v23  ;;  %v3175_v23 = vld [vmem:[%s4068_s14] ss:$0 sm:$0xff] }
  0xa5   :  { %v584_v28 = vadd.f32 1e-05, %v552_v25  ;;  %v583_v29 = vadd.f32 1e-05, %v551_v26  ;;  %697 = vadd.xlane.f32.xlu1 %v111_v24  ;;  %695 = vadd.xlane.f32.xlu0 %v110_v27  ;;  %v522_v54 = vmul.f32 %v3144_v37, %v3144_v37 }
  0xa6   :  { %v420_v32 = vpop.xlane.xlu1 %419  ;;  %v418_v35 = vpop.xlane.xlu0 %417  ;;  %v521_v55 = vmul.f32 %v3146_v38, %v3146_v38 }
  0xa7   :  { %2579 = vrsqrt.f32 %v584_v28  ;;  %v3151_v47 = vmul.f32 0.03125, %v420_v32  ;;  %v3153_v50 = vmul.f32 0.03125, %v418_v35 }
  0xa8   :  { %2581 = vrsqrt.f32 %v583_v29 }
  0xa9   :  { %701 = vadd.xlane.f32.xlu1 %v113_v36  ;;  %699 = vadd.xlane.f32.xlu0 %v112_v39  ;;  %v524_v12 = vmul.f32 %v3151_v47, %v3151_v47  ;;  %v523_v3 = vmul.f32 %v3153_v50, %v3153_v50  ;;  %v115_v36 = vld [vmem:[%s4059_s5 + $0x68] sm:$0xff] }
  0xaa   :  { %v480_v51 = vpop.xlane.xlu1 %479  ;;  %v478_v52 = vpop.xlane.xlu0 %477 }
  0xab   :  { %v506_v57 = vmul.f32 0.03125, %v480_v51  ;;  %v505_v58 = vmul.f32 0.03125, %v478_v52  ;;  %v114_v52 = vld [vmem:[%s4059_s5 + $0x60] sm:$0xff] }
  0xad   :  { %v2576_v60 = vpop.eup %2575  ;;  %v538_v61 = vsub.f32 %v506_v57, %v522_v54  ;;  %v537_v62 = vsub.f32 %v505_v58, %v521_v55  ;;  %761 = vadd.xlane.f32.xlu1 %v736_v46  ;;  %759 = vadd.xlane.f32.xlu0 %v735_v53  ;;  %v567_v54 = vsub.f32 %v2872_v0, %v3123_v48  ;;  %v116_v48 = vld [vmem:[%s4059_s5 + $0x70] sm:$0xff] }
  0xae   :  { %v2578_v6 = vpop.eup %2577  ;;  %v484_v45 = vpop.xlane.xlu1 %483  ;;  %v614_v14 = vmul.f32 %v2576_v60, %v566_v59 }
  0xaf   :  { %v482_v13 = vpop.xlane.xlu0 %481  ;;  %v554_v15 = vmax.f32 %v538_v61, 0.0  ;;  %v553_v16 = vmax.f32 %v537_v62, 0.0  ;;  %v508_v17 = vmul.f32 0.03125, %v484_v45  ;;  %v613_v44 = vmul.f32 %v2578_v6, %v565_v7 }
  0xb0   :  { %v507_v20 = vmul.f32 0.03125, %v482_v13  ;;  %v630_v24 = vmul.f32 %v3164_v5, %v614_v14  ;;  %v740_v45 = vmul.f32 %v115_v36, %v115_v36  ;;  %v739_v13 = vmul.f32 %v114_v52, %v114_v52 }
  0xb1   :  { %v2580_v25 = vpop.eup %2579  ;;  %v586_v26 = vadd.f32 1e-05, %v554_v15  ;;  %v585_v27 = vadd.f32 1e-05, %v553_v16  ;;  %v540_v28 = vsub.f32 %v508_v17, %v524_v12  ;;  %765 = vadd.xlane.f32.xlu1 %v738_v63  ;;  %763 = vadd.xlane.f32.xlu0 %v737_v4  ;;  %v629_v39 = vmul.f32 %v3164_v5, %v613_v44  ;;  %v117_v63 = vld [vmem:[%s4059_s5 + $0x78] sm:$0xff] }
  0xb2   :  { %v539_v29 = vsub.f32 %v507_v20, %v523_v3  ;;  %v424_v32 = vpop.xlane.xlu1 %423  ;;  %v646_v2 = vadd.f32 %v3175_v23, %v630_v24  ;;  %v2582_v49 = vpop.eup %2581  ;;  %v616_v53 = vmul.f32 %v2580_v25, %v568_v1 }
  0xb3   :  { %v422_v35 = vpop.xlane.xlu0 %421  ;;  %2583 = vrsqrt.f32 %v586_v26  ;;  %v556_v46 = vmax.f32 %v540_v28, 0.0  ;;  %v645_v55 = vadd.f32 %v3175_v23, %v629_v39  ;;  %v615_v4 = vmul.f32 %v2582_v49, %v567_v54 }
  0xb4   :  { %v555_v51 = vmax.f32 %v539_v29, 0.0  ;;  %2585 = vrsqrt.f32 %v585_v27  ;;  %v662_v57 = vmax.f32 %v646_v2, 0.0  ;;  %v3194_v6 = vmul.f32 0.03125, %v424_v32 }
  0xb5   :  { %v588_v58 = vadd.f32 1e-05, %v556_v46  ;;  %705 = vadd.xlane.f32.xlu1 %v115_v36  ;;  %703 = vadd.xlane.f32.xlu0 %v114_v52  ;;  %v661_v62 = vmax.f32 %v645_v55, 0.0  ;;  %v3196_v0 = vmul.f32 0.03125, %v422_v35  ;;  %v632_v7 = vmul.f32 %v3164_v5, %v616_v53 }
  0xb6   :  { %v587_v59 = vadd.f32 1e-05, %v555_v51  ;;  %v428_v60 = vpop.xlane.xlu1 %427  ;;  %v631_v3 = vmul.f32 %v3164_v5, %v615_v4  ;;  %v526_v44 = vmul.f32 %v3194_v6, %v3194_v6  ;;  %v570_v27 = vsub.f32 %v2904_v8, %v3144_v37 }
  0xb7   :  { %v426_v61 = vpop.xlane.xlu0 %425  ;;  %2587 = vrsqrt.f32 %v588_v58  ;;  %v971_v12 = vpack.c.bf16 %v662_v57, %v661_v62  ;;  %v3203_v14 = vmul.f32 0.03125, %v428_v60  ;;  %v648_v1 = vadd.f32 %v3175_v23, %v632_v7 }
  0xb8   :  { %2589 = vrsqrt.f32 %v587_v59  ;;  %v3205_v15 = vmul.f32 0.03125, %v426_v61  ;;  %v647_v20 = vadd.f32 %v3175_v23, %v631_v3  ;;  %v525_v24 = vmul.f32 %v3196_v0, %v3196_v0 }
  0xb9   :  { %709 = vadd.xlane.f32.xlu1 %v117_v63  ;;  %2324 = vmatprep.mubr.bf16.mxu0 %v971_v12  ;;  %v664_v29 = vmax.f32 %v648_v1, 0.0  ;;  %v742_v32 = vmul.f32 %v117_v63, %v117_v63  ;;  %v569_v36 = vsub.f32 %v2909_v9, %v3146_v38  ;;  %v741_v49 = vmul.f32 %v116_v48, %v116_v48  ;;  %v2544_v9 = vld [vmem:[%s4060_s6 + $0x8] sm:$0xff]  }
  0xba   :  { %707 = vadd.xlane.f32.xlu0 %v116_v48  ;;  %v488_v16 = vpop.xlane.xlu1 %487  ;;  %v663_v28 = vmax.f32 %v647_v20, 0.0  ;;  %v528_v51 = vmul.f32 %v3203_v14, %v3203_v14  ;;  %v527_v52 = vmul.f32 %v3205_v15, %v3205_v15  ;;  %v572_v59 = vsub.f32 %v2914_v10, %v3151_v47  ;;  %v2545_v10 = vld [vmem:[%s4060_s6 + $0x10] sm:$0xff]  }
  0xbb   :  { %v486_v17 = vpop.xlane.xlu0 %485  ;;  %v510_v25 = vmul.f32 0.03125, %v488_v16 }
  0xbc   :  { %v509_v26 = vmul.f32 0.03125, %v486_v17  ;;  %v972_v53 = vpack.c.bf16 %v664_v29, %v663_v28 }
  0xbd   :  { %v2584_v35 = vpop.eup %2583  ;;  %v542_v39 = vsub.f32 %v510_v25, %v526_v44  ;;  %769 = vadd.xlane.f32.xlu1 %v740_v45 }
  0xbe   :  { %v541_v2 = vsub.f32 %v509_v26, %v525_v24  ;;  %v2586_v46 = vpop.eup %2585  ;;  %767 = vadd.xlane.f32.xlu0 %v739_v13  ;;  %v492_v8 = vpop.xlane.xlu1 %491  ;;  %v618_v54 = vmul.f32 %v2584_v35, %v570_v27  ;;  %2325 = vmatmul.mubr.bf16.vlgmr.msra.gmra.mrb[0].mxu0 %v972_v53 }
  0xbf   :  { %v490_v37 = vpop.xlane.xlu0 %489  ;;  %v558_v38 = vmax.f32 %v542_v39, 0.0  ;;  %v512_v57 = vmul.f32 0.03125, %v492_v8  ;;  %v617_v60 = vmul.f32 %v2586_v46, %v569_v36  ;;  %2341 = vmatpush3.bf16.msra.mxu0 %v3068_v56  ;;  %v571_v56 = vsub.f32 %v2919_v11, %v3153_v50  ;;  %v2547_v8 = vld [vmem:[%s4060_s6 + $0x20] sm:$0xff]  }
  0xc0   :  { %v557_v55 = vmax.f32 %v541_v2, 0.0  ;;  %v511_v58 = vmul.f32 0.03125, %v490_v37  ;;  %v634_v61 = vmul.f32 %v3164_v5, %v618_v54  ;;  %2342 = vmatprep.subr.bf16.mxu0 %v2544_v9 }
  0xc1   :  { %v2588_v62 = vpop.eup %2587  ;;  %v590_v63 = vadd.f32 1e-05, %v558_v38  ;;  %v544_v48 = vsub.f32 %v512_v57, %v528_v51  ;;  %773 = vadd.xlane.f32.xlu1 %v742_v32  ;;  %v633_v45 = vmul.f32 %v3164_v5, %v617_v60  ;;  %v2546_v32 = vld [vmem:[%s4060_s6 + $0x18] sm:$0xff]   ;;  %v573_v60 = vsub.f32 %v2947_v19, %v3196_v0 }
  0xc2   :  { %v589_v4 = vadd.f32 1e-05, %v557_v55  ;;  %v543_v7 = vsub.f32 %v511_v58, %v527_v52  ;;  %771 = vadd.xlane.f32.xlu0 %v741_v49  ;;  %v432_v12 = vpop.xlane.xlu1 %431  ;;  %v650_v13 = vadd.f32 %v3175_v23, %v634_v61  ;;  %v2590_v47 = vpop.eup %2589  ;;  %v620_v20 = vmul.f32 %v2588_v62, %v572_v59 }
  0xc3   :  { %v430_v3 = vpop.xlane.xlu0 %429  ;;  %2591 = vrsqrt.f32 %v590_v63  ;;  %v560_v16 = vmax.f32 %v544_v48, 0.0  ;;  %v649_v1 = vadd.f32 %v3175_v23, %v633_v45  ;;  %2343 = vmatpush3.bf16.msra.mxu0 %v2544_v9  ;;  %v619_v29 = vmul.f32 %v2590_v47, %v571_v56 }
  0xc4   :  { %v559_v17 = vmax.f32 %v543_v7, 0.0  ;;  %2593 = vrsqrt.f32 %v589_v4  ;;  %v666_v44 = vmax.f32 %v650_v13, 0.0  ;;  %2344 = vmatprep.subr.bf16.mxu0 %v2545_v10  ;;  %v3239_v35 = vmul.f32 0.03125, %v432_v12 }
  0xc5   :  { %v592_v24 = vadd.f32 1e-05, %v560_v16  ;;  %v665_v28 = vmax.f32 %v649_v1, 0.0  ;;  %v3241_v11 = vmul.f32 0.03125, %v430_v3  ;;  %v636_v50 = vmul.f32 %v3164_v5, %v620_v20 }
  0xc6   :  { %v591_v25 = vadd.f32 1e-05, %v559_v17  ;;  %v436_v26 = vpop.xlane.xlu1 %435  ;;  %v635_v39 = vmul.f32 %v3164_v5, %v619_v29  ;;  %v530_v37 = vmul.f32 %v3239_v35, %v3239_v35  ;;  %v574_v55 = vsub.f32 %v2942_v18, %v3194_v6  ;;  %v2548_v6 = vld [vmem:[%s4060_s6 + $0x28] sm:$0xff]  }
  0xc7   :  { %v434_v27 = vpop.xlane.xlu0 %433  ;;  %2595 = vrsqrt.f32 %v592_v24  ;;  %v973_v36 = vpack.c.bf16 %v666_v44, %v665_v28  ;;  %2345 = vmatpush3.bf16.msra.mxu0 %v2545_v10  ;;  %v3245_v2 = vmul.f32 0.03125, %v436_v26  ;;  %v652_v53 = vadd.f32 %v3175_v23, %v636_v50 }
  0xc8   :  { %2597 = vrsqrt.f32 %v591_v25  ;;  %v3247_v49 = vmul.f32 0.03125, %v434_v27  ;;  %v651_v52 = vadd.f32 %v3175_v23, %v635_v39  ;;  %2346 = vmatprep.subr.bf16.mxu0 %v2546_v32  ;;  %v529_v54 = vmul.f32 %v3241_v11, %v3241_v11 }
  0xc9   :  { %2328 = vmatprep.mubr.bf16.mxu0 %v973_v36  ;;  %v668_v58 = vmax.f32 %v652_v53, 0.0  ;;  %v532_v4 = vmul.f32 %v3245_v2, %v3245_v2  ;;  %v576_v10 = vsub.f32 %v2957_v21, %v3203_v14  ;;  %v2549_v21 = vld [vmem:[%s4060_s6 + $0x30] sm:$0xff]   ;;  %v575_v50 = vsub.f32 %v2962_v22, %v3205_v15 }
  0xca   :  { %v496_v46 = vpop.xlane.xlu1 %495  ;;  %v667_v57 = vmax.f32 %v651_v52, 0.0  ;;  %v531_v48 = vmul.f32 %v3247_v49, %v3247_v49 }
  0xcb   :  { %v494_v51 = vpop.xlane.xlu0 %493  ;;  %v514_v9 = vmul.f32 0.03125, %v496_v46  ;;  %2347 = vmatpush3.bf16.msra.mxu0 %v2546_v32 }
  0xcc   :  { %v513_v38 = vmul.f32 0.03125, %v494_v51  ;;  %v974_v7 = vpack.c.bf16 %v668_v58, %v667_v57  ;;  %2348 = vmatprep.subr.bf16.mxu0 %v2547_v8 }
  0xcd   :  { %v2592_v59 = vpop.eup %2591  ;;  %v546_v61 = vsub.f32 %v514_v9, %v530_v37 }
  0xce   :  { %v545_v62 = vsub.f32 %v513_v38, %v529_v54  ;;  %v2594_v63 = vpop.eup %2593  ;;  %v500_v12 = vpop.xlane.xlu1 %499  ;;  %v622_v18 = vmul.f32 %v2592_v59, %v574_v55  ;;  %2329 = vmatmul.mubr.bf16.gmra.mrb[4].mxu0 %v974_v7  ;;  %v2550_v54 = vld [vmem:[%s4060_s6 + $0x38] sm:$0xff]  }
  0xcf   :  { %v498_v3 = vpop.xlane.xlu0 %497  ;;  %v562_v19 = vmax.f32 %v546_v61, 0.0  ;;  %v516_v45 = vmul.f32 0.03125, %v500_v12  ;;  %v621_v47 = vmul.f32 %v2594_v63, %v573_v60  ;;  %2349 = vmatpush3.bf16.msra.mxu0 %v2547_v8  ;;  %v3298_v63 = vld [vmem:[%s4062_s8] sm:$0xff]  }
  0xd0   :  { %v561_v0 = vmax.f32 %v545_v62, 0.0  ;;  %v515_v13 = vmul.f32 0.03125, %v498_v3  ;;  %v638_v16 = vmul.f32 %v3164_v5, %v622_v18  ;;  %2350 = vmatprep.subr.bf16.mxu0 %v2548_v6  ;;  %v578_v3 = vsub.f32 %v2986_v30, %v3239_v35 }
  0xd1   :  { %v2596_v17 = vpop.eup %2595  ;;  %v594_v20 = vadd.f32 1e-05, %v562_v19  ;;  %v548_v1 = vsub.f32 %v516_v45, %v532_v4  ;;  %v637_v26 = vmul.f32 %v3164_v5, %v621_v47 }
  0xd2   :  { %v593_v56 = vadd.f32 1e-05, %v561_v0  ;;  %v547_v44 = vsub.f32 %v515_v13, %v531_v48  ;;  %v123_v24 = vpop.xlane.xlu1 %122  ;;  %v654_v27 = vadd.f32 %v3175_v23, %v638_v16  ;;  %v2598_v14 = vpop.eup %2597  ;;  %v624_v32 = vmul.f32 %v2596_v17, %v576_v10 }
  0xd3   :  { %v121_v25 = vpop.xlane.xlu0 %120  ;;  %2599 = vrsqrt.f32 %v594_v20  ;;  %v564_v28 = vmax.f32 %v548_v1, 0.0  ;;  %v653_v36 = vadd.f32 %v3175_v23, %v637_v26  ;;  %2351 = vmatpush3.bf16.msra.mxu0 %v2548_v6  ;;  %v623_v37 = vmul.f32 %v2598_v14, %v575_v50 }
  0xd4   :  { %v563_v29 = vmax.f32 %v547_v44, 0.0  ;;  %2601 = vrsqrt.f32 %v593_v56  ;;  %v670_v39 = vmax.f32 %v654_v27, 0.0  ;;  %2352 = vmatprep.subr.bf16.mxu0 %v2549_v21  ;;  %v3283_v9 = vmul.f32 0.03125, %v123_v24 }
  0xd5   :  { %v596_v46 = vadd.f32 1e-05, %v564_v28  ;;  %v669_v8 = vmax.f32 %v653_v36, 0.0  ;;  %v3285_v22 = vmul.f32 0.03125, %v121_v25  ;;  %v640_v15 = vmul.f32 %v3164_v5, %v624_v32 }
  0xd6   :  { %v595_v51 = vadd.f32 1e-05, %v563_v29  ;;  %v127_v52 = vpop.xlane.xlu1 %126  ;;  %v639_v55 = vmul.f32 %v3164_v5, %v623_v37  ;;  %v234_v4 = vmul.f32 %v3283_v9, %v3283_v9  ;;  %v577_v0 = vsub.f32 %v2991_v31, %v3241_v11 }
  0xd7   :  { %v125_v53 = vpop.xlane.xlu0 %124  ;;  %2603 = vrsqrt.f32 %v596_v46  ;;  %v975_v38 = vpack.c.bf16 %v670_v39, %v669_v8  ;;  %2353 = vmatpush3.bf16.msra.mxu0 %v2549_v21  ;;  %v3289_v57 = vmul.f32 0.03125, %v127_v52  ;;  %v656_v62 = vadd.f32 %v3175_v23, %v640_v15 }
  0xd8   :  { %2605 = vrsqrt.f32 %v595_v51  ;;  %v3291_v58 = vmul.f32 0.03125, %v125_v53  ;;  %v655_v61 = vadd.f32 %v3175_v23, %v639_v55  ;;  %2354 = vmatprep.subr.bf16.mxu0 %v2550_v54  ;;  %v233_v48 = vmul.f32 %v3285_v22, %v3285_v22 }
  0xd9   :  { %2332 = vmatprep.mubr.bf16.mxu0 %v975_v38  ;;  %v672_v6 = vmax.f32 %v656_v62, 0.0  ;;  %v236_v47 = vmul.f32 %v3289_v57, %v3289_v57  ;;  %v580_v11 = vsub.f32 %v3001_v33, %v3245_v2  ;;  %v579_v2 = vsub.f32 %v3006_v34, %v3247_v49 }
  0xda   :  { %v188_v59 = vpop.xlane.xlu1 %187  ;;  %v671_v18 = vmax.f32 %v655_v61, 0.0  ;;  %v235_v16 = vmul.f32 %v3291_v58, %v3291_v58 }
  0xdb   :  { %v186_v60 = vpop.xlane.xlu0 %185  ;;  %v218_v7 = vmul.f32 0.03125, %v188_v59  ;;  %2355 = vmatpush3.bf16.msra.mxu0 %v2550_v54 }
  0xdc   :  { %v217_v12 = vmul.f32 0.03125, %v186_v60  ;;  %v976_v17 = vpack.c.bf16 %v672_v6, %v671_v18  ;;  %2372 = vmatprep.subr.bf16.mxu0 %v3298_v63 }
  0xdd   :  { %v2600_v19 = vpop.eup %2599  ;;  %v250_v45 = vsub.f32 %v218_v7, %v234_v4 }
  0xde   :  { %v249_v13 = vsub.f32 %v217_v12, %v233_v48  ;;  %v2602_v10 = vpop.eup %2601  ;;  %v192_v20 = vpop.xlane.xlu1 %191  ;;  %v626_v30 = vmul.f32 %v2600_v19, %v578_v3  ;;  %2333 = vmatmul.mubr.bf16.gmra.mrb[8].mxu0 %v976_v17 }
  0xdf   :  { %v190_v56 = vpop.xlane.xlu0 %189  ;;  %v266_v35 = vmax.f32 %v250_v45, 0.0  ;;  %v220_v44 = vmul.f32 0.03125, %v192_v20  ;;  %v625_v24 = vmul.f32 %v2602_v10, %v577_v0  ;;  %v2559_v45 = vld [vmem:[%s4064_s10] sm:$0xff]   ;;  %v282_v10 = vsub.f32 %v3024_v40, %v3283_v9 }
  0xe0   :  { %v265_v1 = vmax.f32 %v249_v13, 0.0  ;;  %v219_v31 = vmul.f32 0.03125, %v190_v56  ;;  %v642_v25 = vmul.f32 %v3164_v5, %v626_v30  ;;  %v2560_v13 = vld [vmem:[%s4064_s10 + $0x8] sm:$0xff]   ;;  %v281_v20 = vsub.f32 %v3029_v41, %v3285_v22  ;;  %2404 = vmatprep.subr.bf16.mxu1 %v2559_v45  ;;  %v2561_v41 = vld [vmem:[%s4064_s10 + $0x10] sm:$0xff]  }
  0xe1   :  { %v2604_v26 = vpop.eup %2603  ;;  %v298_v27 = vadd.f32 1e-05, %v266_v35  ;;  %v252_v14 = vsub.f32 %v220_v44, %v236_v47  ;;  %v641_v50 = vmul.f32 %v3164_v5, %v625_v24  ;;  %2405 = vmatpush3.bf16.msra.mxu1 %v2559_v45  ;;  %v283_v22 = vsub.f32 %v3041_v43, %v3291_v58 }
  0xe2   :  { %v297_v21 = vadd.f32 1e-05, %v265_v1  ;;  %v251_v28 = vsub.f32 %v219_v31, %v235_v16  ;;  %v131_v29 = vpop.xlane.xlu1 %130  ;;  %v658_v36 = vadd.f32 %v3175_v23, %v642_v25  ;;  %v2606_v39 = vpop.eup %2605  ;;  %v628_v33 = vmul.f32 %v2604_v26, %v580_v11  ;;  %2406 = vmatprep.subr.bf16.mxu1 %v2560_v13 }
  0xe3   :  { %v129_v32 = vpop.xlane.xlu0 %128  ;;  %2607 = vrsqrt.f32 %v298_v27  ;;  %v268_v46 = vmax.f32 %v252_v14, 0.0  ;;  %v657_v52 = vadd.f32 %v3175_v23, %v641_v50  ;;  %v627_v55 = vmul.f32 %v2606_v39, %v579_v2 }
  0xe4   :  { %v267_v51 = vmax.f32 %v251_v28, 0.0  ;;  %2609 = vrsqrt.f32 %v297_v21  ;;  %v674_v53 = vmax.f32 %v658_v36, 0.0  ;;  %v3321_v59 = vmul.f32 0.03125, %v131_v29 }
  0xe5   :  { %v300_v8 = vadd.f32 1e-05, %v268_v46  ;;  %v673_v38 = vmax.f32 %v657_v52, 0.0  ;;  %v3323_v60 = vmul.f32 0.03125, %v129_v32  ;;  %v644_v61 = vmul.f32 %v3164_v5, %v628_v33  ;;  %2407 = vmatpush3.bf16.msra.mxu1 %v2560_v13 }
  0xe6   :  { %v299_v37 = vadd.f32 1e-05, %v267_v51  ;;  %v135_v54 = vpop.xlane.xlu1 %134  ;;  %v643_v34 = vmul.f32 %v3164_v5, %v627_v55  ;;  %v238_v18 = vmul.f32 %v3321_v59, %v3321_v59  ;;  %v284_v46 = vsub.f32 %v3036_v42, %v3289_v57  ;;  %2408 = vmatprep.subr.bf16.mxu1 %v2561_v41 }
  0xe7   :  { %v133_v15 = vpop.xlane.xlu0 %132  ;;  %2611 = vrsqrt.f32 %v300_v8  ;;  %v977_v62 = vpack.c.bf16 %v674_v53, %v673_v38  ;;  %v3327_v49 = vmul.f32 0.03125, %v135_v54  ;;  %v660_v3 = vadd.f32 %v3175_v23, %v644_v61  ;;  %v2562_v8 = vld [vmem:[%s4064_s10 + $0x18] sm:$0xff]  }
  0xe8   :  { %2613 = vrsqrt.f32 %v299_v37  ;;  %v3329_v4 = vmul.f32 0.03125, %v133_v15  ;;  %v659_v12 = vadd.f32 %v3175_v23, %v643_v34  ;;  %v237_v6 = vmul.f32 %v3323_v60, %v3323_v60 }
  0xe9   :  { %2336 = vmatprep.mubr.bf16.mxu0 %v977_v62  ;;  %v676_v16 = vmax.f32 %v660_v3, 0.0  ;;  %v240_v1 = vmul.f32 %v3327_v49, %v3327_v49  ;;  %2409 = vmatpush3.bf16.msra.mxu1 %v2561_v41 }
  0xea   :  { %v196_v48 = vpop.xlane.xlu1 %195  ;;  %v675_v47 = vmax.f32 %v659_v12, 0.0  ;;  %v239_v44 = vmul.f32 %v3329_v4, %v3329_v4  ;;  %2410 = vmatprep.subr.bf16.mxu1 %v2562_v8 }
  0xeb   :  { %v194_v7 = vpop.xlane.xlu0 %193  ;;  %v222_v19 = vmul.f32 0.03125, %v196_v48 }
  0xec   :  { %v221_v0 = vmul.f32 0.03125, %v194_v7  ;;  %v978_v31 = vpack.c.bf16 %v676_v16, %v675_v47  ;;  %v2563_v7 = vld [vmem:[%s4064_s10 + $0x20] sm:$0xff]  }
  0xed   :  { %v2608_v17 = vpop.eup %2607  ;;  %v254_v56 = vsub.f32 %v222_v19, %v238_v18  ;;  %2411 = vmatpush3.bf16.msra.mxu1 %v2562_v8 }
  0xee   :  { %v253_v30 = vsub.f32 %v221_v0, %v237_v6  ;;  %v2610_v35 = vpop.eup %2609  ;;  %v200_v11 = vpop.xlane.xlu1 %199  ;;  %v330_v40 = vmul.f32 %v2608_v17, %v282_v10  ;;  %2337 = vmatmul.mubr.bf16.gmra.mrb[12].mxu0 %v978_v31  ;;  %2412 = vmatprep.subr.bf16.mxu1 %v2563_v7  ;;  %v2714_v31 = vld [vmem:[%s4057_s3 + $0x20] sm:$0xff] }
  0xef   :  { %v198_v24 = vpop.xlane.xlu0 %197  ;;  %v270_v9 = vmax.f32 %v254_v56, 0.0  ;;  %v224_v26 = vmul.f32 0.03125, %v200_v11  ;;  %v329_v21 = vmul.f32 %v2610_v35, %v281_v20  ;;  %v2564_v56 = vld [vmem:[%s4064_s10 + $0x28] sm:$0xff]   ;;  %v285_v11 = vsub.f32 %v2714_v31, %v3323_v60 }
  0xf0   :  { %v269_v25 = vmax.f32 %v253_v30, 0.0  ;;  %v223_v27 = vmul.f32 0.03125, %v198_v24  ;;  %v352_v14 = vmul.f32 %v3164_v5, %v330_v40  ;;  %v2713_v30 = vld [vmem:[%s4057_s3 + $0x28] sm:$0xff] }
  0xf1   :  { %v2612_v28 = vpop.eup %2611  ;;  %v302_v29 = vadd.f32 1e-05, %v270_v9  ;;  %v256_v50 = vsub.f32 %v224_v26, %v240_v1  ;;  %v351_v2 = vmul.f32 %v3164_v5, %v329_v21  ;;  %v286_v35 = vsub.f32 %v2713_v30, %v3321_v59  ;;  %v2552_v21 = vld [vmem:[%s4062_s8 + $0x8] sm:$0xff]   ;;  %2413 = vmatpush3.bf16.msra.mxu1 %v2563_v7 }
  0xf2   :  { %v301_v32 = vadd.f32 1e-05, %v269_v25  ;;  %v255_v36 = vsub.f32 %v223_v27, %v239_v44  ;;  %v2614_v39 = vpop.eup %2613  ;;  %v139_v51 = vpop.xlane.xlu1 %138  ;;  %v374_v52 = vadd.f32 %v3175_v23, %v352_v14  ;;  %v332_v37 = vmul.f32 %v2612_v28, %v284_v46  ;;  %2414 = vmatprep.subr.bf16.mxu1 %v2564_v56 }
  0xf3   :  { %v137_v33 = vpop.xlane.xlu0 %136  ;;  %v331_v43 = vmul.f32 %v2614_v39, %v283_v22  ;;  %2615 = vrsqrt.f32 %v302_v29  ;;  %v272_v58 = vmax.f32 %v256_v50, 0.0  ;;  %v373_v42 = vadd.f32 %v3175_v23, %v351_v2 }
  0xf4   :  { %v271_v53 = vmax.f32 %v255_v36, 0.0  ;;  %2617 = vrsqrt.f32 %v301_v32  ;;  %v390_v61 = vmax.f32 %v374_v52, 0.0  ;;  %v3366_v62 = vmul.f32 0.03125, %v139_v51  ;;  %v2715_v32 = vld [vmem:[%s4057_s3 + $0x38] sm:$0xff] }
  0xf5   :  { %v304_v57 = vadd.f32 1e-05, %v272_v58  ;;  %v353_v15 = vmul.f32 %v3164_v5, %v331_v43  ;;  %v3368_v34 = vmul.f32 0.03125, %v137_v33  ;;  %v389_v48 = vmax.f32 %v373_v42, 0.0  ;;  %2415 = vmatpush3.bf16.msra.mxu1 %v2564_v56 }
  0xf6   :  { %v303_v54 = vadd.f32 1e-05, %v271_v53  ;;  %v143_v38 = vpop.xlane.xlu1 %142  ;;  %v354_v12 = vmul.f32 %v3164_v5, %v332_v37  ;;  %v242_v47 = vmul.f32 %v3366_v62, %v3366_v62  ;;  %v288_v50 = vsub.f32 %v2715_v32, %v3327_v49  ;;  %v2553_v49 = vld [vmem:[%s4062_s8 + $0x10] sm:$0xff]  }
  0xf7   :  { %v141_v55 = vpop.xlane.xlu0 %140  ;;  %2619 = vrsqrt.f32 %v304_v57  ;;  %v375_v3 = vadd.f32 %v3175_v23, %v353_v15  ;;  %v3375_v18 = vmul.f32 0.03125, %v143_v38  ;;  %v947_v19 = vpack.c.bf16 %v390_v61, %v389_v48 }
  0xf8   :  { %2621 = vrsqrt.f32 %v303_v54  ;;  %v3377_v6 = vmul.f32 0.03125, %v141_v55  ;;  %v376_v13 = vadd.f32 %v3175_v23, %v354_v12  ;;  %v241_v16 = vmul.f32 %v3368_v34, %v3368_v34 }
  0xf9   :  { %v391_v10 = vmax.f32 %v375_v3, 0.0  ;;  %2356 = vmatprep.mubr.bf16.mxu0 %v947_v19  ;;  %v244_v25 = vmul.f32 %v3375_v18, %v3375_v18 }
  0xfa   :  { %v204_v0 = vpop.xlane.xlu1 %203  ;;  %v392_v1 = vmax.f32 %v376_v13, 0.0  ;;  %v243_v26 = vmul.f32 %v3377_v6, %v3377_v6 }
  0xfb   :  { %v202_v45 = vpop.xlane.xlu0 %201  ;;  %v226_v17 = vmul.f32 0.03125, %v204_v0  ;;  %v2554_v0 = vld [vmem:[%s4062_s8 + $0x18] sm:$0xff]  }
  0xfc   :  { %v225_v20 = vmul.f32 0.03125, %v202_v45  ;;  %v948_v27 = vpack.c.bf16 %v392_v1, %v391_v10  ;;  %v2555_v1 = vld [vmem:[%s4062_s8 + $0x20] sm:$0xff]  }
  0xfd   :  { %v2616_v44 = vpop.eup %2615  ;;  %v258_v24 = vsub.f32 %v226_v17, %v242_v47 }
  0xfe   :  { %v257_v40 = vsub.f32 %v225_v20, %v241_v16  ;;  %v2618_v9 = vpop.eup %2617  ;;  %v208_v59 = vpop.xlane.xlu1 %207  ;;  %v334_v22 = vmul.f32 %v2616_v44, %v286_v35  ;;  %2357 = vmatmul.mubr.bf16.vlgmr.msra.gmra.mrb[0].mxu0 %v948_v27 }
  0xff   :  { %v206_v41 = vpop.xlane.xlu0 %205  ;;  %v274_v14 = vmax.f32 %v258_v24, 0.0  ;;  %v228_v28 = vmul.f32 0.03125, %v208_v59  ;;  %v333_v36 = vmul.f32 %v2618_v9, %v285_v11  ;;  %2373 = vmatpush3.bf16.msra.mxu0 %v3298_v63  ;;  %v2716_v63 = vld [vmem:[%s4057_s3 + $0x30] sm:$0xff]  ;;  %v2718_v59 = vld [vmem:[%s4057_s3 + $0x40] sm:$0xff] }
 0x100   :  { %v273_v60 = vmax.f32 %v257_v40, 0.0  ;;  %v227_v29 = vmul.f32 0.03125, %v206_v41  ;;  %v356_v39 = vmul.f32 %v3164_v5, %v334_v22  ;;  %2374 = vmatprep.subr.bf16.mxu0 %v2552_v21  ;;  %v287_v15 = vsub.f32 %v2716_v63, %v3329_v4  ;;  %v2717_v40 = vld [vmem:[%s4057_s3 + $0x48] sm:$0xff] }
 0x101   :  { %v2620_v46 = vpop.eup %2619  ;;  %v306_v51 = vadd.f32 1e-05, %v274_v14  ;;  %v260_v2 = vsub.f32 %v228_v28, %v244_v25  ;;  %v355_v53 = vmul.f32 %v3164_v5, %v333_v36  ;;  %v290_v9 = vsub.f32 %v2717_v40, %v3366_v62  ;;  %v2556_v36 = vld [vmem:[%s4062_s8 + $0x28] sm:$0xff]  }
 0x102   :  { %v305_v33 = vadd.f32 1e-05, %v273_v60  ;;  %v259_v52 = vsub.f32 %v227_v29, %v243_v26  ;;  %v147_v43 = vpop.xlane.xlu1 %146  ;;  %v378_v8 = vadd.f32 %v3175_v23, %v356_v39  ;;  %v2622_v37 = vpop.eup %2621  ;;  %v336_v54 = vmul.f32 %v2620_v46, %v288_v50 }
 0x103   :  { %v145_v58 = vpop.xlane.xlu0 %144  ;;  %2623 = vrsqrt.f32 %v306_v51  ;;  %v276_v42 = vmax.f32 %v260_v2, 0.0  ;;  %v377_v38 = vadd.f32 %v3175_v23, %v355_v53  ;;  %2375 = vmatpush3.bf16.msra.mxu0 %v2552_v21  ;;  %v335_v19 = vmul.f32 %v2622_v37, %v287_v15 }
 0x104   :  { %v275_v57 = vmax.f32 %v259_v52, 0.0  ;;  %2625 = vrsqrt.f32 %v305_v33  ;;  %v394_v55 = vmax.f32 %v378_v8, 0.0  ;;  %2376 = vmatprep.subr.bf16.mxu0 %v2553_v49  ;;  %v3421_v45 = vmul.f32 0.03125, %v147_v43  ;;  %v2719_v33 = vld [vmem:[%s4057_s3 + $0x58] sm:$0xff] }
 0x105   :  { %v308_v61 = vadd.f32 1e-05, %v276_v42  ;;  %v393_v3 = vmax.f32 %v377_v38, 0.0  ;;  %v3423_v4 = vmul.f32 0.03125, %v145_v58  ;;  %v358_v13 = vmul.f32 %v3164_v5, %v336_v54 }
 0x106   :  { %v307_v48 = vadd.f32 1e-05, %v275_v57  ;;  %v151_v7 = vpop.xlane.xlu1 %150  ;;  %v357_v47 = vmul.f32 %v3164_v5, %v335_v19  ;;  %v246_v44 = vmul.f32 %v3421_v45, %v3421_v45  ;;  %v289_v41 = vsub.f32 %v2718_v59, %v3368_v34 }
 0x107   :  { %v149_v12 = vpop.xlane.xlu0 %148  ;;  %2627 = vrsqrt.f32 %v308_v61  ;;  %v949_v10 = vpack.c.bf16 %v394_v55, %v393_v3  ;;  %2377 = vmatpush3.bf16.msra.mxu0 %v2553_v49  ;;  %v3427_v16 = vmul.f32 0.03125, %v151_v7  ;;  %v380_v35 = vadd.f32 %v3175_v23, %v358_v13 }
 0x108   :  { %2629 = vrsqrt.f32 %v307_v48  ;;  %v3429_v17 = vmul.f32 0.03125, %v149_v12  ;;  %v379_v30 = vadd.f32 %v3175_v23, %v357_v47  ;;  %2378 = vmatprep.subr.bf16.mxu0 %v2554_v0  ;;  %v245_v31 = vmul.f32 %v3423_v4, %v3423_v4  ;;  %v2720_v48 = vld [vmem:[%s4057_s3 + $0x50] sm:$0xff] }
 0x109   :  { %2360 = vmatprep.mubr.bf16.mxu0 %v949_v10  ;;  %v396_v26 = vmax.f32 %v380_v35, 0.0  ;;  %v248_v60 = vmul.f32 %v3427_v16, %v3427_v16  ;;  %v292_v2 = vsub.f32 %v2719_v33, %v3375_v18  ;;  %v2557_v18 = vld [vmem:[%s4062_s8 + $0x30] sm:$0xff]   ;;  %v291_v7 = vsub.f32 %v2720_v48, %v3377_v6 }
 0x10a   :  { %v212_v20 = vpop.xlane.xlu1 %211  ;;  %v395_v25 = vmax.f32 %v379_v30, 0.0  ;;  %v247_v28 = vmul.f32 %v3429_v17, %v3429_v17 }
 0x10b   :  { %v210_v56 = vpop.xlane.xlu0 %209  ;;  %v230_v11 = vmul.f32 0.03125, %v212_v20  ;;  %2379 = vmatpush3.bf16.msra.mxu0 %v2554_v0 }
 0x10c   :  { %v229_v24 = vmul.f32 0.03125, %v210_v56  ;;  %v950_v62 = vpack.c.bf16 %v396_v26, %v395_v25  ;;  %2380 = vmatprep.subr.bf16.mxu0 %v2555_v1  ;;  %v2558_v56 = vld [vmem:[%s4062_s8 + $0x38] sm:$0xff]  }
 0x10d   :  { %v2624_v27 = vpop.eup %2623  ;;  %v262_v22 = vsub.f32 %v230_v11, %v246_v44 }
 0x10e   :  { %v261_v21 = vsub.f32 %v229_v24, %v245_v31  ;;  %v2626_v14 = vpop.eup %2625  ;;  %v216_v29 = vpop.xlane.xlu1 %215  ;;  %v338_v50 = vmul.f32 %v2624_v27, %v290_v9  ;;  %2361 = vmatmul.mubr.bf16.gmra.mrb[4].mxu0 %v950_v62 }
 0x10f   :  { %v214_v32 = vpop.xlane.xlu0 %213  ;;  %v278_v34 = vmax.f32 %v262_v22, 0.0  ;;  %v232_v46 = vmul.f32 0.03125, %v216_v29  ;;  %v337_v52 = vmul.f32 %v2626_v14, %v289_v41  ;;  %2381 = vmatpush3.bf16.msra.mxu0 %v2555_v1  ;;  %v2721_v41 = vld [vmem:[%s4057_s3 + $0x68] sm:$0xff] }
 0x110   :  { %v277_v39 = vmax.f32 %v261_v21, 0.0  ;;  %v231_v51 = vmul.f32 0.03125, %v214_v32  ;;  %v360_v43 = vmul.f32 %v3164_v5, %v338_v50  ;;  %2382 = vmatprep.subr.bf16.mxu0 %v2556_v36  ;;  %v294_v22 = vsub.f32 %v2721_v41, %v3421_v45 }
 0x111   :  { %v2628_v58 = vpop.eup %2627  ;;  %v310_v53 = vadd.f32 1e-05, %v278_v34  ;;  %v264_v49 = vsub.f32 %v232_v46, %v248_v60  ;;  %v359_v54 = vmul.f32 %v3164_v5, %v337_v52 }
 0x112   :  { %v309_v8 = vadd.f32 1e-05, %v277_v39  ;;  %v263_v37 = vsub.f32 %v231_v51, %v247_v28  ;;  %v682_v42 = vpop.xlane.xlu1 %681  ;;  %v382_v63 = vadd.f32 %v3175_v23, %v360_v43  ;;  %v2630_v15 = vpop.eup %2629  ;;  %v340_v61 = vmul.f32 %v2628_v58, %v292_v2 }
 0x113   :  { %v680_v57 = vpop.xlane.xlu0 %679  ;;  %2631 = vrsqrt.f32 %v310_v53  ;;  %v280_v38 = vmax.f32 %v264_v49, 0.0  ;;  %v381_v12 = vadd.f32 %v3175_v23, %v359_v54  ;;  %2383 = vmatpush3.bf16.msra.mxu0 %v2556_v36  ;;  %v339_v20 = vmul.f32 %v2630_v15, %v291_v7  ;;  %v2724_v53 = vld [vmem:[%s4067_s13] ss:$0 sm:$0xff] }
 0x114   :  { %v279_v55 = vmax.f32 %v263_v37, 0.0  ;;  %2633 = vrsqrt.f32 %v309_v8  ;;  %v398_v3 = vmax.f32 %v382_v63, 0.0  ;;  %2384 = vmatprep.subr.bf16.mxu0 %v2557_v18  ;;  %v3473_v30 = vmul.f32 0.03125, %v682_v42  ;;  %v2725_v15 = vld [vmem:[%s4068_s14] ss:$0 sm:$0xff] }
 0x115   :  { %v312_v19 = vadd.f32 1e-05, %v280_v38  ;;  %v397_v47 = vmax.f32 %v381_v12, 0.0  ;;  %v3475_v6 = vmul.f32 0.03125, %v680_v57  ;;  %v362_v35 = vmul.f32 %v3164_v5, %v340_v61  ;;  %v2726_v12 = vld [vmem:[%s4057_s3 + $0x70] sm:$0xff] }
 0x116   :  { %v311_v0 = vadd.f32 1e-05, %v279_v55  ;;  %v686_v13 = vpop.xlane.xlu1 %685  ;;  %v361_v44 = vmul.f32 %v3164_v5, %v339_v20  ;;  %v792_v26 = vmul.f32 %v3473_v30, %v3473_v30 }
 0x117   :  { %v684_v10 = vpop.xlane.xlu0 %683  ;;  %2635 = vrsqrt.f32 %v312_v19  ;;  %v951_v1 = vpack.c.bf16 %v398_v3, %v397_v47  ;;  %2385 = vmatpush3.bf16.msra.mxu0 %v2557_v18  ;;  %v3479_v31 = vmul.f32 0.03125, %v686_v13  ;;  %v384_v25 = vadd.f32 %v3175_v23, %v362_v35 }
 0x118   :  { %2637 = vrsqrt.f32 %v311_v0  ;;  %v3481_v11 = vmul.f32 0.03125, %v684_v10  ;;  %v383_v9 = vadd.f32 %v3175_v23, %v361_v44  ;;  %2386 = vmatprep.subr.bf16.mxu0 %v2558_v56  ;;  %v791_v5 = vmul.f32 %v3475_v6, %v3475_v6  ;;  %v2722_v23 = vld [vmem:[%s4057_s3 + $0x60] sm:$0xff] }
 0x119   :  { %2364 = vmatprep.mubr.bf16.mxu0 %v951_v1  ;;  %v400_v14 = vmax.f32 %v384_v25, 0.0  ;;  %v293_v28 = vsub.f32 %v2722_v23, %v3423_v4  ;;  %v794_v50 = vmul.f32 %v3479_v31, %v3479_v31  ;;  %v2723_v4 = vld [vmem:[%s4057_s3 + $0x78] sm:$0xff]  ;;  %v295_v3 = vsub.f32 %v2726_v12, %v3429_v17  ;;  %v3522_v17 = vld [vmem:[%s4059_s5 + $0x8] sm:$0xff]  ;;  %s2771_s3 = smov [#allocation6]  }
 0x11a   :  { %v746_v24 = vpop.xlane.xlu1 %745  ;;  %v399_v21 = vmax.f32 %v383_v9, 0.0  ;;  %v793_v36 = vmul.f32 %v3481_v11, %v3481_v11  ;;  %v296_v43 = vsub.f32 %v2723_v4, %v3427_v16 }
 0x11b   :  { %v744_v40 = vpop.xlane.xlu0 %743  ;;  %v776_v27 = vmul.f32 0.03125, %v746_v24  ;;  %2387 = vmatpush3.bf16.msra.mxu0 %v2558_v56 }
 0x11c   :  { %v775_v59 = vmul.f32 0.03125, %v744_v40  ;;  %v952_v45 = vpack.c.bf16 %v400_v14, %v399_v21 }
 0x11d   :  { %v2632_v60 = vpop.eup %2631  ;;  %v808_v62 = vsub.f32 %v776_v27, %v792_v26  ;;  %v840_v26 = vsub.f32 %v3522_v17, %v3473_v30  ;;  %v3537_v30 = vld [vmem:[%s4059_s5] sm:$0xff] }
 0x11e   :  { %v807_v29 = vsub.f32 %v775_v59, %v791_v5  ;;  %v2634_v32 = vpop.eup %2633  ;;  %v750_v34 = vpop.xlane.xlu1 %749  ;;  %v342_v46 = vmul.f32 %v2632_v60, %v294_v22  ;;  %2365 = vmatmul.mubr.bf16.gmra.mrb[8].mxu0 %v952_v45 }
 0x11f   :  { %v748_v39 = vpop.xlane.xlu0 %747  ;;  %v824_v51 = vmax.f32 %v808_v62, 0.0  ;;  %v778_v2 = vmul.f32 0.03125, %v750_v34  ;;  %v341_v58 = vmul.f32 %v2634_v32, %v293_v28  ;;  %v839_v32 = vsub.f32 %v3537_v30, %v3475_v6  ;;  %v3549_v34 = vld [vmem:[%s4059_s5 + $0x18] sm:$0xff] }
 0x120   :  { %v823_v33 = vmax.f32 %v807_v29, 0.0  ;;  %v777_v52 = vmul.f32 0.03125, %v748_v39  ;;  %v364_v8 = vmul.f32 %v2724_v53, %v342_v46  ;;  %v842_v39 = vsub.f32 %v3549_v34, %v3479_v31 }
 0x121   :  { %v2636_v49 = vpop.eup %2635  ;;  %v856_v37 = vadd.f32 1e-05, %v824_v51  ;;  %v810_v57 = vsub.f32 %v778_v2, %v794_v50  ;;  %v363_v18 = vmul.f32 %v2724_v53, %v341_v58  ;;  %v3558_v58 = vld [vmem:[%s4070_s16] ss:$0 sm:$0xff] }
 0x122   :  { %v855_v42 = vadd.f32 1e-05, %v823_v33  ;;  %v809_v54 = vsub.f32 %v777_v52, %v793_v36  ;;  %v690_v63 = vpop.xlane.xlu1 %689  ;;  %v386_v38 = vadd.f32 %v2725_v15, %v364_v8  ;;  %v2638_v16 = vpop.eup %2637  ;;  %v344_v7 = vmul.f32 %v2636_v49, %v296_v43  ;;  %v3544_v36 = vld [vmem:[%s4069_s15] ss:$0 sm:$0xff] }
 0x123   :  { %2639 = vrsqrt.f32 %v856_v37  ;;  %v826_v55 = vmax.f32 %v810_v57, 0.0  ;;  %v688_v48 = vpop.xlane.xlu0 %687  ;;  %v385_v19 = vadd.f32 %v2725_v15, %v363_v18  ;;  %v343_v56 = vmul.f32 %v2638_v16, %v295_v3  ;;  %v3566_v57 = vld [vmem:[%s4059_s5 + $0x10] sm:$0xff] }
 0x124   :  { %v825_v61 = vmax.f32 %v809_v54, 0.0  ;;  %2641 = vrsqrt.f32 %v855_v42  ;;  %v402_v0 = vmax.f32 %v386_v38, 0.0  ;;  %v3515_v35 = vmul.f32 0.03125, %v690_v63 }
 0x125   :  { %v858_v13 = vadd.f32 1e-05, %v826_v55  ;;  %v401_v20 = vmax.f32 %v385_v19, 0.0  ;;  %v366_v44 = vmul.f32 %v2724_v53, %v344_v7  ;;  %v3517_v24 = vmul.f32 0.03125, %v688_v48 }
 0x126   :  { %v857_v10 = vadd.f32 1e-05, %v825_v61  ;;  %v694_v47 = vpop.xlane.xlu1 %693  ;;  %v365_v9 = vmul.f32 %v2724_v53, %v343_v56  ;;  %v796_v59 = vmul.f32 %v3515_v35, %v3515_v35  ;;  %v841_v54 = vsub.f32 %v3566_v57, %v3481_v11 }
 0x127   :  { %2643 = vrsqrt.f32 %v858_v13  ;;  %v692_v1 = vpop.xlane.xlu0 %691  ;;  %v953_v40 = vpack.c.bf16 %v402_v0, %v401_v20  ;;  %v388_v25 = vadd.f32 %v2725_v15, %v366_v44  ;;  %v3528_v41 = vmul.f32 0.03125, %v694_v47 }
 0x128   :  { %2645 = vrsqrt.f32 %v857_v10  ;;  %v387_v27 = vadd.f32 %v2725_v15, %v365_v9  ;;  %v795_v60 = vmul.f32 %v3517_v24, %v3517_v24  ;;  %v3532_v23 = vmul.f32 0.03125, %v692_v1 }
 0x129   :  { %2368 = vmatprep.mubr.bf16.mxu0 %v953_v40  ;;  %v404_v14 = vmax.f32 %v388_v25, 0.0  ;;  %v798_v6 = vmul.f32 %v3528_v41, %v3528_v41 }
 0x12a   :  { %v754_v5 = vpop.xlane.xlu1 %753  ;;  %v403_v62 = vmax.f32 %v387_v27, 0.0  ;;  %v797_v8 = vmul.f32 %v3532_v23, %v3532_v23 }
 0x12b   :  { %v780_v22 = vmul.f32 0.03125, %v754_v5  ;;  %v752_v21 = vpop.xlane.xlu0 %751 }
 0x12c   :  { %v779_v28 = vmul.f32 0.03125, %v752_v21  ;;  %v954_v51 = vpack.c.bf16 %v404_v14, %v403_v62 }
 0x12d   :  { %v2640_v29 = vpop.eup %2639  ;;  %v812_v50 = vsub.f32 %v780_v22, %v796_v59 }
 0x12e   :  { %v2642_v45 = vpop.eup %2641  ;;  %v811_v46 = vsub.f32 %v779_v28, %v795_v60  ;;  %v758_v33 = vpop.xlane.xlu1 %757  ;;  %v888_v2 = vmul.f32 %v2640_v29, %v840_v26  ;;  %2369 = vmatmul.mubr.bf16.gmra.mrb[12].mxu0 %v954_v51  ;;  %v3588_v60 = vld [vmem:[%s4059_s5 + $0x28] sm:$0xff] }
 0x12f   :  { %v828_v52 = vmax.f32 %v812_v50, 0.0  ;;  %v782_v4 = vmul.f32 0.03125, %v758_v33  ;;  %v756_v43 = vpop.xlane.xlu0 %755  ;;  %v887_v53 = vmul.f32 %v2642_v45, %v839_v32  ;;  %v844_v28 = vsub.f32 %v3588_v60, %v3515_v35  ;;  %v3599_v45 = vld [vmem:[%s4059_s5 + $0x20] sm:$0xff] }
 0x130   :  { %v827_v31 = vmax.f32 %v811_v46, 0.0  ;;  %v781_v49 = vmul.f32 0.03125, %v756_v43  ;;  %v910_v37 = vmul.f32 %v3544_v36, %v888_v2 }
 0x131   :  { %v2644_v42 = vpop.eup %2643  ;;  %v860_v63 = vadd.f32 1e-05, %v828_v52  ;;  %v814_v18 = vsub.f32 %v782_v4, %v798_v6  ;;  %v909_v15 = vmul.f32 %v3544_v36, %v887_v53 }
 0x132   :  { %v2646_v38 = vpop.eup %2645  ;;  %v859_v16 = vadd.f32 1e-05, %v827_v31  ;;  %v813_v55 = vsub.f32 %v781_v49, %v797_v8  ;;  %v698_v61 = vpop.xlane.xlu1 %697  ;;  %v932_v48 = vadd.f32 %v3558_v58, %v910_v37  ;;  %v890_v7 = vmul.f32 %v2644_v42, %v842_v39  ;;  %v3611_v42 = vld [vmem:[%s4059_s5 + $0x38] sm:$0xff] }
 0x133   :  { %v889_v12 = vmul.f32 %v2646_v38, %v841_v54  ;;  %2647 = vrsqrt.f32 %v860_v63  ;;  %v830_v3 = vmax.f32 %v814_v18, 0.0  ;;  %v696_v19 = vpop.xlane.xlu0 %695  ;;  %v931_v13 = vadd.f32 %v3558_v58, %v909_v15 }
 0x134   :  { %2649 = vrsqrt.f32 %v859_v16  ;;  %v829_v0 = vmax.f32 %v813_v55, 0.0  ;;  %v3574_v1 = vmul.f32 0.03125, %v698_v61  ;;  %v912_v40 = vmul.f32 %v3544_v36, %v890_v7  ;;  %v3619_v16 = vld [vmem:[%s4059_s5 + $0x30] sm:$0xff] }
 0x135   :  { %v862_v11 = vadd.f32 1e-05, %v830_v3  ;;  %v911_v10 = vmul.f32 %v3544_v36, %v889_v12  ;;  %v1285_v56 = vpack.c.bf16 %v932_v48, %v931_v13  ;;  %v3578_v25 = vmul.f32 0.03125, %v696_v19 }
 0x136   :  { %v861_v47 = vadd.f32 1e-05, %v829_v0  ;;  %v702_v20 = vpop.xlane.xlu1 %701  ;;  %v934_v26 = vadd.f32 %v3558_v58, %v912_v40  ;;  %v800_v27 = vmul.f32 %v3574_v1, %v3574_v1  ;;  %v843_v39 = vsub.f32 %v3599_v45, %v3517_v24 }
 0x137   :  { %2651 = vrsqrt.f32 %v862_v11  ;;  %v700_v44 = vpop.xlane.xlu0 %699  ;;  %v933_v9 = vadd.f32 %v3558_v58, %v911_v10  ;;  %2388 = vmatprep.mubr.bf16.mxu0 %v1285_v56  ;;  %v3583_v59 = vmul.f32 0.03125, %v702_v20  ;;  %v799_v62 = vmul.f32 %v3578_v25, %v3578_v25 }
 0x138   :  { %2653 = vrsqrt.f32 %v861_v47  ;;  %v3594_v29 = vmul.f32 0.03125, %v700_v44  ;;  %v846_v54 = vsub.f32 %v3611_v42, %v3528_v41  ;;  %v845_v55 = vsub.f32 %v3619_v16, %v3532_v23 }
 0x139   :  { %v1286_v21 = vpack.c.bf16 %v934_v26, %v933_v9  ;;  %v802_v6 = vmul.f32 %v3583_v59, %v3583_v59 }
 0x13a   :  { %v762_v5 = vpop.xlane.xlu1 %761  ;;  %v801_v8 = vmul.f32 %v3594_v29, %v3594_v29 }
 0x13b   :  { %v784_v22 = vmul.f32 0.03125, %v762_v5  ;;  %v760_v14 = vpop.xlane.xlu0 %759  ;;  %2389 = vmatmul.mubr.bf16.vlgmr.msra.gmra.mrb[0].mxu0 %v1286_v21 }
 0x13c   :  { %v783_v32 = vmul.f32 0.03125, %v760_v14 }
 0x13d   :  { %v2648_v50 = vpop.eup %2647  ;;  %v816_v46 = vsub.f32 %v784_v22, %v800_v27 }
 0x13e   :  { %v2650_v51 = vpop.eup %2649  ;;  %v815_v33 = vsub.f32 %v783_v32, %v799_v62  ;;  %v766_v35 = vpop.xlane.xlu1 %765  ;;  %v892_v2 = vmul.f32 %v2648_v50, %v844_v28  ;;  %v3640_v50 = vld [vmem:[%s4059_s5 + $0x48] sm:$0xff] }
 0x13f   :  { %v832_v52 = vmax.f32 %v816_v46, 0.0  ;;  %v786_v4 = vmul.f32 0.03125, %v766_v35  ;;  %v764_v43 = vpop.xlane.xlu0 %763  ;;  %v891_v53 = vmul.f32 %v2650_v51, %v843_v39  ;;  %v848_v39 = vsub.f32 %v3640_v50, %v3574_v1  ;;  %v3658_v1 = vld [vmem:[%s4059_s5 + $0x58] sm:$0xff] }
 0x140   :  { %v831_v31 = vmax.f32 %v815_v33, 0.0  ;;  %v785_v49 = vmul.f32 0.03125, %v764_v43  ;;  %v914_v24 = vmul.f32 %v3544_v36, %v892_v2  ;;  %v3651_v2 = vld [vmem:[%s4059_s5 + $0x40] sm:$0xff]  ;;  %v850_v43 = vsub.f32 %v3658_v1, %v3583_v59  ;;  %v3670_v59 = vld [vmem:[%s4059_s5 + $0x50] sm:$0xff] }
 0x141   :  { %v2652_v37 = vpop.eup %2651  ;;  %v864_v63 = vadd.f32 1e-05, %v832_v52  ;;  %v818_v18 = vsub.f32 %v786_v4, %v802_v6  ;;  %v913_v15 = vmul.f32 %v3544_v36, %v891_v53  ;;  %v847_v6 = vsub.f32 %v3651_v2, %v3578_v25 }
 0x142   :  { %v2654_v38 = vpop.eup %2653  ;;  %v863_v61 = vadd.f32 1e-05, %v831_v31  ;;  %v817_v48 = vsub.f32 %v785_v49, %v801_v8  ;;  %v706_v7 = vpop.xlane.xlu1 %705  ;;  %v936_v12 = vadd.f32 %v3558_v58, %v914_v24  ;;  %v894_v0 = vmul.f32 %v2652_v37, %v846_v54 }
 0x143   :  { %2655 = vrsqrt.f32 %v864_v63  ;;  %v834_v41 = vmax.f32 %v818_v18, 0.0  ;;  %v704_v3 = vpop.xlane.xlu0 %703  ;;  %v935_v19 = vadd.f32 %v3558_v58, %v913_v15  ;;  %v893_v11 = vmul.f32 %v2654_v38, %v845_v55 }
 0x144   :  { %2657 = vrsqrt.f32 %v863_v61  ;;  %v833_v13 = vmax.f32 %v817_v48, 0.0  ;;  %v3626_v44 = vmul.f32 0.03125, %v706_v7  ;;  %v916_v9 = vmul.f32 %v3544_v36, %v894_v0 }
 0x145   :  { %v866_v10 = vadd.f32 1e-05, %v834_v41  ;;  %v1287_v47 = vpack.c.bf16 %v936_v12, %v935_v19  ;;  %v915_v23 = vmul.f32 %v3544_v36, %v893_v11  ;;  %v3629_v26 = vmul.f32 0.03125, %v704_v3 }
 0x146   :  { %v865_v20 = vadd.f32 1e-05, %v833_v13  ;;  %v710_v56 = vpop.xlane.xlu1 %709  ;;  %v938_v27 = vadd.f32 %v3558_v58, %v916_v9  ;;  %v804_v21 = vmul.f32 %v3626_v44, %v3626_v44  ;;  %v849_v61 = vsub.f32 %v3670_v59, %v3594_v29 }
 0x147   :  { %2659 = vrsqrt.f32 %v866_v10  ;;  %2392 = vmatprep.mubr.bf16.mxu0 %v1287_v47  ;;  %v708_v40 = vpop.xlane.xlu0 %707  ;;  %v937_v5 = vadd.f32 %v3558_v58, %v915_v23  ;;  %v3635_v14 = vmul.f32 0.03125, %v710_v56  ;;  %v803_v46 = vmul.f32 %v3629_v26, %v3629_v26 }
 0x148   :  { %2661 = vrsqrt.f32 %v865_v20  ;;  %v3646_v51 = vmul.f32 0.03125, %v708_v40 }
 0x149   :  { %v1288_v62 = vpack.c.bf16 %v938_v27, %v937_v5  ;;  %v806_v49 = vmul.f32 %v3635_v14, %v3635_v14 }
 0x14a   :  { %v770_v22 = vpop.xlane.xlu1 %769  ;;  %v805_v63 = vmul.f32 %v3646_v51, %v3646_v51 }
 0x14b   :  { %v788_v28 = vmul.f32 0.03125, %v770_v22  ;;  %v768_v32 = vpop.xlane.xlu0 %767  ;;  %2393 = vmatmul.mubr.bf16.gmra.mrb[4].mxu0 %v1288_v62 }
 0x14c   :  { %v787_v33 = vmul.f32 0.03125, %v768_v32  ;;  %v3691_v32 = vld [vmem:[%s4059_s5 + $0x60] sm:$0xff] }
 0x14d   :  { %v2656_v35 = vpop.eup %2655  ;;  %v820_v52 = vsub.f32 %v788_v28, %v804_v21  ;;  %v3684_v21 = vld [vmem:[%s4059_s5 + $0x68] sm:$0xff] }
 0x14e   :  { %v2658_v4 = vpop.eup %2657  ;;  %v819_v53 = vsub.f32 %v787_v33, %v803_v46  ;;  %v774_v8 = vpop.xlane.xlu1 %773  ;;  %v896_v31 = vmul.f32 %v2656_v35, %v848_v39  ;;  %v852_v28 = vsub.f32 %v3684_v21, %v3626_v44  ;;  %v851_v39 = vsub.f32 %v3691_v32, %v3629_v26 }
 0x14f   :  { %v836_v24 = vmax.f32 %v820_v52, 0.0  ;;  %v790_v37 = vmul.f32 0.03125, %v774_v8  ;;  %v772_v25 = vpop.xlane.xlu0 %771  ;;  %v895_v54 = vmul.f32 %v2658_v4, %v847_v6  ;;  %v3698_v6 = vld [vmem:[%s4059_s5 + $0x78] sm:$0xff] }
 0x150   :  { %v835_v18 = vmax.f32 %v819_v53, 0.0  ;;  %v789_v15 = vmul.f32 0.03125, %v772_v25  ;;  %v918_v38 = vmul.f32 %v3544_v36, %v896_v31  ;;  %v854_v44 = vsub.f32 %v3698_v6, %v3635_v14 }
 0x151   :  { %v2660_v55 = vpop.eup %2659  ;;  %v868_v48 = vadd.f32 1e-05, %v836_v24  ;;  %v822_v7 = vsub.f32 %v790_v37, %v806_v49  ;;  %v917_v12 = vmul.f32 %v3544_v36, %v895_v54 }
 0x152   :  { %v2662_v41 = vpop.eup %2661  ;;  %v867_v3 = vadd.f32 1e-05, %v835_v18  ;;  %v821_v19 = vsub.f32 %v789_v15, %v805_v63  ;;  %v940_v0 = vadd.f32 %v3558_v58, %v918_v38  ;;  %v898_v13 = vmul.f32 %v2660_v55, %v850_v43  ;;  %v3706_v43 = vld [vmem:[%s4059_s5 + $0x70] sm:$0xff]  ;;  %v2566_v38 = vld [vmem:[%s4064_s10 + $0x38] sm:$0xff]  }
 0x153   :  { %2663 = vrsqrt.f32 %v868_v48  ;;  %v838_v11 = vmax.f32 %v822_v7, 0.0  ;;  %v939_v10 = vadd.f32 %v3558_v58, %v917_v12  ;;  %v897_v47 = vmul.f32 %v2662_v41, %v849_v61  ;;  %v2565_v15 = vld [vmem:[%s4064_s10 + $0x30] sm:$0xff]   ;;  %v2190_v48 = vld [vmem:[%s4063_s9] ss:$0 sm:$0xff]  ;;  %s4079_s10 = sld [smem:[#allocation9_spill]]  ;;  %s2149_s9 = sshll.u32 %s2771_s3, 4  ;;  %s2150_s9 = int_to_ptr.vmem [resolvable:$true] %s2149_s9 }
 0x154   :  { %2665 = vrsqrt.f32 %v867_v3  ;;  %v837_v20 = vmax.f32 %v821_v19, 0.0  ;;  %v920_v56 = vmul.f32 %v3544_v36, %v898_v13  ;;  %v853_v26 = vsub.f32 %v3706_v43, %v3646_v51  ;;  %2416 = vmatprep.subr.bf16.mxu1 %v2565_v15  ;;  %s2743_s29 = scalar_lea.vmem %s2150_s9, 2048  ;;  %p2748_p1 = scmp.lt.s32.totalorder %s2150_s9, %s2150_s9 }
 0x155   :  { %v870_v29 = vadd.f32 1e-05, %v838_v11  ;;  %v1289_v23 = vpack.c.bf16 %v940_v0, %v939_v10  ;;  %v919_v40 = vmul.f32 %v3544_v36, %v897_v47  ;;  %2417 = vmatpush3.bf16.msra.mxu1 %v2565_v15  ;;  %p2744_p0 = scmp.ne.s32.totalorder %s2150_s9, %s2743_s29  ;;  %p2749_p2 = scmp.lt.s32.totalorder %s2743_s29, %s2743_s29 }
 0x156   :  { %v869_v9 = vadd.f32 1e-05, %v837_v20  ;;  %v942_v5 = vadd.f32 %v3558_v58, %v920_v56  ;;  %2418 = vmatprep.subr.bf16.mxu1 %v2566_v38 }
 0x157   :  { %2667 = vrsqrt.f32 %v870_v29  ;;  %2396 = vmatprep.mubr.bf16.mxu0 %v1289_v23  ;;  %v941_v27 = vadd.f32 %v3558_v58, %v919_v40  ;;  %p2750_p3 = por %p2749_p2, %p2748_p1 }
 0x158   :  { %2669 = vrsqrt.f32 %v869_v9 }
 0x159   :  { %v1290_v22 = vpack.c.bf16 %v942_v5, %v941_v27  ;;  %2419 = vmatpush3.bf16.msra.mxu1 %v2566_v38  ;;  %p2751_p4 = pnand %p2750_p3, %p2744_p0 }
 0x15b   :  { %2397 = vmatmul.mubr.bf16.gmra.mrb[8].mxu0 %v1290_v22 }
 0x15d   :  { %v2664_v62 = vpop.eup %2663 }
 0x15e   :  { %v2666_v46 = vpop.eup %2665  ;;  %v900_v33 = vmul.f32 %v2664_v62, %v852_v28 }
 0x15f   :  { %v899_v35 = vmul.f32 %v2666_v46, %v851_v39 }
 0x160   :  { %v922_v52 = vmul.f32 %v3544_v36, %v900_v33 }
 0x161   :  { %v2668_v4 = vpop.eup %2667  ;;  %v921_v53 = vmul.f32 %v3544_v36, %v899_v35 }
 0x162   :  { %v2670_v8 = vpop.eup %2669  ;;  %v944_v31 = vadd.f32 %v3558_v58, %v922_v52  ;;  %v902_v49 = vmul.f32 %v2668_v4, %v854_v44 }
 0x163   :  { %v943_v24 = vadd.f32 %v3558_v58, %v921_v53  ;;  %v901_v14 = vmul.f32 %v2670_v8, %v853_v26 }
 0x164   :  { %v924_v37 = vmul.f32 %v3544_v36, %v902_v49 }
 0x165   :  { %v1291_v25 = vpack.c.bf16 %v944_v31, %v943_v24  ;;  %v923_v54 = vmul.f32 %v3544_v36, %v901_v14  ;;  %v3726_v36 = vld [vmem:[%s4077_s27 + $0x8] sm:$0xff] }
 0x166   :  { %v946_v63 = vadd.f32 %v3558_v58, %v924_v37  ;;  %1986 = vadd.xlane.f32.xlu1 %v3726_v36  ;;  %v1991_v55 = vmul.f32 %v3726_v36, %v3726_v36 }
 0x167   :  { %2400 = vmatprep.mubr.bf16.mxu0 %v1291_v25  ;;  %v945_v18 = vadd.f32 %v3558_v58, %v923_v54  ;;  %v3731_v58 = vld [vmem:[%s4077_s27] sm:$0xff] }
 0x168   :  { %1984 = vadd.xlane.f32.xlu0 %v3731_v58  ;;  %v1990_v61 = vmul.f32 %v3731_v58, %v3731_v58 }
 0x169   :  { %v1292_v51 = vpack.c.bf16 %v946_v63, %v945_v18 }
 0x16a   :  { %1994 = vadd.xlane.f32.xlu1 %v1991_v55 }
 0x16b   :  { %2401 = vmatmul.mubr.bf16.gmra.mrb[12].mxu0 %v1292_v51 }
 0x16c   :  { %1992 = vadd.xlane.f32.xlu0 %v1990_v61 }
 0x20e   :  { %v2390_v7 = vpop.f32.mrb[0].mxu0 }
 0x20f   :  { %v1479_v12 = vadd.f32 %v2390_v7, %v2190_v48  ;;  %v1391_v41 = vpop.f32.mrb[1].mxu0 }
 0x210   :  { %v1477_v3 = vadd.f32 %v2190_v48, %v1391_v41  ;;  %v2391_v19 = vpop.f32.mrb[2].mxu0 }
 0x211   :  { %v1480_v0 = vadd.f32 %v2391_v19, %v2190_v48  ;;  %v1394_v13 = vpop.f32.mrb[3].mxu0  ;;  %v1495_v10 = vmax.f32 %v1479_v12, 0.0 }
 0x212   :  { %v1478_v11 = vadd.f32 %v2190_v48, %v1394_v13  ;;  %v1493_v20 = vmax.f32 %v1477_v3, 0.0 }
 0x213   :  { %v1496_v47 = vmax.f32 %v1480_v0, 0.0 }
 0x214   :  { %v1494_v56 = vmax.f32 %v1478_v11, 0.0 }
 0x215   :  { %v1510_v29 = vpack.c.bf16 %v1496_v47, %v1495_v10 }
 0x216   :  { %v1509_v23 = vpack.c.bf16 %v1494_v56, %v1493_v20  ;;  %v2767_v56 = vmov -1e+30  }
 0x217   :  { %65 = vst [vmem:[#allocation2] sm:$0x1] %v2767_v56 }
 0x218   :  { %2420 = vmatprep.mubr.bf16.mxu1 %v1509_v23  ;;  %v1987_v23 = vpop.xlane.xlu1 %1986 }
 0x219   :  { %2421 = vmatmul.mubr.bf16.vlgmr.msra.gmra.mrb[0].mxu1 %v1510_v29  ;;  %v2768_v29 = vmov 0.0  }
 0x21a   :  { %2436 = vmatprep.subr.bf16.mxu1 %v2768_v29  ;;  %2476 = vmatprep.subr.bf16.mxu0 %v2768_v29 }
 0x21b   :  { %2492 = vmatprep.mubr.msk.bf16.mxu0 %vm2769_vm0, %v2768_v29 }
 0x21e   :  { %v2394_v40 = vpop.f32.mrb[4].mxu0 }
 0x21f   :  { %v1483_v9 = vadd.f32 %v2394_v40, %v2190_v48  ;;  %v1407_v5 = vpop.f32.mrb[5].mxu0  ;;  %v1985_v40 = vpop.xlane.xlu0 %1984 }
 0x220   :  { %v1481_v27 = vadd.f32 %v2190_v48, %v1407_v5  ;;  %v2395_v22 = vpop.f32.mrb[6].mxu0  ;;  %v1988_v5 = vmul.f32 0.03125, %v1985_v40 }
 0x221   :  { %v1484_v28 = vadd.f32 %v2395_v22, %v2190_v48  ;;  %v1410_v62 = vpop.f32.mrb[7].mxu0  ;;  %v1499_v46 = vmax.f32 %v1483_v9, 0.0  ;;  %v1989_v9 = vmul.f32 0.03125, %v1987_v23  ;;  %v2567_v22 = vld [vmem:[%s4066_s12] sm:$0xff]  }
 0x222   :  { %v1482_v39 = vadd.f32 %v2190_v48, %v1410_v62  ;;  %v1497_v35 = vmax.f32 %v1481_v27, 0.0  ;;  %v1998_v27 = vmul.f32 %v1988_v5, %v1988_v5  ;;  %2477 = vmatpush3.bf16.msra.mxu0 %v2567_v22 }
 0x223   :  { %v1500_v33 = vmax.f32 %v1484_v28, 0.0  ;;  %v1995_v28 = vpop.xlane.xlu1 %1994  ;;  %v1993_v62 = vpop.xlane.xlu0 %1992  ;;  %2478 = vmatprep.subr.bf16.mxu0 %v2768_v29 }
 0x224   :  { %v1498_v44 = vmax.f32 %v1482_v39, 0.0  ;;  %v1997_v39 = vmul.f32 0.03125, %v1995_v28 }
 0x225   :  { %v1512_v52 = vpack.c.bf16 %v1500_v33, %v1499_v46  ;;  %v1996_v46 = vmul.f32 0.03125, %v1993_v62 }
 0x226   :  { %v1511_v4 = vpack.c.bf16 %v1498_v44, %v1497_v35  ;;  %v2568_v44 = vld [vmem:[%s4066_s12 + $0x8] sm:$0xff]  }
 0x227   :  { %v2000_v35 = vsub.f32 %v1996_v46, %v1998_v27  ;;  %2479 = vmatpush3.bf16.msra.mxu0 %v2568_v44 }
 0x228   :  { %2424 = vmatprep.mubr.bf16.mxu1 %v1511_v4  ;;  %2480 = vmatprep.subr.bf16.mxu0 %v2768_v29 }
 0x229   :  { %2425 = vmatmul.mubr.bf16.gmra.mrb[4].mxu1 %v1512_v52  ;;  %v2002_v4 = vmax.f32 %v2000_v35, 0.0 }
 0x22e   :  { %v2398_v26 = vpop.f32.mrb[8].mxu0 }
 0x22f   :  { %v1487_v53 = vadd.f32 %v2398_v26, %v2190_v48  ;;  %v1423_v8 = vpop.f32.mrb[9].mxu0 }
 0x230   :  { %v1485_v31 = vadd.f32 %v2190_v48, %v1423_v8  ;;  %v2399_v49 = vpop.f32.mrb[10].mxu0  ;;  %v2569_v8 = vld [vmem:[%s4066_s12 + $0x10] sm:$0xff]  }
 0x231   :  { %v1488_v24 = vadd.f32 %v2399_v49, %v2190_v48  ;;  %v1426_v14 = vpop.f32.mrb[11].mxu0  ;;  %v1503_v25 = vmax.f32 %v1487_v53, 0.0  ;;  %v2006_v53 = vadd.f32 1e-05, %v2002_v4  ;;  %2481 = vmatpush3.bf16.msra.mxu0 %v2569_v8  ;;  %v3766_v49 = vld [vmem:[%s4065_s11] ss:$0 sm:$0xff] }
 0x232   :  { %v1486_v37 = vadd.f32 %v2190_v48, %v1426_v14  ;;  %v1501_v63 = vmax.f32 %v1485_v31, 0.0  ;;  %2482 = vmatprep.subr.bf16.mxu0 %v2768_v29  ;;  %v2570_v31 = vld [vmem:[%s4066_s12 + $0x18] sm:$0xff]   ;;  %v2571_v14 = vld [vmem:[%s4066_s12 + $0x20] sm:$0xff]  }
 0x233   :  { %v1504_v54 = vmax.f32 %v1488_v24, 0.0 }
 0x234   :  { %v1502_v18 = vmax.f32 %v1486_v37, 0.0 }
 0x235   :  { %v1514_v51 = vpack.c.bf16 %v1504_v54, %v1503_v25  ;;  %2483 = vmatpush3.bf16.msra.mxu0 %v2570_v31 }
 0x236   :  { %v1513_v15 = vpack.c.bf16 %v1502_v18, %v1501_v63  ;;  %2484 = vmatprep.subr.bf16.mxu0 %v2768_v29  ;;  %v2005_v18 = vsub.f32 %v3726_v36, %v1989_v9 }
 0x238   :  { %2428 = vmatprep.mubr.bf16.mxu1 %v1513_v15 }
 0x239   :  { %2429 = vmatmul.mubr.bf16.gmra.mrb[8].mxu1 %v1514_v51  ;;  %v2004_v51 = vsub.f32 %v3731_v58, %v1988_v5  ;;  %2485 = vmatpush3.bf16.msra.mxu0 %v2571_v14 }
 0x23a   :  { %2486 = vmatprep.subr.bf16.mxu0 %v2768_v29 }
 0x23e   :  { %v2402_v38 = vpop.f32.mrb[12].mxu0 }
 0x23f   :  { %v1491_v55 = vadd.f32 %v2402_v38, %v2190_v48  ;;  %v1439_v61 = vpop.f32.mrb[13].mxu0 }
 0x240   :  { %v1489_v7 = vadd.f32 %v2190_v48, %v1439_v61  ;;  %v2403_v12 = vpop.f32.mrb[14].mxu0 }
 0x241   :  { %v1492_v41 = vadd.f32 %v2403_v12, %v2190_v48  ;;  %v1442_v3 = vpop.f32.mrb[15].mxu0  ;;  %v1507_v0 = vmax.f32 %v1491_v55, 0.0 }
 0x242   :  { %v1490_v19 = vadd.f32 %v2190_v48, %v1442_v3  ;;  %v1505_v11 = vmax.f32 %v1489_v7, 0.0  ;;  %v1999_v48 = vmul.f32 %v1989_v9, %v1989_v9  ;;  %v2572_v3 = vld [vmem:[%s4066_s12 + $0x28] sm:$0xff]  }
 0x243   :  { %v1508_v13 = vmax.f32 %v1492_v41, 0.0  ;;  %2487 = vmatpush3.bf16.msra.mxu0 %v2572_v3 }
 0x244   :  { %v1506_v10 = vmax.f32 %v1490_v19, 0.0  ;;  %v2001_v33 = vsub.f32 %v1997_v39, %v1999_v48  ;;  %2488 = vmatprep.subr.bf16.mxu0 %v2768_v29 }
 0x245   :  { %v1516_v47 = vpack.c.bf16 %v1508_v13, %v1507_v0 }
 0x246   :  { %v1515_v20 = vpack.c.bf16 %v1506_v10, %v1505_v11  ;;  %v2003_v52 = vmax.f32 %v2001_v33, 0.0  ;;  %v2573_v11 = vld [vmem:[%s4066_s12 + $0x30] sm:$0xff]  }
 0x247   :  { %2489 = vmatpush3.bf16.msra.mxu0 %v2573_v11 }
 0x248   :  { %2432 = vmatprep.mubr.bf16.mxu1 %v1515_v20  ;;  %v2007_v26 = vadd.f32 1e-05, %v2003_v52  ;;  %2490 = vmatprep.subr.bf16.mxu0 %v2768_v29 }
 0x249   :  { %2433 = vmatmul.mubr.bf16.gmra.mrb[12].mxu1 %v1516_v47  ;;  %v2208_v47 = vld [vmem:[%s4068_s14] ss:$0 sm:$0xff]  ;;  %s4078_s14 = sld [smem:[#allocation10_spill]] }
 0x24a   :  { %2671 = vrsqrt.f32 %v2007_v26  ;;  %2452 = vmatprep.mubr.msk.bf16.mxu1 %vm2769_vm0, %v2768_v29 }
 0x24b   :  { %2673 = vrsqrt.f32 %v2006_v53 }
 0x254   :  { %v2672_v15 = vpop.eup %2671 }
 0x255   :  { %v2674_v7 = vpop.eup %2673  ;;  %v2011_v0 = vmul.f32 %v2672_v15, %v2005_v18 }
 0x256   :  { %v2010_v13 = vmul.f32 %v2674_v7, %v2004_v51 }
 0x2ec   :  { %v2422_v24 = vpop.f32.mrb[0].mxu1 }
 0x2ed   :  { %v3773_v37 = vadd.f32 %v2422_v24, %v3766_v49  ;;  %v1622_v25 = vpop.f32.mrb[1].mxu1 }
 0x2ee   :  { %v3776_v54 = vadd.f32 %v3766_v49, %v1622_v25  ;;  %v2423_v63 = vpop.f32.mrb[2].mxu1 }
 0x2ef   :  { %v1687_v38 = vadd.f32 %v3566_v57, %v3773_v37  ;;  %v3783_v55 = vadd.f32 %v2423_v63, %v3766_v49  ;;  %v1625_v61 = vpop.f32.mrb[3].mxu1 }
 0x2f0   :  { %v1685_v12 = vadd.f32 %v3537_v30, %v3776_v54  ;;  %v3789_v41 = vadd.f32 %v3766_v49, %v1625_v61  ;;  %v2207_v30 = vld [vmem:[%s4067_s13] ss:$0 sm:$0xff] }
 0x2f1   :  { %1703 = vst [vmem:[#allocation6 + $0x10] sm:$0xff] %v1687_v38  ;;  %v1688_v57 = vadd.f32 %v3549_v34, %v3783_v55  ;;  %v2019_v34 = vmul.f32 %v2207_v30, %v2011_v0  ;;  %v2018_v10 = vmul.f32 %v2207_v30, %v2010_v13 }
 0x2f2   :  { %1701 = vst [vmem:[#allocation6] sm:$0xff] %v1685_v12  ;;  %v1686_v19 = vadd.f32 %v3522_v17, %v3789_v41  ;;  %v2574_v17 = vld [vmem:[%s4066_s12 + $0x38] sm:$0xff]  }
 0x2f3   :  { %1704 = vst [vmem:[#allocation6 + $0x18] sm:$0xff] %v1688_v57  ;;  %2491 = vmatpush3.bf16.msra.mxu0 %v2574_v17  ;;  %v2026_v20 = vadd.f32 %v2208_v47, %v2018_v10  ;;  %v2027_v56 = vadd.f32 %v2208_v47, %v2019_v34 }
 0x2f4   :  { %1702 = vst [vmem:[#allocation6 + $0x8] sm:$0xff] %v1686_v19 }
 0x2f5   :  { %v2028_v40 = vmax.f32 %v2026_v20, 0.0  ;;  %v2029_v9 = vmax.f32 %v2027_v56, 0.0 }
 0x2f7   :  { %v2032_v28 = vpack.c.bf16 %v2029_v9, %v2028_v40 }
 0x2f9   :  { %2493 = vmatmul.mubr.bf16.vlgmr.msra.gmra.mrb[16].mxu0 %v2032_v28 }
 0x2fc   :  { %v2426_v23 = vpop.f32.mrb[4].mxu1 }
 0x2fd   :  { %v3813_v5 = vadd.f32 %v2426_v23, %v3766_v49  ;;  %v1638_v48 = vpop.f32.mrb[5].mxu1 }
 0x2fe   :  { %v3816_v27 = vadd.f32 %v3766_v49, %v1638_v48  ;;  %v2427_v22 = vpop.f32.mrb[6].mxu1 }
 0x2ff   :  { %v1691_v62 = vadd.f32 %v3619_v16, %v3813_v5  ;;  %v3821_v39 = vadd.f32 %v2427_v22, %v3766_v49  ;;  %v1641_v46 = vpop.f32.mrb[7].mxu1 }
 0x300   :  { %v1689_v33 = vadd.f32 %v3599_v45, %v3816_v27  ;;  %v3826_v35 = vadd.f32 %v3766_v49, %v1641_v46 }
 0x301   :  { %1707 = vst [vmem:[#allocation6 + $0x30] sm:$0xff] %v1691_v62  ;;  %v1692_v44 = vadd.f32 %v3611_v42, %v3821_v39 }
 0x302   :  { %1705 = vst [vmem:[#allocation6 + $0x20] sm:$0xff] %v1689_v33  ;;  %v1690_v52 = vadd.f32 %v3588_v60, %v3826_v35 }
 0x303   :  { %1708 = vst [vmem:[#allocation6 + $0x38] sm:$0xff] %v1692_v44 }
 0x304   :  { %1706 = vst [vmem:[#allocation6 + $0x28] sm:$0xff] %v1690_v52 }
 0x30c   :  { %v2430_v16 = vpop.f32.mrb[8].mxu1 }
 0x30d   :  { %v3833_v4 = vadd.f32 %v2430_v16, %v3766_v49  ;;  %v1654_v26 = vpop.f32.mrb[9].mxu1 }
 0x30e   :  { %v3836_v45 = vadd.f32 %v3766_v49, %v1654_v26  ;;  %v2431_v53 = vpop.f32.mrb[10].mxu1 }
 0x30f   :  { %v1695_v8 = vadd.f32 %v3670_v59, %v3833_v4  ;;  %v3841_v42 = vadd.f32 %v2431_v53, %v3766_v49  ;;  %v1657_v31 = vpop.f32.mrb[11].mxu1  ;;  %v1718_v59 = vstv %s4078_s14 }
 0x310   :  { %v1693_v60 = vadd.f32 %v3651_v2, %v3836_v45  ;;  %v3846_v24 = vadd.f32 %v3766_v49, %v1657_v31  ;;  %v3856_v63 = vmul.f32 %v1718_v59, %v3813_v5  ;;  %v3859_v2 = vmul.f32 %v1718_v59, %v3816_v27 }
 0x311   :  { %1711 = vst [vmem:[#allocation6 + $0x50] sm:$0xff] %v1695_v8  ;;  %v1696_v14 = vadd.f32 %v3658_v1, %v3841_v42  ;;  %v3862_v18 = vmul.f32 %v1718_v59, %v3773_v37  ;;  %v3865_v1 = vmul.f32 %v1718_v59, %v3821_v39  ;;  %v3871_v51 = vmul.f32 %v1718_v59, %v3783_v55 }
 0x312   :  { %1709 = vst [vmem:[#allocation6 + $0x40] sm:$0xff] %v1693_v60  ;;  %v1694_v25 = vadd.f32 %v3640_v50, %v3846_v24  ;;  %v3868_v50 = vmul.f32 %v1718_v59, %v3776_v54  ;;  %v3874_v15 = vmul.f32 %v1718_v59, %v3789_v41  ;;  %v3877_v38 = vmul.f32 %v1718_v59, %v3826_v35 }
 0x313   :  { %1712 = vst [vmem:[#allocation6 + $0x58] sm:$0xff] %v1696_v14  ;;  %v1753_v7 = vmax.f32 %v3862_v18, %v3856_v63  ;;  %v3882_v12 = vmul.f32 %v1718_v59, %v3833_v4  ;;  %v3885_v3 = vmul.f32 %v1718_v59, %v3841_v42  ;;  %v3893_v13 = vmul.f32 %v1718_v59, %v3836_v45 }
 0x314   :  { %1710 = vst [vmem:[#allocation6 + $0x48] sm:$0xff] %v1694_v25  ;;  %v1751_v0 = vmax.f32 %v3868_v50, %v3859_v2  ;;  %v3896_v30 = vmul.f32 %v1718_v59, %v3846_v24  ;;  %v1754_v10 = vmax.f32 %v3871_v51, %v3865_v1  ;;  %v1752_v23 = vmax.f32 %v3874_v15, %v3877_v38 }
 0x315   :  { %v1735_v60 = vlaneseq }
 0x316   :  { %v1758_v22 = vmax.f32 %v1754_v10, %v3885_v3  ;;  %v1755_v46 = vmax.f32 %v1751_v0, %v3893_v13 }
 0x31c   :  { %v2434_v61 = vpop.f32.mrb[12].mxu1 }
 0x31d   :  { %v3888_v57 = vadd.f32 %v2434_v61, %v3766_v49  ;;  %v1670_v19 = vpop.f32.mrb[13].mxu1  ;;  %v3933_v61 = vshrl.u32 %v1735_v60, 7 }
 0x31e   :  { %v3899_v11 = vadd.f32 %v3766_v49, %v1670_v19  ;;  %v2435_v34 = vpop.f32.mrb[14].mxu1 }
 0x31f   :  { %v1699_v17 = vadd.f32 %v3706_v43, %v3888_v57  ;;  %v3906_v47 = vmul.f32 %v1718_v59, %v3888_v57  ;;  %v3909_v20 = vadd.f32 %v2435_v34, %v3766_v49  ;;  %v1673_v56 = vpop.f32.mrb[15].mxu1  ;;  %v1757_v43 = vmax.f32 %v1753_v7, %v3882_v12 }
 0x320   :  { %v1697_v40 = vadd.f32 %v3691_v32, %v3899_v11  ;;  %v1731_v9 = vmul.f32 %v1718_v59, %v3899_v11  ;;  %v3917_v48 = vadd.f32 %v3766_v49, %v1673_v56  ;;  %v1756_v32 = vmax.f32 %v1752_v23, %v3896_v30 }
 0x321   :  { %1715 = vst [vmem:[#allocation6 + $0x70] sm:$0xff] %v1699_v17  ;;  %v1700_v28 = vadd.f32 %v3698_v6, %v3909_v20  ;;  %v3924_v62 = vmul.f32 %v1718_v59, %v3909_v20  ;;  %v1761_v44 = vmax.f32 %v1757_v43, %v3906_v47  ;;  %v1779_v0 = vsub.s32 0, %v3933_v61 }
 0x322   :  { %1713 = vst [vmem:[#allocation6 + $0x60] sm:$0xff] %v1697_v40  ;;  %v1698_v49 = vadd.f32 %v3684_v21, %v3917_v48  ;;  %v1732_v33 = vmul.f32 %v1718_v59, %v3917_v48  ;;  %v1759_v16 = vmax.f32 %v1755_v46, %v1731_v9  ;;  %v1750_v59 = vld [vmem:[#allocation2] sm:$0x1] }
 0x323   :  { %1716 = vst [vmem:[#allocation6 + $0x78] sm:$0xff] %v1700_v28  ;;  %v1762_v52 = vmax.f32 %v1758_v22, %v3924_v62 }
 0x324   :  { %1714 = vst [vmem:[#allocation6 + $0x68] sm:$0xff] %v1698_v49  ;;  %v1760_v6 = vmax.f32 %v1756_v32, %v1732_v33 }
 0x325   :  { %v1764_v26 = vmax.f32 %v1761_v44, %v1762_v52 }
 0x326   :  { %v1763_v53 = vmax.f32 %v1759_v16, %v1760_v6 }
 0x328   :  { %v1765_v8 = vmax.f32 %v1763_v53, %v1764_v26 }
 0x32a   :  { %v1766_v31 = vrot.slane %v1765_v8, 4 }
 0x32c   :  { %v1767_v14 = vmax.f32 %v1765_v8, %v1766_v31 }
 0x32e   :  { %v1768_v25 = vrot.slane %v1767_v14, 2 }
 0x330   :  { %v1769_v21 = vmax.f32 %v1767_v14, %v1768_v25 }
 0x332   :  { %v1770_v7 = vrot.slane %v1769_v21, 1 }
 0x334   :  { %v1771_v19 = vmax.f32 %v1769_v21, %v1770_v7 }
 0x336   :  { %v1772_v34 = vmax.f32 %v1750_v59, %v1771_v19 }
 0x338   :  { %v3938_v10 = vrot.slane %v1772_v34, %v1779_v0  ;;  %1966 = vst [vmem:[#allocation2] sm:$0x1] %v1772_v34  ;;  %v1773_v17 = vsub.f32 %v1750_v59, %v1772_v34 }
 0x33a   :  { %v1794_v56 = vsub.f32 %v1731_v9, %v3938_v10  ;;  %v1795_v23 = vsub.f32 %v1732_v33, %v3938_v10  ;;  %v1782_v40 = vsub.f32 %v3868_v50, %v3938_v10  ;;  %v1783_v43 = vsub.f32 %v3874_v15, %v3938_v10 }
 0x33b   :  { %v1784_v22 = vsub.f32 %v3862_v18, %v3938_v10  ;;  %v1785_v28 = vsub.f32 %v3871_v51, %v3938_v10  ;;  %v1786_v33 = vsub.f32 %v3859_v2, %v3938_v10  ;;  %v1787_v15 = vsub.f32 %v3877_v38, %v3938_v10 }
 0x33c   :  { %v1822_v46 = vmul.f32 1.442695, %v1794_v56  ;;  %v1824_v32 = vmul.f32 1.442695, %v1795_v23  ;;  %v1798_v49 = vmul.f32 1.442695, %v1782_v40  ;;  %v1796_v18 = vsub.f32 %v3906_v47, %v3938_v10 }
 0x33d   :  { %v1800_v44 = vmul.f32 1.442695, %v1783_v43  ;;  %v1802_v9 = vmul.f32 1.442695, %v1784_v22  ;;  %v1804_v50 = vmul.f32 1.442695, %v1785_v28  ;;  %v1788_v51 = vsub.f32 %v3856_v63, %v3938_v10 }
 0x33e   :  { %2675 = vpow2.f32 %v1822_v46  ;;  %v1797_v52 = vsub.f32 %v3924_v62, %v3938_v10  ;;  %v1806_v16 = vmul.f32 1.442695, %v1786_v33  ;;  %v1789_v2 = vsub.f32 %v3865_v1, %v3938_v10 }
 0x33f   :  { %2677 = vpow2.f32 %v1824_v32  ;;  %v1808_v6 = vmul.f32 1.442695, %v1787_v15  ;;  %v1790_v38 = vsub.f32 %v3893_v13, %v3938_v10  ;;  %v1810_v26 = vmul.f32 1.442695, %v1788_v51 }
 0x340   :  { %2679 = vpow2.f32 %v1798_v49  ;;  %v1812_v47 = vmul.f32 1.442695, %v1789_v2  ;;  %v1791_v63 = vsub.f32 %v3896_v30, %v3938_v10  ;;  %v1826_v62 = vmul.f32 1.442695, %v1796_v18 }
 0x341   :  { %2681 = vpow2.f32 %v1800_v44  ;;  %v1814_v53 = vmul.f32 1.442695, %v1790_v38  ;;  %v1792_v13 = vsub.f32 %v3882_v12, %v3938_v10  ;;  %v1828_v60 = vmul.f32 1.442695, %v1797_v52 }
 0x342   :  { %2683 = vpow2.f32 %v1802_v9  ;;  %v1774_v21 = vmul.f32 1.442695, %v1773_v17  ;;  %v1816_v59 = vmul.f32 1.442695, %v1791_v63 }
 0x343   :  { %2685 = vpow2.f32 %v1804_v50 }
 0x344   :  { %2687 = vpow2.f32 %v1806_v16 }
 0x345   :  { %2689 = vpow2.f32 %v1808_v6 }
 0x346   :  { %2691 = vpow2.f32 %v1810_v26 }
 0x347   :  { %2693 = vpow2.f32 %v1812_v47 }
 0x348   :  { %v3966_v8 = vpop.eup %2675  ;;  %2695 = vpow2.f32 %v1814_v53 }
 0x349   :  { %v2678_v31 = vpop.eup %2677  ;;  %v3970_v1 = vmul.f32 %v3966_v8, %v3899_v11  ;;  %v1793_v11 = vsub.f32 %v3885_v3, %v3938_v10  ;;  %2697 = vpow2.f32 %v1826_v62 }
 0x34a   :  { %v2680_v14 = vpop.eup %2679  ;;  %v3975_v25 = vmul.f32 %v2678_v31, %v3917_v48  ;;  %v1846_v30 = vpack.c.bf16 %v2678_v31, %v3966_v8  ;;  %2699 = vpow2.f32 %v1828_v60  ;;  %v1818_v48 = vmul.f32 1.442695, %v1792_v13 }
 0x34b   :  { %v2682_v7 = vpop.eup %2681  ;;  %2701 = vpow2.f32 %v1774_v21  ;;  %v1820_v17 = vmul.f32 1.442695, %v1793_v11  ;;  %v1897_v6 = vmul.f32 %v2680_v14, %v3776_v54  ;;  %v2770_v8 = vmov 1.0|1.0  }
 0x34c   :  { %v2684_v19 = vpop.eup %2683  ;;  %v1919_v34 = vpack.c.bf16 %v3975_v25, %v3970_v1  ;;  %v1840_v12 = vpack.c.bf16 %v2682_v7, %v2680_v14  ;;  %2703 = vpow2.f32 %v1816_v59  ;;  %v1898_v38 = vmul.f32 %v2682_v7, %v3789_v41 }
 0x34d   :  { %v2686_v56 = vpop.eup %2685  ;;  %2705 = vpow2.f32 %v1818_v48  ;;  %v1899_v63 = vmul.f32 %v2684_v19, %v3773_v37 }
 0x34e   :  { %2437 = vmatpush3.bf16.msra.mxu1 %v1840_v12  ;;  %v2688_v23 = vpop.eup %2687  ;;  %v1841_v40 = vpack.c.bf16 %v2686_v56, %v2684_v19  ;;  %2707 = vpow2.f32 %v1820_v17  ;;  %v1913_v47 = vpack.c.bf16 %v1898_v38, %v1897_v6  ;;  %v1900_v53 = vmul.f32 %v2686_v56, %v3783_v55 }
 0x34f   :  { %2438 = vmatprep.subr.bf16.mxu1 %v2768_v29  ;;  %v2690_v43 = vpop.eup %2689  ;;  %v1901_v41 = vmul.f32 %v2688_v23, %v3816_v27 }
 0x350   :  { %v2692_v3 = vpop.eup %2691  ;;  %v1842_v22 = vpack.c.bf16 %v2690_v43, %v2688_v23  ;;  %v1914_v54 = vpack.c.bf16 %v1900_v53, %v1899_v63 }
 0x351   :  { %v2694_v10 = vpop.eup %2693  ;;  %v1903_v55 = vmul.f32 %v2692_v3, %v3813_v5 }
 0x352   :  { %2439 = vmatpush3.bf16.msra.mxu1 %v1841_v40  ;;  %v2696_v28 = vpop.eup %2695  ;;  %v1843_v9 = vpack.c.bf16 %v2694_v10, %v2692_v3  ;;  %v1904_v62 = vmul.f32 %v2694_v10, %v3821_v39 }
 0x353   :  { %2440 = vmatprep.subr.bf16.mxu1 %v2768_v29  ;;  %v2698_v46 = vpop.eup %2697  ;;  %v1905_v13 = vmul.f32 %v2696_v28, %v3836_v45 }
 0x354   :  { %v2700_v32 = vpop.eup %2699  ;;  %v1911_v49 = vmul.f32 %v2698_v46, %v3888_v57  ;;  %v1916_v31 = vpack.c.bf16 %v1904_v62, %v1903_v55 }
 0x355   :  { %v2702_v44 = vpop.eup %2701  ;;  %v1847_v33 = vpack.c.bf16 %v2700_v32, %v2698_v46  ;;  %v1912_v50 = vmul.f32 %v2700_v32, %v3909_v20  ;;  %v1737_v20 = vadd.s32 8, %v3933_v61 }
 0x356   :  { %2441 = vmatpush3.bf16.msra.mxu1 %v1842_v22  ;;  %v2704_v15 = vpop.eup %2703  ;;  %v3989_v18 = vrot.slane %v2702_v44, %v1779_v0  ;;  %v2200_v0 = vld [vmem:[%s4079_s10] ss:$0 sm:$0xff] }
 0x357   :  { %2442 = vmatprep.subr.bf16.mxu1 %v2768_v29  ;;  %v1920_v51 = vpack.c.bf16 %v1912_v50, %v1911_v49  ;;  %v2706_v52 = vpop.eup %2705  ;;  %v1844_v16 = vpack.c.bf16 %v2704_v15, %v2696_v28  ;;  %vm1743_vm1 = vcmp.eq.s32.totalorder %v3933_v61, %v2200_v0  ;;  %vm1744_vm2 = vcmp.eq.s32.totalorder %v1737_v20, %v2200_v0 }
 0x358   :  { %v2708_v2 = vpop.eup %2707  ;;  %vm4002_vm3 = vmpackc.low %vm1744_vm2, %vm1743_vm1  ;;  %v1902_v61 = vmul.f32 %v2690_v43, %v3826_v35  ;;  %v1906_v60 = vmul.f32 %v2704_v15, %v3846_v24  ;;  %v1907_v35 = vmul.f32 %v2706_v52, %v3833_v4 }
 0x359   :  { %v1845_v57 = vpack.c.bf16 %v2708_v2, %v2706_v52  ;;  %v1908_v14 = vmul.f32 %v2708_v2, %v3841_v42 }
 0x35a   :  { %2443 = vmatpush3.bf16.msra.mxu1 %v1843_v9  ;;  %v1915_v37 = vpack.c.bf16 %v1902_v61, %v1901_v41  ;;  %v1917_v27 = vpack.c.bf16 %v1906_v60, %v1905_v13 }
 0x35b   :  { %2444 = vmatprep.subr.bf16.mxu1 %v2768_v29  ;;  %v1918_v5 = vpack.c.bf16 %v1908_v14, %v1907_v35 }
 0x35e   :  { %2445 = vmatpush3.bf16.msra.mxu1 %v1844_v16 }
 0x35f   :  { %2446 = vmatprep.subr.bf16.mxu1 %v2768_v29 }
 0x362   :  { %2447 = vmatpush3.bf16.msra.mxu1 %v1845_v57 }
 0x363   :  { %2448 = vmatprep.subr.bf16.mxu1 %v2768_v29 }
 0x366   :  { %2449 = vmatpush3.bf16.msra.mxu1 %v1846_v30 }
 0x367   :  { %2450 = vmatprep.subr.bf16.mxu1 %v2768_v29 }
 0x36a   :  { %2451 = vmatpush3.bf16.msra.mxu1 %v1847_v33 }
 0x36b   :  { %2456 = vmatprep.subr.bf16.mxu1 %v2768_v29 }
 0x36d   :  { %2453 = vmatmul.mubr.msk.bf16.vlgmr.msra.gmra.mrb[16].mxu1 %vm4002_vm3, %v2770_v8 }
 0x36e   :  { %2457 = vmatpush3.bf16.msra.mxu1 %v1913_v47  ;;  %2472 = vmatprep.mubr.msk.bf16.mxu1 %vm2769_vm0, %v2768_v29 }
 0x36f   :  { %2458 = vmatprep.subr.bf16.mxu1 %v2768_v29 }
 0x372   :  { %2459 = vmatpush3.bf16.msra.mxu1 %v1914_v54 }
 0x373   :  { %2460 = vmatprep.subr.bf16.mxu1 %v2768_v29 }
 0x376   :  { %2461 = vmatpush3.bf16.msra.mxu1 %v1915_v37 }
 0x377   :  { %2462 = vmatprep.subr.bf16.mxu1 %v2768_v29 }
 0x37a   :  { %2463 = vmatpush3.bf16.msra.mxu1 %v1916_v31 }
 0x37b   :  { %2464 = vmatprep.subr.bf16.mxu1 %v2768_v29 }
 0x37e   :  { %2465 = vmatpush3.bf16.msra.mxu1 %v1917_v27 }
 0x37f   :  { %2466 = vmatprep.subr.bf16.mxu1 %v2768_v29 }
 0x382   :  { %2467 = vmatpush3.bf16.msra.mxu1 %v1918_v5 }
 0x383   :  { %2468 = vmatprep.subr.bf16.mxu1 %v2768_v29 }
 0x386   :  { %2469 = vmatpush3.bf16.msra.mxu1 %v1919_v34 }
 0x387   :  { %2470 = vmatprep.subr.bf16.mxu1 %v2768_v29 }
 0x38a   :  { %2471 = vmatpush3.bf16.msra.mxu1 %v1920_v51 }
 0x38d   :  { %2473 = vmatmul.mubr.msk.bf16.vlgmr.msra.gmra.mrb[20].mxu1 %vm4002_vm3, %v2770_v8 }
 0x3cc   :  { %v2131_v39 = vpop.f32.mrb[16].mxu0 }
 0x3cd   :  { %v2494_v4 = vpop.f32.mrb[17].mxu0 }
 0x3ce   :  { %v2134_v45 = vpop.f32.mrb[18].mxu0 }
 0x3cf   :  { %v2495_v42 = vpop.f32.mrb[19].mxu0 }
 0x3d0   :  { %2754 = shalt.err (!%p2751_p4)
}
 0x3d1   :  { %s2755_s30 = scalar_lea.hbm %s4072_s18, 2048 }
 0x3d2   :  { %p2756_p5 = scmp.ne.s32.totalorder %s4072_s18, %s2755_s30  ;;  %p2759_p6 = scmp.lt.u32.totalorder %s2755_s30, %s4072_s18 }
 0x3d4   :  { %p2761_p7 = pnand %p2759_p6, %p2756_p5 }
 0x3d6   :  { %2764 = shalt.err (!%p2761_p7)
}
 0x3d7   :  { %s2772_s8 = smov 128   ;;  %s2773_s20 = smov 8   ;;  %v1838_v29 = vmul.f32 0.0, %v3989_v18 }
 0x3d8   :  { %2155 = dma.vmem_to_hbm [thread:$0]  %s2150_s9, 2048, %s4072_s18, [#allocation7], %s2772_s8, %s2772_s8, %s2773_s20  }
 0x440   :  { %v1882_v24 = vpop.f32.mrb[16].mxu1 }
 0x441   :  { %v1889_v1 = vadd.f32 %v1882_v24, %v1838_v29  ;;  %v2454_v25 = vpop.f32.mrb[17].mxu1 }
 0x442   :  { %v1885_v30 = vpop.f32.mrb[18].mxu1 }
 0x443   :  { %v1890_v21 = vadd.f32 %v1885_v30, %v1838_v29  ;;  %v2455_v7 = vpop.f32.mrb[19].mxu1  ;;  %v1976_v59 = vmax.f32 %v1889_v1, 1e-12 }
 0x445   :  { %v1977_v11 = vmax.f32 %v1890_v21, 1e-12  ;;  %2709 = vrcp.f32 %v1976_v59 }
 0x447   :  { %2711 = vrcp.f32 %v1977_v11 }
 0x44f   :  { %v2710_v56 = vpop.eup %2709 }
 0x451   :  { %v2712_v43 = vpop.eup %2711 }
 0x460   :  { %v1955_v19 = vpop.f32.mrb[20].mxu1 }
 0x461   :  { %v1962_v34 = vadd.f32 %v1955_v19, %v1838_v29  ;;  %v2474_v12 = vpop.f32.mrb[21].mxu1 }
 0x462   :  { %v1958_v48 = vpop.f32.mrb[22].mxu1 }
 0x463   :  { %v1979_v17 = vmul.f32 %v2710_v56, %v1962_v34  ;;  %v1963_v23 = vadd.f32 %v1958_v48, %v1838_v29  ;;  %v2475_v40 = vpop.f32.mrb[23].mxu1 }
 0x465   :  { %v2030_v3 = vadd.f32 %v1979_v17, %v3731_v58  ;;  %v1981_v10 = vmul.f32 %v2712_v43, %v1963_v23 }
 0x467   :  { %v2138_v22 = vadd.f32 %v2131_v39, %v2030_v3  ;;  %v2031_v28 = vadd.f32 %v1981_v10, %v3726_v36 }
 0x469   :  { %2140 = vst [vmem:[%s4071_s17] sm:$0xff] %v2138_v22  ;;  %v2139_v46 = vadd.f32 %v2134_v45, %v2031_v28 }
 0x46b   :  { %2141 = vst [vmem:[%s4071_s17 + $0x8] sm:$0xff] %v2139_v46 }
 0x46c   :  { %2765 = dma.done.wait [#allocation7], 2048  }
 0x46d   :  { %2766 = vsyncadd [#allocation7], 4294965248 }
 0x46e   :  { %2161 = vsyncpa [#allocation7], 1 }

</bundles_post_ra>
